<compile_context>
chip_gen: v7x
topology: tpu7x:2x2x1
jax: 0.10.0
libtpu: 0.0.40
codegen_flags: <defaults>
</compile_context>

<pallas_src>
import functools
import math

import jax
import jax.numpy as jnp
from jax.experimental import pallas as pl
from jax.experimental.pallas import tpu as pltpu

SELU_ALPHA = 1.6732632423543772848170429916717
SELU_SCALE = 1.0507009873554804934193349852946


def _round_up(x, m):
    return (x + m - 1) // m * m


# ----------------------------- Pallas kernel ------------------------------
#
# One kernel for every layer:   out = [selu](W @ P + b) [+ add]
#   w_ref : (R, K)   bf16  resident across the grid
#   p_ref : (K, tm)  bf16  patches tile (spatial on the lane axis)
#   b_ref : (R, 1)   f32   bias (zeros when the layer has none)
#   a_ref : (R, tm)  bf16  optional fused-add operand (residual / skip)
#   o_ref : (R, tm)        output tile (bf16 intermediates, f32 final)
#   s_ref : (R, tm)        optional second output (c1 + c2 in the encoder)

def _gemm_kernel(w_ref, p_ref, b_ref, *rest, apply_selu, mode):
    r = jnp.dot(w_ref[...], p_ref[...], preferred_element_type=jnp.float32)
    r = r + b_ref[...]
    if apply_selu:
        # exp() only sees the non-positive branch -> no overflow in the
        # discarded lane of the select.
        r = SELU_SCALE * jnp.where(
            r > 0, r, SELU_ALPHA * (jnp.exp(jnp.minimum(r, 0.0)) - 1.0))
    if mode == "plain":
        (o_ref,) = rest
        o_ref[...] = r.astype(o_ref.dtype)
    elif mode == "add":                      # selu(conv) + skip   (decoder)
        a_ref, o_ref = rest
        o_ref[...] = (r + a_ref[...].astype(jnp.float32)).astype(o_ref.dtype)
    else:                                    # "residual": emit c2 and c1 + c2
        a_ref, o_ref, s_ref = rest
        o_ref[...] = r.astype(o_ref.dtype)
        s_ref[...] = (r + a_ref[...].astype(jnp.float32)).astype(s_ref.dtype)


def fused_gemm(w, p, bias=None, add=None, apply_selu=True, mode="plain",
               out_dtype=jnp.bfloat16, tm_max=2048):
    """out^T (R, M) = w (R, K) @ p (K, M) with fused bias/SELU/add epilogue."""
    R, K = w.shape
    K2, M = p.shape
    assert K == K2
    if mode in ("add", "residual"):
        assert add is not None and add.shape == (R, M)

    if M <= tm_max:                           # one lane-aligned block
        Mp = _round_up(M, 128)
        tm = Mp
    else:
        tm = tm_max
        Mp = _round_up(M, tm)
    if Mp != M:
        p = jnp.pad(p, ((0, 0), (0, Mp - M)))
        if add is not None:
            add = jnp.pad(add, ((0, 0), (0, Mp - M)))

    b2 = (jnp.zeros((R, 1), jnp.float32) if bias is None
          else bias.reshape(R, 1).astype(jnp.float32))

    args = [w.astype(jnp.bfloat16), p.astype(jnp.bfloat16), b2]
    in_specs = [
        pl.BlockSpec((R, K), lambda i: (0, 0)),      # weights, resident
        pl.BlockSpec((K, tm), lambda i: (0, i)),     # patches tile
        pl.BlockSpec((R, 1), lambda i: (0, 0)),      # bias
    ]
    if mode in ("add", "residual"):
        args.append(add.astype(jnp.bfloat16))
        in_specs.append(pl.BlockSpec((R, tm), lambda i: (0, i)))

    out_spec = pl.BlockSpec((R, tm), lambda i: (0, i))
    if mode == "residual":
        out_shape = (jax.ShapeDtypeStruct((R, Mp), out_dtype),
                     jax.ShapeDtypeStruct((R, Mp), out_dtype))
        out_specs = (out_spec, out_spec)
    else:
        out_shape = jax.ShapeDtypeStruct((R, Mp), out_dtype)
        out_specs = out_spec

    out_bytes = 2 if out_dtype == jnp.bfloat16 else 4
    n_out = 2 if mode == "residual" else 1
    cost = pl.CostEstimate(
        flops=2 * R * K * Mp,
        transcendentals=(R * Mp) if apply_selu else 0,
        bytes_accessed=(K * Mp + R * K) * 2
        + (R * Mp * 2 if mode in ("add", "residual") else 0)
        + R * Mp * out_bytes * n_out,
    )

    out = pl.pallas_call(
        functools.partial(_gemm_kernel, apply_selu=apply_selu, mode=mode),
        out_shape=out_shape,
        grid=(Mp // tm,),
        in_specs=in_specs,
        out_specs=out_specs,
        compiler_params=pltpu.CompilerParams(
            dimension_semantics=("parallel",)),
        cost_estimate=cost,
    )(*args)

    if mode == "residual":
        return out[0][:, :M], out[1][:, :M]
    return out[:, :M]


# --------------------------- conv glue (im2col) ----------------------------

def _conv_patches(xp, k, stride, out_spatial):
    # xp: (N, C, Dp, Hp, Wp) padded, channels-first.
    # Returns patches^T of shape (k^3*C, N*Do*Ho*Wo); columns = (n, d, h, w).
    N, C = xp.shape[:2]
    Do, Ho, Wo = out_spatial
    cols = []
    for kd in range(k):
        for kh in range(k):
            for kw in range(k):
                cols.append(xp[:, :,
                               kd:kd + (Do - 1) * stride + 1:stride,
                               kh:kh + (Ho - 1) * stride + 1:stride,
                               kw:kw + (Wo - 1) * stride + 1:stride])
    pt = jnp.stack(cols, axis=0)                    # (T, N, C, Do, Ho, Wo)
    pt = jnp.transpose(pt, (0, 2, 1, 3, 4, 5))      # (T, C, N, Do, Ho, Wo)
    return pt.reshape(k ** 3 * C, N * Do * Ho * Wo)


def conv3d(x, w, bias=None, stride=1, padding=1, apply_selu=True,
           residual_add=None, out_dtype=jnp.bfloat16):
    # x: (N, Cin, D, H, W);  w: (Cout, Cin, k, k, k)  (PyTorch Conv3d layout)
    N, Cin, D, H, W = x.shape
    Cout, _, k, _, _ = w.shape
    xp = jnp.pad(x, ((0, 0), (0, 0), (padding, padding),
                     (padding, padding), (padding, padding)))
    Do = (D + 2 * padding - k) // stride + 1
    Ho = (H + 2 * padding - k) // stride + 1
    Wo = (W + 2 * padding - k) // stride + 1
    pT = _conv_patches(xp, k, stride, (Do, Ho, Wo))
    wT = jnp.transpose(w, (0, 2, 3, 4, 1)).reshape(Cout, k ** 3 * Cin)

    def unflatten(o):
        return jnp.transpose(o.reshape(Cout, N, Do, Ho, Wo), (1, 0, 2, 3, 4))

    if residual_add is not None:
        addT = jnp.transpose(residual_add, (1, 0, 2, 3, 4)).reshape(
            Cout, N * Do * Ho * Wo)
        c2T, sT = fused_gemm(wT, pT, bias, add=addT, apply_selu=apply_selu,
                             mode="residual", out_dtype=out_dtype)
        return unflatten(c2T), unflatten(sT)
    oT = fused_gemm(wT, pT, bias, apply_selu=apply_selu, mode="plain",
                    out_dtype=out_dtype)
    return unflatten(oT)


def conv_transpose3d(x, w, apply_selu=True, add=None, out_dtype=jnp.bfloat16):
    # ConvTranspose3d(k=3, stride=2, padding=1, output_padding=1, bias=False)
    # via sub-pixel decomposition: a single GEMM (8*Cout, 8*Cin) @ (8*Cin, M)
    # over the *un-dilated* input produces all 8 output parity groups.
    # x: (N, Cin, D, H, W);  w: (Cin, Cout, 3, 3, 3)  (PyTorch layout)
    N, Cin, D, H, W = x.shape
    _, Cout, k, _, _ = w.shape
    assert k == 3
    xp = jnp.pad(x, ((0, 0), (0, 0), (0, 1), (0, 1), (0, 1)))  # high-side pad
    cols = []
    for dd in (0, 1):
        for dh in (0, 1):
            for dw in (0, 1):
                cols.append(xp[:, :, dd:dd + D, dh:dh + H, dw:dw + W])
    M = N * D * H * W
    pT = jnp.transpose(jnp.stack(cols, axis=0),
                       (0, 2, 1, 3, 4, 5)).reshape(8 * Cin, M)

    # Per-dim tap selection S[parity, offset, kidx]:
    #   even outputs <- (offset 0, kidx 1); odd <- (0, kidx 2) + (1, kidx 0)
    S = (jnp.zeros((2, 2, 3), w.dtype)
         .at[0, 0, 1].set(1.0).at[1, 0, 2].set(1.0).at[1, 1, 0].set(1.0))
    Wbig = jnp.einsum('adk,bel,cfm,ijklm->abcjdefi', S, S, S, w)
    Wbig = Wbig.reshape(8 * Cout, 8 * Cin)

    if add is not None:       # skip tensor, (N, Cout, 2D, 2H, 2W)
        addT = jnp.transpose(
            add.reshape(N, Cout, D, 2, H, 2, W, 2),
            (3, 5, 7, 1, 0, 2, 4, 6)).reshape(8 * Cout, M)
        oT = fused_gemm(Wbig, pT, None, add=addT, apply_selu=apply_selu,
                        mode="add", out_dtype=out_dtype)
    else:
        oT = fused_gemm(Wbig, pT, None, apply_selu=apply_selu, mode="plain",
                        out_dtype=out_dtype)

    out = jnp.transpose(oT.reshape(2, 2, 2, Cout, N, D, H, W),
                        (4, 3, 5, 0, 6, 1, 7, 2))
    return out.reshape(N, Cout, 2 * D, 2 * H, 2 * W)


# ------------------------- parameters (deterministic) ----------------------

def init_params(key, features=4, volume_features=8, ksize=3):
    F_u, F_p, K = features, volume_features, ksize
    per_block = [
        (1 * F_p, 1 * F_u, 1 * F_u),
        (1 * F_u, 2 * F_u, 2 * F_u),
        (2 * F_u, 2 * F_u, 2 * F_u),
        (2 * F_u, 2 * F_u, 4 * F_u),
    ]
    deconvs = [
        (2 * F_u, 1 * F_u),
        (2 * F_u, 2 * F_u),
        (2 * F_u, 2 * F_u),
        (4 * F_u, 2 * F_u),
    ]
    keys = jax.random.split(key, 32)
    ki = iter(range(32))

    def conv_w(cout, cin):
        fan_in = cin * K ** 3
        return (jax.random.normal(keys[next(ki)], (cout, cin, K, K, K),
                                  jnp.float32) / math.sqrt(fan_in))

    def deconv_w(cin, cout):
        fan_in = cin * K ** 3
        return (jax.random.normal(keys[next(ki)], (cin, cout, K, K, K),
                                  jnp.float32) / math.sqrt(fan_in))

    params = {}
    for i, (fi, f, fo) in enumerate(per_block, start=1):
        params[f'resblock_{i}'] = {
            'w1': conv_w(f, fi),
            'w2': conv_w(f, f),
            'w3': conv_w(fo, f),
        }
    params['conv_b_1_w'] = conv_w(4 * F_u, 4 * F_u)
    params['conv_b_2_w'] = conv_w(4 * F_u, 4 * F_u)
    params['conv_b_2_b'] = 0.01 * jax.random.normal(
        keys[next(ki)], (4 * F_u,), jnp.float32)     # conv_3d_b_2 has bias
    for i, (fi, fo) in enumerate(deconvs, start=1):
        params[f'deconv_{i}_w'] = deconv_w(fi, fo)
    params['deconv_proj_w'] = deconv_w(F_u, 1)
    return params


# ------------------------------- forward -----------------------------------

def resnet_regression_forward(volume_ncdhw, params):
    # Keep PyTorch's NCDHW (channels-first) layout end to end; the transposed
    # GEMM puts spatial on the lane axis, so channels-first is natural.
    nxt = volume_ncdhw.astype(jnp.bfloat16)
    residual = {}
    for l in range(1, 5):
        p = params[f'resblock_{l}']
        c1 = conv3d(nxt, p['w1'], stride=1, apply_selu=True)
        # conv_2 with the residual add fused into the epilogue:
        #   c2 = selu(conv2(c1));  s = c1 + c2   (one kernel, two outputs)
        c2, s = conv3d(c1, p['w2'], stride=1, apply_selu=True,
                       residual_add=c1)
        c3 = conv3d(s, p['w3'], stride=2, apply_selu=True)
        residual[l] = c2
        nxt = c3
    nxt = conv3d(nxt, params['conv_b_1_w'], stride=1, apply_selu=True)
    nxt = conv3d(nxt, params['conv_b_2_w'], bias=params['conv_b_2_b'],
                 stride=1, apply_selu=True)
    for l in reversed(range(1, 5)):
        # selu(deconv(x)) + skip, with the skip add fused into the epilogue
        nxt = conv_transpose3d(nxt, params[f'deconv_{l}_w'],
                               apply_selu=True, add=residual[l])
    proj = conv_transpose3d(nxt, params['deconv_proj_w'], apply_selu=False,
                            out_dtype=jnp.float32)
    return proj   # (N, 1, 2D, 2H, 2W) NCDHW, matching the PyTorch module


if __name__ == "__main__":
    key = jax.random.PRNGKey(0)
    k_in, k_params = jax.random.split(key)
    # config: features=4, volume_features=8, unary_ksize=3 (small test sizes)
    volume = jax.random.normal(k_in, (1, 8, 16, 16, 16), jnp.float32)  # NCDHW
    params = init_params(k_params, features=4, volume_features=8, ksize=3)

    fwd = jax.jit(resnet_regression_forward)
    out = jax.block_until_ready(fwd(volume, params))

    assert out.shape == (1, 1, 32, 32, 32), out.shape
    assert bool(jnp.all(jnp.isfinite(out)))
    print("KERNEL_OK")
</pallas_src>

<mosaic_0001>
module attributes {stable_mosaic.version = 11 : i64} {
  func.func @_gemm_kernel(%arg0: i32, %arg1: memref<4x216xbf16, #tpu.memory_space<vmem>>, %arg2: memref<216x2048xbf16, #tpu.memory_space<vmem>>, %arg3: memref<4x1xf32, #tpu.memory_space<vmem>>, %arg4: memref<4x2048xbf16, #tpu.memory_space<vmem>>) attributes {dimension_semantics = [#tpu.dimension_semantics<parallel>], iteration_bounds = array<i64: 2>, scalar_prefetch = 0 : i64, scratch_operands = 0 : i64, tpu.core_type = #tpu.core_type<tc>, window_params = [{pipeline_mode = #tpu.pipeline_mode<synchronous>, transform_indices = @transform_0, window_bounds = array<i64: 4, 216>}, {transform_indices = @transform_1, window_bounds = array<i64: 216, 2048>}, {pipeline_mode = #tpu.pipeline_mode<synchronous>, transform_indices = @transform_2, window_bounds = array<i64: 4, 1>}, {transform_indices = @transform_3, window_bounds = array<i64: 4, 2048>}]} {
    %c0 = arith.constant 0 : index
    %c0_0 = arith.constant 0 : index
    %0 = vector.load %arg1[%c0, %c0_0] : memref<4x216xbf16, #tpu.memory_space<vmem>>, vector<4x216xbf16>
    %c0_1 = arith.constant 0 : index
    %c0_2 = arith.constant 0 : index
    %1 = vector.load %arg2[%c0_1, %c0_2] : memref<216x2048xbf16, #tpu.memory_space<vmem>>, vector<216x2048xbf16>
    %cst = arith.constant dense<0.000000e+00> : vector<4x2048xf32>
    %2 = tpu.matmul %0, %1, %cst {dimension_numbers = #tpu.dot_dimension_numbers<[1], [0], [0], [1], [0, 0, 1, 1], [], []>} : vector<4x216xbf16>, vector<216x2048xbf16>, vector<4x2048xf32> -> vector<4x2048xf32>
    %c0_3 = arith.constant 0 : index
    %c0_4 = arith.constant 0 : index
    %3 = vector.load %arg3[%c0_3, %c0_4] : memref<4x1xf32, #tpu.memory_space<vmem>>, vector<4x1xf32>
    %4 = vector.broadcast %3 : vector<4x1xf32> to vector<4x2048xf32>
    %5 = arith.addf %2, %4 : vector<4x2048xf32>
    %cst_5 = arith.constant 0.000000e+00 : f32
    %6 = vector.broadcast %cst_5 : f32 to vector<4x2048xf32>
    %7 = arith.cmpf ogt, %5, %6 : vector<4x2048xf32>
    %cst_6 = arith.constant 0.000000e+00 : f32
    %8 = vector.broadcast %cst_6 : f32 to vector<4x2048xf32>
    %9 = arith.minimumf %5, %8 : vector<4x2048xf32>
    %10 = math.exp %9 : vector<4x2048xf32>
    %cst_7 = arith.constant 1.000000e+00 : f32
    %11 = vector.broadcast %cst_7 : f32 to vector<4x2048xf32>
    %12 = arith.subf %10, %11 : vector<4x2048xf32>
    %cst_8 = arith.constant 1.67326319 : f32
    %13 = vector.broadcast %cst_8 : f32 to vector<4x2048xf32>
    %14 = arith.mulf %13, %12 : vector<4x2048xf32>
    %15 = arith.select %7, %5, %14 : vector<4x2048xi1>, vector<4x2048xf32>
    %cst_9 = arith.constant 1.05070102 : f32
    %16 = vector.broadcast %cst_9 : f32 to vector<4x2048xf32>
    %17 = arith.mulf %16, %15 : vector<4x2048xf32>
    %18 = arith.truncf %17 : vector<4x2048xf32> to vector<4x2048xbf16>
    %c0_10 = arith.constant 0 : index
    %c0_11 = arith.constant 0 : index
    %19 = vector.load %arg4[%c0_10, %c0_11] : memref<4x2048xbf16, #tpu.memory_space<vmem>>, vector<4x2048xbf16>
    tpu.vector_store %arg4[%c0_10, %c0_11], %18 {strides = array<i32>} : memref<4x2048xbf16, #tpu.memory_space<vmem>>, vector<4x2048xbf16>,
    return
  }
  func.func @transform_0(%arg0: i32) -> (i32, i32) {
    %c0_i32 = arith.constant 0 : i32
    %c0_i32_0 = arith.constant 0 : i32
    %c0_i32_1 = arith.constant 0 : i32
    return %c0_i32, %c0_i32_0 : i32, i32
  }
  func.func @transform_1(%arg0: i32) -> (i32, i32) {
    %c0_i32 = arith.constant 0 : i32
    %c0_i32_0 = arith.constant 0 : i32
    return %c0_i32, %arg0 : i32, i32
  }
  func.func @transform_2(%arg0: i32) -> (i32, i32) {
    %c0_i32 = arith.constant 0 : i32
    %c0_i32_0 = arith.constant 0 : i32
    %c0_i32_1 = arith.constant 0 : i32
    return %c0_i32, %c0_i32_0 : i32, i32
  }
  func.func @transform_3(%arg0: i32) -> (i32, i32) {
    %c0_i32 = arith.constant 0 : i32
    %c0_i32_0 = arith.constant 0 : i32
    return %c0_i32, %arg0 : i32, i32
  }
}

module attributes {stable_mosaic.version = 11 : i64} {
  func.func @_gemm_kernel(%arg0: i32, %arg1: memref<4x108xbf16, #tpu.memory_space<vmem>>, %arg2: memref<108x2048xbf16, #tpu.memory_space<vmem>>, %arg3: memref<4x1xf32, #tpu.memory_space<vmem>>, %arg4: memref<4x2048xbf16, #tpu.memory_space<vmem>>, %arg5: memref<4x2048xbf16, #tpu.memory_space<vmem>>, %arg6: memref<4x2048xbf16, #tpu.memory_space<vmem>>) attributes {dimension_semantics = [#tpu.dimension_semantics<parallel>], iteration_bounds = array<i64: 2>, scalar_prefetch = 0 : i64, scratch_operands = 0 : i64, tpu.core_type = #tpu.core_type<tc>, window_params = [{pipeline_mode = #tpu.pipeline_mode<synchronous>, transform_indices = @transform_0, window_bounds = array<i64: 4, 108>}, {transform_indices = @transform_1, window_bounds = array<i64: 108, 2048>}, {pipeline_mode = #tpu.pipeline_mode<synchronous>, transform_indices = @transform_2, window_bounds = array<i64: 4, 1>}, {transform_indices = @transform_3, window_bounds = array<i64: 4, 2048>}, {transform_indices = @transform_4, window_bounds = array<i64: 4, 2048>}, {transform_indices = @transform_5, window_bounds = array<i64: 4, 2048>}]} {
    %c0 = arith.constant 0 : index
    %c0_0 = arith.constant 0 : index
    %0 = vector.load %arg1[%c0, %c0_0] : memref<4x108xbf16, #tpu.memory_space<vmem>>, vector<4x108xbf16>
    %c0_1 = arith.constant 0 : index
    %c0_2 = arith.constant 0 : index
    %1 = vector.load %arg2[%c0_1, %c0_2] : memref<108x2048xbf16, #tpu.memory_space<vmem>>, vector<108x2048xbf16>
    %cst = arith.constant dense<0.000000e+00> : vector<4x2048xf32>
    %2 = tpu.matmul %0, %1, %cst {dimension_numbers = #tpu.dot_dimension_numbers<[1], [0], [0], [1], [0, 0, 1, 1], [], []>} : vector<4x108xbf16>, vector<108x2048xbf16>, vector<4x2048xf32> -> vector<4x2048xf32>
    %c0_3 = arith.constant 0 : index
    %c0_4 = arith.constant 0 : index
    %3 = vector.load %arg3[%c0_3, %c0_4] : memref<4x1xf32, #tpu.memory_space<vmem>>, vector<4x1xf32>
    %4 = vector.broadcast %3 : vector<4x1xf32> to vector<4x2048xf32>
    %5 = arith.addf %2, %4 : vector<4x2048xf32>
    %cst_5 = arith.constant 0.000000e+00 : f32
    %6 = vector.broadcast %cst_5 : f32 to vector<4x2048xf32>
    %7 = arith.cmpf ogt, %5, %6 : vector<4x2048xf32>
    %cst_6 = arith.constant 0.000000e+00 : f32
    %8 = vector.broadcast %cst_6 : f32 to vector<4x2048xf32>
    %9 = arith.minimumf %5, %8 : vector<4x2048xf32>
    %10 = math.exp %9 : vector<4x2048xf32>
    %cst_7 = arith.constant 1.000000e+00 : f32
    %11 = vector.broadcast %cst_7 : f32 to vector<4x2048xf32>
    %12 = arith.subf %10, %11 : vector<4x2048xf32>
    %cst_8 = arith.constant 1.67326319 : f32
    %13 = vector.broadcast %cst_8 : f32 to vector<4x2048xf32>
    %14 = arith.mulf %13, %12 : vector<4x2048xf32>
    %15 = arith.select %7, %5, %14 : vector<4x2048xi1>, vector<4x2048xf32>
    %cst_9 = arith.constant 1.05070102 : f32
    %16 = vector.broadcast %cst_9 : f32 to vector<4x2048xf32>
    %17 = arith.mulf %16, %15 : vector<4x2048xf32>
    %18 = arith.truncf %17 : vector<4x2048xf32> to vector<4x2048xbf16>
    %c0_10 = arith.constant 0 : index
    %c0_11 = arith.constant 0 : index
    %19 = vector.load %arg5[%c0_10, %c0_11] : memref<4x2048xbf16, #tpu.memory_space<vmem>>, vector<4x2048xbf16>
    tpu.vector_store %arg5[%c0_10, %c0_11], %18 {strides = array<i32>} : memref<4x2048xbf16, #tpu.memory_space<vmem>>, vector<4x2048xbf16>,
    %c0_12 = arith.constant 0 : index
    %c0_13 = arith.constant 0 : index
    %20 = vector.load %arg4[%c0_12, %c0_13] : memref<4x2048xbf16, #tpu.memory_space<vmem>>, vector<4x2048xbf16>
    %21 = arith.extf %20 : vector<4x2048xbf16> to vector<4x2048xf32>
    %22 = arith.addf %17, %21 : vector<4x2048xf32>
    %23 = arith.truncf %22 : vector<4x2048xf32> to vector<4x2048xbf16>
    %c0_14 = arith.constant 0 : index
    %c0_15 = arith.constant 0 : index
    %24 = vector.load %arg6[%c0_14, %c0_15] : memref<4x2048xbf16, #tpu.memory_space<vmem>>, vector<4x2048xbf16>
    tpu.vector_store %arg6[%c0_14, %c0_15], %23 {strides = array<i32>} : memref<4x2048xbf16, #tpu.memory_space<vmem>>, vector<4x2048xbf16>,
    return
  }
  func.func @transform_0(%arg0: i32) -> (i32, i32) {
    %c0_i32 = arith.constant 0 : i32
    %c0_i32_0 = arith.constant 0 : i32
    %c0_i32_1 = arith.constant 0 : i32
    return %c0_i32, %c0_i32_0 : i32, i32
  }
  func.func @transform_1(%arg0: i32) -> (i32, i32) {
    %c0_i32 = arith.constant 0 : i32
    %c0_i32_0 = arith.constant 0 : i32
    return %c0_i32, %arg0 : i32, i32
  }
  func.func @transform_2(%arg0: i32) -> (i32, i32) {
    %c0_i32 = arith.constant 0 : i32
    %c0_i32_0 = arith.constant 0 : i32
    %c0_i32_1 = arith.constant 0 : i32
    return %c0_i32, %c0_i32_0 : i32, i32
  }
  func.func @transform_3(%arg0: i32) -> (i32, i32) {
    %c0_i32 = arith.constant 0 : i32
    %c0_i32_0 = arith.constant 0 : i32
    return %c0_i32, %arg0 : i32, i32
  }
  func.func @transform_4(%arg0: i32) -> (i32, i32) {
    %c0_i32 = arith.constant 0 : i32
    %c0_i32_0 = arith.constant 0 : i32
    return %c0_i32, %arg0 : i32, i32
  }
  func.func @transform_5(%arg0: i32) -> (i32, i32) {
    %c0_i32 = arith.constant 0 : i32
    %c0_i32_0 = arith.constant 0 : i32
    return %c0_i32, %arg0 : i32, i32
  }
}

module attributes {stable_mosaic.version = 11 : i64} {
  func.func @_gemm_kernel(%arg0: i32, %arg1: memref<4x108xbf16, #tpu.memory_space<vmem>>, %arg2: memref<108x512xbf16, #tpu.memory_space<vmem>>, %arg3: memref<4x1xf32, #tpu.memory_space<vmem>>, %arg4: memref<4x512xbf16, #tpu.memory_space<vmem>>) attributes {dimension_semantics = [#tpu.dimension_semantics<parallel>], iteration_bounds = array<i64: 1>, scalar_prefetch = 0 : i64, scratch_operands = 0 : i64, tpu.core_type = #tpu.core_type<tc>, window_params = [{pipeline_mode = #tpu.pipeline_mode<synchronous>, transform_indices = @transform_0, window_bounds = array<i64: 4, 108>}, {transform_indices = @transform_1, window_bounds = array<i64: 108, 512>}, {pipeline_mode = #tpu.pipeline_mode<synchronous>, transform_indices = @transform_2, window_bounds = array<i64: 4, 1>}, {transform_indices = @transform_3, window_bounds = array<i64: 4, 512>}]} {
    %c0 = arith.constant 0 : index
    %c0_0 = arith.constant 0 : index
    %0 = vector.load %arg1[%c0, %c0_0] : memref<4x108xbf16, #tpu.memory_space<vmem>>, vector<4x108xbf16>
    %c0_1 = arith.constant 0 : index
    %c0_2 = arith.constant 0 : index
    %1 = vector.load %arg2[%c0_1, %c0_2] : memref<108x512xbf16, #tpu.memory_space<vmem>>, vector<108x512xbf16>
    %cst = arith.constant dense<0.000000e+00> : vector<4x512xf32>
    %2 = tpu.matmul %0, %1, %cst {dimension_numbers = #tpu.dot_dimension_numbers<[1], [0], [0], [1], [0, 0, 1, 1], [], []>} : vector<4x108xbf16>, vector<108x512xbf16>, vector<4x512xf32> -> vector<4x512xf32>
    %c0_3 = arith.constant 0 : index
    %c0_4 = arith.constant 0 : index
    %3 = vector.load %arg3[%c0_3, %c0_4] : memref<4x1xf32, #tpu.memory_space<vmem>>, vector<4x1xf32>
    %4 = vector.broadcast %3 : vector<4x1xf32> to vector<4x512xf32>
    %5 = arith.addf %2, %4 : vector<4x512xf32>
    %cst_5 = arith.constant 0.000000e+00 : f32
    %6 = vector.broadcast %cst_5 : f32 to vector<4x512xf32>
    %7 = arith.cmpf ogt, %5, %6 : vector<4x512xf32>
    %cst_6 = arith.constant 0.000000e+00 : f32
    %8 = vector.broadcast %cst_6 : f32 to vector<4x512xf32>
    %9 = arith.minimumf %5, %8 : vector<4x512xf32>
    %10 = math.exp %9 : vector<4x512xf32>
    %cst_7 = arith.constant 1.000000e+00 : f32
    %11 = vector.broadcast %cst_7 : f32 to vector<4x512xf32>
    %12 = arith.subf %10, %11 : vector<4x512xf32>
    %cst_8 = arith.constant 1.67326319 : f32
    %13 = vector.broadcast %cst_8 : f32 to vector<4x512xf32>
    %14 = arith.mulf %13, %12 : vector<4x512xf32>
    %15 = arith.select %7, %5, %14 : vector<4x512xi1>, vector<4x512xf32>
    %cst_9 = arith.constant 1.05070102 : f32
    %16 = vector.broadcast %cst_9 : f32 to vector<4x512xf32>
    %17 = arith.mulf %16, %15 : vector<4x512xf32>
    %18 = arith.truncf %17 : vector<4x512xf32> to vector<4x512xbf16>
    %c0_10 = arith.constant 0 : index
    %c0_11 = arith.constant 0 : index
    %19 = vector.load %arg4[%c0_10, %c0_11] : memref<4x512xbf16, #tpu.memory_space<vmem>>, vector<4x512xbf16>
    tpu.vector_store %arg4[%c0_10, %c0_11], %18 {strides = array<i32>} : memref<4x512xbf16, #tpu.memory_space<vmem>>, vector<4x512xbf16>,
    return
  }
  func.func @transform_0(%arg0: i32) -> (i32, i32) {
    %c0_i32 = arith.constant 0 : i32
    %c0_i32_0 = arith.constant 0 : i32
    %c0_i32_1 = arith.constant 0 : i32
    return %c0_i32, %c0_i32_0 : i32, i32
  }
  func.func @transform_1(%arg0: i32) -> (i32, i32) {
    %c0_i32 = arith.constant 0 : i32
    %c0_i32_0 = arith.constant 0 : i32
    return %c0_i32, %arg0 : i32, i32
  }
  func.func @transform_2(%arg0: i32) -> (i32, i32) {
    %c0_i32 = arith.constant 0 : i32
    %c0_i32_0 = arith.constant 0 : i32
    %c0_i32_1 = arith.constant 0 : i32
    return %c0_i32, %c0_i32_0 : i32, i32
  }
  func.func @transform_3(%arg0: i32) -> (i32, i32) {
    %c0_i32 = arith.constant 0 : i32
    %c0_i32_0 = arith.constant 0 : i32
    return %c0_i32, %arg0 : i32, i32
  }
}

module attributes {stable_mosaic.version = 11 : i64} {
  func.func @_gemm_kernel(%arg0: i32, %arg1: memref<8x108xbf16, #tpu.memory_space<vmem>>, %arg2: memref<108x512xbf16, #tpu.memory_space<vmem>>, %arg3: memref<8x1xf32, #tpu.memory_space<vmem>>, %arg4: memref<8x512xbf16, #tpu.memory_space<vmem>>) attributes {dimension_semantics = [#tpu.dimension_semantics<parallel>], iteration_bounds = array<i64: 1>, scalar_prefetch = 0 : i64, scratch_operands = 0 : i64, tpu.core_type = #tpu.core_type<tc>, window_params = [{pipeline_mode = #tpu.pipeline_mode<synchronous>, transform_indices = @transform_0, window_bounds = array<i64: 8, 108>}, {transform_indices = @transform_1, window_bounds = array<i64: 108, 512>}, {pipeline_mode = #tpu.pipeline_mode<synchronous>, transform_indices = @transform_2, window_bounds = array<i64: 8, 1>}, {transform_indices = @transform_3, window_bounds = array<i64: 8, 512>}]} {
    %c0 = arith.constant 0 : index
    %c0_0 = arith.constant 0 : index
    %0 = vector.load %arg1[%c0, %c0_0] : memref<8x108xbf16, #tpu.memory_space<vmem>>, vector<8x108xbf16>
    %c0_1 = arith.constant 0 : index
    %c0_2 = arith.constant 0 : index
    %1 = vector.load %arg2[%c0_1, %c0_2] : memref<108x512xbf16, #tpu.memory_space<vmem>>, vector<108x512xbf16>
    %cst = arith.constant dense<0.000000e+00> : vector<8x512xf32>
    %2 = tpu.matmul %0, %1, %cst {dimension_numbers = #tpu.dot_dimension_numbers<[1], [0], [0], [1], [0, 0, 1, 1], [], []>} : vector<8x108xbf16>, vector<108x512xbf16>, vector<8x512xf32> -> vector<8x512xf32>
    %c0_3 = arith.constant 0 : index
    %c0_4 = arith.constant 0 : index
    %3 = vector.load %arg3[%c0_3, %c0_4] : memref<8x1xf32, #tpu.memory_space<vmem>>, vector<8x1xf32>
    %4 = vector.broadcast %3 : vector<8x1xf32> to vector<8x512xf32>
    %5 = arith.addf %2, %4 : vector<8x512xf32>
    %cst_5 = arith.constant 0.000000e+00 : f32
    %6 = vector.broadcast %cst_5 : f32 to vector<8x512xf32>
    %7 = arith.cmpf ogt, %5, %6 : vector<8x512xf32>
    %cst_6 = arith.constant 0.000000e+00 : f32
    %8 = vector.broadcast %cst_6 : f32 to vector<8x512xf32>
    %9 = arith.minimumf %5, %8 : vector<8x512xf32>
    %10 = math.exp %9 : vector<8x512xf32>
    %cst_7 = arith.constant 1.000000e+00 : f32
    %11 = vector.broadcast %cst_7 : f32 to vector<8x512xf32>
    %12 = arith.subf %10, %11 : vector<8x512xf32>
    %cst_8 = arith.constant 1.67326319 : f32
    %13 = vector.broadcast %cst_8 : f32 to vector<8x512xf32>
    %14 = arith.mulf %13, %12 : vector<8x512xf32>
    %15 = arith.select %7, %5, %14 : vector<8x512xi1>, vector<8x512xf32>
    %cst_9 = arith.constant 1.05070102 : f32
    %16 = vector.broadcast %cst_9 : f32 to vector<8x512xf32>
    %17 = arith.mulf %16, %15 : vector<8x512xf32>
    %18 = arith.truncf %17 : vector<8x512xf32> to vector<8x512xbf16>
    %c0_10 = arith.constant 0 : index
    %c0_11 = arith.constant 0 : index
    %19 = vector.load %arg4[%c0_10, %c0_11] : memref<8x512xbf16, #tpu.memory_space<vmem>>, vector<8x512xbf16>
    tpu.vector_store %arg4[%c0_10, %c0_11], %18 {strides = array<i32>} : memref<8x512xbf16, #tpu.memory_space<vmem>>, vector<8x512xbf16>,
    return
  }
  func.func @transform_0(%arg0: i32) -> (i32, i32) {
    %c0_i32 = arith.constant 0 : i32
    %c0_i32_0 = arith.constant 0 : i32
    %c0_i32_1 = arith.constant 0 : i32
    return %c0_i32, %c0_i32_0 : i32, i32
  }
  func.func @transform_1(%arg0: i32) -> (i32, i32) {
    %c0_i32 = arith.constant 0 : i32
    %c0_i32_0 = arith.constant 0 : i32
    return %c0_i32, %arg0 : i32, i32
  }
  func.func @transform_2(%arg0: i32) -> (i32, i32) {
    %c0_i32 = arith.constant 0 : i32
    %c0_i32_0 = arith.constant 0 : i32
    %c0_i32_1 = arith.constant 0 : i32
    return %c0_i32, %c0_i32_0 : i32, i32
  }
  func.func @transform_3(%arg0: i32) -> (i32, i32) {
    %c0_i32 = arith.constant 0 : i32
    %c0_i32_0 = arith.constant 0 : i32
    return %c0_i32, %arg0 : i32, i32
  }
}

module attributes {stable_mosaic.version = 11 : i64} {
  func.func @_gemm_kernel(%arg0: i32, %arg1: memref<8x216xbf16, #tpu.memory_space<vmem>>, %arg2: memref<216x512xbf16, #tpu.memory_space<vmem>>, %arg3: memref<8x1xf32, #tpu.memory_space<vmem>>, %arg4: memref<8x512xbf16, #tpu.memory_space<vmem>>, %arg5: memref<8x512xbf16, #tpu.memory_space<vmem>>, %arg6: memref<8x512xbf16, #tpu.memory_space<vmem>>) attributes {dimension_semantics = [#tpu.dimension_semantics<parallel>], iteration_bounds = array<i64: 1>, scalar_prefetch = 0 : i64, scratch_operands = 0 : i64, tpu.core_type = #tpu.core_type<tc>, window_params = [{pipeline_mode = #tpu.pipeline_mode<synchronous>, transform_indices = @transform_0, window_bounds = array<i64: 8, 216>}, {transform_indices = @transform_1, window_bounds = array<i64: 216, 512>}, {pipeline_mode = #tpu.pipeline_mode<synchronous>, transform_indices = @transform_2, window_bounds = array<i64: 8, 1>}, {transform_indices = @transform_3, window_bounds = array<i64: 8, 512>}, {transform_indices = @transform_4, window_bounds = array<i64: 8, 512>}, {transform_indices = @transform_5, window_bounds = array<i64: 8, 512>}]} {
    %c0 = arith.constant 0 : index
    %c0_0 = arith.constant 0 : index
    %0 = vector.load %arg1[%c0, %c0_0] : memref<8x216xbf16, #tpu.memory_space<vmem>>, vector<8x216xbf16>
    %c0_1 = arith.constant 0 : index
    %c0_2 = arith.constant 0 : index
    %1 = vector.load %arg2[%c0_1, %c0_2] : memref<216x512xbf16, #tpu.memory_space<vmem>>, vector<216x512xbf16>
    %cst = arith.constant dense<0.000000e+00> : vector<8x512xf32>
    %2 = tpu.matmul %0, %1, %cst {dimension_numbers = #tpu.dot_dimension_numbers<[1], [0], [0], [1], [0, 0, 1, 1], [], []>} : vector<8x216xbf16>, vector<216x512xbf16>, vector<8x512xf32> -> vector<8x512xf32>
    %c0_3 = arith.constant 0 : index
    %c0_4 = arith.constant 0 : index
    %3 = vector.load %arg3[%c0_3, %c0_4] : memref<8x1xf32, #tpu.memory_space<vmem>>, vector<8x1xf32>
    %4 = vector.broadcast %3 : vector<8x1xf32> to vector<8x512xf32>
    %5 = arith.addf %2, %4 : vector<8x512xf32>
    %cst_5 = arith.constant 0.000000e+00 : f32
    %6 = vector.broadcast %cst_5 : f32 to vector<8x512xf32>
    %7 = arith.cmpf ogt, %5, %6 : vector<8x512xf32>
    %cst_6 = arith.constant 0.000000e+00 : f32
    %8 = vector.broadcast %cst_6 : f32 to vector<8x512xf32>
    %9 = arith.minimumf %5, %8 : vector<8x512xf32>
    %10 = math.exp %9 : vector<8x512xf32>
    %cst_7 = arith.constant 1.000000e+00 : f32
    %11 = vector.broadcast %cst_7 : f32 to vector<8x512xf32>
    %12 = arith.subf %10, %11 : vector<8x512xf32>
    %cst_8 = arith.constant 1.67326319 : f32
    %13 = vector.broadcast %cst_8 : f32 to vector<8x512xf32>
    %14 = arith.mulf %13, %12 : vector<8x512xf32>
    %15 = arith.select %7, %5, %14 : vector<8x512xi1>, vector<8x512xf32>
    %cst_9 = arith.constant 1.05070102 : f32
    %16 = vector.broadcast %cst_9 : f32 to vector<8x512xf32>
    %17 = arith.mulf %16, %15 : vector<8x512xf32>
    %18 = arith.truncf %17 : vector<8x512xf32> to vector<8x512xbf16>
    %c0_10 = arith.constant 0 : index
    %c0_11 = arith.constant 0 : index
    %19 = vector.load %arg5[%c0_10, %c0_11] : memref<8x512xbf16, #tpu.memory_space<vmem>>, vector<8x512xbf16>
    tpu.vector_store %arg5[%c0_10, %c0_11], %18 {strides = array<i32>} : memref<8x512xbf16, #tpu.memory_space<vmem>>, vector<8x512xbf16>,
    %c0_12 = arith.constant 0 : index
    %c0_13 = arith.constant 0 : index
    %20 = vector.load %arg4[%c0_12, %c0_13] : memref<8x512xbf16, #tpu.memory_space<vmem>>, vector<8x512xbf16>
    %21 = arith.extf %20 : vector<8x512xbf16> to vector<8x512xf32>
    %22 = arith.addf %17, %21 : vector<8x512xf32>
    %23 = arith.truncf %22 : vector<8x512xf32> to vector<8x512xbf16>
    %c0_14 = arith.constant 0 : index
    %c0_15 = arith.constant 0 : index
    %24 = vector.load %arg6[%c0_14, %c0_15] : memref<8x512xbf16, #tpu.memory_space<vmem>>, vector<8x512xbf16>
    tpu.vector_store %arg6[%c0_14, %c0_15], %23 {strides = array<i32>} : memref<8x512xbf16, #tpu.memory_space<vmem>>, vector<8x512xbf16>,
    return
  }
  func.func @transform_0(%arg0: i32) -> (i32, i32) {
    %c0_i32 = arith.constant 0 : i32
    %c0_i32_0 = arith.constant 0 : i32
    %c0_i32_1 = arith.constant 0 : i32
    return %c0_i32, %c0_i32_0 : i32, i32
  }
  func.func @transform_1(%arg0: i32) -> (i32, i32) {
    %c0_i32 = arith.constant 0 : i32
    %c0_i32_0 = arith.constant 0 : i32
    return %c0_i32, %arg0 : i32, i32
  }
  func.func @transform_2(%arg0: i32) -> (i32, i32) {
    %c0_i32 = arith.constant 0 : i32
    %c0_i32_0 = arith.constant 0 : i32
    %c0_i32_1 = arith.constant 0 : i32
    return %c0_i32, %c0_i32_0 : i32, i32
  }
  func.func @transform_3(%arg0: i32) -> (i32, i32) {
    %c0_i32 = arith.constant 0 : i32
    %c0_i32_0 = arith.constant 0 : i32
    return %c0_i32, %arg0 : i32, i32
  }
  func.func @transform_4(%arg0: i32) -> (i32, i32) {
    %c0_i32 = arith.constant 0 : i32
    %c0_i32_0 = arith.constant 0 : i32
    return %c0_i32, %arg0 : i32, i32
  }
  func.func @transform_5(%arg0: i32) -> (i32, i32) {
    %c0_i32 = arith.constant 0 : i32
    %c0_i32_0 = arith.constant 0 : i32
    return %c0_i32, %arg0 : i32, i32
  }
}

module attributes {stable_mosaic.version = 11 : i64} {
  func.func @_gemm_kernel(%arg0: i32, %arg1: memref<8x216xbf16, #tpu.memory_space<vmem>>, %arg2: memref<216x128xbf16, #tpu.memory_space<vmem>>, %arg3: memref<8x1xf32, #tpu.memory_space<vmem>>, %arg4: memref<8x128xbf16, #tpu.memory_space<vmem>>) attributes {dimension_semantics = [#tpu.dimension_semantics<parallel>], iteration_bounds = array<i64: 1>, scalar_prefetch = 0 : i64, scratch_operands = 0 : i64, tpu.core_type = #tpu.core_type<tc>, window_params = [{pipeline_mode = #tpu.pipeline_mode<synchronous>, transform_indices = @transform_0, window_bounds = array<i64: 8, 216>}, {transform_indices = @transform_1, window_bounds = array<i64: 216, 128>}, {pipeline_mode = #tpu.pipeline_mode<synchronous>, transform_indices = @transform_2, window_bounds = array<i64: 8, 1>}, {transform_indices = @transform_3, window_bounds = array<i64: 8, 128>}]} {
    %c0 = arith.constant 0 : index
    %c0_0 = arith.constant 0 : index
    %0 = vector.load %arg1[%c0, %c0_0] : memref<8x216xbf16, #tpu.memory_space<vmem>>, vector<8x216xbf16>
    %c0_1 = arith.constant 0 : index
    %c0_2 = arith.constant 0 : index
    %1 = vector.load %arg2[%c0_1, %c0_2] : memref<216x128xbf16, #tpu.memory_space<vmem>>, vector<216x128xbf16>
    %cst = arith.constant dense<0.000000e+00> : vector<8x128xf32>
    %2 = tpu.matmul %0, %1, %cst {dimension_numbers = #tpu.dot_dimension_numbers<[1], [0], [0], [1], [0, 0, 1, 1], [], []>} : vector<8x216xbf16>, vector<216x128xbf16>, vector<8x128xf32> -> vector<8x128xf32>
    %c0_3 = arith.constant 0 : index
    %c0_4 = arith.constant 0 : index
    %3 = vector.load %arg3[%c0_3, %c0_4] : memref<8x1xf32, #tpu.memory_space<vmem>>, vector<8x1xf32>
    %4 = vector.broadcast %3 : vector<8x1xf32> to vector<8x128xf32>
    %5 = arith.addf %2, %4 : vector<8x128xf32>
    %cst_5 = arith.constant 0.000000e+00 : f32
    %6 = vector.broadcast %cst_5 : f32 to vector<8x128xf32>
    %7 = arith.cmpf ogt, %5, %6 : vector<8x128xf32>
    %cst_6 = arith.constant 0.000000e+00 : f32
    %8 = vector.broadcast %cst_6 : f32 to vector<8x128xf32>
    %9 = arith.minimumf %5, %8 : vector<8x128xf32>
    %10 = math.exp %9 : vector<8x128xf32>
    %cst_7 = arith.constant 1.000000e+00 : f32
    %11 = vector.broadcast %cst_7 : f32 to vector<8x128xf32>
    %12 = arith.subf %10, %11 : vector<8x128xf32>
    %cst_8 = arith.constant 1.67326319 : f32
    %13 = vector.broadcast %cst_8 : f32 to vector<8x128xf32>
    %14 = arith.mulf %13, %12 : vector<8x128xf32>
    %15 = arith.select %7, %5, %14 : vector<8x128xi1>, vector<8x128xf32>
    %cst_9 = arith.constant 1.05070102 : f32
    %16 = vector.broadcast %cst_9 : f32 to vector<8x128xf32>
    %17 = arith.mulf %16, %15 : vector<8x128xf32>
    %18 = arith.truncf %17 : vector<8x128xf32> to vector<8x128xbf16>
    %c0_10 = arith.constant 0 : index
    %c0_11 = arith.constant 0 : index
    %19 = vector.load %arg4[%c0_10, %c0_11] : memref<8x128xbf16, #tpu.memory_space<vmem>>, vector<8x128xbf16>
    tpu.vector_store %arg4[%c0_10, %c0_11], %18 {strides = array<i32>} : memref<8x128xbf16, #tpu.memory_space<vmem>>, vector<8x128xbf16>,
    return
  }
  func.func @transform_0(%arg0: i32) -> (i32, i32) {
    %c0_i32 = arith.constant 0 : i32
    %c0_i32_0 = arith.constant 0 : i32
    %c0_i32_1 = arith.constant 0 : i32
    return %c0_i32, %c0_i32_0 : i32, i32
  }
  func.func @transform_1(%arg0: i32) -> (i32, i32) {
    %c0_i32 = arith.constant 0 : i32
    %c0_i32_0 = arith.constant 0 : i32
    return %c0_i32, %arg0 : i32, i32
  }
  func.func @transform_2(%arg0: i32) -> (i32, i32) {
    %c0_i32 = arith.constant 0 : i32
    %c0_i32_0 = arith.constant 0 : i32
    %c0_i32_1 = arith.constant 0 : i32
    return %c0_i32, %c0_i32_0 : i32, i32
  }
  func.func @transform_3(%arg0: i32) -> (i32, i32) {
    %c0_i32 = arith.constant 0 : i32
    %c0_i32_0 = arith.constant 0 : i32
    return %c0_i32, %arg0 : i32, i32
  }
}

module attributes {stable_mosaic.version = 11 : i64} {
  func.func @_gemm_kernel(%arg0: i32, %arg1: memref<8x216xbf16, #tpu.memory_space<vmem>>, %arg2: memref<216x128xbf16, #tpu.memory_space<vmem>>, %arg3: memref<8x1xf32, #tpu.memory_space<vmem>>, %arg4: memref<8x128xbf16, #tpu.memory_space<vmem>>, %arg5: memref<8x128xbf16, #tpu.memory_space<vmem>>, %arg6: memref<8x128xbf16, #tpu.memory_space<vmem>>) attributes {dimension_semantics = [#tpu.dimension_semantics<parallel>], iteration_bounds = array<i64: 1>, scalar_prefetch = 0 : i64, scratch_operands = 0 : i64, tpu.core_type = #tpu.core_type<tc>, window_params = [{pipeline_mode = #tpu.pipeline_mode<synchronous>, transform_indices = @transform_0, window_bounds = array<i64: 8, 216>}, {transform_indices = @transform_1, window_bounds = array<i64: 216, 128>}, {pipeline_mode = #tpu.pipeline_mode<synchronous>, transform_indices = @transform_2, window_bounds = array<i64: 8, 1>}, {transform_indices = @transform_3, window_bounds = array<i64: 8, 128>}, {transform_indices = @transform_4, window_bounds = array<i64: 8, 128>}, {transform_indices = @transform_5, window_bounds = array<i64: 8, 128>}]} {
    %c0 = arith.constant 0 : index
    %c0_0 = arith.constant 0 : index
    %0 = vector.load %arg1[%c0, %c0_0] : memref<8x216xbf16, #tpu.memory_space<vmem>>, vector<8x216xbf16>
    %c0_1 = arith.constant 0 : index
    %c0_2 = arith.constant 0 : index
    %1 = vector.load %arg2[%c0_1, %c0_2] : memref<216x128xbf16, #tpu.memory_space<vmem>>, vector<216x128xbf16>
    %cst = arith.constant dense<0.000000e+00> : vector<8x128xf32>
    %2 = tpu.matmul %0, %1, %cst {dimension_numbers = #tpu.dot_dimension_numbers<[1], [0], [0], [1], [0, 0, 1, 1], [], []>} : vector<8x216xbf16>, vector<216x128xbf16>, vector<8x128xf32> -> vector<8x128xf32>
    %c0_3 = arith.constant 0 : index
    %c0_4 = arith.constant 0 : index
    %3 = vector.load %arg3[%c0_3, %c0_4] : memref<8x1xf32, #tpu.memory_space<vmem>>, vector<8x1xf32>
    %4 = vector.broadcast %3 : vector<8x1xf32> to vector<8x128xf32>
    %5 = arith.addf %2, %4 : vector<8x128xf32>
    %cst_5 = arith.constant 0.000000e+00 : f32
    %6 = vector.broadcast %cst_5 : f32 to vector<8x128xf32>
    %7 = arith.cmpf ogt, %5, %6 : vector<8x128xf32>
    %cst_6 = arith.constant 0.000000e+00 : f32
    %8 = vector.broadcast %cst_6 : f32 to vector<8x128xf32>
    %9 = arith.minimumf %5, %8 : vector<8x128xf32>
    %10 = math.exp %9 : vector<8x128xf32>
    %cst_7 = arith.constant 1.000000e+00 : f32
    %11 = vector.broadcast %cst_7 : f32 to vector<8x128xf32>
    %12 = arith.subf %10, %11 : vector<8x128xf32>
    %cst_8 = arith.constant 1.67326319 : f32
    %13 = vector.broadcast %cst_8 : f32 to vector<8x128xf32>
    %14 = arith.mulf %13, %12 : vector<8x128xf32>
    %15 = arith.select %7, %5, %14 : vector<8x128xi1>, vector<8x128xf32>
    %cst_9 = arith.constant 1.05070102 : f32
    %16 = vector.broadcast %cst_9 : f32 to vector<8x128xf32>
    %17 = arith.mulf %16, %15 : vector<8x128xf32>
    %18 = arith.truncf %17 : vector<8x128xf32> to vector<8x128xbf16>
    %c0_10 = arith.constant 0 : index
    %c0_11 = arith.constant 0 : index
    %19 = vector.load %arg5[%c0_10, %c0_11] : memref<8x128xbf16, #tpu.memory_space<vmem>>, vector<8x128xbf16>
    tpu.vector_store %arg5[%c0_10, %c0_11], %18 {strides = array<i32>} : memref<8x128xbf16, #tpu.memory_space<vmem>>, vector<8x128xbf16>,
    %c0_12 = arith.constant 0 : index
    %c0_13 = arith.constant 0 : index
    %20 = vector.load %arg4[%c0_12, %c0_13] : memref<8x128xbf16, #tpu.memory_space<vmem>>, vector<8x128xbf16>
    %21 = arith.extf %20 : vector<8x128xbf16> to vector<8x128xf32>
    %22 = arith.addf %17, %21 : vector<8x128xf32>
    %23 = arith.truncf %22 : vector<8x128xf32> to vector<8x128xbf16>
    %c0_14 = arith.constant 0 : index
    %c0_15 = arith.constant 0 : index
    %24 = vector.load %arg6[%c0_14, %c0_15] : memref<8x128xbf16, #tpu.memory_space<vmem>>, vector<8x128xbf16>
    tpu.vector_store %arg6[%c0_14, %c0_15], %23 {strides = array<i32>} : memref<8x128xbf16, #tpu.memory_space<vmem>>, vector<8x128xbf16>,
    return
  }
  func.func @transform_0(%arg0: i32) -> (i32, i32) {
    %c0_i32 = arith.constant 0 : i32
    %c0_i32_0 = arith.constant 0 : i32
    %c0_i32_1 = arith.constant 0 : i32
    return %c0_i32, %c0_i32_0 : i32, i32
  }
  func.func @transform_1(%arg0: i32) -> (i32, i32) {
    %c0_i32 = arith.constant 0 : i32
    %c0_i32_0 = arith.constant 0 : i32
    return %c0_i32, %arg0 : i32, i32
  }
  func.func @transform_2(%arg0: i32) -> (i32, i32) {
    %c0_i32 = arith.constant 0 : i32
    %c0_i32_0 = arith.constant 0 : i32
    %c0_i32_1 = arith.constant 0 : i32
    return %c0_i32, %c0_i32_0 : i32, i32
  }
  func.func @transform_3(%arg0: i32) -> (i32, i32) {
    %c0_i32 = arith.constant 0 : i32
    %c0_i32_0 = arith.constant 0 : i32
    return %c0_i32, %arg0 : i32, i32
  }
  func.func @transform_4(%arg0: i32) -> (i32, i32) {
    %c0_i32 = arith.constant 0 : i32
    %c0_i32_0 = arith.constant 0 : i32
    return %c0_i32, %arg0 : i32, i32
  }
  func.func @transform_5(%arg0: i32) -> (i32, i32) {
    %c0_i32 = arith.constant 0 : i32
    %c0_i32_0 = arith.constant 0 : i32
    return %c0_i32, %arg0 : i32, i32
  }
}

module attributes {stable_mosaic.version = 11 : i64} {
  func.func @_gemm_kernel(%arg0: i32, %arg1: memref<16x216xbf16, #tpu.memory_space<vmem>>, %arg2: memref<216x128xbf16, #tpu.memory_space<vmem>>, %arg3: memref<16x1xf32, #tpu.memory_space<vmem>>, %arg4: memref<16x128xbf16, #tpu.memory_space<vmem>>) attributes {dimension_semantics = [#tpu.dimension_semantics<parallel>], iteration_bounds = array<i64: 1>, scalar_prefetch = 0 : i64, scratch_operands = 0 : i64, tpu.core_type = #tpu.core_type<tc>, window_params = [{pipeline_mode = #tpu.pipeline_mode<synchronous>, transform_indices = @transform_0, window_bounds = array<i64: 16, 216>}, {transform_indices = @transform_1, window_bounds = array<i64: 216, 128>}, {pipeline_mode = #tpu.pipeline_mode<synchronous>, transform_indices = @transform_2, window_bounds = array<i64: 16, 1>}, {transform_indices = @transform_3, window_bounds = array<i64: 16, 128>}]} {
    %c0 = arith.constant 0 : index
    %c0_0 = arith.constant 0 : index
    %0 = vector.load %arg1[%c0, %c0_0] : memref<16x216xbf16, #tpu.memory_space<vmem>>, vector<16x216xbf16>
    %c0_1 = arith.constant 0 : index
    %c0_2 = arith.constant 0 : index
    %1 = vector.load %arg2[%c0_1, %c0_2] : memref<216x128xbf16, #tpu.memory_space<vmem>>, vector<216x128xbf16>
    %cst = arith.constant dense<0.000000e+00> : vector<16x128xf32>
    %2 = tpu.matmul %0, %1, %cst {dimension_numbers = #tpu.dot_dimension_numbers<[1], [0], [0], [1], [0, 0, 1, 1], [], []>} : vector<16x216xbf16>, vector<216x128xbf16>, vector<16x128xf32> -> vector<16x128xf32>
    %c0_3 = arith.constant 0 : index
    %c0_4 = arith.constant 0 : index
    %3 = vector.load %arg3[%c0_3, %c0_4] : memref<16x1xf32, #tpu.memory_space<vmem>>, vector<16x1xf32>
    %4 = vector.broadcast %3 : vector<16x1xf32> to vector<16x128xf32>
    %5 = arith.addf %2, %4 : vector<16x128xf32>
    %cst_5 = arith.constant 0.000000e+00 : f32
    %6 = vector.broadcast %cst_5 : f32 to vector<16x128xf32>
    %7 = arith.cmpf ogt, %5, %6 : vector<16x128xf32>
    %cst_6 = arith.constant 0.000000e+00 : f32
    %8 = vector.broadcast %cst_6 : f32 to vector<16x128xf32>
    %9 = arith.minimumf %5, %8 : vector<16x128xf32>
    %10 = math.exp %9 : vector<16x128xf32>
    %cst_7 = arith.constant 1.000000e+00 : f32
    %11 = vector.broadcast %cst_7 : f32 to vector<16x128xf32>
    %12 = arith.subf %10, %11 : vector<16x128xf32>
    %cst_8 = arith.constant 1.67326319 : f32
    %13 = vector.broadcast %cst_8 : f32 to vector<16x128xf32>
    %14 = arith.mulf %13, %12 : vector<16x128xf32>
    %15 = arith.select %7, %5, %14 : vector<16x128xi1>, vector<16x128xf32>
    %cst_9 = arith.constant 1.05070102 : f32
    %16 = vector.broadcast %cst_9 : f32 to vector<16x128xf32>
    %17 = arith.mulf %16, %15 : vector<16x128xf32>
    %18 = arith.truncf %17 : vector<16x128xf32> to vector<16x128xbf16>
    %c0_10 = arith.constant 0 : index
    %c0_11 = arith.constant 0 : index
    %19 = vector.load %arg4[%c0_10, %c0_11] : memref<16x128xbf16, #tpu.memory_space<vmem>>, vector<16x128xbf16>
    tpu.vector_store %arg4[%c0_10, %c0_11], %18 {strides = array<i32>} : memref<16x128xbf16, #tpu.memory_space<vmem>>, vector<16x128xbf16>,
    return
  }
  func.func @transform_0(%arg0: i32) -> (i32, i32) {
    %c0_i32 = arith.constant 0 : i32
    %c0_i32_0 = arith.constant 0 : i32
    %c0_i32_1 = arith.constant 0 : i32
    return %c0_i32, %c0_i32_0 : i32, i32
  }
  func.func @transform_1(%arg0: i32) -> (i32, i32) {
    %c0_i32 = arith.constant 0 : i32
    %c0_i32_0 = arith.constant 0 : i32
    return %c0_i32, %arg0 : i32, i32
  }
  func.func @transform_2(%arg0: i32) -> (i32, i32) {
    %c0_i32 = arith.constant 0 : i32
    %c0_i32_0 = arith.constant 0 : i32
    %c0_i32_1 = arith.constant 0 : i32
    return %c0_i32, %c0_i32_0 : i32, i32
  }
  func.func @transform_3(%arg0: i32) -> (i32, i32) {
    %c0_i32 = arith.constant 0 : i32
    %c0_i32_0 = arith.constant 0 : i32
    return %c0_i32, %arg0 : i32, i32
  }
}

module attributes {stable_mosaic.version = 11 : i64} {
  func.func @_gemm_kernel(%arg0: i32, %arg1: memref<16x432xbf16, #tpu.memory_space<vmem>>, %arg2: memref<432x128xbf16, #tpu.memory_space<vmem>>, %arg3: memref<16x1xf32, #tpu.memory_space<vmem>>, %arg4: memref<16x128xbf16, #tpu.memory_space<vmem>>) attributes {dimension_semantics = [#tpu.dimension_semantics<parallel>], iteration_bounds = array<i64: 1>, scalar_prefetch = 0 : i64, scratch_operands = 0 : i64, tpu.core_type = #tpu.core_type<tc>, window_params = [{pipeline_mode = #tpu.pipeline_mode<synchronous>, transform_indices = @transform_0, window_bounds = array<i64: 16, 432>}, {transform_indices = @transform_1, window_bounds = array<i64: 432, 128>}, {pipeline_mode = #tpu.pipeline_mode<synchronous>, transform_indices = @transform_2, window_bounds = array<i64: 16, 1>}, {transform_indices = @transform_3, window_bounds = array<i64: 16, 128>}]} {
    %c0 = arith.constant 0 : index
    %c0_0 = arith.constant 0 : index
    %0 = vector.load %arg1[%c0, %c0_0] : memref<16x432xbf16, #tpu.memory_space<vmem>>, vector<16x432xbf16>
    %c0_1 = arith.constant 0 : index
    %c0_2 = arith.constant 0 : index
    %1 = vector.load %arg2[%c0_1, %c0_2] : memref<432x128xbf16, #tpu.memory_space<vmem>>, vector<432x128xbf16>
    %cst = arith.constant dense<0.000000e+00> : vector<16x128xf32>
    %2 = tpu.matmul %0, %1, %cst {dimension_numbers = #tpu.dot_dimension_numbers<[1], [0], [0], [1], [0, 0, 1, 1], [], []>} : vector<16x432xbf16>, vector<432x128xbf16>, vector<16x128xf32> -> vector<16x128xf32>
    %c0_3 = arith.constant 0 : index
    %c0_4 = arith.constant 0 : index
    %3 = vector.load %arg3[%c0_3, %c0_4] : memref<16x1xf32, #tpu.memory_space<vmem>>, vector<16x1xf32>
    %4 = vector.broadcast %3 : vector<16x1xf32> to vector<16x128xf32>
    %5 = arith.addf %2, %4 : vector<16x128xf32>
    %cst_5 = arith.constant 0.000000e+00 : f32
    %6 = vector.broadcast %cst_5 : f32 to vector<16x128xf32>
    %7 = arith.cmpf ogt, %5, %6 : vector<16x128xf32>
    %cst_6 = arith.constant 0.000000e+00 : f32
    %8 = vector.broadcast %cst_6 : f32 to vector<16x128xf32>
    %9 = arith.minimumf %5, %8 : vector<16x128xf32>
    %10 = math.exp %9 : vector<16x128xf32>
    %cst_7 = arith.constant 1.000000e+00 : f32
    %11 = vector.broadcast %cst_7 : f32 to vector<16x128xf32>
    %12 = arith.subf %10, %11 : vector<16x128xf32>
    %cst_8 = arith.constant 1.67326319 : f32
    %13 = vector.broadcast %cst_8 : f32 to vector<16x128xf32>
    %14 = arith.mulf %13, %12 : vector<16x128xf32>
    %15 = arith.select %7, %5, %14 : vector<16x128xi1>, vector<16x128xf32>
    %cst_9 = arith.constant 1.05070102 : f32
    %16 = vector.broadcast %cst_9 : f32 to vector<16x128xf32>
    %17 = arith.mulf %16, %15 : vector<16x128xf32>
    %18 = arith.truncf %17 : vector<16x128xf32> to vector<16x128xbf16>
    %c0_10 = arith.constant 0 : index
    %c0_11 = arith.constant 0 : index
    %19 = vector.load %arg4[%c0_10, %c0_11] : memref<16x128xbf16, #tpu.memory_space<vmem>>, vector<16x128xbf16>
    tpu.vector_store %arg4[%c0_10, %c0_11], %18 {strides = array<i32>} : memref<16x128xbf16, #tpu.memory_space<vmem>>, vector<16x128xbf16>,
    return
  }
  func.func @transform_0(%arg0: i32) -> (i32, i32) {
    %c0_i32 = arith.constant 0 : i32
    %c0_i32_0 = arith.constant 0 : i32
    %c0_i32_1 = arith.constant 0 : i32
    return %c0_i32, %c0_i32_0 : i32, i32
  }
  func.func @transform_1(%arg0: i32) -> (i32, i32) {
    %c0_i32 = arith.constant 0 : i32
    %c0_i32_0 = arith.constant 0 : i32
    return %c0_i32, %arg0 : i32, i32
  }
  func.func @transform_2(%arg0: i32) -> (i32, i32) {
    %c0_i32 = arith.constant 0 : i32
    %c0_i32_0 = arith.constant 0 : i32
    %c0_i32_1 = arith.constant 0 : i32
    return %c0_i32, %c0_i32_0 : i32, i32
  }
  func.func @transform_3(%arg0: i32) -> (i32, i32) {
    %c0_i32 = arith.constant 0 : i32
    %c0_i32_0 = arith.constant 0 : i32
    return %c0_i32, %arg0 : i32, i32
  }
}

module attributes {stable_mosaic.version = 11 : i64} {
  func.func @_gemm_kernel(%arg0: i32, %arg1: memref<64x128xbf16, #tpu.memory_space<vmem>>, %arg2: memref<128x128xbf16, #tpu.memory_space<vmem>>, %arg3: memref<64x1xf32, #tpu.memory_space<vmem>>, %arg4: memref<64x128xbf16, #tpu.memory_space<vmem>>, %arg5: memref<64x128xbf16, #tpu.memory_space<vmem>>) attributes {dimension_semantics = [#tpu.dimension_semantics<parallel>], iteration_bounds = array<i64: 1>, scalar_prefetch = 0 : i64, scratch_operands = 0 : i64, tpu.core_type = #tpu.core_type<tc>, window_params = [{pipeline_mode = #tpu.pipeline_mode<synchronous>, transform_indices = @transform_0, window_bounds = array<i64: 64, 128>}, {transform_indices = @transform_1, window_bounds = array<i64: 128, 128>}, {pipeline_mode = #tpu.pipeline_mode<synchronous>, transform_indices = @transform_2, window_bounds = array<i64: 64, 1>}, {transform_indices = @transform_3, window_bounds = array<i64: 64, 128>}, {transform_indices = @transform_4, window_bounds = array<i64: 64, 128>}]} {
    %c0 = arith.constant 0 : index
    %c0_0 = arith.constant 0 : index
    %0 = vector.load %arg1[%c0, %c0_0] : memref<64x128xbf16, #tpu.memory_space<vmem>>, vector<64x128xbf16>
    %c0_1 = arith.constant 0 : index
    %c0_2 = arith.constant 0 : index
    %1 = vector.load %arg2[%c0_1, %c0_2] : memref<128x128xbf16, #tpu.memory_space<vmem>>, vector<128x128xbf16>
    %cst = arith.constant dense<0.000000e+00> : vector<64x128xf32>
    %2 = tpu.matmul %0, %1, %cst {dimension_numbers = #tpu.dot_dimension_numbers<[1], [0], [0], [1], [0, 0, 1, 1], [], []>} : vector<64x128xbf16>, vector<128x128xbf16>, vector<64x128xf32> -> vector<64x128xf32>
    %c0_3 = arith.constant 0 : index
    %c0_4 = arith.constant 0 : index
    %3 = vector.load %arg3[%c0_3, %c0_4] : memref<64x1xf32, #tpu.memory_space<vmem>>, vector<64x1xf32>
    %4 = vector.broadcast %3 : vector<64x1xf32> to vector<64x128xf32>
    %5 = arith.addf %2, %4 : vector<64x128xf32>
    %cst_5 = arith.constant 0.000000e+00 : f32
    %6 = vector.broadcast %cst_5 : f32 to vector<64x128xf32>
    %7 = arith.cmpf ogt, %5, %6 : vector<64x128xf32>
    %cst_6 = arith.constant 0.000000e+00 : f32
    %8 = vector.broadcast %cst_6 : f32 to vector<64x128xf32>
    %9 = arith.minimumf %5, %8 : vector<64x128xf32>
    %10 = math.exp %9 : vector<64x128xf32>
    %cst_7 = arith.constant 1.000000e+00 : f32
    %11 = vector.broadcast %cst_7 : f32 to vector<64x128xf32>
    %12 = arith.subf %10, %11 : vector<64x128xf32>
    %cst_8 = arith.constant 1.67326319 : f32
    %13 = vector.broadcast %cst_8 : f32 to vector<64x128xf32>
    %14 = arith.mulf %13, %12 : vector<64x128xf32>
    %15 = arith.select %7, %5, %14 : vector<64x128xi1>, vector<64x128xf32>
    %cst_9 = arith.constant 1.05070102 : f32
    %16 = vector.broadcast %cst_9 : f32 to vector<64x128xf32>
    %17 = arith.mulf %16, %15 : vector<64x128xf32>
    %c0_10 = arith.constant 0 : index
    %c0_11 = arith.constant 0 : index
    %18 = vector.load %arg4[%c0_10, %c0_11] : memref<64x128xbf16, #tpu.memory_space<vmem>>, vector<64x128xbf16>
    %19 = arith.extf %18 : vector<64x128xbf16> to vector<64x128xf32>
    %20 = arith.addf %17, %19 : vector<64x128xf32>
    %21 = arith.truncf %20 : vector<64x128xf32> to vector<64x128xbf16>
    %c0_12 = arith.constant 0 : index
    %c0_13 = arith.constant 0 : index
    %22 = vector.load %arg5[%c0_12, %c0_13] : memref<64x128xbf16, #tpu.memory_space<vmem>>, vector<64x128xbf16>
    tpu.vector_store %arg5[%c0_12, %c0_13], %21 {strides = array<i32>} : memref<64x128xbf16, #tpu.memory_space<vmem>>, vector<64x128xbf16>,
    return
  }
  func.func @transform_0(%arg0: i32) -> (i32, i32) {
    %c0_i32 = arith.constant 0 : i32
    %c0_i32_0 = arith.constant 0 : i32
    %c0_i32_1 = arith.constant 0 : i32
    return %c0_i32, %c0_i32_0 : i32, i32
  }
  func.func @transform_1(%arg0: i32) -> (i32, i32) {
    %c0_i32 = arith.constant 0 : i32
    %c0_i32_0 = arith.constant 0 : i32
    return %c0_i32, %arg0 : i32, i32
  }
  func.func @transform_2(%arg0: i32) -> (i32, i32) {
    %c0_i32 = arith.constant 0 : i32
    %c0_i32_0 = arith.constant 0 : i32
    %c0_i32_1 = arith.constant 0 : i32
    return %c0_i32, %c0_i32_0 : i32, i32
  }
  func.func @transform_3(%arg0: i32) -> (i32, i32) {
    %c0_i32 = arith.constant 0 : i32
    %c0_i32_0 = arith.constant 0 : i32
    return %c0_i32, %arg0 : i32, i32
  }
  func.func @transform_4(%arg0: i32) -> (i32, i32) {
    %c0_i32 = arith.constant 0 : i32
    %c0_i32_0 = arith.constant 0 : i32
    return %c0_i32, %arg0 : i32, i32
  }
}

module attributes {stable_mosaic.version = 11 : i64} {
  func.func @_gemm_kernel(%arg0: i32, %arg1: memref<64x64xbf16, #tpu.memory_space<vmem>>, %arg2: memref<64x128xbf16, #tpu.memory_space<vmem>>, %arg3: memref<64x1xf32, #tpu.memory_space<vmem>>, %arg4: memref<64x128xbf16, #tpu.memory_space<vmem>>, %arg5: memref<64x128xbf16, #tpu.memory_space<vmem>>) attributes {dimension_semantics = [#tpu.dimension_semantics<parallel>], iteration_bounds = array<i64: 1>, scalar_prefetch = 0 : i64, scratch_operands = 0 : i64, tpu.core_type = #tpu.core_type<tc>, window_params = [{pipeline_mode = #tpu.pipeline_mode<synchronous>, transform_indices = @transform_0, window_bounds = array<i64: 64, 64>}, {transform_indices = @transform_1, window_bounds = array<i64: 64, 128>}, {pipeline_mode = #tpu.pipeline_mode<synchronous>, transform_indices = @transform_2, window_bounds = array<i64: 64, 1>}, {transform_indices = @transform_3, window_bounds = array<i64: 64, 128>}, {transform_indices = @transform_4, window_bounds = array<i64: 64, 128>}]} {
    %c0 = arith.constant 0 : index
    %c0_0 = arith.constant 0 : index
    %0 = vector.load %arg1[%c0, %c0_0] : memref<64x64xbf16, #tpu.memory_space<vmem>>, vector<64x64xbf16>
    %c0_1 = arith.constant 0 : index
    %c0_2 = arith.constant 0 : index
    %1 = vector.load %arg2[%c0_1, %c0_2] : memref<64x128xbf16, #tpu.memory_space<vmem>>, vector<64x128xbf16>
    %cst = arith.constant dense<0.000000e+00> : vector<64x128xf32>
    %2 = tpu.matmul %0, %1, %cst {dimension_numbers = #tpu.dot_dimension_numbers<[1], [0], [0], [1], [0, 0, 1, 1], [], []>} : vector<64x64xbf16>, vector<64x128xbf16>, vector<64x128xf32> -> vector<64x128xf32>
    %c0_3 = arith.constant 0 : index
    %c0_4 = arith.constant 0 : index
    %3 = vector.load %arg3[%c0_3, %c0_4] : memref<64x1xf32, #tpu.memory_space<vmem>>, vector<64x1xf32>
    %4 = vector.broadcast %3 : vector<64x1xf32> to vector<64x128xf32>
    %5 = arith.addf %2, %4 : vector<64x128xf32>
    %cst_5 = arith.constant 0.000000e+00 : f32
    %6 = vector.broadcast %cst_5 : f32 to vector<64x128xf32>
    %7 = arith.cmpf ogt, %5, %6 : vector<64x128xf32>
    %cst_6 = arith.constant 0.000000e+00 : f32
    %8 = vector.broadcast %cst_6 : f32 to vector<64x128xf32>
    %9 = arith.minimumf %5, %8 : vector<64x128xf32>
    %10 = math.exp %9 : vector<64x128xf32>
    %cst_7 = arith.constant 1.000000e+00 : f32
    %11 = vector.broadcast %cst_7 : f32 to vector<64x128xf32>
    %12 = arith.subf %10, %11 : vector<64x128xf32>
    %cst_8 = arith.constant 1.67326319 : f32
    %13 = vector.broadcast %cst_8 : f32 to vector<64x128xf32>
    %14 = arith.mulf %13, %12 : vector<64x128xf32>
    %15 = arith.select %7, %5, %14 : vector<64x128xi1>, vector<64x128xf32>
    %cst_9 = arith.constant 1.05070102 : f32
    %16 = vector.broadcast %cst_9 : f32 to vector<64x128xf32>
    %17 = arith.mulf %16, %15 : vector<64x128xf32>
    %c0_10 = arith.constant 0 : index
    %c0_11 = arith.constant 0 : index
    %18 = vector.load %arg4[%c0_10, %c0_11] : memref<64x128xbf16, #tpu.memory_space<vmem>>, vector<64x128xbf16>
    %19 = arith.extf %18 : vector<64x128xbf16> to vector<64x128xf32>
    %20 = arith.addf %17, %19 : vector<64x128xf32>
    %21 = arith.truncf %20 : vector<64x128xf32> to vector<64x128xbf16>
    %c0_12 = arith.constant 0 : index
    %c0_13 = arith.constant 0 : index
    %22 = vector.load %arg5[%c0_12, %c0_13] : memref<64x128xbf16, #tpu.memory_space<vmem>>, vector<64x128xbf16>
    tpu.vector_store %arg5[%c0_12, %c0_13], %21 {strides = array<i32>} : memref<64x128xbf16, #tpu.memory_space<vmem>>, vector<64x128xbf16>,
    return
  }
  func.func @transform_0(%arg0: i32) -> (i32, i32) {
    %c0_i32 = arith.constant 0 : i32
    %c0_i32_0 = arith.constant 0 : i32
    %c0_i32_1 = arith.constant 0 : i32
    return %c0_i32, %c0_i32_0 : i32, i32
  }
  func.func @transform_1(%arg0: i32) -> (i32, i32) {
    %c0_i32 = arith.constant 0 : i32
    %c0_i32_0 = arith.constant 0 : i32
    return %c0_i32, %arg0 : i32, i32
  }
  func.func @transform_2(%arg0: i32) -> (i32, i32) {
    %c0_i32 = arith.constant 0 : i32
    %c0_i32_0 = arith.constant 0 : i32
    %c0_i32_1 = arith.constant 0 : i32
    return %c0_i32, %c0_i32_0 : i32, i32
  }
  func.func @transform_3(%arg0: i32) -> (i32, i32) {
    %c0_i32 = arith.constant 0 : i32
    %c0_i32_0 = arith.constant 0 : i32
    return %c0_i32, %arg0 : i32, i32
  }
  func.func @transform_4(%arg0: i32) -> (i32, i32) {
    %c0_i32 = arith.constant 0 : i32
    %c0_i32_0 = arith.constant 0 : i32
    return %c0_i32, %arg0 : i32, i32
  }
}

module attributes {stable_mosaic.version = 11 : i64} {
  func.func @_gemm_kernel(%arg0: i32, %arg1: memref<32x64xbf16, #tpu.memory_space<vmem>>, %arg2: memref<64x512xbf16, #tpu.memory_space<vmem>>, %arg3: memref<32x1xf32, #tpu.memory_space<vmem>>, %arg4: memref<32x512xbf16, #tpu.memory_space<vmem>>, %arg5: memref<32x512xbf16, #tpu.memory_space<vmem>>) attributes {dimension_semantics = [#tpu.dimension_semantics<parallel>], iteration_bounds = array<i64: 1>, scalar_prefetch = 0 : i64, scratch_operands = 0 : i64, tpu.core_type = #tpu.core_type<tc>, window_params = [{pipeline_mode = #tpu.pipeline_mode<synchronous>, transform_indices = @transform_0, window_bounds = array<i64: 32, 64>}, {transform_indices = @transform_1, window_bounds = array<i64: 64, 512>}, {pipeline_mode = #tpu.pipeline_mode<synchronous>, transform_indices = @transform_2, window_bounds = array<i64: 32, 1>}, {transform_indices = @transform_3, window_bounds = array<i64: 32, 512>}, {transform_indices = @transform_4, window_bounds = array<i64: 32, 512>}]} {
    %c0 = arith.constant 0 : index
    %c0_0 = arith.constant 0 : index
    %0 = vector.load %arg1[%c0, %c0_0] : memref<32x64xbf16, #tpu.memory_space<vmem>>, vector<32x64xbf16>
    %c0_1 = arith.constant 0 : index
    %c0_2 = arith.constant 0 : index
    %1 = vector.load %arg2[%c0_1, %c0_2] : memref<64x512xbf16, #tpu.memory_space<vmem>>, vector<64x512xbf16>
    %cst = arith.constant dense<0.000000e+00> : vector<32x512xf32>
    %2 = tpu.matmul %0, %1, %cst {dimension_numbers = #tpu.dot_dimension_numbers<[1], [0], [0], [1], [0, 0, 1, 1], [], []>} : vector<32x64xbf16>, vector<64x512xbf16>, vector<32x512xf32> -> vector<32x512xf32>
    %c0_3 = arith.constant 0 : index
    %c0_4 = arith.constant 0 : index
    %3 = vector.load %arg3[%c0_3, %c0_4] : memref<32x1xf32, #tpu.memory_space<vmem>>, vector<32x1xf32>
    %4 = vector.broadcast %3 : vector<32x1xf32> to vector<32x512xf32>
    %5 = arith.addf %2, %4 : vector<32x512xf32>
    %cst_5 = arith.constant 0.000000e+00 : f32
    %6 = vector.broadcast %cst_5 : f32 to vector<32x512xf32>
    %7 = arith.cmpf ogt, %5, %6 : vector<32x512xf32>
    %cst_6 = arith.constant 0.000000e+00 : f32
    %8 = vector.broadcast %cst_6 : f32 to vector<32x512xf32>
    %9 = arith.minimumf %5, %8 : vector<32x512xf32>
    %10 = math.exp %9 : vector<32x512xf32>
    %cst_7 = arith.constant 1.000000e+00 : f32
    %11 = vector.broadcast %cst_7 : f32 to vector<32x512xf32>
    %12 = arith.subf %10, %11 : vector<32x512xf32>
    %cst_8 = arith.constant 1.67326319 : f32
    %13 = vector.broadcast %cst_8 : f32 to vector<32x512xf32>
    %14 = arith.mulf %13, %12 : vector<32x512xf32>
    %15 = arith.select %7, %5, %14 : vector<32x512xi1>, vector<32x512xf32>
    %cst_9 = arith.constant 1.05070102 : f32
    %16 = vector.broadcast %cst_9 : f32 to vector<32x512xf32>
    %17 = arith.mulf %16, %15 : vector<32x512xf32>
    %c0_10 = arith.constant 0 : index
    %c0_11 = arith.constant 0 : index
    %18 = vector.load %arg4[%c0_10, %c0_11] : memref<32x512xbf16, #tpu.memory_space<vmem>>, vector<32x512xbf16>
    %19 = arith.extf %18 : vector<32x512xbf16> to vector<32x512xf32>
    %20 = arith.addf %17, %19 : vector<32x512xf32>
    %21 = arith.truncf %20 : vector<32x512xf32> to vector<32x512xbf16>
    %c0_12 = arith.constant 0 : index
    %c0_13 = arith.constant 0 : index
    %22 = vector.load %arg5[%c0_12, %c0_13] : memref<32x512xbf16, #tpu.memory_space<vmem>>, vector<32x512xbf16>
    tpu.vector_store %arg5[%c0_12, %c0_13], %21 {strides = array<i32>} : memref<32x512xbf16, #tpu.memory_space<vmem>>, vector<32x512xbf16>,
    return
  }
  func.func @transform_0(%arg0: i32) -> (i32, i32) {
    %c0_i32 = arith.constant 0 : i32
    %c0_i32_0 = arith.constant 0 : i32
    %c0_i32_1 = arith.constant 0 : i32
    return %c0_i32, %c0_i32_0 : i32, i32
  }
  func.func @transform_1(%arg0: i32) -> (i32, i32) {
    %c0_i32 = arith.constant 0 : i32
    %c0_i32_0 = arith.constant 0 : i32
    return %c0_i32, %arg0 : i32, i32
  }
  func.func @transform_2(%arg0: i32) -> (i32, i32) {
    %c0_i32 = arith.constant 0 : i32
    %c0_i32_0 = arith.constant 0 : i32
    %c0_i32_1 = arith.constant 0 : i32
    return %c0_i32, %c0_i32_0 : i32, i32
  }
  func.func @transform_3(%arg0: i32) -> (i32, i32) {
    %c0_i32 = arith.constant 0 : i32
    %c0_i32_0 = arith.constant 0 : i32
    return %c0_i32, %arg0 : i32, i32
  }
  func.func @transform_4(%arg0: i32) -> (i32, i32) {
    %c0_i32 = arith.constant 0 : i32
    %c0_i32_0 = arith.constant 0 : i32
    return %c0_i32, %arg0 : i32, i32
  }
}

module attributes {stable_mosaic.version = 11 : i64} {
  func.func @_gemm_kernel(%arg0: i32, %arg1: memref<8x32xbf16, #tpu.memory_space<vmem>>, %arg2: memref<32x2048xbf16, #tpu.memory_space<vmem>>, %arg3: memref<8x1xf32, #tpu.memory_space<vmem>>, %arg4: memref<8x2048xf32, #tpu.memory_space<vmem>>) attributes {dimension_semantics = [#tpu.dimension_semantics<parallel>], iteration_bounds = array<i64: 2>, scalar_prefetch = 0 : i64, scratch_operands = 0 : i64, tpu.core_type = #tpu.core_type<tc>, window_params = [{pipeline_mode = #tpu.pipeline_mode<synchronous>, transform_indices = @transform_0, window_bounds = array<i64: 8, 32>}, {transform_indices = @transform_1, window_bounds = array<i64: 32, 2048>}, {pipeline_mode = #tpu.pipeline_mode<synchronous>, transform_indices = @transform_2, window_bounds = array<i64: 8, 1>}, {transform_indices = @transform_3, window_bounds = array<i64: 8, 2048>}]} {
    %c0 = arith.constant 0 : index
    %c0_0 = arith.constant 0 : index
    %0 = vector.load %arg1[%c0, %c0_0] : memref<8x32xbf16, #tpu.memory_space<vmem>>, vector<8x32xbf16>
    %c0_1 = arith.constant 0 : index
    %c0_2 = arith.constant 0 : index
    %1 = vector.load %arg2[%c0_1, %c0_2] : memref<32x2048xbf16, #tpu.memory_space<vmem>>, vector<32x2048xbf16>
    %cst = arith.constant dense<0.000000e+00> : vector<8x2048xf32>
    %2 = tpu.matmul %0, %1, %cst {dimension_numbers = #tpu.dot_dimension_numbers<[1], [0], [0], [1], [0, 0, 1, 1], [], []>} : vector<8x32xbf16>, vector<32x2048xbf16>, vector<8x2048xf32> -> vector<8x2048xf32>
    %c0_3 = arith.constant 0 : index
    %c0_4 = arith.constant 0 : index
    %3 = vector.load %arg3[%c0_3, %c0_4] : memref<8x1xf32, #tpu.memory_space<vmem>>, vector<8x1xf32>
    %4 = vector.broadcast %3 : vector<8x1xf32> to vector<8x2048xf32>
    %5 = arith.addf %2, %4 : vector<8x2048xf32>
    %c0_5 = arith.constant 0 : index
    %c0_6 = arith.constant 0 : index
    %6 = vector.load %arg4[%c0_5, %c0_6] : memref<8x2048xf32, #tpu.memory_space<vmem>>, vector<8x2048xf32>
    tpu.vector_store %arg4[%c0_5, %c0_6], %5 {strides = array<i32>} : memref<8x2048xf32, #tpu.memory_space<vmem>>, vector<8x2048xf32>,
    return
  }
  func.func @transform_0(%arg0: i32) -> (i32, i32) {
    %c0_i32 = arith.constant 0 : i32
    %c0_i32_0 = arith.constant 0 : i32
    %c0_i32_1 = arith.constant 0 : i32
    return %c0_i32, %c0_i32_0 : i32, i32
  }
  func.func @transform_1(%arg0: i32) -> (i32, i32) {
    %c0_i32 = arith.constant 0 : i32
    %c0_i32_0 = arith.constant 0 : i32
    return %c0_i32, %arg0 : i32, i32
  }
  func.func @transform_2(%arg0: i32) -> (i32, i32) {
    %c0_i32 = arith.constant 0 : i32
    %c0_i32_0 = arith.constant 0 : i32
    %c0_i32_1 = arith.constant 0 : i32
    return %c0_i32, %c0_i32_0 : i32, i32
  }
  func.func @transform_3(%arg0: i32) -> (i32, i32) {
    %c0_i32 = arith.constant 0 : i32
    %c0_i32_0 = arith.constant 0 : i32
    return %c0_i32, %arg0 : i32, i32
  }
}

</mosaic_0001>

<bundles_post_ra>
// kernel: resnet_regression_forward.19
= control target key start
LH: loop header
LB: loop body
LE: loop exit
PB: predicated region body
PF: predicated region fallthrough
CT: control target
= control target key end

     0   :  { %s3017_s12 = smov 0   ;;  %s3019_s13 = smov 0   ;;  %s3815_s0 = inlined_call_operand.vmem [shape: bf16[4,216], index: 0, kind: input, shape index: {}]   ;;  %s3816_s1 = inlined_call_operand.vmem [shape: bf16[216,4096], index: 1, kind: input, shape index: {}]   ;;  %s3817_s2 = inlined_call_operand.vmem [shape: f32[4,1], index: 2, kind: input, shape index: {}]   ;;  %s3818_s3 = inlined_call_operand.vmem [shape: bf16[4,4096], index: 3, kind: output, shape index: {}]  }
   0x1   :  { %s3021_s14 = smov 0  }
   0x2 LB: > { %s2616_s15 = sadd.s32 4294967295, %s2993_s14   ;;  %s3034_s16 = sadd.s32 1, %s2993_s14   ;;  %s2993_s14 = sphi %s3021_s14, %s3821_s14   ;;  %s2989_s13 = sphi %s3019_s13, %s3820_s13   ;;  %s2985_s12 = sphi %s3017_s12, %s3819_s12  }
   0x3   : > { %s38_s17 = ssub.s32 %s2993_s14, %s3034_s16  ;;  %s41_s18 = sadd.s32 1, %s2989_s13 }
   0x4   : > { %p39_p0 = scmp.eq.s32.totalorder %s38_s17, 0  ;;  %p48_p1 = scmp.ne.s32.totalorder %s2989_s13, %s2985_s12 }
   0x5   : > { %p49_p2 = scmp.eq.s32.totalorder %s2993_s14, 0  ;;  %p2619_p4 = scmp.ge.s32.totalorder %s2993_s14, 2 }
   0x6   : > { %s3043_s19 = scalar_select %p39_p0, %s2989_s13, %s41_s18  }
   0x7   : > { %p50_p3 = por %p49_p2, %p48_p1  ;;  %127 = sbr.rel (%p2619_p4) target bundleno = 127 (0x7f), region = 24 }
   0xe   : > { %130 = sbr.rel (!%p50_p3) target bundleno = 127 (0x7f), region = 28  ;;  %s132_s20 = sand.u32 (%p50_p3), 1, %s2989_s13  }
   0xf   : > { %s2892_s21 = sshll.u32 (%p50_p3), %s2993_s14, 6  ;;  %s2893_s22 = smul.u32 (%p50_p3), 1728, %s132_s20 }
  0x10   : > { %s3051_s25 = scalar_lea.vmem (%p50_p3), %s3816_s1, %s2892_s21 }
  0x11   : > { %v150_v0 = vld [vmem:[%s3051_s25] sm:$0xff] (%p50_p3)  ;;  %v152_v1 = vld [vmem:[%s3051_s25 + $0x8] sm:$0xff] (%p50_p3)  ;;  %v154_v2 = vld [vmem:[%s3051_s25 + $0x10] sm:$0xff] (%p50_p3)  ;;  %s3059_s26 = scalar_lea.vmem (%p50_p3), [#allocation2], %s2893_s22 }
  0x12   : > { %v156_v3 = vld [vmem:[%s3051_s25 + $0x18] sm:$0xff] (%p50_p3)  ;;  %v158_v4 = vld [vmem:[%s3051_s25 + $0x20] sm:$0xff] (%p50_p3)  ;;  %v160_v5 = vld [vmem:[%s3051_s25 + $0x28] sm:$0xff] (%p50_p3)  ;;  %151 = vst [vmem:[%s3059_s26] sm:$0xff] (%p50_p3), %v150_v0 }
  0x13   : > { %153 = vst [vmem:[%s3059_s26 + $0x8] sm:$0xff] (%p50_p3), %v152_v1  ;;  %155 = vst [vmem:[%s3059_s26 + $0x10] sm:$0xff] (%p50_p3), %v154_v2  ;;  %v162_v6 = vld [vmem:[%s3051_s25 + $0x30] sm:$0xff] (%p50_p3)  ;;  %v164_v7 = vld [vmem:[%s3051_s25 + $0x38] sm:$0xff] (%p50_p3) }
  0x14   : > { %157 = vst [vmem:[%s3059_s26 + $0x18] sm:$0xff] (%p50_p3), %v156_v3  ;;  %159 = vst [vmem:[%s3059_s26 + $0x20] sm:$0xff] (%p50_p3), %v158_v4  ;;  %v166_v8 = vld [vmem:[%s3051_s25 + $0x80] sm:$0xff] (%p50_p3)  ;;  %v168_v9 = vld [vmem:[%s3051_s25 + $0x88] sm:$0xff] (%p50_p3) }
  0x15   : > { %161 = vst [vmem:[%s3059_s26 + $0x28] sm:$0xff] %v160_v5  ;;  %163 = vst [vmem:[%s3059_s26 + $0x30] sm:$0xff] %v162_v6  ;;  %v170_v10 = vld [vmem:[%s3051_s25 + $0x90] sm:$0xff]  ;;  %v172_v11 = vld [vmem:[%s3051_s25 + $0x98] sm:$0xff] }
  0x16   : > { %165 = vst [vmem:[%s3059_s26 + $0x38] sm:$0xff] %v164_v7  ;;  %167 = vst [vmem:[%s3059_s26 + $0x40] sm:$0xff] %v166_v8  ;;  %v174_v12 = vld [vmem:[%s3051_s25 + $0xa0] sm:$0xff]  ;;  %v176_v13 = vld [vmem:[%s3051_s25 + $0xa8] sm:$0xff] }
  0x17   : > { %169 = vst [vmem:[%s3059_s26 + $0x48] sm:$0xff] %v168_v9  ;;  %171 = vst [vmem:[%s3059_s26 + $0x50] sm:$0xff] %v170_v10  ;;  %v178_v14 = vld [vmem:[%s3051_s25 + $0xb0] sm:$0xff]  ;;  %v180_v15 = vld [vmem:[%s3051_s25 + $0xb8] sm:$0xff] }
  0x18   : > { %173 = vst [vmem:[%s3059_s26 + $0x58] sm:$0xff] %v172_v11  ;;  %175 = vst [vmem:[%s3059_s26 + $0x60] sm:$0xff] %v174_v12  ;;  %v182_v16 = vld [vmem:[%s3051_s25 + $0x100] sm:$0xff]  ;;  %v184_v17 = vld [vmem:[%s3051_s25 + $0x108] sm:$0xff] }
  0x19   : > { %177 = vst [vmem:[%s3059_s26 + $0x68] sm:$0xff] %v176_v13  ;;  %179 = vst [vmem:[%s3059_s26 + $0x70] sm:$0xff] %v178_v14  ;;  %v186_v18 = vld [vmem:[%s3051_s25 + $0x110] sm:$0xff]  ;;  %v188_v19 = vld [vmem:[%s3051_s25 + $0x118] sm:$0xff] }
  0x1a   : > { %181 = vst [vmem:[%s3059_s26 + $0x78] sm:$0xff] %v180_v15  ;;  %183 = vst [vmem:[%s3059_s26 + $0x80] sm:$0xff] %v182_v16  ;;  %v190_v20 = vld [vmem:[%s3051_s25 + $0x120] sm:$0xff]  ;;  %v192_v21 = vld [vmem:[%s3051_s25 + $0x128] sm:$0xff] }
  0x1b   : > { %185 = vst [vmem:[%s3059_s26 + $0x88] sm:$0xff] %v184_v17  ;;  %187 = vst [vmem:[%s3059_s26 + $0x90] sm:$0xff] %v186_v18  ;;  %v194_v22 = vld [vmem:[%s3051_s25 + $0x130] sm:$0xff]  ;;  %v196_v23 = vld [vmem:[%s3051_s25 + $0x138] sm:$0xff] }
  0x1c   : > { %189 = vst [vmem:[%s3059_s26 + $0x98] sm:$0xff] %v188_v19  ;;  %191 = vst [vmem:[%s3059_s26 + $0xa0] sm:$0xff] %v190_v20  ;;  %v198_v24 = vld [vmem:[%s3051_s25 + $0x180] sm:$0xff]  ;;  %v200_v25 = vld [vmem:[%s3051_s25 + $0x188] sm:$0xff] }
  0x1d   : > { %193 = vst [vmem:[%s3059_s26 + $0xa8] sm:$0xff] %v192_v21  ;;  %195 = vst [vmem:[%s3059_s26 + $0xb0] sm:$0xff] %v194_v22  ;;  %v202_v26 = vld [vmem:[%s3051_s25 + $0x190] sm:$0xff]  ;;  %v204_v27 = vld [vmem:[%s3051_s25 + $0x198] sm:$0xff] }
  0x1e   : > { %197 = vst [vmem:[%s3059_s26 + $0xb8] sm:$0xff] %v196_v23  ;;  %199 = vst [vmem:[%s3059_s26 + $0xc0] sm:$0xff] %v198_v24  ;;  %v206_v28 = vld [vmem:[%s3051_s25 + $0x1a0] sm:$0xff]  ;;  %v208_v29 = vld [vmem:[%s3051_s25 + $0x1a8] sm:$0xff] }
  0x1f   : > { %201 = vst [vmem:[%s3059_s26 + $0xc8] sm:$0xff] %v200_v25  ;;  %203 = vst [vmem:[%s3059_s26 + $0xd0] sm:$0xff] %v202_v26  ;;  %v210_v30 = vld [vmem:[%s3051_s25 + $0x1b0] sm:$0xff]  ;;  %v212_v31 = vld [vmem:[%s3051_s25 + $0x1b8] sm:$0xff] }
  0x20   : > { %205 = vst [vmem:[%s3059_s26 + $0xd8] sm:$0xff] %v204_v27  ;;  %207 = vst [vmem:[%s3059_s26 + $0xe0] sm:$0xff] %v206_v28  ;;  %v214_v32 = vld [vmem:[%s3051_s25 + $0x200] sm:$0xff]  ;;  %v216_v33 = vld [vmem:[%s3051_s25 + $0x208] sm:$0xff] }
  0x21   : > { %209 = vst [vmem:[%s3059_s26 + $0xe8] sm:$0xff] %v208_v29  ;;  %211 = vst [vmem:[%s3059_s26 + $0xf0] sm:$0xff] %v210_v30  ;;  %v218_v34 = vld [vmem:[%s3051_s25 + $0x210] sm:$0xff]  ;;  %v220_v35 = vld [vmem:[%s3051_s25 + $0x218] sm:$0xff] }
  0x22   : > { %213 = vst [vmem:[%s3059_s26 + $0xf8] sm:$0xff] %v212_v31  ;;  %215 = vst [vmem:[%s3059_s26 + $0x100] sm:$0xff] %v214_v32  ;;  %v222_v36 = vld [vmem:[%s3051_s25 + $0x220] sm:$0xff]  ;;  %v224_v37 = vld [vmem:[%s3051_s25 + $0x228] sm:$0xff] }
  0x23   : > { %217 = vst [vmem:[%s3059_s26 + $0x108] sm:$0xff] %v216_v33  ;;  %219 = vst [vmem:[%s3059_s26 + $0x110] sm:$0xff] %v218_v34  ;;  %v226_v38 = vld [vmem:[%s3051_s25 + $0x230] sm:$0xff]  ;;  %v228_v39 = vld [vmem:[%s3051_s25 + $0x238] sm:$0xff] }
  0x24   : > { %221 = vst [vmem:[%s3059_s26 + $0x118] sm:$0xff] %v220_v35  ;;  %223 = vst [vmem:[%s3059_s26 + $0x120] sm:$0xff] %v222_v36  ;;  %v230_v40 = vld [vmem:[%s3051_s25 + $0x280] sm:$0xff]  ;;  %v232_v41 = vld [vmem:[%s3051_s25 + $0x288] sm:$0xff] }
  0x25   : > { %225 = vst [vmem:[%s3059_s26 + $0x128] sm:$0xff] %v224_v37  ;;  %227 = vst [vmem:[%s3059_s26 + $0x130] sm:$0xff] %v226_v38  ;;  %v234_v42 = vld [vmem:[%s3051_s25 + $0x290] sm:$0xff]  ;;  %v236_v43 = vld [vmem:[%s3051_s25 + $0x298] sm:$0xff] }
  0x26   : > { %229 = vst [vmem:[%s3059_s26 + $0x138] sm:$0xff] %v228_v39  ;;  %231 = vst [vmem:[%s3059_s26 + $0x140] sm:$0xff] %v230_v40  ;;  %v238_v44 = vld [vmem:[%s3051_s25 + $0x2a0] sm:$0xff]  ;;  %v240_v45 = vld [vmem:[%s3051_s25 + $0x2a8] sm:$0xff] }
  0x27   : > { %233 = vst [vmem:[%s3059_s26 + $0x148] sm:$0xff] %v232_v41  ;;  %235 = vst [vmem:[%s3059_s26 + $0x150] sm:$0xff] %v234_v42  ;;  %v242_v46 = vld [vmem:[%s3051_s25 + $0x2b0] sm:$0xff]  ;;  %v244_v47 = vld [vmem:[%s3051_s25 + $0x2b8] sm:$0xff] }
  0x28   : > { %237 = vst [vmem:[%s3059_s26 + $0x158] sm:$0xff] %v236_v43  ;;  %239 = vst [vmem:[%s3059_s26 + $0x160] sm:$0xff] %v238_v44  ;;  %v246_v48 = vld [vmem:[%s3051_s25 + $0x300] sm:$0xff]  ;;  %v248_v49 = vld [vmem:[%s3051_s25 + $0x308] sm:$0xff] }
  0x29   : > { %241 = vst [vmem:[%s3059_s26 + $0x168] sm:$0xff] %v240_v45  ;;  %243 = vst [vmem:[%s3059_s26 + $0x170] sm:$0xff] %v242_v46  ;;  %v250_v50 = vld [vmem:[%s3051_s25 + $0x310] sm:$0xff]  ;;  %v252_v51 = vld [vmem:[%s3051_s25 + $0x318] sm:$0xff] }
  0x2a   : > { %245 = vst [vmem:[%s3059_s26 + $0x178] sm:$0xff] %v244_v47  ;;  %247 = vst [vmem:[%s3059_s26 + $0x180] sm:$0xff] %v246_v48  ;;  %v254_v52 = vld [vmem:[%s3051_s25 + $0x320] sm:$0xff]  ;;  %v256_v53 = vld [vmem:[%s3051_s25 + $0x328] sm:$0xff] }
  0x2b   : > { %249 = vst [vmem:[%s3059_s26 + $0x188] sm:$0xff] %v248_v49  ;;  %251 = vst [vmem:[%s3059_s26 + $0x190] sm:$0xff] %v250_v50  ;;  %v258_v54 = vld [vmem:[%s3051_s25 + $0x330] sm:$0xff]  ;;  %v260_v55 = vld [vmem:[%s3051_s25 + $0x338] sm:$0xff] }
  0x2c   : > { %253 = vst [vmem:[%s3059_s26 + $0x198] sm:$0xff] %v252_v51  ;;  %255 = vst [vmem:[%s3059_s26 + $0x1a0] sm:$0xff] %v254_v52  ;;  %v262_v56 = vld [vmem:[%s3051_s25 + $0x380] sm:$0xff]  ;;  %v264_v57 = vld [vmem:[%s3051_s25 + $0x388] sm:$0xff] }
  0x2d   : > { %257 = vst [vmem:[%s3059_s26 + $0x1a8] sm:$0xff] %v256_v53  ;;  %259 = vst [vmem:[%s3059_s26 + $0x1b0] sm:$0xff] %v258_v54  ;;  %v266_v58 = vld [vmem:[%s3051_s25 + $0x390] sm:$0xff]  ;;  %v268_v59 = vld [vmem:[%s3051_s25 + $0x398] sm:$0xff] }
  0x2e   : > { %261 = vst [vmem:[%s3059_s26 + $0x1b8] sm:$0xff] %v260_v55  ;;  %263 = vst [vmem:[%s3059_s26 + $0x1c0] sm:$0xff] %v262_v56  ;;  %v270_v60 = vld [vmem:[%s3051_s25 + $0x3a0] sm:$0xff]  ;;  %v272_v61 = vld [vmem:[%s3051_s25 + $0x3a8] sm:$0xff] }
  0x2f   : > { %265 = vst [vmem:[%s3059_s26 + $0x1c8] sm:$0xff] %v264_v57  ;;  %267 = vst [vmem:[%s3059_s26 + $0x1d0] sm:$0xff] %v266_v58  ;;  %v274_v62 = vld [vmem:[%s3051_s25 + $0x3b0] sm:$0xff]  ;;  %v276_v63 = vld [vmem:[%s3051_s25 + $0x3b8] sm:$0xff] }
  0x30   : > { %269 = vst [vmem:[%s3059_s26 + $0x1d8] sm:$0xff] %v268_v59  ;;  %271 = vst [vmem:[%s3059_s26 + $0x1e0] sm:$0xff] %v270_v60  ;;  %v278_v0 = vld [vmem:[%s3051_s25 + $0x400] sm:$0xff]  ;;  %v280_v1 = vld [vmem:[%s3051_s25 + $0x408] sm:$0xff] }
  0x31   : > { %273 = vst [vmem:[%s3059_s26 + $0x1e8] sm:$0xff] %v272_v61  ;;  %275 = vst [vmem:[%s3059_s26 + $0x1f0] sm:$0xff] %v274_v62  ;;  %v282_v2 = vld [vmem:[%s3051_s25 + $0x410] sm:$0xff]  ;;  %v284_v3 = vld [vmem:[%s3051_s25 + $0x418] sm:$0xff] }
  0x32   : > { %277 = vst [vmem:[%s3059_s26 + $0x1f8] sm:$0xff] %v276_v63  ;;  %279 = vst [vmem:[%s3059_s26 + $0x200] sm:$0xff] %v278_v0  ;;  %v286_v4 = vld [vmem:[%s3051_s25 + $0x420] sm:$0xff]  ;;  %v288_v5 = vld [vmem:[%s3051_s25 + $0x428] sm:$0xff] }
  0x33   : > { %281 = vst [vmem:[%s3059_s26 + $0x208] sm:$0xff] %v280_v1  ;;  %283 = vst [vmem:[%s3059_s26 + $0x210] sm:$0xff] %v282_v2  ;;  %v290_v6 = vld [vmem:[%s3051_s25 + $0x430] sm:$0xff]  ;;  %v292_v7 = vld [vmem:[%s3051_s25 + $0x438] sm:$0xff] }
  0x34   : > { %285 = vst [vmem:[%s3059_s26 + $0x218] sm:$0xff] %v284_v3  ;;  %287 = vst [vmem:[%s3059_s26 + $0x220] sm:$0xff] %v286_v4  ;;  %v294_v8 = vld [vmem:[%s3051_s25 + $0x480] sm:$0xff]  ;;  %v296_v9 = vld [vmem:[%s3051_s25 + $0x488] sm:$0xff] }
  0x35   : > { %289 = vst [vmem:[%s3059_s26 + $0x228] sm:$0xff] %v288_v5  ;;  %291 = vst [vmem:[%s3059_s26 + $0x230] sm:$0xff] %v290_v6  ;;  %v298_v10 = vld [vmem:[%s3051_s25 + $0x490] sm:$0xff]  ;;  %v300_v11 = vld [vmem:[%s3051_s25 + $0x498] sm:$0xff] }
  0x36   : > { %293 = vst [vmem:[%s3059_s26 + $0x238] sm:$0xff] %v292_v7  ;;  %295 = vst [vmem:[%s3059_s26 + $0x240] sm:$0xff] %v294_v8  ;;  %v302_v12 = vld [vmem:[%s3051_s25 + $0x4a0] sm:$0xff]  ;;  %v304_v13 = vld [vmem:[%s3051_s25 + $0x4a8] sm:$0xff] }
  0x37   : > { %297 = vst [vmem:[%s3059_s26 + $0x248] sm:$0xff] %v296_v9  ;;  %299 = vst [vmem:[%s3059_s26 + $0x250] sm:$0xff] %v298_v10  ;;  %v306_v14 = vld [vmem:[%s3051_s25 + $0x4b0] sm:$0xff]  ;;  %v308_v15 = vld [vmem:[%s3051_s25 + $0x4b8] sm:$0xff] }
  0x38   : > { %301 = vst [vmem:[%s3059_s26 + $0x258] sm:$0xff] %v300_v11  ;;  %303 = vst [vmem:[%s3059_s26 + $0x260] sm:$0xff] %v302_v12  ;;  %v310_v16 = vld [vmem:[%s3051_s25 + $0x500] sm:$0xff]  ;;  %v312_v17 = vld [vmem:[%s3051_s25 + $0x508] sm:$0xff] }
  0x39   : > { %305 = vst [vmem:[%s3059_s26 + $0x268] sm:$0xff] %v304_v13  ;;  %307 = vst [vmem:[%s3059_s26 + $0x270] sm:$0xff] %v306_v14  ;;  %v314_v18 = vld [vmem:[%s3051_s25 + $0x510] sm:$0xff]  ;;  %v316_v19 = vld [vmem:[%s3051_s25 + $0x518] sm:$0xff] }
  0x3a   : > { %309 = vst [vmem:[%s3059_s26 + $0x278] sm:$0xff] %v308_v15  ;;  %311 = vst [vmem:[%s3059_s26 + $0x280] sm:$0xff] %v310_v16  ;;  %v318_v20 = vld [vmem:[%s3051_s25 + $0x520] sm:$0xff]  ;;  %v320_v21 = vld [vmem:[%s3051_s25 + $0x528] sm:$0xff] }
  0x3b   : > { %313 = vst [vmem:[%s3059_s26 + $0x288] sm:$0xff] %v312_v17  ;;  %315 = vst [vmem:[%s3059_s26 + $0x290] sm:$0xff] %v314_v18  ;;  %v322_v22 = vld [vmem:[%s3051_s25 + $0x530] sm:$0xff]  ;;  %v324_v23 = vld [vmem:[%s3051_s25 + $0x538] sm:$0xff] }
  0x3c   : > { %317 = vst [vmem:[%s3059_s26 + $0x298] sm:$0xff] %v316_v19  ;;  %319 = vst [vmem:[%s3059_s26 + $0x2a0] sm:$0xff] %v318_v20  ;;  %v326_v24 = vld [vmem:[%s3051_s25 + $0x580] sm:$0xff]  ;;  %v328_v25 = vld [vmem:[%s3051_s25 + $0x588] sm:$0xff] }
  0x3d   : > { %321 = vst [vmem:[%s3059_s26 + $0x2a8] sm:$0xff] %v320_v21  ;;  %323 = vst [vmem:[%s3059_s26 + $0x2b0] sm:$0xff] %v322_v22  ;;  %v330_v26 = vld [vmem:[%s3051_s25 + $0x590] sm:$0xff]  ;;  %v332_v27 = vld [vmem:[%s3051_s25 + $0x598] sm:$0xff] }
  0x3e   : > { %325 = vst [vmem:[%s3059_s26 + $0x2b8] sm:$0xff] %v324_v23  ;;  %327 = vst [vmem:[%s3059_s26 + $0x2c0] sm:$0xff] %v326_v24  ;;  %v334_v28 = vld [vmem:[%s3051_s25 + $0x5a0] sm:$0xff]  ;;  %v336_v29 = vld [vmem:[%s3051_s25 + $0x5a8] sm:$0xff] }
  0x3f   : > { %329 = vst [vmem:[%s3059_s26 + $0x2c8] sm:$0xff] %v328_v25  ;;  %331 = vst [vmem:[%s3059_s26 + $0x2d0] sm:$0xff] %v330_v26  ;;  %v338_v30 = vld [vmem:[%s3051_s25 + $0x5b0] sm:$0xff]  ;;  %v340_v31 = vld [vmem:[%s3051_s25 + $0x5b8] sm:$0xff] }
  0x40   : > { %333 = vst [vmem:[%s3059_s26 + $0x2d8] sm:$0xff] %v332_v27  ;;  %335 = vst [vmem:[%s3059_s26 + $0x2e0] sm:$0xff] %v334_v28  ;;  %v342_v32 = vld [vmem:[%s3051_s25 + $0x600] sm:$0xff]  ;;  %v344_v33 = vld [vmem:[%s3051_s25 + $0x608] sm:$0xff] }
  0x41   : > { %337 = vst [vmem:[%s3059_s26 + $0x2e8] sm:$0xff] %v336_v29  ;;  %339 = vst [vmem:[%s3059_s26 + $0x2f0] sm:$0xff] %v338_v30  ;;  %v346_v34 = vld [vmem:[%s3051_s25 + $0x610] sm:$0xff]  ;;  %v348_v35 = vld [vmem:[%s3051_s25 + $0x618] sm:$0xff] }
  0x42   : > { %341 = vst [vmem:[%s3059_s26 + $0x2f8] sm:$0xff] %v340_v31  ;;  %343 = vst [vmem:[%s3059_s26 + $0x300] sm:$0xff] %v342_v32  ;;  %v350_v36 = vld [vmem:[%s3051_s25 + $0x620] sm:$0xff]  ;;  %v352_v37 = vld [vmem:[%s3051_s25 + $0x628] sm:$0xff] }
  0x43   : > { %345 = vst [vmem:[%s3059_s26 + $0x308] sm:$0xff] %v344_v33  ;;  %347 = vst [vmem:[%s3059_s26 + $0x310] sm:$0xff] %v346_v34  ;;  %v354_v38 = vld [vmem:[%s3051_s25 + $0x630] sm:$0xff]  ;;  %v356_v39 = vld [vmem:[%s3051_s25 + $0x638] sm:$0xff] }
  0x44   : > { %349 = vst [vmem:[%s3059_s26 + $0x318] sm:$0xff] %v348_v35  ;;  %351 = vst [vmem:[%s3059_s26 + $0x320] sm:$0xff] %v350_v36  ;;  %v358_v40 = vld [vmem:[%s3051_s25 + $0x680] sm:$0xff]  ;;  %v360_v41 = vld [vmem:[%s3051_s25 + $0x688] sm:$0xff] }
  0x45   : > { %353 = vst [vmem:[%s3059_s26 + $0x328] sm:$0xff] %v352_v37  ;;  %355 = vst [vmem:[%s3059_s26 + $0x330] sm:$0xff] %v354_v38  ;;  %v362_v42 = vld [vmem:[%s3051_s25 + $0x690] sm:$0xff]  ;;  %v364_v43 = vld [vmem:[%s3051_s25 + $0x698] sm:$0xff] }
  0x46   : > { %357 = vst [vmem:[%s3059_s26 + $0x338] sm:$0xff] %v356_v39  ;;  %359 = vst [vmem:[%s3059_s26 + $0x340] sm:$0xff] %v358_v40  ;;  %v366_v44 = vld [vmem:[%s3051_s25 + $0x6a0] sm:$0xff]  ;;  %v368_v45 = vld [vmem:[%s3051_s25 + $0x6a8] sm:$0xff] }
  0x47   : > { %361 = vst [vmem:[%s3059_s26 + $0x348] sm:$0xff] %v360_v41  ;;  %363 = vst [vmem:[%s3059_s26 + $0x350] sm:$0xff] %v362_v42  ;;  %v370_v46 = vld [vmem:[%s3051_s25 + $0x6b0] sm:$0xff]  ;;  %v372_v47 = vld [vmem:[%s3051_s25 + $0x6b8] sm:$0xff] }
  0x48   : > { %365 = vst [vmem:[%s3059_s26 + $0x358] sm:$0xff] %v364_v43  ;;  %367 = vst [vmem:[%s3059_s26 + $0x360] sm:$0xff] %v366_v44  ;;  %v374_v48 = vld [vmem:[%s3051_s25 + $0x700] sm:$0xff]  ;;  %v376_v49 = vld [vmem:[%s3051_s25 + $0x708] sm:$0xff] }
  0x49   : > { %369 = vst [vmem:[%s3059_s26 + $0x368] sm:$0xff] %v368_v45  ;;  %371 = vst [vmem:[%s3059_s26 + $0x370] sm:$0xff] %v370_v46  ;;  %v378_v50 = vld [vmem:[%s3051_s25 + $0x710] sm:$0xff]  ;;  %v380_v51 = vld [vmem:[%s3051_s25 + $0x718] sm:$0xff] }
  0x4a   : > { %373 = vst [vmem:[%s3059_s26 + $0x378] sm:$0xff] %v372_v47  ;;  %375 = vst [vmem:[%s3059_s26 + $0x380] sm:$0xff] %v374_v48  ;;  %v382_v52 = vld [vmem:[%s3051_s25 + $0x720] sm:$0xff]  ;;  %v384_v53 = vld [vmem:[%s3051_s25 + $0x728] sm:$0xff] }
  0x4b   : > { %377 = vst [vmem:[%s3059_s26 + $0x388] sm:$0xff] %v376_v49  ;;  %379 = vst [vmem:[%s3059_s26 + $0x390] sm:$0xff] %v378_v50  ;;  %v386_v54 = vld [vmem:[%s3051_s25 + $0x730] sm:$0xff]  ;;  %v388_v55 = vld [vmem:[%s3051_s25 + $0x738] sm:$0xff] }
  0x4c   : > { %381 = vst [vmem:[%s3059_s26 + $0x398] sm:$0xff] %v380_v51  ;;  %383 = vst [vmem:[%s3059_s26 + $0x3a0] sm:$0xff] %v382_v52  ;;  %v390_v56 = vld [vmem:[%s3051_s25 + $0x780] sm:$0xff]  ;;  %v392_v57 = vld [vmem:[%s3051_s25 + $0x788] sm:$0xff] }
  0x4d   : > { %385 = vst [vmem:[%s3059_s26 + $0x3a8] sm:$0xff] %v384_v53  ;;  %387 = vst [vmem:[%s3059_s26 + $0x3b0] sm:$0xff] %v386_v54  ;;  %v394_v58 = vld [vmem:[%s3051_s25 + $0x790] sm:$0xff]  ;;  %v396_v59 = vld [vmem:[%s3051_s25 + $0x798] sm:$0xff] }
  0x4e   : > { %389 = vst [vmem:[%s3059_s26 + $0x3b8] sm:$0xff] %v388_v55  ;;  %391 = vst [vmem:[%s3059_s26 + $0x3c0] sm:$0xff] %v390_v56  ;;  %v398_v60 = vld [vmem:[%s3051_s25 + $0x7a0] sm:$0xff]  ;;  %v400_v61 = vld [vmem:[%s3051_s25 + $0x7a8] sm:$0xff] }
  0x4f   : > { %393 = vst [vmem:[%s3059_s26 + $0x3c8] sm:$0xff] %v392_v57  ;;  %395 = vst [vmem:[%s3059_s26 + $0x3d0] sm:$0xff] %v394_v58  ;;  %v402_v62 = vld [vmem:[%s3051_s25 + $0x7b0] sm:$0xff]  ;;  %v404_v63 = vld [vmem:[%s3051_s25 + $0x7b8] sm:$0xff] }
  0x50   : > { %397 = vst [vmem:[%s3059_s26 + $0x3d8] sm:$0xff] %v396_v59  ;;  %399 = vst [vmem:[%s3059_s26 + $0x3e0] sm:$0xff] %v398_v60  ;;  %v406_v0 = vld [vmem:[%s3051_s25 + $0x800] sm:$0xff]  ;;  %v408_v1 = vld [vmem:[%s3051_s25 + $0x808] sm:$0xff] }
  0x51   : > { %401 = vst [vmem:[%s3059_s26 + $0x3e8] sm:$0xff] %v400_v61  ;;  %403 = vst [vmem:[%s3059_s26 + $0x3f0] sm:$0xff] %v402_v62  ;;  %v410_v2 = vld [vmem:[%s3051_s25 + $0x810] sm:$0xff]  ;;  %v412_v3 = vld [vmem:[%s3051_s25 + $0x818] sm:$0xff] }
  0x52   : > { %405 = vst [vmem:[%s3059_s26 + $0x3f8] sm:$0xff] %v404_v63  ;;  %407 = vst [vmem:[%s3059_s26 + $0x400] sm:$0xff] %v406_v0  ;;  %v414_v4 = vld [vmem:[%s3051_s25 + $0x820] sm:$0xff]  ;;  %v416_v5 = vld [vmem:[%s3051_s25 + $0x828] sm:$0xff] }
  0x53   : > { %409 = vst [vmem:[%s3059_s26 + $0x408] sm:$0xff] %v408_v1  ;;  %411 = vst [vmem:[%s3059_s26 + $0x410] sm:$0xff] %v410_v2  ;;  %v418_v6 = vld [vmem:[%s3051_s25 + $0x830] sm:$0xff]  ;;  %v420_v7 = vld [vmem:[%s3051_s25 + $0x838] sm:$0xff] }
  0x54   : > { %413 = vst [vmem:[%s3059_s26 + $0x418] sm:$0xff] %v412_v3  ;;  %415 = vst [vmem:[%s3059_s26 + $0x420] sm:$0xff] %v414_v4  ;;  %v422_v8 = vld [vmem:[%s3051_s25 + $0x880] sm:$0xff]  ;;  %v424_v9 = vld [vmem:[%s3051_s25 + $0x888] sm:$0xff] }
  0x55   : > { %417 = vst [vmem:[%s3059_s26 + $0x428] sm:$0xff] %v416_v5  ;;  %419 = vst [vmem:[%s3059_s26 + $0x430] sm:$0xff] %v418_v6  ;;  %v426_v10 = vld [vmem:[%s3051_s25 + $0x890] sm:$0xff]  ;;  %v428_v11 = vld [vmem:[%s3051_s25 + $0x898] sm:$0xff] }
  0x56   : > { %421 = vst [vmem:[%s3059_s26 + $0x438] sm:$0xff] %v420_v7  ;;  %423 = vst [vmem:[%s3059_s26 + $0x440] sm:$0xff] %v422_v8  ;;  %v430_v12 = vld [vmem:[%s3051_s25 + $0x8a0] sm:$0xff]  ;;  %v432_v13 = vld [vmem:[%s3051_s25 + $0x8a8] sm:$0xff] }
  0x57   : > { %425 = vst [vmem:[%s3059_s26 + $0x448] sm:$0xff] %v424_v9  ;;  %427 = vst [vmem:[%s3059_s26 + $0x450] sm:$0xff] %v426_v10  ;;  %v434_v14 = vld [vmem:[%s3051_s25 + $0x8b0] sm:$0xff]  ;;  %v436_v15 = vld [vmem:[%s3051_s25 + $0x8b8] sm:$0xff] }
  0x58   : > { %429 = vst [vmem:[%s3059_s26 + $0x458] sm:$0xff] %v428_v11  ;;  %431 = vst [vmem:[%s3059_s26 + $0x460] sm:$0xff] %v430_v12  ;;  %v438_v16 = vld [vmem:[%s3051_s25 + $0x900] sm:$0xff]  ;;  %v440_v17 = vld [vmem:[%s3051_s25 + $0x908] sm:$0xff] }
  0x59   : > { %433 = vst [vmem:[%s3059_s26 + $0x468] sm:$0xff] %v432_v13  ;;  %435 = vst [vmem:[%s3059_s26 + $0x470] sm:$0xff] %v434_v14  ;;  %v442_v18 = vld [vmem:[%s3051_s25 + $0x910] sm:$0xff]  ;;  %v444_v19 = vld [vmem:[%s3051_s25 + $0x918] sm:$0xff] }
  0x5a   : > { %437 = vst [vmem:[%s3059_s26 + $0x478] sm:$0xff] %v436_v15  ;;  %439 = vst [vmem:[%s3059_s26 + $0x480] sm:$0xff] %v438_v16  ;;  %v446_v20 = vld [vmem:[%s3051_s25 + $0x920] sm:$0xff]  ;;  %v448_v21 = vld [vmem:[%s3051_s25 + $0x928] sm:$0xff] }
  0x5b   : > { %441 = vst [vmem:[%s3059_s26 + $0x488] sm:$0xff] %v440_v17  ;;  %443 = vst [vmem:[%s3059_s26 + $0x490] sm:$0xff] %v442_v18  ;;  %v450_v22 = vld [vmem:[%s3051_s25 + $0x930] sm:$0xff]  ;;  %v452_v23 = vld [vmem:[%s3051_s25 + $0x938] sm:$0xff] }
  0x5c   : > { %445 = vst [vmem:[%s3059_s26 + $0x498] sm:$0xff] %v444_v19  ;;  %447 = vst [vmem:[%s3059_s26 + $0x4a0] sm:$0xff] %v446_v20  ;;  %v454_v24 = vld [vmem:[%s3051_s25 + $0x980] sm:$0xff]  ;;  %v456_v25 = vld [vmem:[%s3051_s25 + $0x988] sm:$0xff] }
  0x5d   : > { %449 = vst [vmem:[%s3059_s26 + $0x4a8] sm:$0xff] %v448_v21  ;;  %451 = vst [vmem:[%s3059_s26 + $0x4b0] sm:$0xff] %v450_v22  ;;  %v458_v26 = vld [vmem:[%s3051_s25 + $0x990] sm:$0xff]  ;;  %v460_v27 = vld [vmem:[%s3051_s25 + $0x998] sm:$0xff] }
  0x5e   : > { %453 = vst [vmem:[%s3059_s26 + $0x4b8] sm:$0xff] %v452_v23  ;;  %455 = vst [vmem:[%s3059_s26 + $0x4c0] sm:$0xff] %v454_v24  ;;  %v462_v28 = vld [vmem:[%s3051_s25 + $0x9a0] sm:$0xff]  ;;  %v464_v29 = vld [vmem:[%s3051_s25 + $0x9a8] sm:$0xff] }
  0x5f   : > { %457 = vst [vmem:[%s3059_s26 + $0x4c8] sm:$0xff] %v456_v25  ;;  %459 = vst [vmem:[%s3059_s26 + $0x4d0] sm:$0xff] %v458_v26  ;;  %v466_v30 = vld [vmem:[%s3051_s25 + $0x9b0] sm:$0xff]  ;;  %v468_v31 = vld [vmem:[%s3051_s25 + $0x9b8] sm:$0xff] }
  0x60   : > { %461 = vst [vmem:[%s3059_s26 + $0x4d8] sm:$0xff] %v460_v27  ;;  %463 = vst [vmem:[%s3059_s26 + $0x4e0] sm:$0xff] %v462_v28  ;;  %v470_v32 = vld [vmem:[%s3051_s25 + $0xa00] sm:$0xff]  ;;  %v472_v33 = vld [vmem:[%s3051_s25 + $0xa08] sm:$0xff] }
  0x61   : > { %465 = vst [vmem:[%s3059_s26 + $0x4e8] sm:$0xff] %v464_v29  ;;  %467 = vst [vmem:[%s3059_s26 + $0x4f0] sm:$0xff] %v466_v30  ;;  %v474_v34 = vld [vmem:[%s3051_s25 + $0xa10] sm:$0xff]  ;;  %v476_v35 = vld [vmem:[%s3051_s25 + $0xa18] sm:$0xff] }
  0x62   : > { %469 = vst [vmem:[%s3059_s26 + $0x4f8] sm:$0xff] %v468_v31  ;;  %471 = vst [vmem:[%s3059_s26 + $0x500] sm:$0xff] %v470_v32  ;;  %v478_v36 = vld [vmem:[%s3051_s25 + $0xa20] sm:$0xff]  ;;  %v480_v37 = vld [vmem:[%s3051_s25 + $0xa28] sm:$0xff] }
  0x63   : > { %473 = vst [vmem:[%s3059_s26 + $0x508] sm:$0xff] %v472_v33  ;;  %475 = vst [vmem:[%s3059_s26 + $0x510] sm:$0xff] %v474_v34  ;;  %v482_v38 = vld [vmem:[%s3051_s25 + $0xa30] sm:$0xff]  ;;  %v484_v39 = vld [vmem:[%s3051_s25 + $0xa38] sm:$0xff] }
  0x64   : > { %477 = vst [vmem:[%s3059_s26 + $0x518] sm:$0xff] %v476_v35  ;;  %479 = vst [vmem:[%s3059_s26 + $0x520] sm:$0xff] %v478_v36  ;;  %v486_v40 = vld [vmem:[%s3051_s25 + $0xa80] sm:$0xff]  ;;  %v488_v41 = vld [vmem:[%s3051_s25 + $0xa88] sm:$0xff] }
  0x65   : > { %481 = vst [vmem:[%s3059_s26 + $0x528] sm:$0xff] %v480_v37  ;;  %483 = vst [vmem:[%s3059_s26 + $0x530] sm:$0xff] %v482_v38  ;;  %v490_v42 = vld [vmem:[%s3051_s25 + $0xa90] sm:$0xff]  ;;  %v492_v43 = vld [vmem:[%s3051_s25 + $0xa98] sm:$0xff] }
  0x66   : > { %485 = vst [vmem:[%s3059_s26 + $0x538] sm:$0xff] %v484_v39  ;;  %487 = vst [vmem:[%s3059_s26 + $0x540] sm:$0xff] %v486_v40  ;;  %v494_v44 = vld [vmem:[%s3051_s25 + $0xaa0] sm:$0xff]  ;;  %v496_v45 = vld [vmem:[%s3051_s25 + $0xaa8] sm:$0xff] }
  0x67   : > { %489 = vst [vmem:[%s3059_s26 + $0x548] sm:$0xff] %v488_v41  ;;  %491 = vst [vmem:[%s3059_s26 + $0x550] sm:$0xff] %v490_v42  ;;  %v498_v46 = vld [vmem:[%s3051_s25 + $0xab0] sm:$0xff]  ;;  %v500_v47 = vld [vmem:[%s3051_s25 + $0xab8] sm:$0xff] }
  0x68   : > { %493 = vst [vmem:[%s3059_s26 + $0x558] sm:$0xff] %v492_v43  ;;  %495 = vst [vmem:[%s3059_s26 + $0x560] sm:$0xff] %v494_v44  ;;  %v502_v48 = vld [vmem:[%s3051_s25 + $0xb00] sm:$0xff]  ;;  %v504_v49 = vld [vmem:[%s3051_s25 + $0xb08] sm:$0xff] }
  0x69   : > { %497 = vst [vmem:[%s3059_s26 + $0x568] sm:$0xff] %v496_v45  ;;  %499 = vst [vmem:[%s3059_s26 + $0x570] sm:$0xff] %v498_v46  ;;  %v506_v50 = vld [vmem:[%s3051_s25 + $0xb10] sm:$0xff]  ;;  %v508_v51 = vld [vmem:[%s3051_s25 + $0xb18] sm:$0xff] }
  0x6a   : > { %501 = vst [vmem:[%s3059_s26 + $0x578] sm:$0xff] %v500_v47  ;;  %503 = vst [vmem:[%s3059_s26 + $0x580] sm:$0xff] %v502_v48  ;;  %v510_v52 = vld [vmem:[%s3051_s25 + $0xb20] sm:$0xff]  ;;  %v512_v53 = vld [vmem:[%s3051_s25 + $0xb28] sm:$0xff] }
  0x6b   : > { %505 = vst [vmem:[%s3059_s26 + $0x588] sm:$0xff] %v504_v49  ;;  %507 = vst [vmem:[%s3059_s26 + $0x590] sm:$0xff] %v506_v50  ;;  %v514_v54 = vld [vmem:[%s3051_s25 + $0xb30] sm:$0xff]  ;;  %v516_v55 = vld [vmem:[%s3051_s25 + $0xb38] sm:$0xff] }
  0x6c   : > { %509 = vst [vmem:[%s3059_s26 + $0x598] sm:$0xff] %v508_v51  ;;  %511 = vst [vmem:[%s3059_s26 + $0x5a0] sm:$0xff] %v510_v52  ;;  %v518_v56 = vld [vmem:[%s3051_s25 + $0xb80] sm:$0xff]  ;;  %v520_v57 = vld [vmem:[%s3051_s25 + $0xb88] sm:$0xff] }
  0x6d   : > { %513 = vst [vmem:[%s3059_s26 + $0x5a8] sm:$0xff] %v512_v53  ;;  %515 = vst [vmem:[%s3059_s26 + $0x5b0] sm:$0xff] %v514_v54  ;;  %v522_v58 = vld [vmem:[%s3051_s25 + $0xb90] sm:$0xff]  ;;  %v524_v59 = vld [vmem:[%s3051_s25 + $0xb98] sm:$0xff] }
  0x6e   : > { %517 = vst [vmem:[%s3059_s26 + $0x5b8] sm:$0xff] %v516_v55  ;;  %519 = vst [vmem:[%s3059_s26 + $0x5c0] sm:$0xff] %v518_v56  ;;  %v526_v60 = vld [vmem:[%s3051_s25 + $0xba0] sm:$0xff]  ;;  %v528_v61 = vld [vmem:[%s3051_s25 + $0xba8] sm:$0xff] }
  0x6f   : > { %521 = vst [vmem:[%s3059_s26 + $0x5c8] sm:$0xff] %v520_v57  ;;  %523 = vst [vmem:[%s3059_s26 + $0x5d0] sm:$0xff] %v522_v58  ;;  %v530_v62 = vld [vmem:[%s3051_s25 + $0xbb0] sm:$0xff]  ;;  %v532_v63 = vld [vmem:[%s3051_s25 + $0xbb8] sm:$0xff] }
  0x70   : > { %525 = vst [vmem:[%s3059_s26 + $0x5d8] sm:$0xff] %v524_v59  ;;  %527 = vst [vmem:[%s3059_s26 + $0x5e0] sm:$0xff] %v526_v60  ;;  %v534_v0 = vld [vmem:[%s3051_s25 + $0xc00] sm:$0xff]  ;;  %v536_v1 = vld [vmem:[%s3051_s25 + $0xc08] sm:$0xff] }
  0x71   : > { %529 = vst [vmem:[%s3059_s26 + $0x5e8] sm:$0xff] %v528_v61  ;;  %531 = vst [vmem:[%s3059_s26 + $0x5f0] sm:$0xff] %v530_v62  ;;  %v538_v2 = vld [vmem:[%s3051_s25 + $0xc10] sm:$0xff]  ;;  %v540_v3 = vld [vmem:[%s3051_s25 + $0xc18] sm:$0xff] }
  0x72   : > { %533 = vst [vmem:[%s3059_s26 + $0x5f8] sm:$0xff] %v532_v63  ;;  %535 = vst [vmem:[%s3059_s26 + $0x600] sm:$0xff] %v534_v0  ;;  %v542_v4 = vld [vmem:[%s3051_s25 + $0xc20] sm:$0xff]  ;;  %v544_v5 = vld [vmem:[%s3051_s25 + $0xc28] sm:$0xff] }
  0x73   : > { %537 = vst [vmem:[%s3059_s26 + $0x608] sm:$0xff] %v536_v1  ;;  %539 = vst [vmem:[%s3059_s26 + $0x610] sm:$0xff] %v538_v2  ;;  %v546_v6 = vld [vmem:[%s3051_s25 + $0xc30] sm:$0xff]  ;;  %v548_v7 = vld [vmem:[%s3051_s25 + $0xc38] sm:$0xff] }
  0x74   : > { %541 = vst [vmem:[%s3059_s26 + $0x618] sm:$0xff] %v540_v3  ;;  %543 = vst [vmem:[%s3059_s26 + $0x620] sm:$0xff] %v542_v4  ;;  %v550_v8 = vld [vmem:[%s3051_s25 + $0xc80] sm:$0xff]  ;;  %v552_v9 = vld [vmem:[%s3051_s25 + $0xc88] sm:$0xff] }
  0x75   : > { %545 = vst [vmem:[%s3059_s26 + $0x628] sm:$0xff] %v544_v5  ;;  %547 = vst [vmem:[%s3059_s26 + $0x630] sm:$0xff] %v546_v6  ;;  %v554_v10 = vld [vmem:[%s3051_s25 + $0xc90] sm:$0xff]  ;;  %v556_v11 = vld [vmem:[%s3051_s25 + $0xc98] sm:$0xff] }
  0x76   : > { %549 = vst [vmem:[%s3059_s26 + $0x638] sm:$0xff] %v548_v7  ;;  %551 = vst [vmem:[%s3059_s26 + $0x640] sm:$0xff] %v550_v8  ;;  %v558_v12 = vld [vmem:[%s3051_s25 + $0xca0] sm:$0xff]  ;;  %v560_v13 = vld [vmem:[%s3051_s25 + $0xca8] sm:$0xff] }
  0x77   : > { %553 = vst [vmem:[%s3059_s26 + $0x648] sm:$0xff] %v552_v9  ;;  %555 = vst [vmem:[%s3059_s26 + $0x650] sm:$0xff] %v554_v10  ;;  %v562_v14 = vld [vmem:[%s3051_s25 + $0xcb0] sm:$0xff]  ;;  %v564_v15 = vld [vmem:[%s3051_s25 + $0xcb8] sm:$0xff] }
  0x78   : > { %557 = vst [vmem:[%s3059_s26 + $0x658] sm:$0xff] %v556_v11  ;;  %559 = vst [vmem:[%s3059_s26 + $0x660] sm:$0xff] %v558_v12  ;;  %v566_v16 = vld [vmem:[%s3051_s25 + $0xd00] sm:$0xff]  ;;  %v568_v17 = vld [vmem:[%s3051_s25 + $0xd08] sm:$0xff] }
  0x79   : > { %561 = vst [vmem:[%s3059_s26 + $0x668] sm:$0xff] %v560_v13  ;;  %563 = vst [vmem:[%s3059_s26 + $0x670] sm:$0xff] %v562_v14  ;;  %v570_v18 = vld [vmem:[%s3051_s25 + $0xd10] sm:$0xff]  ;;  %v572_v19 = vld [vmem:[%s3051_s25 + $0xd18] sm:$0xff] }
  0x7a   : > { %565 = vst [vmem:[%s3059_s26 + $0x678] sm:$0xff] %v564_v15  ;;  %567 = vst [vmem:[%s3059_s26 + $0x680] sm:$0xff] %v566_v16  ;;  %v574_v20 = vld [vmem:[%s3051_s25 + $0xd20] sm:$0xff]  ;;  %v576_v21 = vld [vmem:[%s3051_s25 + $0xd28] sm:$0xff] }
  0x7b   : > { %569 = vst [vmem:[%s3059_s26 + $0x688] sm:$0xff] %v568_v17  ;;  %571 = vst [vmem:[%s3059_s26 + $0x690] sm:$0xff] %v570_v18  ;;  %v578_v22 = vld [vmem:[%s3051_s25 + $0xd30] sm:$0xff]  ;;  %v580_v23 = vld [vmem:[%s3051_s25 + $0xd38] sm:$0xff] }
  0x7c   : > { %573 = vst [vmem:[%s3059_s26 + $0x698] sm:$0xff] %v572_v19  ;;  %575 = vst [vmem:[%s3059_s26 + $0x6a0] sm:$0xff] %v574_v20 }
  0x7d   : > { %577 = vst [vmem:[%s3059_s26 + $0x6a8] sm:$0xff] %v576_v21  ;;  %579 = vst [vmem:[%s3059_s26 + $0x6b0] sm:$0xff] %v578_v22 }
  0x7e   : > { %581 = vst [vmem:[%s3059_s26 + $0x6b8] sm:$0xff] %v580_v23 }
  0x7f PF: > { %p2622_p5 = scmp.ge.s32.totalorder %s2993_s14, 1  ;;  %p586_p6 = scmp.lt.s32.totalorder %s2993_s14, 3 }
  0x81   : > { %p587_p7 = pnand %p2622_p5, %p586_p6 }
  0x82   : > { %s593_s27 = sand.u32 (!%p587_p7), 1, %s2985_s12   ;;  %v3493_v24 = vld.sshfl [vmem:[%s3815_s0] sm:$0x33 pattern:$0x76325410] (!%p587_p7)  ;;  %vm1937_vm0 = vcmask (!%p587_p7), 719872  }
  0x83   : > { %590 = sbr.rel (%p587_p7) target bundleno = 609 (0x261), region = 51  ;;  %v3497_v25 = vcombine.high (!%p587_p7), %v3493_v24, %v3493_v24  ;;  %v2995_v4 = vmov (!%p587_p7), 0   ;;  %vm1941_vm1 = vcmask (!%p587_p7), 1043456   ;;  %s2623_s9 = sshll.u32 (!%p587_p7), %s2616_s15, 4 }
  0x84   : > { %s2894_s30 = smul.u32 (!%p587_p7), 1728, %s593_s27  ;;  %2921 = vset.pattern.permute.xlu0 (!%p587_p7), %v2995_v4  ;;  %p618_p8 = scmp.lt.s32.totalorder (!%p587_p7), %s2623_s9, 31 }
  0x85   : > { %2851 = vmatprep.mubr.msk.bf16.mxu0 (!%p587_p7), %vm1937_vm0, %v3497_v25  ;;  %2853 = vmatprep.mubr.msk.bf16.mxu1 (!%p587_p7), %vm1937_vm0, %v3497_v25 }
  0x86   : > { %s3503_s4 = scalar_lea.vmem (!%p587_p7), [#allocation2], %s2894_s30 }
  0x87   : > { %v625_v26 = vld [vmem:[%s3503_s4] sm:$0xff] (!%p587_p7)  ;;  %v626_v28 = vld [vmem:[%s3503_s4 + $0x8] sm:$0xff] (!%p587_p7) }
  0x88   : > { %v633_v27 = vld [vmem:[%s3503_s4 + $0x40] sm:$0xff] (!%p587_p7)  ;;  %v634_v30 = vld [vmem:[%s3503_s4 + $0x48] sm:$0xff] (!%p587_p7) }
  0x89   : > { %v2627_v29 = vcombine.high (!%p587_p7), %v625_v26, %v633_v27  ;;  %v2626_v31 = vcombine.low (!%p587_p7), %v625_v26, %v633_v27  ;;  %v641_v32 = vld [vmem:[%s3503_s4 + $0x80] sm:$0xff] (!%p587_p7)  ;;  %v2629_v34 = vcombine.high (!%p587_p7), %v626_v28, %v634_v30  ;;  %v2628_v35 = vcombine.low (!%p587_p7), %v626_v28, %v634_v30  ;;  %v642_v37 = vld [vmem:[%s3503_s4 + $0x88] sm:$0xff] (!%p587_p7) }
  0x8a   : > { %v649_v33 = vld [vmem:[%s3503_s4 + $0xc0] sm:$0xff]  ;;  %v650_v38 = vld [vmem:[%s3503_s4 + $0xc8] sm:$0xff]  ;;  %s3823_s9 = smov (!%p618_p8, %s2623_s9), 31 }
  0x8b   : > { %v2643_v36 = vcombine.high %v641_v32, %v649_v33  ;;  %v657_v39 = vld [vmem:[%s3503_s4 + $0x100] sm:$0xff]  ;;  %1990 = vmatprep.subr.bf16.mxu0 %v2627_v29  ;;  %v2645_v40 = vcombine.high %v642_v37, %v650_v38  ;;  %v658_v42 = vld [vmem:[%s3503_s4 + $0x108] sm:$0xff]  ;;  %2031 = vmatprep.subr.bf16.mxu1 %v2629_v34  ;;  %v2642_v44 = vcombine.low %v641_v32, %v649_v33  ;;  %s2624_s10 = sshll.u32 %s3823_s9, 1 }
  0x8c   : > { %v665_v41 = vld [vmem:[%s3503_s4 + $0x140] sm:$0xff]  ;;  %v666_v43 = vld [vmem:[%s3503_s4 + $0x148] sm:$0xff]  ;;  %1991 = vmatpush1.bf16.msra.mxu0 %v2626_v31  ;;  %2032 = vmatpush1.bf16.msra.mxu1 %v2628_v35  ;;  %v2644_v45 = vcombine.low %v642_v37, %v650_v38  ;;  %s3781_s14 = scalar_lea.vmem %s3818_s3, %s2624_s10 }
  0x8d   : > { %1992 = vmatprep.subr.bf16.mxu0 %v2643_v36  ;;  %v2659_v46 = vcombine.high %v657_v39, %v665_v41  ;;  %2033 = vmatprep.subr.bf16.mxu1 %v2645_v40  ;;  %v2661_v47 = vcombine.high %v658_v42, %v666_v43  ;;  %v673_v48 = vld [vmem:[%s3503_s4 + $0x180] sm:$0xff]  ;;  %v674_v50 = vld [vmem:[%s3503_s4 + $0x188] sm:$0xff]  ;;  %v2658_v52 = vcombine.low %v657_v39, %v665_v41 }
  0x8e   : > { %v681_v49 = vld [vmem:[%s3503_s4 + $0x1c0] sm:$0xff]  ;;  %v682_v51 = vld [vmem:[%s3503_s4 + $0x1c8] sm:$0xff]  ;;  %v2660_v53 = vcombine.low %v658_v42, %v666_v43 }
  0x8f   : > { %v2675_v54 = vcombine.high %v673_v48, %v681_v49  ;;  %v2677_v55 = vcombine.high %v674_v50, %v682_v51  ;;  %v689_v56 = vld [vmem:[%s3503_s4 + $0x200] sm:$0xff]  ;;  %v690_v58 = vld [vmem:[%s3503_s4 + $0x208] sm:$0xff]  ;;  %v2674_v60 = vcombine.low %v673_v48, %v681_v49  ;;  %v2676_v61 = vcombine.low %v674_v50, %v682_v51 }
  0x90   : > { %1993 = vmatpush1.bf16.msra.mxu0 %v2642_v44  ;;  %2034 = vmatpush1.bf16.msra.mxu1 %v2644_v45  ;;  %v697_v57 = vld [vmem:[%s3503_s4 + $0x240] sm:$0xff]  ;;  %v698_v59 = vld [vmem:[%s3503_s4 + $0x248] sm:$0xff] }
  0x91   : > { %1994 = vmatprep.subr.bf16.mxu0 %v2659_v46  ;;  %2035 = vmatprep.subr.bf16.mxu1 %v2661_v47  ;;  %v2691_v62 = vcombine.high %v689_v56, %v697_v57  ;;  %v2693_v63 = vcombine.high %v690_v58, %v698_v59  ;;  %v705_v0 = vld [vmem:[%s3503_s4 + $0x280] sm:$0xff]  ;;  %v706_v2 = vld [vmem:[%s3503_s4 + $0x288] sm:$0xff]  ;;  %v2690_v5 = vcombine.low %v689_v56, %v697_v57 }
  0x92   : > { %v713_v1 = vld [vmem:[%s3503_s4 + $0x2c0] sm:$0xff]  ;;  %v714_v3 = vld [vmem:[%s3503_s4 + $0x2c8] sm:$0xff]  ;;  %v2692_v6 = vcombine.low %v690_v58, %v698_v59 }
  0x93   : > { %v2707_v7 = vcombine.high %v705_v0, %v713_v1  ;;  %v2709_v8 = vcombine.high %v706_v2, %v714_v3  ;;  %v721_v9 = vld [vmem:[%s3503_s4 + $0x300] sm:$0xff]  ;;  %v722_v11 = vld [vmem:[%s3503_s4 + $0x308] sm:$0xff]  ;;  %v2706_v13 = vcombine.low %v705_v0, %v713_v1  ;;  %v2708_v14 = vcombine.low %v706_v2, %v714_v3 }
  0x94   : > { %1995 = vmatpush1.bf16.msra.mxu0 %v2658_v52  ;;  %2036 = vmatpush1.bf16.msra.mxu1 %v2660_v53  ;;  %v729_v10 = vld [vmem:[%s3503_s4 + $0x340] sm:$0xff]  ;;  %v730_v12 = vld [vmem:[%s3503_s4 + $0x348] sm:$0xff] }
  0x95   : > { %1996 = vmatprep.subr.bf16.mxu0 %v2675_v54  ;;  %2037 = vmatprep.subr.bf16.mxu1 %v2677_v55  ;;  %v2723_v15 = vcombine.high %v721_v9, %v729_v10  ;;  %v2725_v16 = vcombine.high %v722_v11, %v730_v12  ;;  %v737_v17 = vld [vmem:[%s3503_s4 + $0x380] sm:$0xff]  ;;  %v738_v19 = vld [vmem:[%s3503_s4 + $0x388] sm:$0xff]  ;;  %v2722_v21 = vcombine.low %v721_v9, %v729_v10 }
  0x96   : > { %v745_v18 = vld [vmem:[%s3503_s4 + $0x3c0] sm:$0xff]  ;;  %v746_v20 = vld [vmem:[%s3503_s4 + $0x3c8] sm:$0xff]  ;;  %v2724_v22 = vcombine.low %v722_v11, %v730_v12  ;;  %v627_v12 = vld [vmem:[%s3503_s4 + $0x10] sm:$0xff] }
  0x97   : > { %v2739_v23 = vcombine.high %v737_v17, %v745_v18  ;;  %v2741_v26 = vcombine.high %v738_v19, %v746_v20  ;;  %v753_v27 = vld [vmem:[%s3503_s4 + $0x400] sm:$0xff]  ;;  %v754_v29 = vld [vmem:[%s3503_s4 + $0x408] sm:$0xff]  ;;  %v2738_v31 = vcombine.low %v737_v17, %v745_v18  ;;  %v2740_v32 = vcombine.low %v738_v19, %v746_v20  ;;  %v643_v20 = vld [vmem:[%s3503_s4 + $0x90] sm:$0xff] }
  0x98   : > { %1997 = vmatpush1.bf16.msra.mxu0 %v2674_v60  ;;  %2038 = vmatpush1.bf16.msra.mxu1 %v2676_v61  ;;  %v761_v28 = vld [vmem:[%s3503_s4 + $0x440] sm:$0xff]  ;;  %v762_v30 = vld [vmem:[%s3503_s4 + $0x448] sm:$0xff] }
  0x99   : > { %1998 = vmatprep.subr.bf16.mxu0 %v2691_v62  ;;  %2039 = vmatprep.subr.bf16.mxu1 %v2693_v63  ;;  %v2755_v33 = vcombine.high %v753_v27, %v761_v28  ;;  %v2757_v34 = vcombine.high %v754_v29, %v762_v30  ;;  %v769_v35 = vld [vmem:[%s3503_s4 + $0x480] sm:$0xff]  ;;  %v770_v37 = vld [vmem:[%s3503_s4 + $0x488] sm:$0xff]  ;;  %v2754_v39 = vcombine.low %v753_v27, %v761_v28 }
  0x9a   : > { %v777_v36 = vld [vmem:[%s3503_s4 + $0x4c0] sm:$0xff]  ;;  %v778_v38 = vld [vmem:[%s3503_s4 + $0x4c8] sm:$0xff]  ;;  %v2756_v40 = vcombine.low %v754_v29, %v762_v30  ;;  %v659_v30 = vld [vmem:[%s3503_s4 + $0x110] sm:$0xff] }
  0x9b   : > { %v2771_v41 = vcombine.high %v769_v35, %v777_v36  ;;  %v2773_v42 = vcombine.high %v770_v37, %v778_v38  ;;  %v785_v43 = vld [vmem:[%s3503_s4 + $0x500] sm:$0xff]  ;;  %v786_v45 = vld [vmem:[%s3503_s4 + $0x508] sm:$0xff]  ;;  %v2770_v47 = vcombine.low %v769_v35, %v777_v36  ;;  %v2772_v48 = vcombine.low %v770_v37, %v778_v38  ;;  %v675_v38 = vld [vmem:[%s3503_s4 + $0x190] sm:$0xff] }
  0x9c   : > { %1999 = vmatpush1.bf16.msra.mxu0 %v2690_v5  ;;  %2040 = vmatpush1.bf16.msra.mxu1 %v2692_v6  ;;  %v793_v44 = vld [vmem:[%s3503_s4 + $0x540] sm:$0xff]  ;;  %v794_v46 = vld [vmem:[%s3503_s4 + $0x548] sm:$0xff] }
  0x9d   : > { %2000 = vmatprep.subr.bf16.mxu0 %v2707_v7  ;;  %2041 = vmatprep.subr.bf16.mxu1 %v2709_v8  ;;  %v2787_v49 = vcombine.high %v785_v43, %v793_v44  ;;  %v2789_v50 = vcombine.high %v786_v45, %v794_v46  ;;  %v801_v51 = vld [vmem:[%s3503_s4 + $0x580] sm:$0xff]  ;;  %v802_v53 = vld [vmem:[%s3503_s4 + $0x588] sm:$0xff]  ;;  %v2786_v55 = vcombine.low %v785_v43, %v793_v44 }
  0x9e   : > { %v809_v52 = vld [vmem:[%s3503_s4 + $0x5c0] sm:$0xff]  ;;  %v810_v54 = vld [vmem:[%s3503_s4 + $0x5c8] sm:$0xff]  ;;  %v2788_v56 = vcombine.low %v786_v45, %v794_v46  ;;  %v691_v46 = vld [vmem:[%s3503_s4 + $0x210] sm:$0xff] }
  0x9f   : > { %v2803_v57 = vcombine.high %v801_v51, %v809_v52  ;;  %v2805_v58 = vcombine.high %v802_v53, %v810_v54  ;;  %v817_v59 = vld [vmem:[%s3503_s4 + $0x600] sm:$0xff]  ;;  %v818_v61 = vld [vmem:[%s3503_s4 + $0x608] sm:$0xff]  ;;  %v2802_v63 = vcombine.low %v801_v51, %v809_v52  ;;  %v2804_v0 = vcombine.low %v802_v53, %v810_v54  ;;  %v707_v54 = vld [vmem:[%s3503_s4 + $0x290] sm:$0xff] }
  0xa0   : > { %2001 = vmatpush1.bf16.msra.mxu0 %v2706_v13  ;;  %2042 = vmatpush1.bf16.msra.mxu1 %v2708_v14  ;;  %v825_v60 = vld [vmem:[%s3503_s4 + $0x640] sm:$0xff]  ;;  %v826_v62 = vld [vmem:[%s3503_s4 + $0x648] sm:$0xff]  ;;  %v635_v13 = vld [vmem:[%s3503_s4 + $0x50] sm:$0xff] }
  0xa1   : > { %2002 = vmatprep.subr.bf16.mxu0 %v2723_v15  ;;  %2043 = vmatprep.subr.bf16.mxu1 %v2725_v16  ;;  %v2819_v1 = vcombine.high %v817_v59, %v825_v60  ;;  %v841_v2 = vld [vmem:[%s3817_s2] sm:$0xf]  ;;  %v2821_v3 = vcombine.high %v818_v61, %v826_v62  ;;  %v834_v5 = vld [vmem:[%s3503_s4 + $0x688] sm:$0xff]  ;;  %v2818_v6 = vcombine.low %v817_v59, %v825_v60  ;;  %v628_v14 = vld [vmem:[%s3503_s4 + $0x18] sm:$0xff] }
  0xa2   : > { %v833_v4 = vld [vmem:[%s3503_s4 + $0x680] sm:$0xff]  ;;  %844 = vperm.xlu0 %2921, %v841_v2   ;;  %v2820_v7 = vcombine.low %v818_v61, %v826_v62  ;;  %v2837_v10 = vcombine.high %v834_v5, %v834_v5  ;;  %v2836_v11 = vcombine.low %v834_v5, %v834_v5  ;;  %v636_v15 = vld [vmem:[%s3503_s4 + $0x58] sm:$0xff]  ;;  %v2631_v17 = vcombine.high %v627_v12, %v635_v13  ;;  %v723_v62 = vld [vmem:[%s3503_s4 + $0x310] sm:$0xff] }
  0xa3   : > { %v2835_v8 = vcombine.high %v833_v4, %v833_v4  ;;  %v2834_v9 = vcombine.low %v833_v4, %v833_v4  ;;  %v2633_v19 = vcombine.high %v628_v14, %v636_v15  ;;  %v2632_v27 = vcombine.low %v628_v14, %v636_v15  ;;  %v755_v14 = vld [vmem:[%s3503_s4 + $0x410] sm:$0xff] }
  0xa4   : > { %2003 = vmatpush1.bf16.msra.mxu0 %v2722_v21  ;;  %2044 = vmatpush1.bf16.msra.mxu1 %v2724_v22  ;;  %v1949_v18 = vsel %vm1941_vm1, %v2836_v11, 0  ;;  %v651_v21 = vld [vmem:[%s3503_s4 + $0xd0] sm:$0xff]  ;;  %v644_v22 = vld [vmem:[%s3503_s4 + $0x98] sm:$0xff] }
  0xa5   : > { %2004 = vmatprep.subr.bf16.mxu0 %v2739_v23  ;;  %2045 = vmatprep.subr.bf16.mxu1 %v2741_v26  ;;  %v1943_v16 = vsel %vm1941_vm1, %v2834_v9, 0  ;;  %v652_v23 = vld [vmem:[%s3503_s4 + $0xd8] sm:$0xff]  ;;  %v2630_v26 = vcombine.low %v627_v12, %v635_v13  ;;  %v2647_v28 = vcombine.high %v643_v20, %v651_v21  ;;  %v763_v15 = vld [vmem:[%s3503_s4 + $0x450] sm:$0xff] }
  0xa6   : > { %v2649_v29 = vcombine.high %v644_v22, %v652_v23  ;;  %v2648_v35 = vcombine.low %v644_v22, %v652_v23  ;;  %v748_v9 = vld [vmem:[%s3503_s4 + $0x3d8] sm:$0xff]  ;;  %v771_v22 = vld [vmem:[%s3503_s4 + $0x490] sm:$0xff] }
  0xa7   : > { %v779_v23 = vld [vmem:[%s3503_s4 + $0x4d0] sm:$0xff] }
  0xa8   : > { %2005 = vmatpush1.bf16.msra.mxu0 %v2738_v31  ;;  %2046 = vmatpush1.bf16.msra.mxu1 %v2740_v32  ;;  %v667_v31 = vld [vmem:[%s3503_s4 + $0x150] sm:$0xff]  ;;  %v660_v32 = vld [vmem:[%s3503_s4 + $0x118] sm:$0xff] }
  0xa9   : > { %2006 = vmatprep.subr.bf16.mxu0 %v2755_v33  ;;  %2047 = vmatprep.subr.bf16.mxu1 %v2757_v34  ;;  %v668_v33 = vld [vmem:[%s3503_s4 + $0x158] sm:$0xff]  ;;  %v2646_v34 = vcombine.low %v643_v20, %v651_v21  ;;  %v2663_v36 = vcombine.high %v659_v30, %v667_v31  ;;  %v2759_v20 = vcombine.high %v755_v14, %v763_v15 }
  0xaa   : > { %v2665_v37 = vcombine.high %v660_v32, %v668_v33  ;;  %v2664_v43 = vcombine.low %v660_v32, %v668_v33  ;;  %v787_v32 = vld [vmem:[%s3503_s4 + $0x510] sm:$0xff] }
  0xab   : > { %v795_v33 = vld [vmem:[%s3503_s4 + $0x550] sm:$0xff] }
  0xac   : > { %2007 = vmatpush1.bf16.msra.mxu0 %v2754_v39  ;;  %2048 = vmatpush1.bf16.msra.mxu1 %v2756_v40  ;;  %v683_v39 = vld [vmem:[%s3503_s4 + $0x1d0] sm:$0xff]  ;;  %v676_v40 = vld [vmem:[%s3503_s4 + $0x198] sm:$0xff] }
  0xad   : > { %2008 = vmatprep.subr.bf16.mxu0 %v2771_v41  ;;  %2049 = vmatprep.subr.bf16.mxu1 %v2773_v42  ;;  %v684_v41 = vld [vmem:[%s3503_s4 + $0x1d8] sm:$0xff]  ;;  %v2662_v42 = vcombine.low %v659_v30, %v667_v31  ;;  %v2679_v44 = vcombine.high %v675_v38, %v683_v39  ;;  %v2775_v30 = vcombine.high %v771_v22, %v779_v23 }
  0xae   : > { %v2681_v45 = vcombine.high %v676_v40, %v684_v41  ;;  %v2680_v51 = vcombine.low %v676_v40, %v684_v41  ;;  %v803_v40 = vld [vmem:[%s3503_s4 + $0x590] sm:$0xff] }
  0xaf   : > { %v811_v41 = vld [vmem:[%s3503_s4 + $0x5d0] sm:$0xff] }
  0xb0   : > { %2009 = vmatpush1.bf16.msra.mxu0 %v2770_v47  ;;  %2050 = vmatpush1.bf16.msra.mxu1 %v2772_v48  ;;  %v699_v47 = vld [vmem:[%s3503_s4 + $0x250] sm:$0xff]  ;;  %v692_v48 = vld [vmem:[%s3503_s4 + $0x218] sm:$0xff] }
  0xb1   : > { %2010 = vmatprep.subr.bf16.mxu0 %v2787_v49  ;;  %2051 = vmatprep.subr.bf16.mxu1 %v2789_v50  ;;  %v700_v49 = vld [vmem:[%s3503_s4 + $0x258] sm:$0xff]  ;;  %v2678_v50 = vcombine.low %v675_v38, %v683_v39  ;;  %v2695_v52 = vcombine.high %v691_v46, %v699_v47  ;;  %v2791_v38 = vcombine.high %v787_v32, %v795_v33 }
  0xb2   : > { %v2697_v53 = vcombine.high %v692_v48, %v700_v49  ;;  %v2696_v59 = vcombine.low %v692_v48, %v700_v49  ;;  %v819_v48 = vld [vmem:[%s3503_s4 + $0x610] sm:$0xff] }
  0xb3   : > { %v827_v49 = vld [vmem:[%s3503_s4 + $0x650] sm:$0xff] }
  0xb4   : > { %2011 = vmatpush1.bf16.msra.mxu0 %v2786_v55  ;;  %2052 = vmatpush1.bf16.msra.mxu1 %v2788_v56  ;;  %v715_v55 = vld [vmem:[%s3503_s4 + $0x2d0] sm:$0xff]  ;;  %v708_v56 = vld [vmem:[%s3503_s4 + $0x298] sm:$0xff] }
  0xb5   : > { %2012 = vmatprep.subr.bf16.mxu0 %v2803_v57  ;;  %2053 = vmatprep.subr.bf16.mxu1 %v2805_v58  ;;  %v716_v57 = vld [vmem:[%s3503_s4 + $0x2d8] sm:$0xff]  ;;  %v2694_v58 = vcombine.low %v691_v46, %v699_v47  ;;  %v2711_v60 = vcombine.high %v707_v54, %v715_v55  ;;  %v2710_v2 = vcombine.low %v707_v54, %v715_v55 }
  0xb6   : > { %v2713_v61 = vcombine.high %v708_v56, %v716_v57  ;;  %v2807_v46 = vcombine.high %v803_v40, %v811_v41  ;;  %v2823_v54 = vcombine.high %v819_v48, %v827_v49 }
  0xb8   : > { %2013 = vmatpush1.bf16.msra.mxu0 %v2802_v63  ;;  %2054 = vmatpush1.bf16.msra.mxu1 %v2804_v0  ;;  %v731_v63 = vld [vmem:[%s3503_s4 + $0x350] sm:$0xff]  ;;  %v724_v0 = vld [vmem:[%s3503_s4 + $0x318] sm:$0xff] }
  0xb9   : > { %2014 = vmatprep.subr.bf16.mxu0 %v2819_v1  ;;  %2055 = vmatprep.subr.bf16.mxu1 %v2821_v3  ;;  %v732_v1 = vld [vmem:[%s3503_s4 + $0x358] sm:$0xff]  ;;  %v2712_v3 = vcombine.low %v708_v56, %v716_v57  ;;  %v2727_v4 = vcombine.high %v723_v62, %v731_v63  ;;  %v835_v56 = vld [vmem:[%s3503_s4 + $0x690] sm:$0xff] }
  0xba   : > { %v2729_v5 = vcombine.high %v724_v0, %v732_v1  ;;  %v2728_v11 = vcombine.low %v724_v0, %v732_v1  ;;  %v836_v57 = vld [vmem:[%s3503_s4 + $0x698] sm:$0xff]  ;;  %v629_v0 = vld [vmem:[%s3503_s4 + $0x20] sm:$0xff] }
  0xbb   : > { %v637_v1 = vld [vmem:[%s3503_s4 + $0x60] sm:$0xff] }
  0xbc   : > { %2015 = vmatpush1.bf16.msra.mxu0 %v2818_v6  ;;  %2056 = vmatpush1.bf16.msra.mxu1 %v2820_v7  ;;  %v739_v6 = vld [vmem:[%s3503_s4 + $0x390] sm:$0xff] }
  0xbd   : > { %2850 = vmatprep.subr.msk.bf16.mxu0 %vm1941_vm1, %v2835_v8  ;;  %2852 = vmatprep.subr.msk.bf16.mxu1 %vm1941_vm1, %v2837_v10  ;;  %v747_v7 = vld [vmem:[%s3503_s4 + $0x3d0] sm:$0xff]  ;;  %v740_v8 = vld [vmem:[%s3503_s4 + $0x398] sm:$0xff]  ;;  %v2726_v10 = vcombine.low %v723_v62, %v731_v63  ;;  %v2841_v62 = vcombine.high %v836_v57, %v836_v57  ;;  %v2840_v63 = vcombine.low %v836_v57, %v836_v57  ;;  %v741_v57 = vld [vmem:[%s3503_s4 + $0x3a0] sm:$0xff] }
  0xbe   : > { %v2743_v12 = vcombine.high %v739_v6, %v747_v7  ;;  %v2745_v13 = vcombine.high %v740_v8, %v748_v9 }
  0xc0   : > { %2017 = vmatpush1.bf16.msra.mxu0 %v1943_v16  ;;  %2058 = vmatpush1.bf16.msra.mxu1 %v1949_v18  ;;  %v756_v16 = vld [vmem:[%s3503_s4 + $0x418] sm:$0xff]  ;;  %v2742_v18 = vcombine.low %v739_v6, %v747_v7  ;;  %v1961_v6 = vsel %vm1941_vm1, %v2840_v63, 0 }
  0xc1   : > { %2072 = vmatprep.subr.bf16.mxu0 %v2631_v17  ;;  %2113 = vmatprep.subr.bf16.mxu1 %v2633_v19  ;;  %v764_v17 = vld [vmem:[%s3503_s4 + $0x458] sm:$0xff]  ;;  %v2744_v19 = vcombine.low %v740_v8, %v748_v9  ;;  %v645_v8 = vld [vmem:[%s3503_s4 + $0xa0] sm:$0xff] }
  0xc2   : > { %v2761_v21 = vcombine.high %v756_v16, %v764_v17  ;;  %v653_v9 = vld [vmem:[%s3503_s4 + $0xe0] sm:$0xff] }
  0xc3   : > { %2023 = vmatmul.mubr.bf16.vlgmr.msra.gmra.mrb[0].mxu0 %v3493_v24  ;;  %2064 = vmatmul.mubr.bf16.vlgmr.msra.gmra.mrb[0].mxu1 %v3493_v24 }
  0xc4   : > { %2073 = vmatpush1.bf16.msra.mxu0 %v2630_v26  ;;  %2114 = vmatpush1.bf16.msra.mxu1 %v2632_v27  ;;  %v772_v26 = vld [vmem:[%s3503_s4 + $0x498] sm:$0xff] }
  0xc5   : > { %2074 = vmatprep.subr.bf16.mxu0 %v2647_v28  ;;  %2115 = vmatprep.subr.bf16.mxu1 %v2649_v29  ;;  %v780_v27 = vld [vmem:[%s3503_s4 + $0x4d8] sm:$0xff]  ;;  %v2758_v28 = vcombine.low %v755_v14, %v763_v15  ;;  %v2760_v29 = vcombine.low %v756_v16, %v764_v17  ;;  %v2651_v14 = vcombine.high %v645_v8, %v653_v9  ;;  %v661_v16 = vld [vmem:[%s3503_s4 + $0x120] sm:$0xff] }
  0xc6   : > { %2855 = vmatprep.mubr.msk.bf16.mxu0 %vm1937_vm0, %v3497_v25  ;;  %2857 = vmatprep.mubr.msk.bf16.mxu1 %vm1937_vm0, %v3497_v25  ;;  %v2777_v31 = vcombine.high %v772_v26, %v780_v27  ;;  %v669_v17 = vld [vmem:[%s3503_s4 + $0x160] sm:$0xff] }
  0xc8   : > { %2075 = vmatpush1.bf16.msra.mxu0 %v2646_v34  ;;  %2116 = vmatpush1.bf16.msra.mxu1 %v2648_v35  ;;  %v788_v34 = vld [vmem:[%s3503_s4 + $0x518] sm:$0xff] }
  0xc9   : > { %2076 = vmatprep.subr.bf16.mxu0 %v2663_v36  ;;  %2117 = vmatprep.subr.bf16.mxu1 %v2665_v37  ;;  %v796_v35 = vld [vmem:[%s3503_s4 + $0x558] sm:$0xff]  ;;  %v2774_v36 = vcombine.low %v771_v22, %v779_v23  ;;  %v2776_v37 = vcombine.low %v772_v26, %v780_v27  ;;  %v2667_v22 = vcombine.high %v661_v16, %v669_v17  ;;  %v677_v26 = vld [vmem:[%s3503_s4 + $0x1a0] sm:$0xff] }
  0xca   : > { %v2793_v39 = vcombine.high %v788_v34, %v796_v35  ;;  %v685_v27 = vld [vmem:[%s3503_s4 + $0x1e0] sm:$0xff] }
  0xcc   : > { %2077 = vmatpush1.bf16.msra.mxu0 %v2662_v42  ;;  %2118 = vmatpush1.bf16.msra.mxu1 %v2664_v43  ;;  %v804_v42 = vld [vmem:[%s3503_s4 + $0x598] sm:$0xff] }
  0xcd   : > { %2078 = vmatprep.subr.bf16.mxu0 %v2679_v44  ;;  %2119 = vmatprep.subr.bf16.mxu1 %v2681_v45  ;;  %v812_v43 = vld [vmem:[%s3503_s4 + $0x5d8] sm:$0xff]  ;;  %v2790_v44 = vcombine.low %v787_v32, %v795_v33  ;;  %v2792_v45 = vcombine.low %v788_v34, %v796_v35  ;;  %v693_v33 = vld [vmem:[%s3503_s4 + $0x220] sm:$0xff]  ;;  %v694_v35 = vld [vmem:[%s3503_s4 + $0x228] sm:$0xff] }
  0xce   : > { %v2809_v47 = vcombine.high %v804_v42, %v812_v43  ;;  %v701_v34 = vld [vmem:[%s3503_s4 + $0x260] sm:$0xff] }
  0xd0   : > { %2079 = vmatpush1.bf16.msra.mxu0 %v2678_v50  ;;  %2120 = vmatpush1.bf16.msra.mxu1 %v2680_v51  ;;  %v820_v50 = vld [vmem:[%s3503_s4 + $0x618] sm:$0xff] }
  0xd1   : > { %2080 = vmatprep.subr.bf16.mxu0 %v2695_v52  ;;  %2121 = vmatprep.subr.bf16.mxu1 %v2697_v53  ;;  %v828_v51 = vld [vmem:[%s3503_s4 + $0x658] sm:$0xff]  ;;  %v2806_v52 = vcombine.low %v803_v40, %v811_v41  ;;  %v2808_v53 = vcombine.low %v804_v42, %v812_v43  ;;  %v709_v41 = vld [vmem:[%s3503_s4 + $0x2a0] sm:$0xff]  ;;  %v710_v43 = vld [vmem:[%s3503_s4 + $0x2a8] sm:$0xff] }
  0xd2   : > { %v2825_v55 = vcombine.high %v820_v50, %v828_v51  ;;  %v717_v42 = vld [vmem:[%s3503_s4 + $0x2e0] sm:$0xff] }
  0xd4   : > { %2081 = vmatpush1.bf16.msra.mxu0 %v2694_v58  ;;  %2122 = vmatpush1.bf16.msra.mxu1 %v2696_v59  ;;  %v2822_v58 = vcombine.low %v819_v48, %v827_v49  ;;  %v2824_v59 = vcombine.low %v820_v50, %v828_v51  ;;  %v725_v49 = vld [vmem:[%s3503_s4 + $0x320] sm:$0xff]  ;;  %v726_v51 = vld [vmem:[%s3503_s4 + $0x328] sm:$0xff] }
  0xd5   : > { %2082 = vmatprep.subr.bf16.mxu0 %v2711_v60  ;;  %2123 = vmatprep.subr.bf16.mxu1 %v2713_v61  ;;  %v2839_v60 = vcombine.high %v835_v56, %v835_v56  ;;  %v2838_v61 = vcombine.low %v835_v56, %v835_v56  ;;  %v733_v50 = vld [vmem:[%s3503_s4 + $0x360] sm:$0xff] }
  0xd8   : > { %2083 = vmatpush1.bf16.msra.mxu0 %v2710_v2  ;;  %2124 = vmatpush1.bf16.msra.mxu1 %v2712_v3  ;;  %v630_v2 = vld [vmem:[%s3503_s4 + $0x28] sm:$0xff] }
  0xd9   : > { %2084 = vmatprep.subr.bf16.mxu0 %v2727_v4  ;;  %2125 = vmatprep.subr.bf16.mxu1 %v2729_v5  ;;  %v638_v3 = vld [vmem:[%s3503_s4 + $0x68] sm:$0xff]  ;;  %v1955_v4 = vsel %vm1941_vm1, %v2838_v61, 0  ;;  %v2635_v5 = vcombine.high %v629_v0, %v637_v1  ;;  %v2730_v61 = vcombine.low %v725_v49, %v733_v50 }
  0xda   : > { %v2637_v7 = vcombine.high %v630_v2, %v638_v3 }
  0xdc   : > { %2085 = vmatpush1.bf16.msra.mxu0 %v2726_v10  ;;  %2126 = vmatpush1.bf16.msra.mxu1 %v2728_v11  ;;  %v646_v10 = vld [vmem:[%s3503_s4 + $0xa8] sm:$0xff] }
  0xdd   : > { %2086 = vmatprep.subr.bf16.mxu0 %v2743_v12  ;;  %2127 = vmatprep.subr.bf16.mxu1 %v2745_v13  ;;  %v654_v11 = vld [vmem:[%s3503_s4 + $0xe8] sm:$0xff]  ;;  %v2634_v12 = vcombine.low %v629_v0, %v637_v1  ;;  %v2636_v13 = vcombine.low %v630_v2, %v638_v3  ;;  %v757_v1 = vld [vmem:[%s3503_s4 + $0x420] sm:$0xff] }
  0xde   : > { %v2653_v15 = vcombine.high %v646_v10, %v654_v11  ;;  %v765_v2 = vld [vmem:[%s3503_s4 + $0x460] sm:$0xff]  ;;  %v758_v3 = vld [vmem:[%s3503_s4 + $0x428] sm:$0xff] }
  0xe0   : > { %2087 = vmatpush1.bf16.msra.mxu0 %v2742_v18  ;;  %2128 = vmatpush1.bf16.msra.mxu1 %v2744_v19  ;;  %v662_v18 = vld [vmem:[%s3503_s4 + $0x128] sm:$0xff] }
  0xe1   : > { %2088 = vmatprep.subr.bf16.mxu0 %v2759_v20  ;;  %2129 = vmatprep.subr.bf16.mxu1 %v2761_v21  ;;  %v670_v19 = vld [vmem:[%s3503_s4 + $0x168] sm:$0xff]  ;;  %v2650_v20 = vcombine.low %v645_v8, %v653_v9  ;;  %v2652_v21 = vcombine.low %v646_v10, %v654_v11  ;;  %v773_v9 = vld [vmem:[%s3503_s4 + $0x4a0] sm:$0xff] }
  0xe2   : > { %v2669_v23 = vcombine.high %v662_v18, %v670_v19  ;;  %v781_v10 = vld [vmem:[%s3503_s4 + $0x4e0] sm:$0xff]  ;;  %v774_v11 = vld [vmem:[%s3503_s4 + $0x4a8] sm:$0xff] }
  0xe4   : > { %2089 = vmatpush1.bf16.msra.mxu0 %v2758_v28  ;;  %2130 = vmatpush1.bf16.msra.mxu1 %v2760_v29  ;;  %v678_v28 = vld [vmem:[%s3503_s4 + $0x1a8] sm:$0xff] }
  0xe5   : > { %2090 = vmatprep.subr.bf16.mxu0 %v2775_v30  ;;  %2131 = vmatprep.subr.bf16.mxu1 %v2777_v31  ;;  %v686_v29 = vld [vmem:[%s3503_s4 + $0x1e8] sm:$0xff]  ;;  %v2668_v30 = vcombine.low %v662_v18, %v670_v19  ;;  %v2683_v31 = vcombine.high %v677_v26, %v685_v27  ;;  %v797_v18 = vld [vmem:[%s3503_s4 + $0x560] sm:$0xff] }
  0xe6   : > { %v2685_v32 = vcombine.high %v678_v28, %v686_v29  ;;  %v790_v19 = vld [vmem:[%s3503_s4 + $0x528] sm:$0xff] }
  0xe8   : > { %2091 = vmatpush1.bf16.msra.mxu0 %v2774_v36  ;;  %2132 = vmatpush1.bf16.msra.mxu1 %v2776_v37  ;;  %v702_v36 = vld [vmem:[%s3503_s4 + $0x268] sm:$0xff]  ;;  %v2682_v37 = vcombine.low %v677_v26, %v685_v27  ;;  %v805_v27 = vld [vmem:[%s3503_s4 + $0x5a0] sm:$0xff] }
  0xe9   : > { %2092 = vmatprep.subr.bf16.mxu0 %v2791_v38  ;;  %2133 = vmatprep.subr.bf16.mxu1 %v2793_v39  ;;  %v2684_v38 = vcombine.low %v678_v28, %v686_v29  ;;  %v2699_v39 = vcombine.high %v693_v33, %v701_v34  ;;  %v2701_v40 = vcombine.high %v694_v35, %v702_v36  ;;  %v813_v28 = vld [vmem:[%s3503_s4 + $0x5e0] sm:$0xff]  ;;  %v806_v29 = vld [vmem:[%s3503_s4 + $0x5a8] sm:$0xff] }
  0xec   : > { %2093 = vmatpush1.bf16.msra.mxu0 %v2790_v44  ;;  %2134 = vmatpush1.bf16.msra.mxu1 %v2792_v45  ;;  %v718_v44 = vld [vmem:[%s3503_s4 + $0x2e8] sm:$0xff]  ;;  %v2698_v45 = vcombine.low %v693_v33, %v701_v34  ;;  %v821_v34 = vld [vmem:[%s3503_s4 + $0x620] sm:$0xff] }
  0xed   : > { %2094 = vmatprep.subr.bf16.mxu0 %v2807_v46  ;;  %2135 = vmatprep.subr.bf16.mxu1 %v2809_v47  ;;  %v2700_v46 = vcombine.low %v694_v35, %v702_v36  ;;  %v2715_v47 = vcombine.high %v709_v41, %v717_v42  ;;  %v2717_v48 = vcombine.high %v710_v43, %v718_v44  ;;  %v829_v35 = vld [vmem:[%s3503_s4 + $0x660] sm:$0xff]  ;;  %v822_v36 = vld [vmem:[%s3503_s4 + $0x628] sm:$0xff] }
  0xf0   : > { %2095 = vmatpush1.bf16.msra.mxu0 %v2806_v52  ;;  %2136 = vmatpush1.bf16.msra.mxu1 %v2808_v53  ;;  %v734_v52 = vld [vmem:[%s3503_s4 + $0x368] sm:$0xff]  ;;  %v2714_v53 = vcombine.low %v709_v41, %v717_v42  ;;  %v837_v42 = vld [vmem:[%s3503_s4 + $0x6a0] sm:$0xff] }
  0xf1   : > { %2096 = vmatprep.subr.bf16.mxu0 %v2823_v54  ;;  %2137 = vmatprep.subr.bf16.mxu1 %v2825_v55  ;;  %v2716_v54 = vcombine.low %v710_v43, %v718_v44  ;;  %v2731_v55 = vcombine.high %v725_v49, %v733_v50  ;;  %v2733_v56 = vcombine.high %v726_v51, %v734_v52  ;;  %v838_v43 = vld [vmem:[%s3503_s4 + $0x6a8] sm:$0xff]  ;;  %v631_v50 = vld [vmem:[%s3503_s4 + $0x30] sm:$0xff] }
  0xf2   : > { %v2826_v44 = vcombine.low %v821_v34, %v829_v35  ;;  %v2844_v49 = vcombine.low %v838_v43, %v838_v43 }
  0xf4   : > { %2097 = vmatpush1.bf16.msra.mxu0 %v2822_v58  ;;  %2138 = vmatpush1.bf16.msra.mxu1 %v2824_v59  ;;  %v749_v58 = vld [vmem:[%s3503_s4 + $0x3e0] sm:$0xff]  ;;  %v742_v59 = vld [vmem:[%s3503_s4 + $0x3a8] sm:$0xff] }
  0xf5   : > { %2854 = vmatprep.subr.msk.bf16.mxu0 %vm1941_vm1, %v2839_v60  ;;  %2856 = vmatprep.subr.msk.bf16.mxu1 %vm1941_vm1, %v2841_v62  ;;  %v750_v60 = vld [vmem:[%s3503_s4 + $0x3e8] sm:$0xff]  ;;  %v2732_v62 = vcombine.low %v726_v51, %v734_v52  ;;  %v2747_v63 = vcombine.high %v741_v57, %v749_v58  ;;  %v639_v51 = vld [vmem:[%s3503_s4 + $0x70] sm:$0xff]  ;;  %v632_v52 = vld [vmem:[%s3503_s4 + $0x38] sm:$0xff] }
  0xf6   : > { %v2749_v0 = vcombine.high %v742_v59, %v750_v60 }
  0xf8   : > { %2099 = vmatpush1.bf16.msra.mxu0 %v1955_v4  ;;  %2140 = vmatpush1.bf16.msra.mxu1 %v1961_v6  ;;  %v766_v4 = vld [vmem:[%s3503_s4 + $0x468] sm:$0xff]  ;;  %v2748_v6 = vcombine.low %v742_v59, %v750_v60  ;;  %v655_v59 = vld [vmem:[%s3503_s4 + $0xf0] sm:$0xff]  ;;  %v648_v60 = vld [vmem:[%s3503_s4 + $0xb8] sm:$0xff] }
  0xf9   : > { %2154 = vmatprep.subr.bf16.mxu0 %v2635_v5  ;;  %2195 = vmatprep.subr.bf16.mxu1 %v2637_v7  ;;  %v2746_v5 = vcombine.low %v741_v57, %v749_v58  ;;  %v2763_v7 = vcombine.high %v757_v1, %v765_v2  ;;  %v2765_v8 = vcombine.high %v758_v3, %v766_v4  ;;  %v647_v58 = vld [vmem:[%s3503_s4 + $0xb0] sm:$0xff] }
  0xfb   : > { %2105 = vmatmul.mubr.bf16.vlgmr.msra.gmra.mrb[4].mxu0 %v3493_v24  ;;  %2146 = vmatmul.mubr.bf16.vlgmr.msra.gmra.mrb[4].mxu1 %v3493_v24  ;;  %v2666_v24 = vcombine.low %v661_v16, %v669_v17  ;;  %v789_v17 = vld [vmem:[%s3503_s4 + $0x520] sm:$0xff] }
  0xfc   : > { %2155 = vmatpush1.bf16.msra.mxu0 %v2634_v12  ;;  %2196 = vmatpush1.bf16.msra.mxu1 %v2636_v13  ;;  %v782_v12 = vld [vmem:[%s3503_s4 + $0x4e8] sm:$0xff]  ;;  %v2762_v13 = vcombine.low %v757_v1, %v765_v2  ;;  %v663_v2 = vld [vmem:[%s3503_s4 + $0x130] sm:$0xff] }
  0xfd   : > { %2156 = vmatprep.subr.bf16.mxu0 %v2651_v14  ;;  %2197 = vmatprep.subr.bf16.mxu1 %v2653_v15  ;;  %v2764_v14 = vcombine.low %v758_v3, %v766_v4  ;;  %v2779_v15 = vcombine.high %v773_v9, %v781_v10  ;;  %v2781_v16 = vcombine.high %v774_v11, %v782_v12  ;;  %v671_v3 = vld [vmem:[%s3503_s4 + $0x170] sm:$0xff]  ;;  %v3707_v4 = vld.sshfl [vmem:[%s3815_s0] sm:$0x33 pattern:$0x76325410] }
  0xfe   : > { %2859 = vmatprep.mubr.msk.bf16.mxu0 %vm1937_vm0, %v3497_v25  ;;  %2861 = vmatprep.mubr.msk.bf16.mxu1 %vm1937_vm0, %v3497_v25 }
 0x100   : > { %2157 = vmatpush1.bf16.msra.mxu0 %v2650_v20  ;;  %2198 = vmatpush1.bf16.msra.mxu1 %v2652_v21  ;;  %v798_v20 = vld [vmem:[%s3503_s4 + $0x568] sm:$0xff]  ;;  %v2778_v21 = vcombine.low %v773_v9, %v781_v10  ;;  %v2671_v9 = vcombine.high %v663_v2, %v671_v3 }
 0x101   : > { %2158 = vmatprep.subr.bf16.mxu0 %v2667_v22  ;;  %2199 = vmatprep.subr.bf16.mxu1 %v2669_v23  ;;  %v2780_v22 = vcombine.low %v774_v11, %v782_v12  ;;  %v2795_v23 = vcombine.high %v789_v17, %v797_v18  ;;  %v2797_v26 = vcombine.high %v790_v19, %v798_v20  ;;  %v679_v11 = vld [vmem:[%s3503_s4 + $0x1b0] sm:$0xff] }
 0x102   : > { %v687_v12 = vld [vmem:[%s3503_s4 + $0x1f0] sm:$0xff] }
 0x104   : > { %2159 = vmatpush1.bf16.msra.mxu0 %v2666_v24  ;;  %2200 = vmatpush1.bf16.msra.mxu1 %v2668_v30  ;;  %v814_v24 = vld [vmem:[%s3503_s4 + $0x5e8] sm:$0xff]  ;;  %v2794_v30 = vcombine.low %v789_v17, %v797_v18  ;;  %v2687_v17 = vcombine.high %v679_v11, %v687_v12 }
 0x105   : > { %2160 = vmatprep.subr.bf16.mxu0 %v2683_v31  ;;  %2201 = vmatprep.subr.bf16.mxu1 %v2685_v32  ;;  %v2796_v31 = vcombine.low %v790_v19, %v798_v20  ;;  %v2811_v32 = vcombine.high %v805_v27, %v813_v28  ;;  %v2813_v33 = vcombine.high %v806_v29, %v814_v24  ;;  %v695_v19 = vld [vmem:[%s3503_s4 + $0x230] sm:$0xff] }
 0x106   : > { %v703_v20 = vld [vmem:[%s3503_s4 + $0x270] sm:$0xff] }
 0x108   : > { %2161 = vmatpush1.bf16.msra.mxu0 %v2682_v37  ;;  %2202 = vmatpush1.bf16.msra.mxu1 %v2684_v38  ;;  %v830_v37 = vld [vmem:[%s3503_s4 + $0x668] sm:$0xff]  ;;  %v2810_v38 = vcombine.low %v805_v27, %v813_v28  ;;  %v711_v28 = vld [vmem:[%s3503_s4 + $0x2b0] sm:$0xff] }
 0x109   : > { %2162 = vmatprep.subr.bf16.mxu0 %v2699_v39  ;;  %2203 = vmatprep.subr.bf16.mxu1 %v2701_v40  ;;  %v2812_v39 = vcombine.low %v806_v29, %v814_v24  ;;  %v2827_v40 = vcombine.high %v821_v34, %v829_v35  ;;  %v2829_v41 = vcombine.high %v822_v36, %v830_v37  ;;  %v719_v29 = vld [vmem:[%s3503_s4 + $0x2f0] sm:$0xff]  ;;  %v712_v24 = vld [vmem:[%s3503_s4 + $0x2b8] sm:$0xff] }
 0x10a   : > { %v727_v35 = vld [vmem:[%s3503_s4 + $0x330] sm:$0xff] }
 0x10c   : > { %2163 = vmatpush1.bf16.msra.mxu0 %v2698_v45  ;;  %2204 = vmatpush1.bf16.msra.mxu1 %v2700_v46  ;;  %v2828_v45 = vcombine.low %v822_v36, %v830_v37  ;;  %v2843_v46 = vcombine.high %v837_v42, %v837_v42  ;;  %v735_v36 = vld [vmem:[%s3503_s4 + $0x370] sm:$0xff]  ;;  %v728_v37 = vld [vmem:[%s3503_s4 + $0x338] sm:$0xff] }
 0x10d   : > { %2164 = vmatprep.subr.bf16.mxu0 %v2715_v47  ;;  %2205 = vmatprep.subr.bf16.mxu1 %v2717_v48  ;;  %v2842_v47 = vcombine.low %v837_v42, %v837_v42  ;;  %v2845_v48 = vcombine.high %v838_v43, %v838_v43  ;;  %v743_v43 = vld [vmem:[%s3503_s4 + $0x3b0] sm:$0xff] }
 0x110   : > { %2165 = vmatpush1.bf16.msra.mxu0 %v2714_v53  ;;  %2206 = vmatpush1.bf16.msra.mxu1 %v2716_v54  ;;  %v640_v53 = vld [vmem:[%s3503_s4 + $0x78] sm:$0xff]  ;;  %v1967_v54 = vsel %vm1941_vm1, %v2842_v47, 0  ;;  %v2734_v47 = vcombine.low %v727_v35, %v735_v36 }
 0x111   : > { %2166 = vmatprep.subr.bf16.mxu0 %v2731_v55  ;;  %2207 = vmatprep.subr.bf16.mxu1 %v2733_v56  ;;  %v2639_v55 = vcombine.high %v631_v50, %v639_v51  ;;  %v1973_v56 = vsel %vm1941_vm1, %v2844_v49, 0  ;;  %v2641_v57 = vcombine.high %v632_v52, %v640_v53 }
 0x114   : > { %2167 = vmatpush1.bf16.msra.mxu0 %v2730_v61  ;;  %2208 = vmatpush1.bf16.msra.mxu1 %v2732_v62  ;;  %v656_v61 = vld [vmem:[%s3503_s4 + $0xf8] sm:$0xff]  ;;  %v2638_v62 = vcombine.low %v631_v50, %v639_v51  ;;  %v759_v51 = vld [vmem:[%s3503_s4 + $0x430] sm:$0xff] }
 0x115   : > { %2168 = vmatprep.subr.bf16.mxu0 %v2747_v63  ;;  %2209 = vmatprep.subr.bf16.mxu1 %v2749_v0  ;;  %v2640_v63 = vcombine.low %v632_v52, %v640_v53  ;;  %v2655_v0 = vcombine.high %v647_v58, %v655_v59  ;;  %v2657_v1 = vcombine.high %v648_v60, %v656_v61  ;;  %v767_v52 = vld [vmem:[%s3503_s4 + $0x470] sm:$0xff]  ;;  %v760_v53 = vld [vmem:[%s3503_s4 + $0x438] sm:$0xff] }
 0x118   : > { %2169 = vmatpush1.bf16.msra.mxu0 %v2746_v5  ;;  %2210 = vmatpush1.bf16.msra.mxu1 %v2748_v6  ;;  %v664_v5 = vld [vmem:[%s3503_s4 + $0x138] sm:$0xff] }
 0x119   : > { %2170 = vmatprep.subr.bf16.mxu0 %v2763_v7  ;;  %2211 = vmatprep.subr.bf16.mxu1 %v2765_v8  ;;  %v672_v6 = vld [vmem:[%s3503_s4 + $0x178] sm:$0xff]  ;;  %v2654_v7 = vcombine.low %v647_v58, %v655_v59  ;;  %v2656_v8 = vcombine.low %v648_v60, %v656_v61  ;;  %v775_v59 = vld [vmem:[%s3503_s4 + $0x4b0] sm:$0xff] }
 0x11a   : > { %v2673_v10 = vcombine.high %v664_v5, %v672_v6  ;;  %v783_v60 = vld [vmem:[%s3503_s4 + $0x4f0] sm:$0xff]  ;;  %v776_v61 = vld [vmem:[%s3503_s4 + $0x4b8] sm:$0xff] }
 0x11c   : > { %2171 = vmatpush1.bf16.msra.mxu0 %v2762_v13  ;;  %2212 = vmatpush1.bf16.msra.mxu1 %v2764_v14  ;;  %v680_v13 = vld [vmem:[%s3503_s4 + $0x1b8] sm:$0xff] }
 0x11d   : > { %2172 = vmatprep.subr.bf16.mxu0 %v2779_v15  ;;  %2213 = vmatprep.subr.bf16.mxu1 %v2781_v16  ;;  %v688_v14 = vld [vmem:[%s3503_s4 + $0x1f8] sm:$0xff]  ;;  %v2670_v15 = vcombine.low %v663_v2, %v671_v3  ;;  %v2672_v16 = vcombine.low %v664_v5, %v672_v6  ;;  %v791_v3 = vld [vmem:[%s3503_s4 + $0x530] sm:$0xff] }
 0x11e   : > { %v2689_v18 = vcombine.high %v680_v13, %v688_v14  ;;  %v799_v5 = vld [vmem:[%s3503_s4 + $0x570] sm:$0xff]  ;;  %v792_v6 = vld [vmem:[%s3503_s4 + $0x538] sm:$0xff] }
 0x120   : > { %2173 = vmatpush1.bf16.msra.mxu0 %v2778_v21  ;;  %2214 = vmatpush1.bf16.msra.mxu1 %v2780_v22  ;;  %v696_v21 = vld [vmem:[%s3503_s4 + $0x238] sm:$0xff] }
 0x121   : > { %2174 = vmatprep.subr.bf16.mxu0 %v2795_v23  ;;  %2215 = vmatprep.subr.bf16.mxu1 %v2797_v26  ;;  %v704_v22 = vld [vmem:[%s3503_s4 + $0x278] sm:$0xff]  ;;  %v2686_v23 = vcombine.low %v679_v11, %v687_v12  ;;  %v2703_v26 = vcombine.high %v695_v19, %v703_v20  ;;  %v807_v12 = vld [vmem:[%s3503_s4 + $0x5b0] sm:$0xff] }
 0x122   : > { %v2705_v27 = vcombine.high %v696_v21, %v704_v22 }
 0x124   : > { %2175 = vmatpush1.bf16.msra.mxu0 %v2794_v30  ;;  %2216 = vmatpush1.bf16.msra.mxu1 %v2796_v31  ;;  %v720_v30 = vld [vmem:[%s3503_s4 + $0x2f8] sm:$0xff]  ;;  %v2702_v31 = vcombine.low %v695_v19, %v703_v20  ;;  %v823_v20 = vld [vmem:[%s3503_s4 + $0x630] sm:$0xff] }
 0x125   : > { %2176 = vmatprep.subr.bf16.mxu0 %v2811_v32  ;;  %2217 = vmatprep.subr.bf16.mxu1 %v2813_v33  ;;  %v2704_v32 = vcombine.low %v696_v21, %v704_v22  ;;  %v2719_v33 = vcombine.high %v711_v28, %v719_v29  ;;  %v2721_v34 = vcombine.high %v712_v24, %v720_v30  ;;  %v831_v21 = vld [vmem:[%s3503_s4 + $0x670] sm:$0xff]  ;;  %v824_v22 = vld [vmem:[%s3503_s4 + $0x638] sm:$0xff] }
 0x128   : > { %2177 = vmatpush1.bf16.msra.mxu0 %v2810_v38  ;;  %2218 = vmatpush1.bf16.msra.mxu1 %v2812_v39  ;;  %v736_v38 = vld [vmem:[%s3503_s4 + $0x378] sm:$0xff]  ;;  %v2718_v39 = vcombine.low %v711_v28, %v719_v29  ;;  %v839_v29 = vld [vmem:[%s3503_s4 + $0x6b0] sm:$0xff] }
 0x129   : > { %2178 = vmatprep.subr.bf16.mxu0 %v2827_v40  ;;  %2219 = vmatprep.subr.bf16.mxu1 %v2829_v41  ;;  %v2720_v40 = vcombine.low %v712_v24, %v720_v30  ;;  %v2735_v41 = vcombine.high %v727_v35, %v735_v36  ;;  %v2737_v42 = vcombine.high %v728_v37, %v736_v38  ;;  %v840_v24 = vld [vmem:[%s3503_s4 + $0x6b8] sm:$0xff] }
 0x12a   : > { %v2830_v30 = vcombine.low %v823_v20, %v831_v21  ;;  %v2848_v35 = vcombine.low %v840_v24, %v840_v24 }
 0x12c   : > { %2179 = vmatpush1.bf16.msra.mxu0 %v2826_v44  ;;  %2220 = vmatpush1.bf16.msra.mxu1 %v2828_v45  ;;  %v751_v44 = vld [vmem:[%s3503_s4 + $0x3f0] sm:$0xff]  ;;  %v744_v45 = vld [vmem:[%s3503_s4 + $0x3b8] sm:$0xff] }
 0x12d   : > { %2858 = vmatprep.subr.msk.bf16.mxu0 %vm1941_vm1, %v2843_v46  ;;  %2860 = vmatprep.subr.msk.bf16.mxu1 %vm1941_vm1, %v2845_v48  ;;  %v752_v46 = vld [vmem:[%s3503_s4 + $0x3f8] sm:$0xff]  ;;  %v2736_v48 = vcombine.low %v728_v37, %v736_v38  ;;  %v2751_v49 = vcombine.high %v743_v43, %v751_v44  ;;  %v1985_v37 = vsel %vm1941_vm1, %v2848_v35, 0  ;;  %v3765_v38 = vpop.permute.xlu0 %844 }
 0x12e   : > { %v2753_v50 = vcombine.high %v744_v45, %v752_v46 }
 0x130   : > { %2181 = vmatpush1.bf16.msra.mxu0 %v1967_v54  ;;  %2222 = vmatpush1.bf16.msra.mxu1 %v1973_v56  ;;  %v768_v54 = vld [vmem:[%s3503_s4 + $0x478] sm:$0xff]  ;;  %v2752_v56 = vcombine.low %v744_v45, %v752_v46 }
 0x131   : > { %2236 = vmatprep.subr.bf16.mxu0 %v2639_v55  ;;  %2277 = vmatprep.subr.bf16.mxu1 %v2641_v57  ;;  %v2750_v55 = vcombine.low %v743_v43, %v751_v44  ;;  %v2767_v57 = vcombine.high %v759_v51, %v767_v52  ;;  %v2769_v58 = vcombine.high %v760_v53, %v768_v54 }
 0x133   : > { %2187 = vmatmul.mubr.bf16.vlgmr.msra.gmra.mrb[8].mxu0 %v3707_v4  ;;  %2228 = vmatmul.mubr.bf16.vlgmr.msra.gmra.mrb[8].mxu1 %v3707_v4 }
 0x134   : > { %2237 = vmatpush1.bf16.msra.mxu0 %v2638_v62  ;;  %2278 = vmatpush1.bf16.msra.mxu1 %v2640_v63  ;;  %v784_v62 = vld [vmem:[%s3503_s4 + $0x4f8] sm:$0xff]  ;;  %v2766_v63 = vcombine.low %v759_v51, %v767_v52 }
 0x135   : > { %2238 = vmatprep.subr.bf16.mxu0 %v2655_v0  ;;  %2279 = vmatprep.subr.bf16.mxu1 %v2657_v1  ;;  %v2768_v0 = vcombine.low %v760_v53, %v768_v54  ;;  %v2783_v1 = vcombine.high %v775_v59, %v783_v60  ;;  %v2785_v2 = vcombine.high %v776_v61, %v784_v62 }
 0x136   : > { %2863 = vmatprep.mubr.msk.bf16.mxu0 %vm1937_vm0, %v3497_v25  ;;  %2865 = vmatprep.mubr.msk.bf16.mxu1 %vm1937_vm0, %v3497_v25  ;;  %v2688_v25 = vcombine.low %v680_v13, %v688_v14  ;;  %v815_v13 = vld [vmem:[%s3503_s4 + $0x5f0] sm:$0xff]  ;;  %v808_v14 = vld [vmem:[%s3503_s4 + $0x5b8] sm:$0xff] }
 0x138   : > { %2239 = vmatpush1.bf16.msra.mxu0 %v2654_v7  ;;  %2280 = vmatpush1.bf16.msra.mxu1 %v2656_v8  ;;  %v800_v7 = vld [vmem:[%s3503_s4 + $0x578] sm:$0xff]  ;;  %v2782_v8 = vcombine.low %v775_v59, %v783_v60 }
 0x139   : > { %2240 = vmatprep.subr.bf16.mxu0 %v2671_v9  ;;  %2281 = vmatprep.subr.bf16.mxu1 %v2673_v10  ;;  %v2784_v9 = vcombine.low %v776_v61, %v784_v62  ;;  %v2799_v10 = vcombine.high %v791_v3, %v799_v5  ;;  %v2801_v11 = vcombine.high %v792_v6, %v800_v7  ;;  %v2483_v61 = vlaneseq }
 0x13c   : > { %2241 = vmatpush1.bf16.msra.mxu0 %v2670_v15  ;;  %2282 = vmatpush1.bf16.msra.mxu1 %v2672_v16  ;;  %v816_v15 = vld [vmem:[%s3503_s4 + $0x5f8] sm:$0xff]  ;;  %v2798_v16 = vcombine.low %v791_v3, %v799_v5 }
 0x13d   : > { %2242 = vmatprep.subr.bf16.mxu0 %v2687_v17  ;;  %2283 = vmatprep.subr.bf16.mxu1 %v2689_v18  ;;  %v2800_v17 = vcombine.low %v792_v6, %v800_v7  ;;  %v2815_v18 = vcombine.high %v807_v12, %v815_v13  ;;  %v2817_v19 = vcombine.high %v808_v14, %v816_v15 }
 0x140   : > { %2243 = vmatpush1.bf16.msra.mxu0 %v2686_v23  ;;  %2284 = vmatpush1.bf16.msra.mxu1 %v2688_v25  ;;  %v832_v23 = vld [vmem:[%s3503_s4 + $0x678] sm:$0xff]  ;;  %v2814_v25 = vcombine.low %v807_v12, %v815_v13 }
 0x141   : > { %2244 = vmatprep.subr.bf16.mxu0 %v2703_v26  ;;  %2285 = vmatprep.subr.bf16.mxu1 %v2705_v27  ;;  %v2816_v26 = vcombine.low %v808_v14, %v816_v15  ;;  %v2831_v27 = vcombine.high %v823_v20, %v831_v21  ;;  %v2833_v28 = vcombine.high %v824_v22, %v832_v23 }
 0x144   : > { %2245 = vmatpush1.bf16.msra.mxu0 %v2702_v31  ;;  %2286 = vmatpush1.bf16.msra.mxu1 %v2704_v32  ;;  %v2832_v31 = vcombine.low %v824_v22, %v832_v23  ;;  %v2847_v32 = vcombine.high %v839_v29, %v839_v29 }
 0x145   : > { %2246 = vmatprep.subr.bf16.mxu0 %v2719_v33  ;;  %2287 = vmatprep.subr.bf16.mxu1 %v2721_v34  ;;  %v2846_v33 = vcombine.low %v839_v29, %v839_v29  ;;  %v2849_v34 = vcombine.high %v840_v24, %v840_v24 }
 0x147   : > { %v1979_v36 = vsel %vm1941_vm1, %v2846_v33, 0 }
 0x148   : > { %2247 = vmatpush1.bf16.msra.mxu0 %v2718_v39  ;;  %2288 = vmatpush1.bf16.msra.mxu1 %v2720_v40 }
 0x149   : > { %2248 = vmatprep.subr.bf16.mxu0 %v2735_v41  ;;  %2289 = vmatprep.subr.bf16.mxu1 %v2737_v42 }
 0x14c   : > { %2249 = vmatpush1.bf16.msra.mxu0 %v2734_v47  ;;  %2290 = vmatpush1.bf16.msra.mxu1 %v2736_v48 }
 0x14d   : > { %2250 = vmatprep.subr.bf16.mxu0 %v2751_v49  ;;  %2291 = vmatprep.subr.bf16.mxu1 %v2753_v50 }
 0x150   : > { %2251 = vmatpush1.bf16.msra.mxu0 %v2750_v55  ;;  %2292 = vmatpush1.bf16.msra.mxu1 %v2752_v56 }
 0x151   : > { %2252 = vmatprep.subr.bf16.mxu0 %v2767_v57  ;;  %2293 = vmatprep.subr.bf16.mxu1 %v2769_v58  ;;  %v2996_v58 = vmov 1983009808  }
 0x152   : > { %v2481_v59 = vunpack.c.l.s4 %v2996_v58 }
 0x154   : > { %2253 = vmatpush1.bf16.msra.mxu0 %v2766_v63  ;;  %2294 = vmatpush1.bf16.msra.mxu1 %v2768_v0  ;;  %v2482_v6 = vunpack.c.0.s8 %v2481_v59 }
 0x155   : > { %2254 = vmatprep.subr.bf16.mxu0 %v2783_v1  ;;  %2295 = vmatprep.subr.bf16.mxu1 %v2785_v2 }
 0x158   : > { %2255 = vmatpush1.bf16.msra.mxu0 %v2782_v8  ;;  %2296 = vmatpush1.bf16.msra.mxu1 %v2784_v9  ;;  %v2484_v8 = vshrl.u32 %v2483_v61, 7 }
 0x159   : > { %2256 = vmatprep.subr.bf16.mxu0 %v2799_v10  ;;  %2297 = vmatprep.subr.bf16.mxu1 %v2801_v11 }
 0x15c   : > { %2257 = vmatpush1.bf16.msra.mxu0 %v2798_v16  ;;  %2298 = vmatpush1.bf16.msra.mxu1 %v2800_v17 }
 0x15d   : > { %2258 = vmatprep.subr.bf16.mxu0 %v2815_v18  ;;  %2299 = vmatprep.subr.bf16.mxu1 %v2817_v19  ;;  %v3774_v18 = vsub.s32 %v2482_v6, %v2484_v8 }
 0x160   : > { %2259 = vmatpush1.bf16.msra.mxu0 %v2814_v25  ;;  %2300 = vmatpush1.bf16.msra.mxu1 %v2816_v26 }
 0x161   : > { %2260 = vmatprep.subr.bf16.mxu0 %v2831_v27  ;;  %2301 = vmatprep.subr.bf16.mxu1 %v2833_v28 }
 0x164   : > { %2261 = vmatpush1.bf16.msra.mxu0 %v2830_v30  ;;  %2302 = vmatpush1.bf16.msra.mxu1 %v2832_v31 }
 0x165   : > { %2862 = vmatprep.subr.msk.bf16.mxu0 %vm1941_vm1, %v2847_v32  ;;  %2864 = vmatprep.subr.msk.bf16.mxu1 %vm1941_vm1, %v2849_v34 }
 0x168   : > { %2263 = vmatpush1.bf16.msra.mxu0 %v1979_v36  ;;  %2304 = vmatpush1.bf16.msra.mxu1 %v1985_v37 }
 0x16b   : > { %2269 = vmatmul.mubr.bf16.vlgmr.msra.gmra.mrb[12].mxu0 %v3707_v4  ;;  %2310 = vmatmul.mubr.bf16.vlgmr.msra.gmra.mrb[12].mxu1 %v3707_v4 }
 0x196   : > { %v2024_v39 = vpop.f32.mrb[0].mxu0  ;;  %v2065_v41 = vpop.f32.mrb[0].mxu1 }
 0x197   : > { %v2025_v40 = vadd.f32 %v2024_v39, %v3765_v38  ;;  %v2026_v42 = vpop.f32.mrb[1].mxu0  ;;  %v2066_v43 = vadd.f32 %v2065_v41, %v3765_v38  ;;  %v2067_v45 = vpop.f32.mrb[1].mxu1 }
 0x198   : > { %v2027_v44 = vadd.f32 %v2026_v42, %v3765_v38  ;;  %v2028_v46 = vpop.f32.mrb[2].mxu0  ;;  %v2068_v48 = vadd.f32 %v2067_v45, %v3765_v38  ;;  %v2069_v49 = vpop.f32.mrb[2].mxu1 }
 0x199   : > { %v2334_v47 = vmin.f32 %v2025_v40, 0.0  ;;  %v2029_v50 = vpop.f32.mrb[3].mxu0  ;;  %v2336_v51 = vmin.f32 %v2066_v43, 0.0  ;;  %v2070_v52 = vpop.f32.mrb[3].mxu1  ;;  %vm2318_vm2 = vcmp.gt.f32.partialorder %v2025_v40, 0.0  ;;  %vm2320_vm3 = vcmp.gt.f32.partialorder %v2066_v43, 0.0 }
 0x19a   : > { %v2335_v4 = vmin.f32 %v2027_v44, 0.0  ;;  %v2337_v54 = vmin.f32 %v2068_v48, 0.0  ;;  %vm2319_vm4 = vcmp.gt.f32.partialorder %v2027_v44, 0.0  ;;  %vm2321_vm5 = vcmp.gt.f32.partialorder %v2068_v48, 0.0 }
 0x19b   : > { %v2350_v53 = vmul.f32 1.442695, %v2334_v47  ;;  %v2354_v55 = vmul.f32 1.442695, %v2336_v51 }
 0x19c   : > { %v2352_v56 = vmul.f32 1.442695, %v2335_v4  ;;  %v2356_v57 = vmul.f32 1.442695, %v2337_v54 }
 0x19d   : > { %2938 = vpow2.f32 %v2350_v53 }
 0x19e   : > { %2940 = vpow2.f32 %v2354_v55 }
 0x19f   : > { %2942 = vpow2.f32 %v2352_v56 }
 0x1a0   : > { %2944 = vpow2.f32 %v2356_v57 }
 0x1a7   : > { %v2939_v60 = vpop.eup %2938 }
 0x1a8   : > { %v2941_v62 = vpop.eup %2940  ;;  %v2866_v63 = vadd.f32 -1.0, %v2939_v60 }
 0x1a9   : > { %v2943_v0 = vpop.eup %2942  ;;  %v2868_v1 = vadd.f32 -1.0, %v2941_v62 }
 0x1aa   : > { %v2945_v2 = vpop.eup %2944  ;;  %v2398_v3 = vmul.f32 1.6732632, %v2866_v63  ;;  %v2867_v5 = vadd.f32 -1.0, %v2943_v0 }
 0x1ab   : > { %v2400_v7 = vmul.f32 1.6732632, %v2868_v1  ;;  %v2869_v9 = vadd.f32 -1.0, %v2945_v2 }
 0x1ac   : > { %v2414_v10 = vsel %vm2318_vm2, %v2025_v40, %v2398_v3  ;;  %v2399_v11 = vmul.f32 1.6732632, %v2867_v5 }
 0x1ad   : > { %v2430_v12 = vmul.f32 1.050701, %v2414_v10  ;;  %v2416_v13 = vsel %vm2320_vm3, %v2066_v43, %v2400_v7  ;;  %v2401_v14 = vmul.f32 1.6732632, %v2869_v9 }
 0x1ae   : > { %v2432_v15 = vmul.f32 1.050701, %v2416_v13  ;;  %v2415_v16 = vsel %vm2319_vm4, %v2027_v44, %v2399_v11 }
 0x1af   : > { %v2431_v17 = vmul.f32 1.050701, %v2415_v16  ;;  %v2417_v19 = vsel %vm2321_vm5, %v2068_v48, %v2401_v14 }
 0x1b0   : > { %v2433_v20 = vmul.f32 1.050701, %v2417_v19 }
 0x1b1   : > { %v2882_v21 = vpack.c.bf16 %v2431_v17, %v2430_v12 }
 0x1b2   : > { %v2883_v22 = vpack.c.bf16 %v2433_v20, %v2432_v15 }
 0x1b3   : > { %v2486_v23 = vrot.slane %v2882_v21, %v3774_v18 }
 0x1b4   : > { %v2493_v25 = vrot.slane %v2883_v22, %v3774_v18 }
 0x1b6   : > { %v2494_v26 = vcombine.low %v2486_v23, %v2493_v25 }
 0x1b8   : > { %2550 = vst [vmem:[%s3781_s14] sm:$0xff] %v2494_v26 }
 0x1ce   : > { %v2106_v27 = vpop.f32.mrb[4].mxu0  ;;  %v2147_v29 = vpop.f32.mrb[4].mxu1 }
 0x1cf   : > { %v2107_v28 = vadd.f32 %v2106_v27, %v3765_v38  ;;  %v2108_v24 = vpop.f32.mrb[5].mxu0  ;;  %v2148_v30 = vadd.f32 %v2147_v29, %v3765_v38  ;;  %v2149_v32 = vpop.f32.mrb[5].mxu1 }
 0x1d0   : > { %v2109_v31 = vadd.f32 %v2108_v24, %v3765_v38  ;;  %v2110_v33 = vpop.f32.mrb[6].mxu0  ;;  %v2150_v35 = vadd.f32 %v2149_v32, %v3765_v38  ;;  %v2151_v36 = vpop.f32.mrb[6].mxu1 }
 0x1d1   : > { %v2338_v34 = vmin.f32 %v2107_v28, 0.0  ;;  %v2111_v37 = vpop.f32.mrb[7].mxu0  ;;  %v2340_v39 = vmin.f32 %v2148_v30, 0.0  ;;  %v2152_v41 = vpop.f32.mrb[7].mxu1  ;;  %vm2322_vm6 = vcmp.gt.f32.partialorder %v2107_v28, 0.0  ;;  %vm2324_vm7 = vcmp.gt.f32.partialorder %v2148_v30, 0.0 }
 0x1d2   : > { %v2339_v40 = vmin.f32 %v2109_v31, 0.0  ;;  %v2341_v43 = vmin.f32 %v2150_v35, 0.0  ;;  %vm2323_vm8 = vcmp.gt.f32.partialorder %v2109_v31, 0.0  ;;  %vm2325_vm9 = vcmp.gt.f32.partialorder %v2150_v35, 0.0 }
 0x1d3   : > { %v2358_v42 = vmul.f32 1.442695, %v2338_v34  ;;  %v2362_v44 = vmul.f32 1.442695, %v2340_v39 }
 0x1d4   : > { %v2360_v45 = vmul.f32 1.442695, %v2339_v40  ;;  %v2364_v46 = vmul.f32 1.442695, %v2341_v43 }
 0x1d5   : > { %2946 = vpow2.f32 %v2358_v42 }
 0x1d6   : > { %2948 = vpow2.f32 %v2362_v44 }
 0x1d7   : > { %2950 = vpow2.f32 %v2360_v45 }
 0x1d8   : > { %2952 = vpow2.f32 %v2364_v46 }
 0x1df   : > { %v2947_v47 = vpop.eup %2946 }
 0x1e0   : > { %v2949_v48 = vpop.eup %2948  ;;  %v2870_v49 = vadd.f32 -1.0, %v2947_v47 }
 0x1e1   : > { %v2951_v50 = vpop.eup %2950  ;;  %v2872_v51 = vadd.f32 -1.0, %v2949_v48 }
 0x1e2   : > { %v2953_v4 = vpop.eup %2952  ;;  %v2402_v52 = vmul.f32 1.6732632, %v2870_v49  ;;  %v2871_v53 = vadd.f32 -1.0, %v2951_v50 }
 0x1e3   : > { %v2404_v54 = vmul.f32 1.6732632, %v2872_v51  ;;  %v2873_v55 = vadd.f32 -1.0, %v2953_v4 }
 0x1e4   : > { %v2418_v56 = vsel %vm2322_vm6, %v2107_v28, %v2402_v52  ;;  %v2403_v57 = vmul.f32 1.6732632, %v2871_v53 }
 0x1e5   : > { %v2434_v58 = vmul.f32 1.050701, %v2418_v56  ;;  %v2420_v59 = vsel %vm2324_vm7, %v2148_v30, %v2404_v54  ;;  %v2405_v60 = vmul.f32 1.6732632, %v2873_v55 }
 0x1e6   : > { %v2436_v61 = vmul.f32 1.050701, %v2420_v59  ;;  %v2419_v62 = vsel %vm2323_vm8, %v2109_v31, %v2403_v57 }
 0x1e7   : > { %v2435_v63 = vmul.f32 1.050701, %v2419_v62  ;;  %v2421_v0 = vsel %vm2325_vm9, %v2150_v35, %v2405_v60 }
 0x1e8   : > { %v2437_v1 = vmul.f32 1.050701, %v2421_v0 }
 0x1e9   : > { %v2884_v2 = vpack.c.bf16 %v2435_v63, %v2434_v58 }
 0x1ea   : > { %v2885_v3 = vpack.c.bf16 %v2437_v1, %v2436_v61 }
 0x1eb   : > { %v2503_v5 = vrot.slane %v2884_v2, %v3774_v18 }
 0x1ec   : > { %v2510_v6 = vrot.slane %v2885_v3, %v3774_v18 }
 0x1ee   : > { %v2511_v7 = vcombine.low %v2503_v5, %v2510_v6 }
 0x1f0   : > { %2551 = vst [vmem:[%s3781_s14 + $0x8] sm:$0xff] %v2511_v7 }
 0x206   : > { %v2188_v8 = vpop.f32.mrb[8].mxu0  ;;  %v2229_v10 = vpop.f32.mrb[8].mxu1 }
 0x207   : > { %v2189_v9 = vadd.f32 %v2188_v8, %v3765_v38  ;;  %v2190_v11 = vpop.f32.mrb[9].mxu0  ;;  %v2230_v12 = vadd.f32 %v2229_v10, %v3765_v38  ;;  %v2231_v14 = vpop.f32.mrb[9].mxu1 }
 0x208   : > { %v2191_v13 = vadd.f32 %v2190_v11, %v3765_v38  ;;  %v2192_v15 = vpop.f32.mrb[10].mxu0  ;;  %v2232_v17 = vadd.f32 %v2231_v14, %v3765_v38  ;;  %v2233_v19 = vpop.f32.mrb[10].mxu1 }
 0x209   : > { %v2342_v16 = vmin.f32 %v2189_v9, 0.0  ;;  %v2193_v20 = vpop.f32.mrb[11].mxu0  ;;  %v2344_v21 = vmin.f32 %v2230_v12, 0.0  ;;  %v2234_v23 = vpop.f32.mrb[11].mxu1  ;;  %vm2326_vm10 = vcmp.gt.f32.partialorder %v2189_v9, 0.0  ;;  %vm2328_vm11 = vcmp.gt.f32.partialorder %v2230_v12, 0.0 }
 0x20a   : > { %v2343_v22 = vmin.f32 %v2191_v13, 0.0  ;;  %v2345_v26 = vmin.f32 %v2232_v17, 0.0  ;;  %vm2327_vm12 = vcmp.gt.f32.partialorder %v2191_v13, 0.0  ;;  %vm2329_vm13 = vcmp.gt.f32.partialorder %v2232_v17, 0.0 }
 0x20b   : > { %v2366_v25 = vmul.f32 1.442695, %v2342_v16  ;;  %v2370_v27 = vmul.f32 1.442695, %v2344_v21 }
 0x20c   : > { %v2368_v28 = vmul.f32 1.442695, %v2343_v22  ;;  %v2372_v29 = vmul.f32 1.442695, %v2345_v26 }
 0x20d   : > { %2954 = vpow2.f32 %v2366_v25 }
 0x20e   : > { %2956 = vpow2.f32 %v2370_v27 }
 0x20f   : > { %2958 = vpow2.f32 %v2368_v28 }
 0x210   : > { %2960 = vpow2.f32 %v2372_v29 }
 0x217   : > { %v2955_v24 = vpop.eup %2954 }
 0x218   : > { %v2957_v30 = vpop.eup %2956  ;;  %v2874_v31 = vadd.f32 -1.0, %v2955_v24 }
 0x219   : > { %v2959_v32 = vpop.eup %2958  ;;  %v2876_v33 = vadd.f32 -1.0, %v2957_v30 }
 0x21a   : > { %v2961_v34 = vpop.eup %2960  ;;  %v2406_v35 = vmul.f32 1.6732632, %v2874_v31  ;;  %v2875_v36 = vadd.f32 -1.0, %v2959_v32 }
 0x21b   : > { %v2408_v37 = vmul.f32 1.6732632, %v2876_v33  ;;  %v2877_v39 = vadd.f32 -1.0, %v2961_v34 }
 0x21c   : > { %v2422_v40 = vsel %vm2326_vm10, %v2189_v9, %v2406_v35  ;;  %v2407_v41 = vmul.f32 1.6732632, %v2875_v36 }
 0x21d   : > { %v2438_v42 = vmul.f32 1.050701, %v2422_v40  ;;  %v2424_v43 = vsel %vm2328_vm11, %v2230_v12, %v2408_v37  ;;  %v2409_v44 = vmul.f32 1.6732632, %v2877_v39 }
 0x21e   : > { %v2440_v45 = vmul.f32 1.050701, %v2424_v43  ;;  %v2423_v46 = vsel %vm2327_vm12, %v2191_v13, %v2407_v41 }
 0x21f   : > { %v2439_v47 = vmul.f32 1.050701, %v2423_v46  ;;  %v2425_v48 = vsel %vm2329_vm13, %v2232_v17, %v2409_v44 }
 0x220   : > { %v2441_v49 = vmul.f32 1.050701, %v2425_v48 }
 0x221   : > { %v2886_v50 = vpack.c.bf16 %v2439_v47, %v2438_v42 }
 0x222   : > { %v2887_v51 = vpack.c.bf16 %v2441_v49, %v2440_v45 }
 0x223   : > { %v2520_v4 = vrot.slane %v2886_v50, %v3774_v18 }
 0x224   : > { %v2527_v52 = vrot.slane %v2887_v51, %v3774_v18 }
 0x226   : > { %v2528_v53 = vcombine.low %v2520_v4, %v2527_v52 }
 0x228   : > { %2552 = vst [vmem:[%s3781_s14 + $0x10] sm:$0xff] %v2528_v53 }
 0x23e   : > { %v2270_v54 = vpop.f32.mrb[12].mxu0  ;;  %v2311_v56 = vpop.f32.mrb[12].mxu1 }
 0x23f   : > { %v2271_v55 = vadd.f32 %v2270_v54, %v3765_v38  ;;  %v2272_v57 = vpop.f32.mrb[13].mxu0  ;;  %v2312_v58 = vadd.f32 %v2311_v56, %v3765_v38  ;;  %v2313_v60 = vpop.f32.mrb[13].mxu1 }
 0x240   : > { %v2273_v59 = vadd.f32 %v2272_v57, %v3765_v38  ;;  %v2274_v61 = vpop.f32.mrb[14].mxu0  ;;  %v2314_v63 = vadd.f32 %v2313_v60, %v3765_v38  ;;  %v2315_v0 = vpop.f32.mrb[14].mxu1 }
 0x241   : > { %v2346_v62 = vmin.f32 %v2271_v55, 0.0  ;;  %v2275_v1 = vpop.f32.mrb[15].mxu0  ;;  %v2348_v2 = vmin.f32 %v2312_v58, 0.0  ;;  %v2316_v5 = vpop.f32.mrb[15].mxu1  ;;  %vm2330_vm14 = vcmp.gt.f32.partialorder %v2271_v55, 0.0  ;;  %vm2332_vm15 = vcmp.gt.f32.partialorder %v2312_v58, 0.0 }
 0x242   : > { %v2347_v3 = vmin.f32 %v2273_v59, 0.0  ;;  %v2349_v7 = vmin.f32 %v2314_v63, 0.0  ;;  %vm2331_vm0 = vcmp.gt.f32.partialorder %v2273_v59, 0.0  ;;  %vm2333_vm1 = vcmp.gt.f32.partialorder %v2314_v63, 0.0 }
 0x243   : > { %v2374_v6 = vmul.f32 1.442695, %v2346_v62  ;;  %v2378_v8 = vmul.f32 1.442695, %v2348_v2 }
 0x244   : > { %v2376_v9 = vmul.f32 1.442695, %v2347_v3  ;;  %v2380_v10 = vmul.f32 1.442695, %v2349_v7 }
 0x245   : > { %2962 = vpow2.f32 %v2374_v6 }
 0x246   : > { %2964 = vpow2.f32 %v2378_v8 }
 0x247   : > { %2966 = vpow2.f32 %v2376_v9 }
 0x248   : > { %2968 = vpow2.f32 %v2380_v10 }
 0x24f   : > { %v2963_v11 = vpop.eup %2962 }
 0x250   : > { %v2965_v12 = vpop.eup %2964  ;;  %v2878_v13 = vadd.f32 -1.0, %v2963_v11 }
 0x251   : > { %v2967_v14 = vpop.eup %2966  ;;  %v2880_v15 = vadd.f32 -1.0, %v2965_v12 }
 0x252   : > { %v2969_v38 = vpop.eup %2968  ;;  %v2410_v16 = vmul.f32 1.6732632, %v2878_v13  ;;  %v2879_v17 = vadd.f32 -1.0, %v2967_v14 }
 0x253   : > { %v2412_v19 = vmul.f32 1.6732632, %v2880_v15  ;;  %v2881_v20 = vadd.f32 -1.0, %v2969_v38 }
 0x254   : > { %v2426_v21 = vsel %vm2330_vm14, %v2271_v55, %v2410_v16  ;;  %v2411_v22 = vmul.f32 1.6732632, %v2879_v17 }
 0x255   : > { %v2442_v23 = vmul.f32 1.050701, %v2426_v21  ;;  %v2428_v25 = vsel %vm2332_vm15, %v2312_v58, %v2412_v19  ;;  %v2413_v26 = vmul.f32 1.6732632, %v2881_v20 }
 0x256   : > { %v2444_v27 = vmul.f32 1.050701, %v2428_v25  ;;  %v2427_v28 = vsel %vm2331_vm0, %v2273_v59, %v2411_v22 }
 0x257   : > { %v2443_v29 = vmul.f32 1.050701, %v2427_v28  ;;  %v2429_v24 = vsel %vm2333_vm1, %v2314_v63, %v2413_v26 }
 0x258   : > { %v2445_v30 = vmul.f32 1.050701, %v2429_v24 }
 0x259   : > { %v2888_v31 = vpack.c.bf16 %v2443_v29, %v2442_v23 }
 0x25a   : > { %v2889_v32 = vpack.c.bf16 %v2445_v30, %v2444_v27 }
 0x25b   : > { %v2537_v33 = vrot.slane %v2888_v31, %v3774_v18 }
 0x25c   : > { %v2544_v34 = vrot.slane %v2889_v32, %v3774_v18 }
 0x25e   : > { %v2545_v35 = vcombine.low %v2537_v33, %v2544_v34 }
 0x260   : > { %2553 = vst [vmem:[%s3781_s14 + $0x18] sm:$0xff] %v2545_v35 }
 0x261 PF: > { %p10_p9 = scmp.ge.s32.totalorder %s3034_s16, 4   ;;  %s3819_s12 = smov %s2989_s13 }
 0x262   : > { %s3820_s13 = smov %s3043_s19  ;;  %s3821_s14 = smov %s3034_s16 }
 0x263   :  { %12 = sbr.rel (!%p10_p9) target bundleno = 2 (0x2), region = 90 }

// kernel: resnet_regression_forward.20
= control target key start
LH: loop header
LB: loop body
LE: loop exit
PB: predicated region body
PF: predicated region fallthrough
CT: control target
= control target key end

     0   :  { %s2347_s18 = smov 0   ;;  %s2349_s19 = smov 0   ;;  %s2856_s0 = inlined_call_operand.vmem [shape: bf16[4,108], index: 0, kind: input, shape index: {}]   ;;  %s2857_s1 = inlined_call_operand.vmem [shape: bf16[108,4096], index: 1, kind: input, shape index: {}]   ;;  %s2858_s2 = inlined_call_operand.vmem [shape: f32[4,1], index: 2, kind: input, shape index: {}]   ;;  %s2859_s3 = inlined_call_operand.vmem [shape: bf16[4,4096], index: 3, kind: input, shape index: {}]   ;;  %s2860_s4 = inlined_call_operand.vmem [shape: bf16[4,4096], index: 4, kind: output, shape index: {0}]   ;;  %s2861_s5 = inlined_call_operand.vmem [shape: bf16[4,4096], index: 5, kind: output, shape index: {1}]  }
   0x1   :  { %s2351_s20 = smov 0  }
   0x2 LB: > { %s2054_s21 = sadd.s32 4294967295, %s2313_s20   ;;  %s2364_s22 = sadd.s32 1, %s2313_s20   ;;  %s2313_s20 = sphi %s2351_s20, %s2864_s20   ;;  %s2309_s19 = sphi %s2349_s19, %s2863_s19   ;;  %s2305_s18 = sphi %s2347_s18, %s2862_s18  }
   0x3   : > { %s41_s23 = ssub.s32 %s2313_s20, %s2364_s22  ;;  %s44_s24 = sadd.s32 1, %s2309_s19 }
   0x4   : > { %p42_p0 = scmp.eq.s32.totalorder %s41_s23, 0  ;;  %p51_p1 = scmp.ne.s32.totalorder %s2309_s19, %s2305_s18 }
   0x5   : > { %p52_p2 = scmp.eq.s32.totalorder %s2313_s20, 0  ;;  %p2057_p4 = scmp.ge.s32.totalorder %s2313_s20, 2 }
   0x6   : > { %s2373_s25 = scalar_select %p42_p0, %s2309_s19, %s44_s24  }
   0x7   : > { %p53_p3 = por %p52_p2, %p51_p1  ;;  %182 = sbr.rel (%p2057_p4) target bundleno = 75 (0x4b), region = 24 }
   0xe   : > { %185 = sbr.rel (!%p53_p3) target bundleno = 75 (0x4b), region = 28  ;;  %s187_s26 = sand.u32 (%p53_p3), 1, %s2309_s19  }
   0xf   : > { %s2229_s27 = sshll.u32 (%p53_p3), %s2313_s20, 6  ;;  %s2230_s28 = smul.u32 (%p53_p3), 896, %s187_s26 }
  0x10   : > { %s2381_s6 = scalar_lea.vmem (%p53_p3), %s2857_s1, %s2229_s27 }
  0x11   : > { %v205_v0 = vld [vmem:[%s2381_s6] sm:$0xff] (%p53_p3)  ;;  %v207_v1 = vld [vmem:[%s2381_s6 + $0x8] sm:$0xff] (%p53_p3)  ;;  %v209_v2 = vld [vmem:[%s2381_s6 + $0x10] sm:$0xff] (%p53_p3)  ;;  %s2389_s7 = scalar_lea.vmem (%p53_p3), [#allocation2], %s2230_s28 }
  0x12   : > { %v211_v3 = vld [vmem:[%s2381_s6 + $0x18] sm:$0xff] (%p53_p3)  ;;  %v213_v4 = vld [vmem:[%s2381_s6 + $0x20] sm:$0xff] (%p53_p3)  ;;  %v215_v5 = vld [vmem:[%s2381_s6 + $0x28] sm:$0xff] (%p53_p3)  ;;  %206 = vst [vmem:[%s2389_s7] sm:$0xff] (%p53_p3), %v205_v0 }
  0x13   : > { %208 = vst [vmem:[%s2389_s7 + $0x8] sm:$0xff] (%p53_p3), %v207_v1  ;;  %210 = vst [vmem:[%s2389_s7 + $0x10] sm:$0xff] (%p53_p3), %v209_v2  ;;  %v217_v6 = vld [vmem:[%s2381_s6 + $0x30] sm:$0xff] (%p53_p3)  ;;  %v219_v7 = vld [vmem:[%s2381_s6 + $0x38] sm:$0xff] (%p53_p3) }
  0x14   : > { %212 = vst [vmem:[%s2389_s7 + $0x18] sm:$0xff] (%p53_p3), %v211_v3  ;;  %214 = vst [vmem:[%s2389_s7 + $0x20] sm:$0xff] (%p53_p3), %v213_v4  ;;  %v221_v8 = vld [vmem:[%s2381_s6 + $0x80] sm:$0xff] (%p53_p3)  ;;  %v223_v9 = vld [vmem:[%s2381_s6 + $0x88] sm:$0xff] (%p53_p3) }
  0x15   : > { %216 = vst [vmem:[%s2389_s7 + $0x28] sm:$0xff] %v215_v5  ;;  %218 = vst [vmem:[%s2389_s7 + $0x30] sm:$0xff] %v217_v6  ;;  %v225_v10 = vld [vmem:[%s2381_s6 + $0x90] sm:$0xff]  ;;  %v227_v11 = vld [vmem:[%s2381_s6 + $0x98] sm:$0xff] }
  0x16   : > { %220 = vst [vmem:[%s2389_s7 + $0x38] sm:$0xff] %v219_v7  ;;  %222 = vst [vmem:[%s2389_s7 + $0x40] sm:$0xff] %v221_v8  ;;  %v229_v12 = vld [vmem:[%s2381_s6 + $0xa0] sm:$0xff]  ;;  %v231_v13 = vld [vmem:[%s2381_s6 + $0xa8] sm:$0xff] }
  0x17   : > { %224 = vst [vmem:[%s2389_s7 + $0x48] sm:$0xff] %v223_v9  ;;  %226 = vst [vmem:[%s2389_s7 + $0x50] sm:$0xff] %v225_v10  ;;  %v233_v14 = vld [vmem:[%s2381_s6 + $0xb0] sm:$0xff]  ;;  %v235_v15 = vld [vmem:[%s2381_s6 + $0xb8] sm:$0xff] }
  0x18   : > { %228 = vst [vmem:[%s2389_s7 + $0x58] sm:$0xff] %v227_v11  ;;  %230 = vst [vmem:[%s2389_s7 + $0x60] sm:$0xff] %v229_v12  ;;  %v237_v16 = vld [vmem:[%s2381_s6 + $0x100] sm:$0xff]  ;;  %v239_v17 = vld [vmem:[%s2381_s6 + $0x108] sm:$0xff] }
  0x19   : > { %232 = vst [vmem:[%s2389_s7 + $0x68] sm:$0xff] %v231_v13  ;;  %234 = vst [vmem:[%s2389_s7 + $0x70] sm:$0xff] %v233_v14  ;;  %v241_v18 = vld [vmem:[%s2381_s6 + $0x110] sm:$0xff]  ;;  %v243_v19 = vld [vmem:[%s2381_s6 + $0x118] sm:$0xff] }
  0x1a   : > { %236 = vst [vmem:[%s2389_s7 + $0x78] sm:$0xff] %v235_v15  ;;  %238 = vst [vmem:[%s2389_s7 + $0x80] sm:$0xff] %v237_v16  ;;  %v245_v20 = vld [vmem:[%s2381_s6 + $0x120] sm:$0xff]  ;;  %v247_v21 = vld [vmem:[%s2381_s6 + $0x128] sm:$0xff] }
  0x1b   : > { %240 = vst [vmem:[%s2389_s7 + $0x88] sm:$0xff] %v239_v17  ;;  %242 = vst [vmem:[%s2389_s7 + $0x90] sm:$0xff] %v241_v18  ;;  %v249_v22 = vld [vmem:[%s2381_s6 + $0x130] sm:$0xff]  ;;  %v251_v23 = vld [vmem:[%s2381_s6 + $0x138] sm:$0xff] }
  0x1c   : > { %244 = vst [vmem:[%s2389_s7 + $0x98] sm:$0xff] %v243_v19  ;;  %246 = vst [vmem:[%s2389_s7 + $0xa0] sm:$0xff] %v245_v20  ;;  %v253_v24 = vld [vmem:[%s2381_s6 + $0x180] sm:$0xff]  ;;  %v255_v25 = vld [vmem:[%s2381_s6 + $0x188] sm:$0xff] }
  0x1d   : > { %248 = vst [vmem:[%s2389_s7 + $0xa8] sm:$0xff] %v247_v21  ;;  %250 = vst [vmem:[%s2389_s7 + $0xb0] sm:$0xff] %v249_v22  ;;  %v257_v26 = vld [vmem:[%s2381_s6 + $0x190] sm:$0xff]  ;;  %v259_v27 = vld [vmem:[%s2381_s6 + $0x198] sm:$0xff] }
  0x1e   : > { %252 = vst [vmem:[%s2389_s7 + $0xb8] sm:$0xff] %v251_v23  ;;  %254 = vst [vmem:[%s2389_s7 + $0xc0] sm:$0xff] %v253_v24  ;;  %v261_v28 = vld [vmem:[%s2381_s6 + $0x1a0] sm:$0xff]  ;;  %v263_v29 = vld [vmem:[%s2381_s6 + $0x1a8] sm:$0xff] }
  0x1f   : > { %256 = vst [vmem:[%s2389_s7 + $0xc8] sm:$0xff] %v255_v25  ;;  %258 = vst [vmem:[%s2389_s7 + $0xd0] sm:$0xff] %v257_v26  ;;  %v265_v30 = vld [vmem:[%s2381_s6 + $0x1b0] sm:$0xff]  ;;  %v267_v31 = vld [vmem:[%s2381_s6 + $0x1b8] sm:$0xff] }
  0x20   : > { %260 = vst [vmem:[%s2389_s7 + $0xd8] sm:$0xff] %v259_v27  ;;  %262 = vst [vmem:[%s2389_s7 + $0xe0] sm:$0xff] %v261_v28  ;;  %v269_v32 = vld [vmem:[%s2381_s6 + $0x200] sm:$0xff]  ;;  %v271_v33 = vld [vmem:[%s2381_s6 + $0x208] sm:$0xff] }
  0x21   : > { %264 = vst [vmem:[%s2389_s7 + $0xe8] sm:$0xff] %v263_v29  ;;  %266 = vst [vmem:[%s2389_s7 + $0xf0] sm:$0xff] %v265_v30  ;;  %v273_v34 = vld [vmem:[%s2381_s6 + $0x210] sm:$0xff]  ;;  %v275_v35 = vld [vmem:[%s2381_s6 + $0x218] sm:$0xff] }
  0x22   : > { %268 = vst [vmem:[%s2389_s7 + $0xf8] sm:$0xff] %v267_v31  ;;  %270 = vst [vmem:[%s2389_s7 + $0x100] sm:$0xff] %v269_v32  ;;  %v277_v36 = vld [vmem:[%s2381_s6 + $0x220] sm:$0xff]  ;;  %v279_v37 = vld [vmem:[%s2381_s6 + $0x228] sm:$0xff] }
  0x23   : > { %272 = vst [vmem:[%s2389_s7 + $0x108] sm:$0xff] %v271_v33  ;;  %274 = vst [vmem:[%s2389_s7 + $0x110] sm:$0xff] %v273_v34  ;;  %v281_v38 = vld [vmem:[%s2381_s6 + $0x230] sm:$0xff]  ;;  %v283_v39 = vld [vmem:[%s2381_s6 + $0x238] sm:$0xff] }
  0x24   : > { %276 = vst [vmem:[%s2389_s7 + $0x118] sm:$0xff] %v275_v35  ;;  %278 = vst [vmem:[%s2389_s7 + $0x120] sm:$0xff] %v277_v36  ;;  %v285_v40 = vld [vmem:[%s2381_s6 + $0x280] sm:$0xff]  ;;  %v287_v41 = vld [vmem:[%s2381_s6 + $0x288] sm:$0xff] }
  0x25   : > { %280 = vst [vmem:[%s2389_s7 + $0x128] sm:$0xff] %v279_v37  ;;  %282 = vst [vmem:[%s2389_s7 + $0x130] sm:$0xff] %v281_v38  ;;  %v289_v42 = vld [vmem:[%s2381_s6 + $0x290] sm:$0xff]  ;;  %v291_v43 = vld [vmem:[%s2381_s6 + $0x298] sm:$0xff] }
  0x26   : > { %284 = vst [vmem:[%s2389_s7 + $0x138] sm:$0xff] %v283_v39  ;;  %286 = vst [vmem:[%s2389_s7 + $0x140] sm:$0xff] %v285_v40  ;;  %v293_v44 = vld [vmem:[%s2381_s6 + $0x2a0] sm:$0xff]  ;;  %v295_v45 = vld [vmem:[%s2381_s6 + $0x2a8] sm:$0xff] }
  0x27   : > { %288 = vst [vmem:[%s2389_s7 + $0x148] sm:$0xff] %v287_v41  ;;  %290 = vst [vmem:[%s2389_s7 + $0x150] sm:$0xff] %v289_v42  ;;  %v297_v46 = vld [vmem:[%s2381_s6 + $0x2b0] sm:$0xff]  ;;  %v299_v47 = vld [vmem:[%s2381_s6 + $0x2b8] sm:$0xff] }
  0x28   : > { %292 = vst [vmem:[%s2389_s7 + $0x158] sm:$0xff] %v291_v43  ;;  %294 = vst [vmem:[%s2389_s7 + $0x160] sm:$0xff] %v293_v44  ;;  %v301_v48 = vld [vmem:[%s2381_s6 + $0x300] sm:$0xff]  ;;  %v303_v49 = vld [vmem:[%s2381_s6 + $0x308] sm:$0xff] }
  0x29   : > { %296 = vst [vmem:[%s2389_s7 + $0x168] sm:$0xff] %v295_v45  ;;  %298 = vst [vmem:[%s2389_s7 + $0x170] sm:$0xff] %v297_v46  ;;  %v305_v50 = vld [vmem:[%s2381_s6 + $0x310] sm:$0xff]  ;;  %v307_v51 = vld [vmem:[%s2381_s6 + $0x318] sm:$0xff] }
  0x2a   : > { %300 = vst [vmem:[%s2389_s7 + $0x178] sm:$0xff] %v299_v47  ;;  %302 = vst [vmem:[%s2389_s7 + $0x180] sm:$0xff] %v301_v48  ;;  %v309_v52 = vld [vmem:[%s2381_s6 + $0x320] sm:$0xff]  ;;  %v311_v53 = vld [vmem:[%s2381_s6 + $0x328] sm:$0xff] }
  0x2b   : > { %304 = vst [vmem:[%s2389_s7 + $0x188] sm:$0xff] %v303_v49  ;;  %306 = vst [vmem:[%s2389_s7 + $0x190] sm:$0xff] %v305_v50  ;;  %v313_v54 = vld [vmem:[%s2381_s6 + $0x330] sm:$0xff]  ;;  %v315_v55 = vld [vmem:[%s2381_s6 + $0x338] sm:$0xff] }
  0x2c   : > { %308 = vst [vmem:[%s2389_s7 + $0x198] sm:$0xff] %v307_v51  ;;  %310 = vst [vmem:[%s2389_s7 + $0x1a0] sm:$0xff] %v309_v52  ;;  %v317_v56 = vld [vmem:[%s2381_s6 + $0x380] sm:$0xff]  ;;  %v319_v57 = vld [vmem:[%s2381_s6 + $0x388] sm:$0xff] }
  0x2d   : > { %312 = vst [vmem:[%s2389_s7 + $0x1a8] sm:$0xff] %v311_v53  ;;  %314 = vst [vmem:[%s2389_s7 + $0x1b0] sm:$0xff] %v313_v54  ;;  %v321_v58 = vld [vmem:[%s2381_s6 + $0x390] sm:$0xff]  ;;  %v323_v59 = vld [vmem:[%s2381_s6 + $0x398] sm:$0xff] }
  0x2e   : > { %316 = vst [vmem:[%s2389_s7 + $0x1b8] sm:$0xff] %v315_v55  ;;  %318 = vst [vmem:[%s2389_s7 + $0x1c0] sm:$0xff] %v317_v56  ;;  %v325_v60 = vld [vmem:[%s2381_s6 + $0x3a0] sm:$0xff]  ;;  %v327_v61 = vld [vmem:[%s2381_s6 + $0x3a8] sm:$0xff] }
  0x2f   : > { %320 = vst [vmem:[%s2389_s7 + $0x1c8] sm:$0xff] %v319_v57  ;;  %322 = vst [vmem:[%s2389_s7 + $0x1d0] sm:$0xff] %v321_v58  ;;  %v329_v62 = vld [vmem:[%s2381_s6 + $0x3b0] sm:$0xff]  ;;  %v331_v63 = vld [vmem:[%s2381_s6 + $0x3b8] sm:$0xff] }
  0x30   : > { %324 = vst [vmem:[%s2389_s7 + $0x1d8] sm:$0xff] %v323_v59  ;;  %326 = vst [vmem:[%s2389_s7 + $0x1e0] sm:$0xff] %v325_v60  ;;  %v333_v0 = vld [vmem:[%s2381_s6 + $0x400] sm:$0xff]  ;;  %v335_v1 = vld [vmem:[%s2381_s6 + $0x408] sm:$0xff] }
  0x31   : > { %328 = vst [vmem:[%s2389_s7 + $0x1e8] sm:$0xff] %v327_v61  ;;  %330 = vst [vmem:[%s2389_s7 + $0x1f0] sm:$0xff] %v329_v62  ;;  %v337_v2 = vld [vmem:[%s2381_s6 + $0x410] sm:$0xff]  ;;  %v339_v3 = vld [vmem:[%s2381_s6 + $0x418] sm:$0xff] }
  0x32   : > { %332 = vst [vmem:[%s2389_s7 + $0x1f8] sm:$0xff] %v331_v63  ;;  %334 = vst [vmem:[%s2389_s7 + $0x200] sm:$0xff] %v333_v0  ;;  %v341_v4 = vld [vmem:[%s2381_s6 + $0x420] sm:$0xff]  ;;  %v343_v5 = vld [vmem:[%s2381_s6 + $0x428] sm:$0xff] }
  0x33   : > { %336 = vst [vmem:[%s2389_s7 + $0x208] sm:$0xff] %v335_v1  ;;  %338 = vst [vmem:[%s2389_s7 + $0x210] sm:$0xff] %v337_v2  ;;  %v345_v6 = vld [vmem:[%s2381_s6 + $0x430] sm:$0xff]  ;;  %v347_v7 = vld [vmem:[%s2381_s6 + $0x438] sm:$0xff] }
  0x34   : > { %340 = vst [vmem:[%s2389_s7 + $0x218] sm:$0xff] %v339_v3  ;;  %342 = vst [vmem:[%s2389_s7 + $0x220] sm:$0xff] %v341_v4  ;;  %v349_v8 = vld [vmem:[%s2381_s6 + $0x480] sm:$0xff]  ;;  %v351_v9 = vld [vmem:[%s2381_s6 + $0x488] sm:$0xff] }
  0x35   : > { %344 = vst [vmem:[%s2389_s7 + $0x228] sm:$0xff] %v343_v5  ;;  %346 = vst [vmem:[%s2389_s7 + $0x230] sm:$0xff] %v345_v6  ;;  %v353_v10 = vld [vmem:[%s2381_s6 + $0x490] sm:$0xff]  ;;  %v355_v11 = vld [vmem:[%s2381_s6 + $0x498] sm:$0xff] }
  0x36   : > { %348 = vst [vmem:[%s2389_s7 + $0x238] sm:$0xff] %v347_v7  ;;  %350 = vst [vmem:[%s2389_s7 + $0x240] sm:$0xff] %v349_v8  ;;  %v357_v12 = vld [vmem:[%s2381_s6 + $0x4a0] sm:$0xff]  ;;  %v359_v13 = vld [vmem:[%s2381_s6 + $0x4a8] sm:$0xff] }
  0x37   : > { %352 = vst [vmem:[%s2389_s7 + $0x248] sm:$0xff] %v351_v9  ;;  %354 = vst [vmem:[%s2389_s7 + $0x250] sm:$0xff] %v353_v10  ;;  %v361_v14 = vld [vmem:[%s2381_s6 + $0x4b0] sm:$0xff]  ;;  %v363_v15 = vld [vmem:[%s2381_s6 + $0x4b8] sm:$0xff] }
  0x38   : > { %356 = vst [vmem:[%s2389_s7 + $0x258] sm:$0xff] %v355_v11  ;;  %358 = vst [vmem:[%s2389_s7 + $0x260] sm:$0xff] %v357_v12  ;;  %v365_v16 = vld [vmem:[%s2381_s6 + $0x500] sm:$0xff]  ;;  %v367_v17 = vld [vmem:[%s2381_s6 + $0x508] sm:$0xff] }
  0x39   : > { %360 = vst [vmem:[%s2389_s7 + $0x268] sm:$0xff] %v359_v13  ;;  %362 = vst [vmem:[%s2389_s7 + $0x270] sm:$0xff] %v361_v14  ;;  %v369_v18 = vld [vmem:[%s2381_s6 + $0x510] sm:$0xff]  ;;  %v371_v19 = vld [vmem:[%s2381_s6 + $0x518] sm:$0xff] }
  0x3a   : > { %364 = vst [vmem:[%s2389_s7 + $0x278] sm:$0xff] %v363_v15  ;;  %366 = vst [vmem:[%s2389_s7 + $0x280] sm:$0xff] %v365_v16  ;;  %v373_v20 = vld [vmem:[%s2381_s6 + $0x520] sm:$0xff]  ;;  %v375_v21 = vld [vmem:[%s2381_s6 + $0x528] sm:$0xff] }
  0x3b   : > { %368 = vst [vmem:[%s2389_s7 + $0x288] sm:$0xff] %v367_v17  ;;  %370 = vst [vmem:[%s2389_s7 + $0x290] sm:$0xff] %v369_v18  ;;  %v377_v22 = vld [vmem:[%s2381_s6 + $0x530] sm:$0xff]  ;;  %v379_v23 = vld [vmem:[%s2381_s6 + $0x538] sm:$0xff] }
  0x3c   : > { %372 = vst [vmem:[%s2389_s7 + $0x298] sm:$0xff] %v371_v19  ;;  %374 = vst [vmem:[%s2389_s7 + $0x2a0] sm:$0xff] %v373_v20  ;;  %v381_v24 = vld [vmem:[%s2381_s6 + $0x580] sm:$0xff]  ;;  %v383_v25 = vld [vmem:[%s2381_s6 + $0x588] sm:$0xff] }
  0x3d   : > { %376 = vst [vmem:[%s2389_s7 + $0x2a8] sm:$0xff] %v375_v21  ;;  %378 = vst [vmem:[%s2389_s7 + $0x2b0] sm:$0xff] %v377_v22  ;;  %v385_v26 = vld [vmem:[%s2381_s6 + $0x590] sm:$0xff]  ;;  %v387_v27 = vld [vmem:[%s2381_s6 + $0x598] sm:$0xff] }
  0x3e   : > { %380 = vst [vmem:[%s2389_s7 + $0x2b8] sm:$0xff] %v379_v23  ;;  %382 = vst [vmem:[%s2389_s7 + $0x2c0] sm:$0xff] %v381_v24  ;;  %v389_v28 = vld [vmem:[%s2381_s6 + $0x5a0] sm:$0xff]  ;;  %v391_v29 = vld [vmem:[%s2381_s6 + $0x5a8] sm:$0xff] }
  0x3f   : > { %384 = vst [vmem:[%s2389_s7 + $0x2c8] sm:$0xff] %v383_v25  ;;  %386 = vst [vmem:[%s2389_s7 + $0x2d0] sm:$0xff] %v385_v26  ;;  %v393_v30 = vld [vmem:[%s2381_s6 + $0x5b0] sm:$0xff]  ;;  %v395_v31 = vld [vmem:[%s2381_s6 + $0x5b8] sm:$0xff] }
  0x40   : > { %388 = vst [vmem:[%s2389_s7 + $0x2d8] sm:$0xff] %v387_v27  ;;  %390 = vst [vmem:[%s2389_s7 + $0x2e0] sm:$0xff] %v389_v28  ;;  %v397_v32 = vld [vmem:[%s2381_s6 + $0x600] sm:$0xff]  ;;  %v399_v33 = vld [vmem:[%s2381_s6 + $0x608] sm:$0xff] }
  0x41   : > { %392 = vst [vmem:[%s2389_s7 + $0x2e8] sm:$0xff] %v391_v29  ;;  %394 = vst [vmem:[%s2389_s7 + $0x2f0] sm:$0xff] %v393_v30  ;;  %v401_v34 = vld [vmem:[%s2381_s6 + $0x610] sm:$0xff]  ;;  %v403_v35 = vld [vmem:[%s2381_s6 + $0x618] sm:$0xff] }
  0x42   : > { %396 = vst [vmem:[%s2389_s7 + $0x2f8] sm:$0xff] %v395_v31  ;;  %398 = vst [vmem:[%s2389_s7 + $0x300] sm:$0xff] %v397_v32  ;;  %v405_v36 = vld [vmem:[%s2381_s6 + $0x620] sm:$0xff]  ;;  %v407_v37 = vld [vmem:[%s2381_s6 + $0x628] sm:$0xff] }
  0x43   : > { %400 = vst [vmem:[%s2389_s7 + $0x308] sm:$0xff] %v399_v33  ;;  %402 = vst [vmem:[%s2389_s7 + $0x310] sm:$0xff] %v401_v34  ;;  %v409_v38 = vld [vmem:[%s2381_s6 + $0x630] sm:$0xff]  ;;  %v411_v39 = vld [vmem:[%s2381_s6 + $0x638] sm:$0xff] }
  0x44   : > { %404 = vst [vmem:[%s2389_s7 + $0x318] sm:$0xff] %v403_v35  ;;  %406 = vst [vmem:[%s2389_s7 + $0x320] sm:$0xff] %v405_v36  ;;  %v413_v40 = vld [vmem:[%s2381_s6 + $0x680] sm:$0xff]  ;;  %v415_v41 = vld [vmem:[%s2381_s6 + $0x688] sm:$0xff] }
  0x45   : > { %408 = vst [vmem:[%s2389_s7 + $0x328] sm:$0xff] %v407_v37  ;;  %410 = vst [vmem:[%s2389_s7 + $0x330] sm:$0xff] %v409_v38  ;;  %v417_v42 = vld [vmem:[%s2381_s6 + $0x690] sm:$0xff]  ;;  %v419_v43 = vld [vmem:[%s2381_s6 + $0x698] sm:$0xff] }
  0x46   : > { %412 = vst [vmem:[%s2389_s7 + $0x338] sm:$0xff] %v411_v39  ;;  %414 = vst [vmem:[%s2389_s7 + $0x340] sm:$0xff] %v413_v40  ;;  %v421_v44 = vld [vmem:[%s2381_s6 + $0x6a0] sm:$0xff]  ;;  %v423_v45 = vld [vmem:[%s2381_s6 + $0x6a8] sm:$0xff] }
  0x47   : > { %416 = vst [vmem:[%s2389_s7 + $0x348] sm:$0xff] %v415_v41  ;;  %418 = vst [vmem:[%s2389_s7 + $0x350] sm:$0xff] %v417_v42  ;;  %v425_v46 = vld [vmem:[%s2381_s6 + $0x6b0] sm:$0xff]  ;;  %v427_v47 = vld [vmem:[%s2381_s6 + $0x6b8] sm:$0xff] }
  0x48   : > { %420 = vst [vmem:[%s2389_s7 + $0x358] sm:$0xff] %v419_v43  ;;  %422 = vst [vmem:[%s2389_s7 + $0x360] sm:$0xff] %v421_v44 }
  0x49   : > { %424 = vst [vmem:[%s2389_s7 + $0x368] sm:$0xff] %v423_v45  ;;  %426 = vst [vmem:[%s2389_s7 + $0x370] sm:$0xff] %v425_v46 }
  0x4a   : > { %428 = vst [vmem:[%s2389_s7 + $0x378] sm:$0xff] %v427_v47 }
  0x4b PF: > { %p2060_p5 = scmp.ge.s32.totalorder %s2313_s20, 1  ;;  %p442_p6 = scmp.lt.s32.totalorder %s2313_s20, 3 }
  0x4d   : > { %p443_p7 = pnand %p2060_p5, %p442_p6 }
  0x4e   : > { %s449_s8 = sand.u32 (!%p443_p7), 1, %s2305_s18   ;;  %v2315_v48 = vmov (!%p443_p7), 0   ;;  %v619_v49 = vld [vmem:[%s2858_s2] sm:$0xf] (!%p443_p7)  ;;  %vm1173_vm0 = vcmask (!%p443_p7), 1045504   ;;  %vm1169_vm1 = vcmask (!%p443_p7), 883712  }
  0x4f   : > { %446 = sbr.rel (%p443_p7) target bundleno = 447 (0x1bf), region = 55  ;;  %1254 = vmatprep.mubr.bf16.mxu0 (!%p443_p7), %v2315_v48  ;;  %1295 = vmatprep.mubr.bf16.mxu1 (!%p443_p7), %v2315_v48  ;;  %s2061_s15 = sshll.u32 (!%p443_p7), %s2054_s21, 4 }
  0x50   : > { %s2231_s9 = smul.u32 (!%p443_p7), 896, %s449_s8  ;;  %2258 = vset.pattern.permute.xlu0 (!%p443_p7), %v2315_v48  ;;  %p488_p8 = scmp.lt.s32.totalorder (!%p443_p7), %s2061_s15, 31 }
  0x51   : > { %622 = vperm.xlu0 (!%p443_p7), %2258, %v619_v49  }
  0x52   : > { %s2618_s12 = scalar_lea.vmem (!%p443_p7), [#allocation2], %s2231_s9 }
  0x53   : > { %v507_v50 = vld [vmem:[%s2618_s12] sm:$0xff] (!%p443_p7)  ;;  %v508_v52 = vld [vmem:[%s2618_s12 + $0x8] sm:$0xff] (!%p443_p7)  ;;  %v509_v42 = vld [vmem:[%s2618_s12 + $0x10] sm:$0xff] (!%p443_p7) }
  0x54   : > { %v515_v51 = vld [vmem:[%s2618_s12 + $0x40] sm:$0xff] (!%p443_p7)  ;;  %v516_v54 = vld [vmem:[%s2618_s12 + $0x48] sm:$0xff] (!%p443_p7)  ;;  %v517_v43 = vld [vmem:[%s2618_s12 + $0x50] sm:$0xff] (!%p443_p7) }
  0x55   : > { %v2068_v53 = vcombine.high (!%p443_p7), %v507_v50, %v515_v51  ;;  %v2067_v55 = vcombine.low (!%p443_p7), %v507_v50, %v515_v51  ;;  %v523_v56 = vld [vmem:[%s2618_s12 + $0x80] sm:$0xff] (!%p443_p7)  ;;  %v2070_v58 = vcombine.high (!%p443_p7), %v508_v52, %v516_v54  ;;  %v2069_v59 = vcombine.low (!%p443_p7), %v508_v52, %v516_v54  ;;  %v524_v61 = vld [vmem:[%s2618_s12 + $0x88] sm:$0xff] (!%p443_p7)  ;;  %v510_v44 = vld [vmem:[%s2618_s12 + $0x18] sm:$0xff] (!%p443_p7) }
  0x56   : > { %v531_v57 = vld [vmem:[%s2618_s12 + $0xc0] sm:$0xff]  ;;  %v532_v62 = vld [vmem:[%s2618_s12 + $0xc8] sm:$0xff]  ;;  %v518_v45 = vld [vmem:[%s2618_s12 + $0x58] sm:$0xff]  ;;  %v2072_v47 = vcombine.high %v509_v42, %v517_v43  ;;  %s2866_s15 = smov (!%p488_p8, %s2061_s15), 31 }
  0x57   : > { %v2084_v60 = vcombine.high %v523_v56, %v531_v57  ;;  %v539_v63 = vld [vmem:[%s2618_s12 + $0x100] sm:$0xff]  ;;  %1222 = vmatprep.subr.bf16.mxu0 %v2068_v53  ;;  %v2086_v0 = vcombine.high %v524_v61, %v532_v62  ;;  %v540_v2 = vld [vmem:[%s2618_s12 + $0x108] sm:$0xff]  ;;  %1263 = vmatprep.subr.bf16.mxu1 %v2070_v58  ;;  %v2083_v4 = vcombine.low %v523_v56, %v531_v57  ;;  %v525_v51 = vld [vmem:[%s2618_s12 + $0x90] sm:$0xff]  ;;  %s2784_s16 = sshll.u32 %s2866_s15, 1 }
  0x58   : > { %v547_v1 = vld [vmem:[%s2618_s12 + $0x140] sm:$0xff]  ;;  %v548_v3 = vld [vmem:[%s2618_s12 + $0x148] sm:$0xff]  ;;  %1223 = vmatpush1.bf16.msra.mxu0 %v2067_v55  ;;  %1264 = vmatpush1.bf16.msra.mxu1 %v2069_v59  ;;  %v2085_v5 = vcombine.low %v524_v61, %v532_v62  ;;  %v2074_v50 = vcombine.high %v510_v44, %v518_v45  ;;  %v533_v52 = vld [vmem:[%s2618_s12 + $0xd0] sm:$0xff]  ;;  %v2071_v56 = vcombine.low %v509_v42, %v517_v43  ;;  %s2790_s20 = scalar_lea.vmem %s2859_s3, %s2784_s16  ;;  %s2805_s24 = scalar_lea.vmem %s2860_s4, %s2784_s16 }
  0x59   : > { %1224 = vmatprep.subr.bf16.mxu0 %v2084_v60  ;;  %v2100_v6 = vcombine.high %v539_v63, %v547_v1  ;;  %1265 = vmatprep.subr.bf16.mxu1 %v2086_v0  ;;  %v2102_v7 = vcombine.high %v540_v2, %v548_v3  ;;  %v555_v8 = vld [vmem:[%s2618_s12 + $0x180] sm:$0xff]  ;;  %v556_v10 = vld [vmem:[%s2618_s12 + $0x188] sm:$0xff]  ;;  %v2099_v12 = vcombine.low %v539_v63, %v547_v1  ;;  %v526_v53 = vld [vmem:[%s2618_s12 + $0x98] sm:$0xff]  ;;  %s2813_s28 = scalar_lea.vmem %s2861_s5, %s2784_s16 }
  0x5a   : > { %v563_v9 = vld [vmem:[%s2618_s12 + $0x1c0] sm:$0xff]  ;;  %v564_v11 = vld [vmem:[%s2618_s12 + $0x1c8] sm:$0xff]  ;;  %v2101_v13 = vcombine.low %v540_v2, %v548_v3  ;;  %v534_v54 = vld [vmem:[%s2618_s12 + $0xd8] sm:$0xff]  ;;  %v2073_v57 = vcombine.low %v510_v44, %v518_v45  ;;  %v2088_v58 = vcombine.high %v525_v51, %v533_v52  ;;  %v2087_v0 = vcombine.low %v525_v51, %v533_v52 }
  0x5b   : > { %v2116_v14 = vcombine.high %v555_v8, %v563_v9  ;;  %v2118_v15 = vcombine.high %v556_v10, %v564_v11  ;;  %v571_v16 = vld [vmem:[%s2618_s12 + $0x200] sm:$0xff]  ;;  %v572_v18 = vld [vmem:[%s2618_s12 + $0x208] sm:$0xff]  ;;  %v2115_v20 = vcombine.low %v555_v8, %v563_v9  ;;  %v2117_v21 = vcombine.low %v556_v10, %v564_v11  ;;  %v541_v60 = vld [vmem:[%s2618_s12 + $0x110] sm:$0xff] }
  0x5c   : > { %1225 = vmatpush1.bf16.msra.mxu0 %v2083_v4  ;;  %1266 = vmatpush1.bf16.msra.mxu1 %v2085_v5  ;;  %v579_v17 = vld [vmem:[%s2618_s12 + $0x240] sm:$0xff]  ;;  %v580_v19 = vld [vmem:[%s2618_s12 + $0x248] sm:$0xff]  ;;  %v2090_v59 = vcombine.high %v526_v53, %v534_v54  ;;  %v549_v61 = vld [vmem:[%s2618_s12 + $0x150] sm:$0xff]  ;;  %v2089_v1 = vcombine.low %v526_v53, %v534_v54 }
  0x5d   : > { %1226 = vmatprep.subr.bf16.mxu0 %v2100_v6  ;;  %1267 = vmatprep.subr.bf16.mxu1 %v2102_v7  ;;  %v2132_v22 = vcombine.high %v571_v16, %v579_v17  ;;  %v2134_v23 = vcombine.high %v572_v18, %v580_v19  ;;  %v587_v24 = vld [vmem:[%s2618_s12 + $0x280] sm:$0xff]  ;;  %v588_v26 = vld [vmem:[%s2618_s12 + $0x288] sm:$0xff]  ;;  %v2131_v28 = vcombine.low %v571_v16, %v579_v17  ;;  %v542_v62 = vld [vmem:[%s2618_s12 + $0x118] sm:$0xff] }
  0x5e   : > { %v595_v25 = vld [vmem:[%s2618_s12 + $0x2c0] sm:$0xff]  ;;  %v596_v27 = vld [vmem:[%s2618_s12 + $0x2c8] sm:$0xff]  ;;  %v2133_v29 = vcombine.low %v572_v18, %v580_v19  ;;  %v550_v63 = vld [vmem:[%s2618_s12 + $0x158] sm:$0xff]  ;;  %v2104_v2 = vcombine.high %v541_v60, %v549_v61  ;;  %v2103_v8 = vcombine.low %v541_v60, %v549_v61 }
  0x5f   : > { %v2148_v30 = vcombine.high %v587_v24, %v595_v25  ;;  %v2150_v31 = vcombine.high %v588_v26, %v596_v27  ;;  %v603_v32 = vld [vmem:[%s2618_s12 + $0x300] sm:$0xff]  ;;  %v604_v34 = vld [vmem:[%s2618_s12 + $0x308] sm:$0xff]  ;;  %v2147_v36 = vcombine.low %v587_v24, %v595_v25  ;;  %v2149_v37 = vcombine.low %v588_v26, %v596_v27  ;;  %v557_v4 = vld [vmem:[%s2618_s12 + $0x190] sm:$0xff] }
  0x60   : > { %1227 = vmatpush1.bf16.msra.mxu0 %v2099_v12  ;;  %1268 = vmatpush1.bf16.msra.mxu1 %v2101_v13  ;;  %v611_v33 = vld [vmem:[%s2618_s12 + $0x340] sm:$0x33]  ;;  %v612_v35 = vld [vmem:[%s2618_s12 + $0x348] sm:$0x33]  ;;  %v2106_v3 = vcombine.high %v542_v62, %v550_v63  ;;  %v565_v5 = vld [vmem:[%s2618_s12 + $0x1d0] sm:$0xff]  ;;  %v2105_v9 = vcombine.low %v542_v62, %v550_v63 }
  0x61   : > { %1228 = vmatprep.subr.bf16.mxu0 %v2116_v14  ;;  %1269 = vmatprep.subr.bf16.mxu1 %v2118_v15  ;;  %v2164_v38 = vcombine.high %v603_v32, %v611_v33  ;;  %v2163_v39 = vcombine.low %v603_v32, %v611_v33  ;;  %v2166_v40 = vcombine.high %v604_v34, %v612_v35  ;;  %v2663_v55 = vld [vmem:[%s2856_s0] sm:$0x3]  ;;  %v558_v6 = vld [vmem:[%s2618_s12 + $0x198] sm:$0xff]  ;;  %v573_v12 = vld [vmem:[%s2618_s12 + $0x210] sm:$0xff] }
  0x62   : > { %v2165_v41 = vcombine.low %v604_v34, %v612_v35  ;;  %v566_v7 = vld [vmem:[%s2618_s12 + $0x1d8] sm:$0xff]  ;;  %v2120_v10 = vcombine.high %v557_v4, %v565_v5  ;;  %v581_v13 = vld [vmem:[%s2618_s12 + $0x250] sm:$0xff]  ;;  %v2119_v16 = vcombine.low %v557_v4, %v565_v5 }
  0x63   : > { %v1175_v46 = vsel %vm1173_vm0, %v2163_v39, 0  ;;  %v2122_v11 = vcombine.high %v558_v6, %v566_v7  ;;  %v574_v14 = vld [vmem:[%s2618_s12 + $0x218] sm:$0xff]  ;;  %v2121_v17 = vcombine.low %v558_v6, %v566_v7  ;;  %v2136_v18 = vcombine.high %v573_v12, %v581_v13  ;;  %v519_v39 = vld [vmem:[%s2618_s12 + $0x60] sm:$0xff] }
  0x64   : > { %1229 = vmatpush1.bf16.msra.mxu0 %v2115_v20  ;;  %1270 = vmatpush1.bf16.msra.mxu1 %v2117_v21  ;;  %v1181_v49 = vsel %vm1173_vm0, %v2165_v41, 0  ;;  %v582_v15 = vld [vmem:[%s2618_s12 + $0x258] sm:$0xff]  ;;  %v589_v20 = vld [vmem:[%s2618_s12 + $0x290] sm:$0xff]  ;;  %v2135_v24 = vcombine.low %v573_v12, %v581_v13  ;;  %v520_v41 = vld [vmem:[%s2618_s12 + $0x68] sm:$0xff] }
  0x65   : > { %1230 = vmatprep.subr.bf16.mxu0 %v2132_v22  ;;  %1271 = vmatprep.subr.bf16.mxu1 %v2134_v23  ;;  %v2138_v19 = vcombine.high %v574_v14, %v582_v15  ;;  %v597_v21 = vld [vmem:[%s2618_s12 + $0x2d0] sm:$0xff]  ;;  %v590_v22 = vld [vmem:[%s2618_s12 + $0x298] sm:$0xff]  ;;  %v2137_v25 = vcombine.low %v574_v14, %v582_v15 }
  0x66   : > { %v598_v23 = vld [vmem:[%s2618_s12 + $0x2d8] sm:$0xff]  ;;  %v2152_v26 = vcombine.high %v589_v20, %v597_v21  ;;  %v2151_v32 = vcombine.low %v589_v20, %v597_v21 }
  0x67   : > { %v2154_v27 = vcombine.high %v590_v22, %v598_v23  ;;  %v2153_v33 = vcombine.low %v590_v22, %v598_v23 }
  0x68   : > { %1231 = vmatpush1.bf16.msra.mxu0 %v2131_v28  ;;  %1272 = vmatpush1.bf16.msra.mxu1 %v2133_v29  ;;  %v605_v28 = vld [vmem:[%s2618_s12 + $0x310] sm:$0xff] }
  0x69   : > { %1232 = vmatprep.subr.bf16.mxu0 %v2148_v30  ;;  %1273 = vmatprep.subr.bf16.mxu1 %v2150_v31  ;;  %v613_v29 = vld [vmem:[%s2618_s12 + $0x350] sm:$0x33]  ;;  %v606_v30 = vld [vmem:[%s2618_s12 + $0x318] sm:$0xff] }
  0x6a   : > { %v614_v31 = vld [vmem:[%s2618_s12 + $0x358] sm:$0x33]  ;;  %v2168_v34 = vcombine.high %v605_v28, %v613_v29  ;;  %v2167_v35 = vcombine.low %v605_v28, %v613_v29 }
  0x6c   : > { %1233 = vmatpush1.bf16.msra.mxu0 %v2147_v36  ;;  %1274 = vmatpush1.bf16.msra.mxu1 %v2149_v37  ;;  %v2170_v36 = vcombine.high %v606_v30, %v614_v31  ;;  %v2169_v37 = vcombine.low %v606_v30, %v614_v31  ;;  %v1187_v42 = vsel %vm1173_vm0, %v2167_v35, 0  ;;  %v521_v35 = vld [vmem:[%s2618_s12 + $0x70] sm:$0xff] }
  0x6d   : > { %2179 = vmatprep.subr.msk.bf16.mxu0 %vm1173_vm0, %v2164_v38  ;;  %2181 = vmatprep.subr.msk.bf16.mxu1 %vm1173_vm0, %v2166_v40  ;;  %v511_v38 = vld [vmem:[%s2618_s12 + $0x20] sm:$0xff]  ;;  %v512_v40 = vld [vmem:[%s2618_s12 + $0x28] sm:$0xff] }
  0x6e   : > { %v2076_v43 = vcombine.high %v511_v38, %v519_v39  ;;  %v1193_v44 = vsel %vm1173_vm0, %v2169_v37, 0  ;;  %v2078_v45 = vcombine.high %v512_v40, %v520_v41  ;;  %v2075_v51 = vcombine.low %v511_v38, %v519_v39  ;;  %v522_v37 = vld [vmem:[%s2618_s12 + $0x78] sm:$0xff] }
  0x6f   : > { %v2077_v52 = vcombine.low %v512_v40, %v520_v41 }
  0x70   : > { %1235 = vmatpush1.bf16.msra.mxu0 %v1175_v46  ;;  %1276 = vmatpush1.bf16.msra.mxu1 %v1181_v49  ;;  %v527_v46 = vld [vmem:[%s2618_s12 + $0xa0] sm:$0xff]  ;;  %v528_v49 = vld [vmem:[%s2618_s12 + $0xa8] sm:$0xff] }
  0x71   : > { %1304 = vmatprep.subr.bf16.mxu0 %v2072_v47  ;;  %1345 = vmatprep.subr.bf16.mxu1 %v2074_v50  ;;  %v535_v47 = vld [vmem:[%s2618_s12 + $0xe0] sm:$0xff]  ;;  %v536_v50 = vld [vmem:[%s2618_s12 + $0xe8] sm:$0xff] }
  0x72   : > { %v2092_v53 = vcombine.high %v527_v46, %v535_v47  ;;  %v2094_v54 = vcombine.high %v528_v49, %v536_v50  ;;  %v2091_v60 = vcombine.low %v527_v46, %v535_v47  ;;  %v2093_v61 = vcombine.low %v528_v49, %v536_v50 }
  0x73   : > { %2180 = vmatmul.mubr.msk.bf16.vlgmr.msra.gmra.mrb[0].mxu0 %vm1169_vm1, %v2663_v55  ;;  %2182 = vmatmul.mubr.msk.bf16.vlgmr.msra.gmra.mrb[0].mxu1 %vm1169_vm1, %v2663_v55 }
  0x74   : > { %1305 = vmatpush1.bf16.msra.mxu0 %v2071_v56  ;;  %1346 = vmatpush1.bf16.msra.mxu1 %v2073_v57  ;;  %v543_v56 = vld [vmem:[%s2618_s12 + $0x120] sm:$0xff] }
  0x75   : > { %1306 = vmatprep.subr.bf16.mxu0 %v2088_v58  ;;  %1347 = vmatprep.subr.bf16.mxu1 %v2090_v59  ;;  %v551_v57 = vld [vmem:[%s2618_s12 + $0x160] sm:$0xff]  ;;  %v544_v58 = vld [vmem:[%s2618_s12 + $0x128] sm:$0xff] }
  0x76   : > { %1336 = vmatprep.mubr.bf16.mxu0 %v2315_v48  ;;  %1377 = vmatprep.mubr.bf16.mxu1 %v2315_v48  ;;  %v552_v59 = vld [vmem:[%s2618_s12 + $0x168] sm:$0xff]  ;;  %v2108_v62 = vcombine.high %v543_v56, %v551_v57  ;;  %v2107_v4 = vcombine.low %v543_v56, %v551_v57 }
  0x77   : > { %v2110_v63 = vcombine.high %v544_v58, %v552_v59  ;;  %v2109_v5 = vcombine.low %v544_v58, %v552_v59 }
  0x78   : > { %1307 = vmatpush1.bf16.msra.mxu0 %v2087_v0  ;;  %1348 = vmatpush1.bf16.msra.mxu1 %v2089_v1  ;;  %v559_v0 = vld [vmem:[%s2618_s12 + $0x1a0] sm:$0xff] }
  0x79   : > { %1308 = vmatprep.subr.bf16.mxu0 %v2104_v2  ;;  %1349 = vmatprep.subr.bf16.mxu1 %v2106_v3  ;;  %v567_v1 = vld [vmem:[%s2618_s12 + $0x1e0] sm:$0xff]  ;;  %v560_v2 = vld [vmem:[%s2618_s12 + $0x1a8] sm:$0xff] }
  0x7a   : > { %v568_v3 = vld [vmem:[%s2618_s12 + $0x1e8] sm:$0xff]  ;;  %v2124_v6 = vcombine.high %v559_v0, %v567_v1  ;;  %v2123_v12 = vcombine.low %v559_v0, %v567_v1 }
  0x7b   : > { %v2126_v7 = vcombine.high %v560_v2, %v568_v3  ;;  %v2125_v13 = vcombine.low %v560_v2, %v568_v3 }
  0x7c   : > { %1309 = vmatpush1.bf16.msra.mxu0 %v2103_v8  ;;  %1350 = vmatpush1.bf16.msra.mxu1 %v2105_v9  ;;  %v575_v8 = vld [vmem:[%s2618_s12 + $0x220] sm:$0xff] }
  0x7d   : > { %1310 = vmatprep.subr.bf16.mxu0 %v2120_v10  ;;  %1351 = vmatprep.subr.bf16.mxu1 %v2122_v11  ;;  %v583_v9 = vld [vmem:[%s2618_s12 + $0x260] sm:$0xff]  ;;  %v576_v10 = vld [vmem:[%s2618_s12 + $0x228] sm:$0xff] }
  0x7e   : > { %v584_v11 = vld [vmem:[%s2618_s12 + $0x268] sm:$0xff]  ;;  %v2140_v14 = vcombine.high %v575_v8, %v583_v9  ;;  %v2139_v20 = vcombine.low %v575_v8, %v583_v9 }
  0x7f   : > { %v2142_v15 = vcombine.high %v576_v10, %v584_v11  ;;  %v2141_v21 = vcombine.low %v576_v10, %v584_v11  ;;  %v593_v11 = vld [vmem:[%s2618_s12 + $0x2b0] sm:$0xff] }
  0x80   : > { %1311 = vmatpush1.bf16.msra.mxu0 %v2119_v16  ;;  %1352 = vmatpush1.bf16.msra.mxu1 %v2121_v17  ;;  %v591_v16 = vld [vmem:[%s2618_s12 + $0x2a0] sm:$0xff] }
  0x81   : > { %1312 = vmatprep.subr.bf16.mxu0 %v2136_v18  ;;  %1353 = vmatprep.subr.bf16.mxu1 %v2138_v19  ;;  %v599_v17 = vld [vmem:[%s2618_s12 + $0x2e0] sm:$0xff]  ;;  %v592_v18 = vld [vmem:[%s2618_s12 + $0x2a8] sm:$0xff] }
  0x82   : > { %v600_v19 = vld [vmem:[%s2618_s12 + $0x2e8] sm:$0xff]  ;;  %v2156_v22 = vcombine.high %v591_v16, %v599_v17  ;;  %v2155_v28 = vcombine.low %v591_v16, %v599_v17 }
  0x83   : > { %v2158_v23 = vcombine.high %v592_v18, %v600_v19  ;;  %v2157_v29 = vcombine.low %v592_v18, %v600_v19  ;;  %v609_v19 = vld [vmem:[%s2618_s12 + $0x330] sm:$0xff] }
  0x84   : > { %1313 = vmatpush1.bf16.msra.mxu0 %v2135_v24  ;;  %1354 = vmatpush1.bf16.msra.mxu1 %v2137_v25  ;;  %v607_v24 = vld [vmem:[%s2618_s12 + $0x320] sm:$0xff] }
  0x85   : > { %1314 = vmatprep.subr.bf16.mxu0 %v2152_v26  ;;  %1355 = vmatprep.subr.bf16.mxu1 %v2154_v27  ;;  %v615_v25 = vld [vmem:[%s2618_s12 + $0x360] sm:$0x33]  ;;  %v608_v26 = vld [vmem:[%s2618_s12 + $0x328] sm:$0xff] }
  0x86   : > { %v616_v27 = vld [vmem:[%s2618_s12 + $0x368] sm:$0x33]  ;;  %v2172_v30 = vcombine.high %v607_v24, %v615_v25  ;;  %v2171_v31 = vcombine.low %v607_v24, %v615_v25 }
  0x88   : > { %1315 = vmatpush1.bf16.msra.mxu0 %v2151_v32  ;;  %1356 = vmatpush1.bf16.msra.mxu1 %v2153_v33  ;;  %v2174_v32 = vcombine.high %v608_v26, %v616_v27  ;;  %v2173_v33 = vcombine.low %v608_v26, %v616_v27  ;;  %v1199_v38 = vsel %vm1173_vm0, %v2171_v31, 0 }
  0x89   : > { %2183 = vmatprep.subr.msk.bf16.mxu0 %vm1173_vm0, %v2168_v34  ;;  %2185 = vmatprep.subr.msk.bf16.mxu1 %vm1173_vm0, %v2170_v36  ;;  %v513_v34 = vld [vmem:[%s2618_s12 + $0x30] sm:$0xff]  ;;  %v514_v36 = vld [vmem:[%s2618_s12 + $0x38] sm:$0xff] }
  0x8a   : > { %v2080_v39 = vcombine.high %v513_v34, %v521_v35  ;;  %v1205_v40 = vsel %vm1173_vm0, %v2173_v33, 0  ;;  %v2082_v41 = vcombine.high %v514_v36, %v522_v37  ;;  %v2079_v46 = vcombine.low %v513_v34, %v521_v35 }
  0x8b   : > { %v2081_v47 = vcombine.low %v514_v36, %v522_v37 }
  0x8c   : > { %1317 = vmatpush1.bf16.msra.mxu0 %v1187_v42  ;;  %1358 = vmatpush1.bf16.msra.mxu1 %v1193_v44  ;;  %v529_v42 = vld [vmem:[%s2618_s12 + $0xb0] sm:$0xff]  ;;  %v530_v44 = vld [vmem:[%s2618_s12 + $0xb8] sm:$0xff] }
  0x8d   : > { %1386 = vmatprep.subr.bf16.mxu0 %v2076_v43  ;;  %1427 = vmatprep.subr.bf16.mxu1 %v2078_v45  ;;  %v537_v43 = vld [vmem:[%s2618_s12 + $0xf0] sm:$0xff]  ;;  %v538_v45 = vld [vmem:[%s2618_s12 + $0xf8] sm:$0xff] }
  0x8e   : > { %v2096_v49 = vcombine.high %v529_v42, %v537_v43  ;;  %v2098_v50 = vcombine.high %v530_v44, %v538_v45  ;;  %v2095_v56 = vcombine.low %v529_v42, %v537_v43  ;;  %v2097_v57 = vcombine.low %v530_v44, %v538_v45 }
  0x8f   : > { %2184 = vmatmul.mubr.msk.bf16.vlgmr.msra.gmra.mrb[4].mxu0 %vm1169_vm1, %v2663_v55  ;;  %2186 = vmatmul.mubr.msk.bf16.vlgmr.msra.gmra.mrb[4].mxu1 %vm1169_vm1, %v2663_v55 }
  0x90   : > { %1387 = vmatpush1.bf16.msra.mxu0 %v2075_v51  ;;  %1428 = vmatpush1.bf16.msra.mxu1 %v2077_v52  ;;  %v545_v51 = vld [vmem:[%s2618_s12 + $0x130] sm:$0xff] }
  0x91   : > { %1388 = vmatprep.subr.bf16.mxu0 %v2092_v53  ;;  %1429 = vmatprep.subr.bf16.mxu1 %v2094_v54  ;;  %v553_v52 = vld [vmem:[%s2618_s12 + $0x170] sm:$0xff]  ;;  %v546_v53 = vld [vmem:[%s2618_s12 + $0x138] sm:$0xff] }
  0x92   : > { %1418 = vmatprep.mubr.bf16.mxu0 %v2315_v48  ;;  %1459 = vmatprep.mubr.bf16.mxu1 %v2315_v48  ;;  %v554_v54 = vld [vmem:[%s2618_s12 + $0x178] sm:$0xff]  ;;  %v2112_v58 = vcombine.high %v545_v51, %v553_v52  ;;  %v2111_v0 = vcombine.low %v545_v51, %v553_v52  ;;  %v1786_v52 = vld [vmem:[%s2790_s20] sm:$0xff] }
  0x93   : > { %v2114_v59 = vcombine.high %v546_v53, %v554_v54  ;;  %v2113_v1 = vcombine.low %v546_v53, %v554_v54  ;;  %v2316_v53 = vmov 1983009808  }
  0x94   : > { %1389 = vmatpush1.bf16.msra.mxu0 %v2091_v60  ;;  %1430 = vmatpush1.bf16.msra.mxu1 %v2093_v61  ;;  %v561_v60 = vld [vmem:[%s2618_s12 + $0x1b0] sm:$0xff]  ;;  %v1713_v54 = vunpack.c.l.s4 %v2316_v53 }
  0x95   : > { %1390 = vmatprep.subr.bf16.mxu0 %v2108_v62  ;;  %1431 = vmatprep.subr.bf16.mxu1 %v2110_v63  ;;  %v569_v61 = vld [vmem:[%s2618_s12 + $0x1f0] sm:$0xff]  ;;  %v562_v62 = vld [vmem:[%s2618_s12 + $0x1b8] sm:$0xff] }
  0x96   : > { %v570_v63 = vld [vmem:[%s2618_s12 + $0x1f8] sm:$0xff]  ;;  %v2128_v2 = vcombine.high %v561_v60, %v569_v61  ;;  %v2127_v8 = vcombine.low %v561_v60, %v569_v61  ;;  %v1790_v60 = vunpack.c.l.bf16 %v1786_v52 }
  0x97   : > { %v2130_v3 = vcombine.high %v562_v62, %v570_v63 }
  0x98   : > { %1391 = vmatpush1.bf16.msra.mxu0 %v2107_v4  ;;  %1432 = vmatpush1.bf16.msra.mxu1 %v2109_v5  ;;  %v577_v4 = vld [vmem:[%s2618_s12 + $0x230] sm:$0xff] }
  0x99   : > { %1392 = vmatprep.subr.bf16.mxu0 %v2124_v6  ;;  %1433 = vmatprep.subr.bf16.mxu1 %v2126_v7  ;;  %v585_v5 = vld [vmem:[%s2618_s12 + $0x270] sm:$0xff]  ;;  %v578_v6 = vld [vmem:[%s2618_s12 + $0x238] sm:$0xff] }
  0x9a   : > { %v586_v7 = vld [vmem:[%s2618_s12 + $0x278] sm:$0xff]  ;;  %v2144_v9 = vcombine.high %v577_v4, %v585_v5 }
  0x9b   : > { %v2146_v10 = vcombine.high %v578_v6, %v586_v7  ;;  %v2145_v16 = vcombine.low %v578_v6, %v586_v7 }
  0x9c   : > { %1393 = vmatpush1.bf16.msra.mxu0 %v2123_v12  ;;  %1434 = vmatpush1.bf16.msra.mxu1 %v2125_v13  ;;  %v601_v12 = vld [vmem:[%s2618_s12 + $0x2f0] sm:$0xff]  ;;  %v594_v13 = vld [vmem:[%s2618_s12 + $0x2b8] sm:$0xff] }
  0x9d   : > { %1394 = vmatprep.subr.bf16.mxu0 %v2140_v14  ;;  %1435 = vmatprep.subr.bf16.mxu1 %v2142_v15  ;;  %v602_v14 = vld [vmem:[%s2618_s12 + $0x2f8] sm:$0xff]  ;;  %v2143_v15 = vcombine.low %v577_v4, %v585_v5  ;;  %v2160_v17 = vcombine.high %v593_v11, %v601_v12 }
  0x9e   : > { %v2162_v18 = vcombine.high %v594_v13, %v602_v14  ;;  %v2161_v24 = vcombine.low %v594_v13, %v602_v14 }
  0xa0   : > { %1395 = vmatpush1.bf16.msra.mxu0 %v2139_v20  ;;  %1436 = vmatpush1.bf16.msra.mxu1 %v2141_v21  ;;  %v617_v20 = vld [vmem:[%s2618_s12 + $0x370] sm:$0x33]  ;;  %v610_v21 = vld [vmem:[%s2618_s12 + $0x338] sm:$0xff] }
  0xa1   : > { %1396 = vmatprep.subr.bf16.mxu0 %v2156_v22  ;;  %1437 = vmatprep.subr.bf16.mxu1 %v2158_v23  ;;  %v618_v22 = vld [vmem:[%s2618_s12 + $0x378] sm:$0x33]  ;;  %v2159_v23 = vcombine.low %v593_v11, %v601_v12  ;;  %v2176_v25 = vcombine.high %v609_v19, %v617_v20  ;;  %v2175_v26 = vcombine.low %v609_v19, %v617_v20 }
  0xa2   : > { %v2178_v27 = vcombine.high %v610_v21, %v618_v22 }
  0xa4   : > { %1397 = vmatpush1.bf16.msra.mxu0 %v2155_v28  ;;  %1438 = vmatpush1.bf16.msra.mxu1 %v2157_v29  ;;  %v2177_v28 = vcombine.low %v610_v21, %v618_v22  ;;  %v1211_v29 = vsel %vm1173_vm0, %v2175_v26, 0 }
  0xa5   : > { %2187 = vmatprep.subr.msk.bf16.mxu0 %vm1173_vm0, %v2172_v30  ;;  %2189 = vmatprep.subr.msk.bf16.mxu1 %vm1173_vm0, %v2174_v32 }
  0xa6   : > { %v1217_v30 = vsel %vm1173_vm0, %v2177_v28, 0 }
  0xa8   : > { %1399 = vmatpush1.bf16.msra.mxu0 %v1199_v38  ;;  %1440 = vmatpush1.bf16.msra.mxu1 %v1205_v40 }
  0xa9   : > { %1468 = vmatprep.subr.bf16.mxu0 %v2080_v39  ;;  %1509 = vmatprep.subr.bf16.mxu1 %v2082_v41 }
  0xab   : > { %2188 = vmatmul.mubr.msk.bf16.vlgmr.msra.gmra.mrb[8].mxu0 %vm1169_vm1, %v2663_v55  ;;  %2190 = vmatmul.mubr.msk.bf16.vlgmr.msra.gmra.mrb[8].mxu1 %vm1169_vm1, %v2663_v55 }
  0xac   : > { %1469 = vmatpush1.bf16.msra.mxu0 %v2079_v46  ;;  %1510 = vmatpush1.bf16.msra.mxu1 %v2081_v47 }
  0xad   : > { %1470 = vmatprep.subr.bf16.mxu0 %v2096_v49  ;;  %1511 = vmatprep.subr.bf16.mxu1 %v2098_v50 }
  0xae   : > { %1500 = vmatprep.mubr.bf16.mxu0 %v2315_v48  ;;  %1541 = vmatprep.mubr.bf16.mxu1 %v2315_v48  ;;  %v2129_v48 = vcombine.low %v562_v62, %v570_v63 }
  0xb0   : > { %1471 = vmatpush1.bf16.msra.mxu0 %v2095_v56  ;;  %1512 = vmatpush1.bf16.msra.mxu1 %v2097_v57  ;;  %v1715_v57 = vlaneseq }
  0xb1   : > { %1472 = vmatprep.subr.bf16.mxu0 %v2112_v58  ;;  %1513 = vmatprep.subr.bf16.mxu1 %v2114_v59 }
  0xb2   : > { %v1716_v5 = vshrl.u32 %v1715_v57, 7 }
  0xb4   : > { %1473 = vmatpush1.bf16.msra.mxu0 %v2111_v0  ;;  %1514 = vmatpush1.bf16.msra.mxu1 %v2113_v1  ;;  %v1791_v1 = vunpack.c.h.bf16 %v1786_v52 }
  0xb5   : > { %1474 = vmatprep.subr.bf16.mxu0 %v2128_v2  ;;  %1515 = vmatprep.subr.bf16.mxu1 %v2130_v3  ;;  %v1714_v3 = vunpack.c.0.s8 %v1713_v54  ;;  %v1787_v54 = vld [vmem:[%s2790_s20 + $0x8] sm:$0xff] }
  0xb6   : > { %v1807_v14 = vcombine.high %v1791_v1, %v1791_v1 }
  0xb8   : > { %1475 = vmatpush1.bf16.msra.mxu0 %v2127_v8  ;;  %1516 = vmatpush1.bf16.msra.mxu1 %v2129_v48  ;;  %v1806_v48 = vcombine.high %v1790_v60, %v1790_v60 }
  0xb9   : > { %1476 = vmatprep.subr.bf16.mxu0 %v2144_v9  ;;  %1517 = vmatprep.subr.bf16.mxu1 %v2146_v10 }
  0xbc   : > { %1477 = vmatpush1.bf16.msra.mxu0 %v2143_v15  ;;  %1518 = vmatpush1.bf16.msra.mxu1 %v2145_v16 }
  0xbd   : > { %1478 = vmatprep.subr.bf16.mxu0 %v2160_v17  ;;  %1519 = vmatprep.subr.bf16.mxu1 %v2162_v18  ;;  %v2793_v17 = vsub.s32 %v1714_v3, %v1716_v5 }
  0xc0   : > { %1479 = vmatpush1.bf16.msra.mxu0 %v2159_v23  ;;  %1520 = vmatpush1.bf16.msra.mxu1 %v2161_v24 }
  0xc1   : > { %2191 = vmatprep.subr.msk.bf16.mxu0 %vm1173_vm0, %v2176_v25  ;;  %2193 = vmatprep.subr.msk.bf16.mxu1 %vm1173_vm0, %v2178_v27 }
  0xc4   : > { %1481 = vmatpush1.bf16.msra.mxu0 %v1211_v29  ;;  %1522 = vmatpush1.bf16.msra.mxu1 %v1217_v30 }
  0xc7   : > { %2192 = vmatmul.mubr.msk.bf16.vlgmr.msra.gmra.mrb[12].mxu0 %vm1169_vm1, %v2663_v55  ;;  %2194 = vmatmul.mubr.msk.bf16.vlgmr.msra.gmra.mrb[12].mxu1 %vm1169_vm1, %v2663_v55 }
  0xd0   : > { %v2775_v31 = vpop.permute.xlu0 %622 }
 0x146   : > { %v1256_v32 = vpop.f32.mrb[0].mxu0  ;;  %v1297_v34 = vpop.f32.mrb[0].mxu1 }
 0x147   : > { %v1257_v33 = vadd.f32 %v1256_v32, %v2775_v31  ;;  %v1258_v35 = vpop.f32.mrb[1].mxu0  ;;  %v1298_v36 = vadd.f32 %v1297_v34, %v2775_v31  ;;  %v1299_v38 = vpop.f32.mrb[1].mxu1 }
 0x148   : > { %v1259_v37 = vadd.f32 %v1258_v35, %v2775_v31  ;;  %v1260_v39 = vpop.f32.mrb[2].mxu0  ;;  %v1300_v41 = vadd.f32 %v1299_v38, %v2775_v31  ;;  %v1301_v55 = vpop.f32.mrb[2].mxu1 }
 0x149   : > { %v1566_v40 = vmin.f32 %v1257_v33, 0.0  ;;  %v1261_v42 = vpop.f32.mrb[3].mxu0  ;;  %v1568_v43 = vmin.f32 %v1298_v36, 0.0  ;;  %v1302_v45 = vpop.f32.mrb[3].mxu1  ;;  %vm1550_vm2 = vcmp.gt.f32.partialorder %v1257_v33, 0.0  ;;  %vm1552_vm3 = vcmp.gt.f32.partialorder %v1298_v36, 0.0 }
 0x14a   : > { %v1567_v44 = vmin.f32 %v1259_v37, 0.0  ;;  %v1569_v47 = vmin.f32 %v1300_v41, 0.0  ;;  %vm1551_vm4 = vcmp.gt.f32.partialorder %v1259_v37, 0.0  ;;  %vm1553_vm5 = vcmp.gt.f32.partialorder %v1300_v41, 0.0 }
 0x14b   : > { %v1582_v46 = vmul.f32 1.442695, %v1566_v40  ;;  %v1586_v49 = vmul.f32 1.442695, %v1568_v43 }
 0x14c   : > { %v1584_v50 = vmul.f32 1.442695, %v1567_v44  ;;  %v1588_v51 = vmul.f32 1.442695, %v1569_v47 }
 0x14d   : > { %2259 = vpow2.f32 %v1582_v46 }
 0x14e   : > { %2261 = vpow2.f32 %v1586_v49 }
 0x14f   : > { %2263 = vpow2.f32 %v1584_v50 }
 0x150   : > { %2265 = vpow2.f32 %v1588_v51 }
 0x157   : > { %v2260_v56 = vpop.eup %2259 }
 0x158   : > { %v2262_v58 = vpop.eup %2261  ;;  %v2195_v59 = vadd.f32 -1.0, %v2260_v56 }
 0x159   : > { %v2264_v61 = vpop.eup %2263  ;;  %v2197_v62 = vadd.f32 -1.0, %v2262_v58 }
 0x15a   : > { %v2266_v63 = vpop.eup %2265  ;;  %v1630_v0 = vmul.f32 1.6732632, %v2195_v59  ;;  %v2196_v2 = vadd.f32 -1.0, %v2264_v61  ;;  %v1792_v59 = vunpack.c.l.bf16 %v1787_v54 }
 0x15b   : > { %v1632_v4 = vmul.f32 1.6732632, %v2197_v62  ;;  %v2198_v6 = vadd.f32 -1.0, %v2266_v63 }
 0x15c   : > { %v1646_v7 = vsel %vm1550_vm2, %v1257_v33, %v1630_v0  ;;  %v1631_v8 = vmul.f32 1.6732632, %v2196_v2  ;;  %v1793_v0 = vunpack.c.h.bf16 %v1787_v54 }
 0x15d   : > { %v1662_v9 = vmul.f32 1.050701, %v1646_v7  ;;  %v1648_v10 = vsel %vm1552_vm3, %v1298_v36, %v1632_v4  ;;  %v1633_v11 = vmul.f32 1.6732632, %v2198_v6  ;;  %v1808_v6 = vcombine.high %v1792_v59, %v1792_v59 }
 0x15e   : > { %v1664_v12 = vmul.f32 1.050701, %v1648_v10  ;;  %v1647_v13 = vsel %vm1551_vm4, %v1259_v37, %v1631_v8 }
 0x15f   : > { %v1822_v15 = vadd.f32 %v1790_v60, %v1662_v9  ;;  %v1663_v16 = vmul.f32 1.050701, %v1647_v13  ;;  %v1649_v18 = vsel %vm1553_vm5, %v1300_v41, %v1633_v11  ;;  %v1809_v11 = vcombine.high %v1793_v0, %v1793_v0 }
 0x160   : > { %v1824_v19 = vadd.f32 %v1791_v1, %v1664_v12  ;;  %v1665_v20 = vmul.f32 1.050701, %v1649_v18 }
 0x161   : > { %v2211_v21 = vpack.c.bf16 %v1663_v16, %v1662_v9  ;;  %v1823_v22 = vadd.f32 %v1806_v48, %v1663_v16 }
 0x162   : > { %v2212_v23 = vpack.c.bf16 %v1665_v20, %v1664_v12  ;;  %v1825_v24 = vadd.f32 %v1807_v14, %v1665_v20  ;;  %v1338_v25 = vpop.f32.mrb[4].mxu0  ;;  %v1379_v29 = vpop.f32.mrb[4].mxu1 }
 0x163   : > { %v1718_v26 = vrot.slane %v2211_v21, %v2793_v17  ;;  %v2219_v27 = vpack.c.bf16 %v1823_v22, %v1822_v15  ;;  %v1339_v28 = vadd.f32 %v1338_v25, %v2775_v31  ;;  %v1340_v30 = vpop.f32.mrb[5].mxu0  ;;  %v1380_v34 = vadd.f32 %v1379_v29, %v2775_v31  ;;  %v1381_v36 = vpop.f32.mrb[5].mxu1 }
 0x164   : > { %v1725_v32 = vrot.slane %v2212_v23, %v2793_v17  ;;  %v2220_v33 = vpack.c.bf16 %v1825_v24, %v1824_v19  ;;  %v1341_v35 = vadd.f32 %v1340_v30, %v2775_v31  ;;  %v1342_v37 = vpop.f32.mrb[6].mxu0  ;;  %v1382_v40 = vadd.f32 %v1381_v36, %v2775_v31  ;;  %v1383_v41 = vpop.f32.mrb[6].mxu1 }
 0x165   : > { %v1878_v38 = vrot.slane %v2219_v27, %v2793_v17  ;;  %v1570_v39 = vmin.f32 %v1339_v28, 0.0  ;;  %v1343_v55 = vpop.f32.mrb[7].mxu0  ;;  %v1572_v44 = vmin.f32 %v1380_v34, 0.0  ;;  %v1384_v45 = vpop.f32.mrb[7].mxu1  ;;  %vm1554_vm6 = vcmp.gt.f32.partialorder %v1339_v28, 0.0 }
 0x166   : > { %v1726_v42 = vcombine.low %v1718_v26, %v1725_v32  ;;  %v1885_v43 = vrot.slane %v2220_v33, %v2793_v17  ;;  %v1571_v47 = vmin.f32 %v1341_v35, 0.0  ;;  %v1573_v51 = vmin.f32 %v1382_v40, 0.0 }
 0x167   : > { %v1590_v46 = vmul.f32 1.442695, %v1570_v39  ;;  %v1594_v50 = vmul.f32 1.442695, %v1572_v44  ;;  %vm1556_vm7 = vcmp.gt.f32.partialorder %v1380_v34, 0.0  ;;  %vm1555_vm8 = vcmp.gt.f32.partialorder %v1341_v35, 0.0 }
 0x168   : > { %1782 = vst [vmem:[%s2805_s24] sm:$0xff] %v1726_v42  ;;  %v1886_v49 = vcombine.low %v1878_v38, %v1885_v43  ;;  %v1592_v52 = vmul.f32 1.442695, %v1571_v47  ;;  %v1596_v53 = vmul.f32 1.442695, %v1573_v51  ;;  %vm1557_vm9 = vcmp.gt.f32.partialorder %v1382_v40, 0.0  ;;  %v1788_v51 = vld [vmem:[%s2790_s20 + $0x10] sm:$0xff] }
 0x169   : > { %2267 = vpow2.f32 %v1590_v46 }
 0x16a   : > { %1942 = vst [vmem:[%s2813_s28] sm:$0xff] %v1886_v49  ;;  %2269 = vpow2.f32 %v1594_v50 }
 0x16b   : > { %2271 = vpow2.f32 %v1592_v52 }
 0x16c   : > { %2273 = vpow2.f32 %v1596_v53 }
 0x173   : > { %v2268_v56 = vpop.eup %2267 }
 0x174   : > { %v2270_v57 = vpop.eup %2269  ;;  %v2199_v58 = vadd.f32 -1.0, %v2268_v56  ;;  %v1794_v56 = vunpack.c.l.bf16 %v1788_v51 }
 0x175   : > { %v2272_v60 = vpop.eup %2271  ;;  %v2201_v61 = vadd.f32 -1.0, %v2270_v57 }
 0x176   : > { %v2274_v62 = vpop.eup %2273  ;;  %v1634_v63 = vmul.f32 1.6732632, %v2199_v58  ;;  %v2200_v1 = vadd.f32 -1.0, %v2272_v60 }
 0x177   : > { %v1636_v2 = vmul.f32 1.6732632, %v2201_v61  ;;  %v2202_v3 = vadd.f32 -1.0, %v2274_v62  ;;  %v1795_v61 = vunpack.c.h.bf16 %v1788_v51 }
 0x178   : > { %v1650_v4 = vsel %vm1554_vm6, %v1339_v28, %v1634_v63  ;;  %v1635_v5 = vmul.f32 1.6732632, %v2200_v1 }
 0x179   : > { %v1666_v7 = vmul.f32 1.050701, %v1650_v4  ;;  %v1652_v8 = vsel %vm1556_vm7, %v1380_v34, %v1636_v2  ;;  %v1637_v48 = vmul.f32 1.6732632, %v2202_v3  ;;  %v1810_v3 = vcombine.high %v1794_v56, %v1794_v56 }
 0x17a   : > { %v1668_v9 = vmul.f32 1.050701, %v1652_v8  ;;  %v1651_v10 = vsel %vm1555_vm8, %v1341_v35, %v1635_v5 }
 0x17b   : > { %v1826_v12 = vadd.f32 %v1792_v59, %v1666_v7  ;;  %v1667_v13 = vmul.f32 1.050701, %v1651_v10  ;;  %v1653_v14 = vsel %vm1557_vm9, %v1382_v40, %v1637_v48  ;;  %v1811_v48 = vcombine.high %v1795_v61, %v1795_v61 }
 0x17c   : > { %v1828_v15 = vadd.f32 %v1793_v0, %v1668_v9  ;;  %v1669_v16 = vmul.f32 1.050701, %v1653_v14 }
 0x17d   : > { %v2213_v18 = vpack.c.bf16 %v1667_v13, %v1666_v7  ;;  %v1827_v19 = vadd.f32 %v1808_v6, %v1667_v13 }
 0x17e   : > { %v2214_v20 = vpack.c.bf16 %v1669_v16, %v1668_v9  ;;  %v1829_v21 = vadd.f32 %v1809_v11, %v1669_v16  ;;  %v1420_v22 = vpop.f32.mrb[8].mxu0  ;;  %v1461_v26 = vpop.f32.mrb[8].mxu1 }
 0x17f   : > { %v1735_v23 = vrot.slane %v2213_v18, %v2793_v17  ;;  %v2221_v24 = vpack.c.bf16 %v1827_v19, %v1826_v12  ;;  %v1421_v25 = vadd.f32 %v1420_v22, %v2775_v31  ;;  %v1422_v27 = vpop.f32.mrb[9].mxu0  ;;  %v1462_v30 = vadd.f32 %v1461_v26, %v2775_v31  ;;  %v1463_v33 = vpop.f32.mrb[9].mxu1 }
 0x180   : > { %v1742_v28 = vrot.slane %v2214_v20, %v2793_v17  ;;  %v2222_v29 = vpack.c.bf16 %v1829_v21, %v1828_v15  ;;  %v1423_v32 = vadd.f32 %v1422_v27, %v2775_v31  ;;  %v1424_v34 = vpop.f32.mrb[10].mxu0  ;;  %v1464_v37 = vadd.f32 %v1463_v33, %v2775_v31  ;;  %v1465_v38 = vpop.f32.mrb[10].mxu1 }
 0x181   : > { %v1895_v35 = vrot.slane %v2221_v24, %v2793_v17  ;;  %v1574_v36 = vmin.f32 %v1421_v25, 0.0  ;;  %v1425_v39 = vpop.f32.mrb[11].mxu0  ;;  %v1576_v55 = vmin.f32 %v1462_v30, 0.0  ;;  %v1466_v42 = vpop.f32.mrb[11].mxu1  ;;  %vm1558_vm10 = vcmp.gt.f32.partialorder %v1421_v25, 0.0 }
 0x182   : > { %v1743_v40 = vcombine.low %v1735_v23, %v1742_v28  ;;  %v1902_v41 = vrot.slane %v2222_v29, %v2793_v17  ;;  %v1575_v44 = vmin.f32 %v1423_v32, 0.0  ;;  %v1577_v47 = vmin.f32 %v1464_v37, 0.0 }
 0x183   : > { %v1598_v43 = vmul.f32 1.442695, %v1574_v36  ;;  %v1602_v46 = vmul.f32 1.442695, %v1576_v55  ;;  %vm1560_vm11 = vcmp.gt.f32.partialorder %v1462_v30, 0.0  ;;  %vm1559_vm12 = vcmp.gt.f32.partialorder %v1423_v32, 0.0 }
 0x184   : > { %1783 = vst [vmem:[%s2805_s24 + $0x8] sm:$0xff] %v1743_v40  ;;  %v1903_v45 = vcombine.low %v1895_v35, %v1902_v41  ;;  %v1600_v49 = vmul.f32 1.442695, %v1575_v44  ;;  %v1604_v50 = vmul.f32 1.442695, %v1577_v47  ;;  %vm1561_vm13 = vcmp.gt.f32.partialorder %v1464_v37, 0.0 }
 0x185   : > { %2275 = vpow2.f32 %v1598_v43 }
 0x186   : > { %1943 = vst [vmem:[%s2813_s28 + $0x8] sm:$0xff] %v1903_v45  ;;  %2277 = vpow2.f32 %v1602_v46 }
 0x187   : > { %2279 = vpow2.f32 %v1600_v49 }
 0x188   : > { %2281 = vpow2.f32 %v1604_v50 }
 0x18f   : > { %v2276_v52 = vpop.eup %2275 }
 0x190   : > { %v2278_v53 = vpop.eup %2277  ;;  %v2203_v54 = vadd.f32 -1.0, %v2276_v52 }
 0x191   : > { %v2280_v57 = vpop.eup %2279  ;;  %v2205_v58 = vadd.f32 -1.0, %v2278_v53 }
 0x192   : > { %v2282_v59 = vpop.eup %2281  ;;  %v1638_v60 = vmul.f32 1.6732632, %v2203_v54  ;;  %v2204_v62 = vadd.f32 -1.0, %v2280_v57 }
 0x193   : > { %v1640_v63 = vmul.f32 1.6732632, %v2205_v58  ;;  %v2206_v0 = vadd.f32 -1.0, %v2282_v59 }
 0x194   : > { %v1654_v1 = vsel %vm1558_vm10, %v1421_v25, %v1638_v60  ;;  %v1639_v2 = vmul.f32 1.6732632, %v2204_v62 }
 0x195   : > { %v1670_v4 = vmul.f32 1.050701, %v1654_v1  ;;  %v1656_v5 = vsel %vm1560_vm11, %v1462_v30, %v1640_v63  ;;  %v1641_v6 = vmul.f32 1.6732632, %v2206_v0 }
 0x196   : > { %v1672_v7 = vmul.f32 1.050701, %v1656_v5  ;;  %v1655_v8 = vsel %vm1559_vm12, %v1423_v32, %v1639_v2 }
 0x197   : > { %v1830_v9 = vadd.f32 %v1794_v56, %v1670_v4  ;;  %v1671_v10 = vmul.f32 1.050701, %v1655_v8  ;;  %v1657_v11 = vsel %vm1561_vm13, %v1464_v37, %v1641_v6 }
 0x198   : > { %v1832_v12 = vadd.f32 %v1795_v61, %v1672_v7  ;;  %v1673_v13 = vmul.f32 1.050701, %v1657_v11 }
 0x199   : > { %v2215_v14 = vpack.c.bf16 %v1671_v10, %v1670_v4  ;;  %v1831_v15 = vadd.f32 %v1810_v3, %v1671_v10 }
 0x19a   : > { %v2216_v16 = vpack.c.bf16 %v1673_v13, %v1672_v7  ;;  %v1833_v18 = vadd.f32 %v1811_v48, %v1673_v13  ;;  %v1502_v19 = vpop.f32.mrb[12].mxu0  ;;  %v1543_v23 = vpop.f32.mrb[12].mxu1 }
 0x19b   : > { %v1752_v20 = vrot.slane %v2215_v14, %v2793_v17  ;;  %v2223_v21 = vpack.c.bf16 %v1831_v15, %v1830_v9  ;;  %v1503_v22 = vadd.f32 %v1502_v19, %v2775_v31  ;;  %v1504_v24 = vpop.f32.mrb[13].mxu0  ;;  %v1544_v27 = vadd.f32 %v1543_v23, %v2775_v31  ;;  %v1545_v29 = vpop.f32.mrb[13].mxu1 }
 0x19c   : > { %v1759_v25 = vrot.slane %v2216_v16, %v2793_v17  ;;  %v2224_v26 = vpack.c.bf16 %v1833_v18, %v1832_v12  ;;  %v1505_v28 = vadd.f32 %v1504_v24, %v2775_v31  ;;  %v1506_v30 = vpop.f32.mrb[14].mxu0  ;;  %v1546_v34 = vadd.f32 %v1545_v29, %v2775_v31  ;;  %v1547_v35 = vpop.f32.mrb[14].mxu1  ;;  %v1789_v31 = vld [vmem:[%s2790_s20 + $0x18] sm:$0xff] }
 0x19d   : > { %v1912_v32 = vrot.slane %v2223_v21, %v2793_v17  ;;  %v1578_v33 = vmin.f32 %v1503_v22, 0.0  ;;  %v1507_v36 = vpop.f32.mrb[15].mxu0  ;;  %v1580_v39 = vmin.f32 %v1544_v27, 0.0  ;;  %v1548_v40 = vpop.f32.mrb[15].mxu1  ;;  %v1796_v51 = vunpack.c.l.bf16 %v1789_v31 }
 0x19e   : > { %v1760_v37 = vcombine.low %v1752_v20, %v1759_v25  ;;  %v1919_v38 = vrot.slane %v2224_v26, %v2793_v17  ;;  %v1579_v55 = vmin.f32 %v1505_v28, 0.0  ;;  %v1581_v44 = vmin.f32 %v1546_v34, 0.0 }
 0x19f   : > { %v1606_v41 = vmul.f32 1.442695, %v1578_v33  ;;  %v1610_v43 = vmul.f32 1.442695, %v1580_v39  ;;  %v1797_v57 = vunpack.c.h.bf16 %v1789_v31  ;;  %vm1562_vm14 = vcmp.gt.f32.partialorder %v1503_v22, 0.0 }
 0x1a0   : > { %1784 = vst [vmem:[%s2805_s24 + $0x10] sm:$0xff] %v1760_v37  ;;  %v1920_v42 = vcombine.low %v1912_v32, %v1919_v38  ;;  %v1608_v45 = vmul.f32 1.442695, %v1579_v55  ;;  %v1612_v46 = vmul.f32 1.442695, %v1581_v44  ;;  %vm1564_vm15 = vcmp.gt.f32.partialorder %v1544_v27, 0.0 }
 0x1a1   : > { %2283 = vpow2.f32 %v1606_v41  ;;  %v1812_v63 = vcombine.high %v1796_v51, %v1796_v51  ;;  %vm1563_vm0 = vcmp.gt.f32.partialorder %v1505_v28, 0.0  ;;  %vm1565_vm1 = vcmp.gt.f32.partialorder %v1546_v34, 0.0 }
 0x1a2   : > { %1944 = vst [vmem:[%s2813_s28 + $0x10] sm:$0xff] %v1920_v42  ;;  %2285 = vpow2.f32 %v1610_v43  ;;  %v1813_v5 = vcombine.high %v1797_v57, %v1797_v57 }
 0x1a3   : > { %2287 = vpow2.f32 %v1608_v45 }
 0x1a4   : > { %2289 = vpow2.f32 %v1612_v46 }
 0x1ab   : > { %v2284_v47 = vpop.eup %2283 }
 0x1ac   : > { %v2286_v49 = vpop.eup %2285  ;;  %v2207_v50 = vadd.f32 -1.0, %v2284_v47 }
 0x1ad   : > { %v2288_v52 = vpop.eup %2287  ;;  %v2209_v53 = vadd.f32 -1.0, %v2286_v49 }
 0x1ae   : > { %v2290_v54 = vpop.eup %2289  ;;  %v1642_v56 = vmul.f32 1.6732632, %v2207_v50  ;;  %v2208_v58 = vadd.f32 -1.0, %v2288_v52 }
 0x1af   : > { %v1644_v59 = vmul.f32 1.6732632, %v2209_v53  ;;  %v2210_v60 = vadd.f32 -1.0, %v2290_v54 }
 0x1b0   : > { %v1658_v61 = vsel %vm1562_vm14, %v1503_v22, %v1642_v56  ;;  %v1643_v62 = vmul.f32 1.6732632, %v2208_v58 }
 0x1b1   : > { %v1674_v0 = vmul.f32 1.050701, %v1658_v61  ;;  %v1660_v1 = vsel %vm1564_vm15, %v1544_v27, %v1644_v59  ;;  %v1645_v2 = vmul.f32 1.6732632, %v2210_v60 }
 0x1b2   : > { %v1676_v3 = vmul.f32 1.050701, %v1660_v1  ;;  %v1659_v4 = vsel %vm1563_vm0, %v1505_v28, %v1643_v62 }
 0x1b3   : > { %v1834_v6 = vadd.f32 %v1796_v51, %v1674_v0  ;;  %v1675_v7 = vmul.f32 1.050701, %v1659_v4  ;;  %v1661_v8 = vsel %vm1565_vm1, %v1546_v34, %v1645_v2 }
 0x1b4   : > { %v1836_v48 = vadd.f32 %v1797_v57, %v1676_v3  ;;  %v1677_v9 = vmul.f32 1.050701, %v1661_v8 }
 0x1b5   : > { %v2217_v10 = vpack.c.bf16 %v1675_v7, %v1674_v0  ;;  %v1835_v11 = vadd.f32 %v1812_v63, %v1675_v7 }
 0x1b6   : > { %v2218_v12 = vpack.c.bf16 %v1677_v9, %v1676_v3  ;;  %v1837_v13 = vadd.f32 %v1813_v5, %v1677_v9 }
 0x1b7   : > { %v1769_v14 = vrot.slane %v2217_v10, %v2793_v17  ;;  %v2225_v15 = vpack.c.bf16 %v1835_v11, %v1834_v6 }
 0x1b8   : > { %v1776_v16 = vrot.slane %v2218_v12, %v2793_v17  ;;  %v2226_v18 = vpack.c.bf16 %v1837_v13, %v1836_v48 }
 0x1b9   : > { %v1929_v19 = vrot.slane %v2225_v15, %v2793_v17 }
 0x1ba   : > { %v1777_v20 = vcombine.low %v1769_v14, %v1776_v16  ;;  %v1936_v21 = vrot.slane %v2226_v18, %v2793_v17 }
 0x1bc   : > { %1785 = vst [vmem:[%s2805_s24 + $0x18] sm:$0xff] %v1777_v20  ;;  %v1937_v22 = vcombine.low %v1929_v19, %v1936_v21 }
 0x1be   : > { %1945 = vst [vmem:[%s2813_s28 + $0x18] sm:$0xff] %v1937_v22 }
 0x1bf PF: > { %p13_p9 = scmp.ge.s32.totalorder %s2364_s22, 4   ;;  %s2862_s18 = smov %s2309_s19 }
 0x1c0   : > { %s2863_s19 = smov %s2373_s25  ;;  %s2864_s20 = smov %s2364_s22 }
 0x1c1   :  { %15 = sbr.rel (!%p13_p9) target bundleno = 2 (0x2), region = 109 }

// kernel: resnet_regression_forward.21
= control target key start
LH: loop header
LB: loop body
LE: loop exit
PB: predicated region body
PF: predicated region fallthrough
CT: control target
= control target key end

     0   :  { %v439_v1 = vmov 0   ;;  %vm190_vm0 = vcmask 1045504   ;;  %vm186_vm1 = vcmask 883712   ;;  %v440_v54 = vmov 1983009808   ;;  %s554_s1 = inlined_call_operand.vmem [shape: bf16[108,512], index: 1, kind: input, shape index: {}]   ;;  %s555_s2 = inlined_call_operand.vmem [shape: f32[4,1], index: 2, kind: input, shape index: {}]   ;;  %s556_s0 = inlined_call_operand.vmem [shape: bf16[4,108], index: 0, kind: input, shape index: {}]   ;;  %s557_s3 = inlined_call_operand.vmem [shape: bf16[4,512], index: 3, kind: output, shape index: {}]  }
   0x1   :  { %v389_v0 = vld [vmem:[%s554_s1 + $0x4] ss:$16 sps:$4 sm:$0xff]   ;;  %235 = vmatprep.mubr.bf16.mxu0 %v439_v1  ;;  %276 = vmatprep.mubr.bf16.mxu1 %v439_v1  ;;  %v391_v2 = vld [vmem:[%s554_s1 + $0xc] ss:$16 sps:$4 sm:$0xff]   ;;  %v393_v3 = vld [vmem:[%s554_s1] ss:$16 sps:$4 sm:$0xff]   ;;  %v328_v55 = vunpack.c.l.s4 %v440_v54  ;;  %v330_v57 = vlaneseq }
   0x2   :  { %388 = vset.pattern.permute.xlu0 %v439_v1  ;;  %203 = vmatprep.subr.bf16.mxu0 %v389_v0  ;;  %v394_v4 = vld [vmem:[%s554_s1 + $0x8] ss:$16 sps:$4 sm:$0xff]   ;;  %v395_v5 = vld [vmem:[%s554_s1 + $0x24] ss:$16 sps:$4 sm:$0xff]   ;;  %v397_v6 = vld [vmem:[%s554_s1 + $0x2c] ss:$16 sps:$4 sm:$0xff]  }
   0x3   :  { %244 = vmatprep.subr.bf16.mxu1 %v391_v2  ;;  %204 = vmatpush1.bf16.msra.mxu0 %v393_v3  ;;  %v399_v7 = vld [vmem:[%s554_s1 + $0x20] ss:$16 sps:$4 sm:$0xff]   ;;  %v400_v8 = vld [vmem:[%s554_s1 + $0x28] ss:$16 sps:$4 sm:$0xff]   ;;  %v401_v9 = vld [vmem:[%s554_s1 + $0x44] ss:$16 sps:$4 sm:$0xff]   ;;  %v329_v1 = vunpack.c.0.s8 %v328_v55 }
   0x4   :  { %245 = vmatpush1.bf16.msra.mxu1 %v394_v4  ;;  %205 = vmatprep.subr.bf16.mxu0 %v395_v5  ;;  %v403_v10 = vld [vmem:[%s554_s1 + $0x4c] ss:$16 sps:$4 sm:$0xff]   ;;  %v405_v11 = vld [vmem:[%s554_s1 + $0x40] ss:$16 sps:$4 sm:$0xff]   ;;  %v406_v12 = vld [vmem:[%s554_s1 + $0x48] ss:$16 sps:$4 sm:$0xff]  }
   0x5   :  { %246 = vmatprep.subr.bf16.mxu1 %v397_v6  ;;  %v407_v13 = vld [vmem:[%s554_s1 + $0x64] ss:$16 sps:$4 sm:$0xff]   ;;  %v409_v14 = vld [vmem:[%s554_s1 + $0x6c] ss:$16 sps:$4 sm:$0xff]   ;;  %v411_v15 = vld [vmem:[%s554_s1 + $0x60] ss:$16 sps:$4 sm:$0xff]  }
   0x6   :  { %v412_v16 = vld [vmem:[%s554_s1 + $0x68] ss:$16 sps:$4 sm:$0xff]   ;;  %v413_v17 = vld [vmem:[%s554_s1 + $0x84] ss:$16 sps:$4 sm:$0xff]   ;;  %v415_v18 = vld [vmem:[%s554_s1 + $0x8c] ss:$16 sps:$4 sm:$0xff]  }
   0x7   :  { %206 = vmatpush1.bf16.msra.mxu0 %v399_v7  ;;  %v417_v19 = vld [vmem:[%s554_s1 + $0x80] ss:$16 sps:$4 sm:$0xff]   ;;  %v418_v20 = vld [vmem:[%s554_s1 + $0x88] ss:$16 sps:$4 sm:$0xff]   ;;  %v419_v21 = vld [vmem:[%s554_s1 + $0xa4] ss:$16 sps:$4 sm:$0xff]  }
   0x8   :  { %247 = vmatpush1.bf16.msra.mxu1 %v400_v8  ;;  %207 = vmatprep.subr.bf16.mxu0 %v401_v9  ;;  %v421_v22 = vld [vmem:[%s554_s1 + $0xac] ss:$16 sps:$4 sm:$0xff]   ;;  %v423_v23 = vld [vmem:[%s554_s1 + $0xa0] ss:$16 sps:$4 sm:$0xff]   ;;  %v424_v24 = vld [vmem:[%s554_s1 + $0xa8] ss:$16 sps:$4 sm:$0xff]  }
   0x9   :  { %248 = vmatprep.subr.bf16.mxu1 %v403_v10  ;;  %v44_v25 = vld [vmem:[%s555_s2] sm:$0xf]  ;;  %v425_v26 = vld [vmem:[%s554_s1 + $0xc4] ss:$16 sps:$4 sm:$0x3f]   ;;  %v331_v3 = vshrl.u32 %v330_v57, 7 }
   0xa   :  { %v427_v27 = vld [vmem:[%s554_s1 + $0xcc] ss:$16 sps:$4 sm:$0x3f]   ;;  %v429_v28 = vld [vmem:[%s554_s1 + $0xc0] ss:$16 sps:$4 sm:$0x3f]   ;;  %47 = vperm.xlu0 %388, %v44_v25  }
   0xb   :  { %208 = vmatpush1.bf16.msra.mxu0 %v405_v11  ;;  %v430_v29 = vld [vmem:[%s554_s1 + $0xc8] ss:$16 sps:$4 sm:$0x3f]   ;;  %v192_v30 = vsel %vm190_vm0, %v429_v28, 0  ;;  %v15_v32 = vld [vmem:[%s556_s0] sm:$0x3] }
   0xc   :  { %249 = vmatpush1.bf16.msra.mxu1 %v406_v12  ;;  %209 = vmatprep.subr.bf16.mxu0 %v407_v13  ;;  %v198_v31 = vsel %vm190_vm0, %v430_v29, 0  ;;  %v332_v13 = vsub.s32 %v329_v1, %v331_v3 }
   0xd   :  { %250 = vmatprep.subr.bf16.mxu1 %v409_v14 }
   0xf   :  { %210 = vmatpush1.bf16.msra.mxu0 %v411_v15 }
  0x10   :  { %251 = vmatpush1.bf16.msra.mxu1 %v412_v16  ;;  %211 = vmatprep.subr.bf16.mxu0 %v413_v17 }
  0x11   :  { %252 = vmatprep.subr.bf16.mxu1 %v415_v18 }
  0x13   :  { %212 = vmatpush1.bf16.msra.mxu0 %v417_v19 }
  0x14   :  { %253 = vmatpush1.bf16.msra.mxu1 %v418_v20  ;;  %213 = vmatprep.subr.bf16.mxu0 %v419_v21 }
  0x15   :  { %254 = vmatprep.subr.bf16.mxu1 %v421_v22 }
  0x17   :  { %214 = vmatpush1.bf16.msra.mxu0 %v423_v23 }
  0x18   :  { %255 = vmatpush1.bf16.msra.mxu1 %v424_v24  ;;  %376 = vmatprep.subr.msk.bf16.mxu0 %vm190_vm0, %v425_v26 }
  0x19   :  { %378 = vmatprep.subr.msk.bf16.mxu1 %vm190_vm0, %v427_v27 }
  0x1b   :  { %216 = vmatpush1.bf16.msra.mxu0 %v192_v30 }
  0x1c   :  { %257 = vmatpush1.bf16.msra.mxu1 %v198_v31 }
  0x1e   :  { %377 = vmatmul.mubr.msk.bf16.vlgmr.msra.gmra.mrb[0].mxu0 %vm186_vm1, %v15_v32 }
  0x1f   :  { %379 = vmatmul.mubr.msk.bf16.vlgmr.msra.gmra.mrb[0].mxu1 %vm186_vm1, %v15_v32 }
  0x89   :  { %v48_v33 = vpop.permute.xlu0 %47 }
  0xf1   :  { %v237_v34 = vpop.f32.mrb[0].mxu0 }
  0xf2   :  { %v278_v35 = vpop.f32.mrb[0].mxu1  ;;  %v238_v36 = vadd.f32 %v237_v34, %v48_v33  ;;  %v239_v38 = vpop.f32.mrb[1].mxu0 }
  0xf3   :  { %v279_v37 = vadd.f32 %v278_v35, %v48_v33  ;;  %v280_v39 = vpop.f32.mrb[1].mxu1  ;;  %v240_v40 = vadd.f32 %v239_v38, %v48_v33  ;;  %v241_v42 = vpop.f32.mrb[2].mxu0 }
  0xf4   :  { %v281_v41 = vadd.f32 %v280_v39, %v48_v33  ;;  %v282_v43 = vpop.f32.mrb[2].mxu1  ;;  %v289_v44 = vmin.f32 %v238_v36, 0.0  ;;  %v242_v46 = vpop.f32.mrb[3].mxu0  ;;  %vm285_vm2 = vcmp.gt.f32.partialorder %v238_v36, 0.0 }
  0xf5   :  { %v291_v45 = vmin.f32 %v279_v37, 0.0  ;;  %v283_v47 = vpop.f32.mrb[3].mxu1  ;;  %v290_v48 = vmin.f32 %v240_v40, 0.0  ;;  %vm287_vm3 = vcmp.gt.f32.partialorder %v279_v37, 0.0  ;;  %vm286_vm4 = vcmp.gt.f32.partialorder %v240_v40, 0.0 }
  0xf6   :  { %v292_v49 = vmin.f32 %v281_v41, 0.0  ;;  %v293_v50 = vmul.f32 1.442695, %v289_v44  ;;  %vm288_vm5 = vcmp.gt.f32.partialorder %v281_v41, 0.0 }
  0xf7   :  { %v297_v51 = vmul.f32 1.442695, %v291_v45  ;;  %v295_v52 = vmul.f32 1.442695, %v290_v48 }
  0xf8   :  { %v299_v53 = vmul.f32 1.442695, %v292_v49  ;;  %431 = vpow2.f32 %v293_v50 }
  0xf9   :  { %433 = vpow2.f32 %v297_v51 }
  0xfa   :  { %435 = vpow2.f32 %v295_v52 }
  0xfb   :  { %437 = vpow2.f32 %v299_v53 }
 0x102   :  { %v432_v56 = vpop.eup %431 }
 0x103   :  { %v434_v58 = vpop.eup %433  ;;  %v380_v59 = vadd.f32 -1.0, %v432_v56 }
 0x104   :  { %v436_v60 = vpop.eup %435  ;;  %v382_v61 = vadd.f32 -1.0, %v434_v58 }
 0x105   :  { %v438_v62 = vpop.eup %437  ;;  %v305_v63 = vmul.f32 1.6732632, %v380_v59  ;;  %v381_v0 = vadd.f32 -1.0, %v436_v60 }
 0x106   :  { %v307_v2 = vmul.f32 1.6732632, %v382_v61  ;;  %v383_v4 = vadd.f32 -1.0, %v438_v62 }
 0x107   :  { %v309_v5 = vsel %vm285_vm2, %v238_v36, %v305_v63  ;;  %v306_v6 = vmul.f32 1.6732632, %v381_v0 }
 0x108   :  { %v313_v7 = vmul.f32 1.050701, %v309_v5  ;;  %v311_v8 = vsel %vm287_vm3, %v279_v37, %v307_v2  ;;  %v308_v9 = vmul.f32 1.6732632, %v383_v4 }
 0x109   :  { %v315_v10 = vmul.f32 1.050701, %v311_v8  ;;  %v310_v11 = vsel %vm286_vm4, %v240_v40, %v306_v6 }
 0x10a   :  { %v314_v12 = vmul.f32 1.050701, %v310_v11  ;;  %v312_v14 = vsel %vm288_vm5, %v281_v41, %v308_v9 }
 0x10b   :  { %v316_v15 = vmul.f32 1.050701, %v312_v14 }
 0x10c   :  { %v384_v16 = vpack.c.bf16 %v314_v12, %v313_v7 }
 0x10d   :  { %v385_v17 = vpack.c.bf16 %v316_v15, %v315_v10 }
 0x10e   :  { %v333_v18 = vrot.slane %v384_v16, %v332_v13 }
 0x10f   :  { %v340_v19 = vrot.slane %v385_v17, %v332_v13 }
 0x111   :  { %v341_v20 = vcombine.low %v333_v18, %v340_v19 }
 0x113   :  { %343 = vst [vmem:[%s557_s3] sm:$0xff] %v341_v20 }

// kernel: resnet_regression_forward.22
= control target key start
LH: loop header
LB: loop body
LE: loop exit
PB: predicated region body
PF: predicated region fallthrough
CT: control target
= control target key end

     0   :  { %v431_v1 = vmov 0   ;;  %vm190_vm0 = vcmask 1045504   ;;  %vm186_vm1 = vcmask 883712   ;;  %s548_s1 = inlined_call_operand.vmem [shape: bf16[108,512], index: 1, kind: input, shape index: {}]   ;;  %s549_s2 = inlined_call_operand.vmem [shape: f32[8,1], index: 2, kind: input, shape index: {}]   ;;  %s550_s0 = inlined_call_operand.vmem [shape: bf16[8,108], index: 0, kind: input, shape index: {}]   ;;  %s551_s3 = inlined_call_operand.vmem [shape: bf16[8,512], index: 3, kind: output, shape index: {}]  }
   0x1   :  { %v381_v0 = vld [vmem:[%s548_s1 + $0x4] ss:$16 sps:$4 sm:$0xff]   ;;  %235 = vmatprep.mubr.bf16.mxu0 %v431_v1  ;;  %276 = vmatprep.mubr.bf16.mxu1 %v431_v1  ;;  %v383_v2 = vld [vmem:[%s548_s1 + $0xc] ss:$16 sps:$4 sm:$0xff]   ;;  %v385_v3 = vld [vmem:[%s548_s1] ss:$16 sps:$4 sm:$0xff]  }
   0x2   :  { %380 = vset.pattern.permute.xlu0 %v431_v1  ;;  %203 = vmatprep.subr.bf16.mxu0 %v381_v0  ;;  %v386_v4 = vld [vmem:[%s548_s1 + $0x8] ss:$16 sps:$4 sm:$0xff]   ;;  %v387_v5 = vld [vmem:[%s548_s1 + $0x24] ss:$16 sps:$4 sm:$0xff]   ;;  %v389_v6 = vld [vmem:[%s548_s1 + $0x2c] ss:$16 sps:$4 sm:$0xff]  }
   0x3   :  { %244 = vmatprep.subr.bf16.mxu1 %v383_v2  ;;  %204 = vmatpush1.bf16.msra.mxu0 %v385_v3  ;;  %v391_v7 = vld [vmem:[%s548_s1 + $0x20] ss:$16 sps:$4 sm:$0xff]   ;;  %v392_v8 = vld [vmem:[%s548_s1 + $0x28] ss:$16 sps:$4 sm:$0xff]   ;;  %v393_v9 = vld [vmem:[%s548_s1 + $0x44] ss:$16 sps:$4 sm:$0xff]  }
   0x4   :  { %245 = vmatpush1.bf16.msra.mxu1 %v386_v4  ;;  %205 = vmatprep.subr.bf16.mxu0 %v387_v5  ;;  %v395_v10 = vld [vmem:[%s548_s1 + $0x4c] ss:$16 sps:$4 sm:$0xff]   ;;  %v397_v11 = vld [vmem:[%s548_s1 + $0x40] ss:$16 sps:$4 sm:$0xff]   ;;  %v398_v12 = vld [vmem:[%s548_s1 + $0x48] ss:$16 sps:$4 sm:$0xff]  }
   0x5   :  { %246 = vmatprep.subr.bf16.mxu1 %v389_v6  ;;  %v399_v13 = vld [vmem:[%s548_s1 + $0x64] ss:$16 sps:$4 sm:$0xff]   ;;  %v401_v14 = vld [vmem:[%s548_s1 + $0x6c] ss:$16 sps:$4 sm:$0xff]   ;;  %v403_v15 = vld [vmem:[%s548_s1 + $0x60] ss:$16 sps:$4 sm:$0xff]  }
   0x6   :  { %v404_v16 = vld [vmem:[%s548_s1 + $0x68] ss:$16 sps:$4 sm:$0xff]   ;;  %v405_v17 = vld [vmem:[%s548_s1 + $0x84] ss:$16 sps:$4 sm:$0xff]   ;;  %v407_v18 = vld [vmem:[%s548_s1 + $0x8c] ss:$16 sps:$4 sm:$0xff]  }
   0x7   :  { %206 = vmatpush1.bf16.msra.mxu0 %v391_v7  ;;  %v409_v19 = vld [vmem:[%s548_s1 + $0x80] ss:$16 sps:$4 sm:$0xff]   ;;  %v410_v20 = vld [vmem:[%s548_s1 + $0x88] ss:$16 sps:$4 sm:$0xff]   ;;  %v411_v21 = vld [vmem:[%s548_s1 + $0xa4] ss:$16 sps:$4 sm:$0xff]  }
   0x8   :  { %247 = vmatpush1.bf16.msra.mxu1 %v392_v8  ;;  %207 = vmatprep.subr.bf16.mxu0 %v393_v9  ;;  %v413_v22 = vld [vmem:[%s548_s1 + $0xac] ss:$16 sps:$4 sm:$0xff]   ;;  %v415_v23 = vld [vmem:[%s548_s1 + $0xa0] ss:$16 sps:$4 sm:$0xff]   ;;  %v416_v24 = vld [vmem:[%s548_s1 + $0xa8] ss:$16 sps:$4 sm:$0xff]  }
   0x9   :  { %248 = vmatprep.subr.bf16.mxu1 %v395_v10  ;;  %v44_v25 = vld [vmem:[%s549_s2] sm:$0xff]  ;;  %v419_v27 = vld [vmem:[%s548_s1 + $0xcc] ss:$16 sps:$4 sm:$0x3f]  }
   0xa   :  { %v417_v26 = vld [vmem:[%s548_s1 + $0xc4] ss:$16 sps:$4 sm:$0x3f]   ;;  %v421_v28 = vld [vmem:[%s548_s1 + $0xc0] ss:$16 sps:$4 sm:$0x3f]   ;;  %47 = vperm.xlu0 %380, %v44_v25  }
   0xb   :  { %208 = vmatpush1.bf16.msra.mxu0 %v397_v11  ;;  %v422_v29 = vld [vmem:[%s548_s1 + $0xc8] ss:$16 sps:$4 sm:$0x3f]   ;;  %v192_v30 = vsel %vm190_vm0, %v421_v28, 0  ;;  %v15_v32 = vld [vmem:[%s550_s0] sm:$0xf] }
   0xc   :  { %249 = vmatpush1.bf16.msra.mxu1 %v398_v12  ;;  %209 = vmatprep.subr.bf16.mxu0 %v399_v13  ;;  %v198_v31 = vsel %vm190_vm0, %v422_v29, 0 }
   0xd   :  { %250 = vmatprep.subr.bf16.mxu1 %v401_v14 }
   0xf   :  { %210 = vmatpush1.bf16.msra.mxu0 %v403_v15 }
  0x10   :  { %251 = vmatpush1.bf16.msra.mxu1 %v404_v16  ;;  %211 = vmatprep.subr.bf16.mxu0 %v405_v17 }
  0x11   :  { %252 = vmatprep.subr.bf16.mxu1 %v407_v18 }
  0x13   :  { %212 = vmatpush1.bf16.msra.mxu0 %v409_v19 }
  0x14   :  { %253 = vmatpush1.bf16.msra.mxu1 %v410_v20  ;;  %213 = vmatprep.subr.bf16.mxu0 %v411_v21 }
  0x15   :  { %254 = vmatprep.subr.bf16.mxu1 %v413_v22 }
  0x17   :  { %214 = vmatpush1.bf16.msra.mxu0 %v415_v23 }
  0x18   :  { %255 = vmatpush1.bf16.msra.mxu1 %v416_v24  ;;  %367 = vmatprep.subr.msk.bf16.mxu0 %vm190_vm0, %v417_v26 }
  0x19   :  { %369 = vmatprep.subr.msk.bf16.mxu1 %vm190_vm0, %v419_v27 }
  0x1b   :  { %216 = vmatpush1.bf16.msra.mxu0 %v192_v30 }
  0x1c   :  { %257 = vmatpush1.bf16.msra.mxu1 %v198_v31 }
  0x1e   :  { %368 = vmatmul.mubr.msk.bf16.vlgmr.msra.gmra.mrb[0].mxu0 %vm186_vm1, %v15_v32 }
  0x1f   :  { %370 = vmatmul.mubr.msk.bf16.vlgmr.msra.gmra.mrb[0].mxu1 %vm186_vm1, %v15_v32 }
  0x89   :  { %v48_v33 = vpop.permute.xlu0 %47 }
  0xf1   :  { %v237_v34 = vpop.f32.mrb[0].mxu0 }
  0xf2   :  { %v278_v35 = vpop.f32.mrb[0].mxu1  ;;  %v238_v36 = vadd.f32 %v237_v34, %v48_v33  ;;  %v239_v38 = vpop.f32.mrb[1].mxu0 }
  0xf3   :  { %v279_v37 = vadd.f32 %v278_v35, %v48_v33  ;;  %v280_v39 = vpop.f32.mrb[1].mxu1  ;;  %v240_v40 = vadd.f32 %v239_v38, %v48_v33  ;;  %v241_v42 = vpop.f32.mrb[2].mxu0 }
  0xf4   :  { %v281_v41 = vadd.f32 %v280_v39, %v48_v33  ;;  %v282_v43 = vpop.f32.mrb[2].mxu1  ;;  %v289_v44 = vmin.f32 %v238_v36, 0.0  ;;  %v242_v46 = vpop.f32.mrb[3].mxu0  ;;  %vm285_vm2 = vcmp.gt.f32.partialorder %v238_v36, 0.0 }
  0xf5   :  { %v291_v45 = vmin.f32 %v279_v37, 0.0  ;;  %v283_v47 = vpop.f32.mrb[3].mxu1  ;;  %v290_v48 = vmin.f32 %v240_v40, 0.0  ;;  %vm287_vm3 = vcmp.gt.f32.partialorder %v279_v37, 0.0  ;;  %vm286_vm4 = vcmp.gt.f32.partialorder %v240_v40, 0.0 }
  0xf6   :  { %v292_v49 = vmin.f32 %v281_v41, 0.0  ;;  %v293_v50 = vmul.f32 1.442695, %v289_v44  ;;  %vm288_vm5 = vcmp.gt.f32.partialorder %v281_v41, 0.0 }
  0xf7   :  { %v297_v51 = vmul.f32 1.442695, %v291_v45  ;;  %v295_v52 = vmul.f32 1.442695, %v290_v48 }
  0xf8   :  { %v299_v53 = vmul.f32 1.442695, %v292_v49  ;;  %423 = vpow2.f32 %v293_v50 }
  0xf9   :  { %425 = vpow2.f32 %v297_v51 }
  0xfa   :  { %427 = vpow2.f32 %v295_v52 }
  0xfb   :  { %429 = vpow2.f32 %v299_v53 }
 0x102   :  { %v424_v54 = vpop.eup %423 }
 0x103   :  { %v426_v55 = vpop.eup %425  ;;  %v371_v56 = vadd.f32 -1.0, %v424_v54 }
 0x104   :  { %v428_v57 = vpop.eup %427  ;;  %v373_v58 = vadd.f32 -1.0, %v426_v55 }
 0x105   :  { %v430_v59 = vpop.eup %429  ;;  %v305_v60 = vmul.f32 1.6732632, %v371_v56  ;;  %v372_v61 = vadd.f32 -1.0, %v428_v57 }
 0x106   :  { %v307_v62 = vmul.f32 1.6732632, %v373_v58  ;;  %v374_v63 = vadd.f32 -1.0, %v430_v59 }
 0x107   :  { %v309_v0 = vsel %vm285_vm2, %v238_v36, %v305_v60  ;;  %v306_v1 = vmul.f32 1.6732632, %v372_v61 }
 0x108   :  { %v313_v2 = vmul.f32 1.050701, %v309_v0  ;;  %v311_v3 = vsel %vm287_vm3, %v279_v37, %v307_v62  ;;  %v308_v4 = vmul.f32 1.6732632, %v374_v63 }
 0x109   :  { %v315_v5 = vmul.f32 1.050701, %v311_v3  ;;  %v310_v6 = vsel %vm286_vm4, %v240_v40, %v306_v1 }
 0x10a   :  { %v314_v7 = vmul.f32 1.050701, %v310_v6  ;;  %v312_v8 = vsel %vm288_vm5, %v281_v41, %v308_v4 }
 0x10b   :  { %v316_v9 = vmul.f32 1.050701, %v312_v8 }
 0x10c   :  { %v377_v10 = vpack.c.bf16 %v314_v7, %v313_v2 }
 0x10d   :  { %v378_v11 = vpack.c.bf16 %v316_v9, %v315_v5 }
 0x10e   :  { %333 = vst [vmem:[%s551_s3] sm:$0xff] %v377_v10 }
 0x10f   :  { %334 = vst [vmem:[%s551_s3 + $0x8] sm:$0xff] %v378_v11 }

// kernel: resnet_regression_forward.23
= control target key start
LH: loop header
LB: loop body
LE: loop exit
PB: predicated region body
PF: predicated region fallthrough
CT: control target
= control target key end

     0   :  { %v710_v1 = vmov 0   ;;  %vm357_vm0 = vcmask 719872   ;;  %vm361_vm1 = vcmask 1043456   ;;  %s927_s1 = inlined_call_operand.vmem [shape: bf16[216,512], index: 1, kind: input, shape index: {}]   ;;  %s928_s0 = inlined_call_operand.vmem [shape: bf16[8,216], index: 0, kind: input, shape index: {}]   ;;  %s929_s2 = inlined_call_operand.vmem [shape: f32[8,1], index: 2, kind: input, shape index: {}]   ;;  %s930_s3 = inlined_call_operand.vmem [shape: bf16[8,512], index: 3, kind: input, shape index: {}]   ;;  %s931_s4 = inlined_call_operand.vmem [shape: bf16[8,512], index: 4, kind: output, shape index: {0}]   ;;  %s932_s5 = inlined_call_operand.vmem [shape: bf16[8,512], index: 5, kind: output, shape index: {1}]  }
   0x1   :  { %v618_v0 = vld [vmem:[%s927_s1 + $0x4] ss:$16 sps:$4 sm:$0xff]   ;;  %617 = vset.pattern.permute.xlu0 %v710_v1  ;;  %v620_v2 = vld [vmem:[%s927_s1 + $0xc] ss:$16 sps:$4 sm:$0xff]   ;;  %v622_v3 = vld [vmem:[%s927_s1] ss:$16 sps:$4 sm:$0xff]  }
   0x2   :  { %374 = vmatprep.subr.bf16.mxu0 %v618_v0  ;;  %v623_v4 = vld [vmem:[%s927_s1 + $0x8] ss:$16 sps:$4 sm:$0xff]   ;;  %415 = vmatprep.subr.bf16.mxu1 %v620_v2  ;;  %v624_v5 = vld [vmem:[%s927_s1 + $0x24] ss:$16 sps:$4 sm:$0xff]   ;;  %v626_v6 = vld [vmem:[%s927_s1 + $0x2c] ss:$16 sps:$4 sm:$0xff]  }
   0x3   :  { %375 = vmatpush1.bf16.msra.mxu0 %v622_v3  ;;  %416 = vmatpush1.bf16.msra.mxu1 %v623_v4  ;;  %v628_v7 = vld [vmem:[%s927_s1 + $0x20] ss:$16 sps:$4 sm:$0xff]   ;;  %v629_v8 = vld [vmem:[%s927_s1 + $0x28] ss:$16 sps:$4 sm:$0xff]   ;;  %v630_v9 = vld [vmem:[%s927_s1 + $0x44] ss:$16 sps:$4 sm:$0xff]  }
   0x4   :  { %376 = vmatprep.subr.bf16.mxu0 %v624_v5  ;;  %417 = vmatprep.subr.bf16.mxu1 %v626_v6  ;;  %v632_v10 = vld [vmem:[%s927_s1 + $0x4c] ss:$16 sps:$4 sm:$0xff]   ;;  %v634_v11 = vld [vmem:[%s927_s1 + $0x40] ss:$16 sps:$4 sm:$0xff]   ;;  %v635_v12 = vld [vmem:[%s927_s1 + $0x48] ss:$16 sps:$4 sm:$0xff]  }
   0x5   :  { %v636_v13 = vld [vmem:[%s927_s1 + $0x64] ss:$16 sps:$4 sm:$0xff]   ;;  %v638_v14 = vld [vmem:[%s927_s1 + $0x6c] ss:$16 sps:$4 sm:$0xff]   ;;  %v640_v15 = vld [vmem:[%s927_s1 + $0x60] ss:$16 sps:$4 sm:$0xff]  }
   0x6   :  { %v641_v16 = vld [vmem:[%s927_s1 + $0x68] ss:$16 sps:$4 sm:$0xff]   ;;  %v642_v17 = vld [vmem:[%s927_s1 + $0x84] ss:$16 sps:$4 sm:$0xff]   ;;  %v644_v18 = vld [vmem:[%s927_s1 + $0x8c] ss:$16 sps:$4 sm:$0xff]  }
   0x7   :  { %377 = vmatpush1.bf16.msra.mxu0 %v628_v7  ;;  %418 = vmatpush1.bf16.msra.mxu1 %v629_v8  ;;  %v646_v19 = vld [vmem:[%s927_s1 + $0x80] ss:$16 sps:$4 sm:$0xff]   ;;  %v647_v20 = vld [vmem:[%s927_s1 + $0x88] ss:$16 sps:$4 sm:$0xff]   ;;  %v648_v21 = vld [vmem:[%s927_s1 + $0xa4] ss:$16 sps:$4 sm:$0xff]  }
   0x8   :  { %378 = vmatprep.subr.bf16.mxu0 %v630_v9  ;;  %419 = vmatprep.subr.bf16.mxu1 %v632_v10  ;;  %v650_v22 = vld [vmem:[%s927_s1 + $0xac] ss:$16 sps:$4 sm:$0xff]   ;;  %v652_v23 = vld [vmem:[%s927_s1 + $0xa0] ss:$16 sps:$4 sm:$0xff]   ;;  %v653_v24 = vld [vmem:[%s927_s1 + $0xa8] ss:$16 sps:$4 sm:$0xff]  }
   0x9   :  { %v654_v25 = vld [vmem:[%s927_s1 + $0xc4] ss:$16 sps:$4 sm:$0xff]   ;;  %v656_v26 = vld [vmem:[%s927_s1 + $0xcc] ss:$16 sps:$4 sm:$0xff]   ;;  %v658_v27 = vld [vmem:[%s927_s1 + $0xc0] ss:$16 sps:$4 sm:$0xff]  }
   0xa   :  { %v659_v28 = vld [vmem:[%s927_s1 + $0xc8] ss:$16 sps:$4 sm:$0xff]   ;;  %v660_v29 = vld [vmem:[%s927_s1 + $0xe4] ss:$16 sps:$4 sm:$0xff]   ;;  %v662_v30 = vld [vmem:[%s927_s1 + $0xec] ss:$16 sps:$4 sm:$0xff]  }
   0xb   :  { %379 = vmatpush1.bf16.msra.mxu0 %v634_v11  ;;  %420 = vmatpush1.bf16.msra.mxu1 %v635_v12  ;;  %v664_v31 = vld [vmem:[%s927_s1 + $0xe0] ss:$16 sps:$4 sm:$0xff]   ;;  %v665_v32 = vld [vmem:[%s927_s1 + $0xe8] ss:$16 sps:$4 sm:$0xff]   ;;  %v666_v33 = vld [vmem:[%s927_s1 + $0x104] ss:$16 sps:$4 sm:$0xff]  }
   0xc   :  { %380 = vmatprep.subr.bf16.mxu0 %v636_v13  ;;  %421 = vmatprep.subr.bf16.mxu1 %v638_v14  ;;  %v668_v34 = vld [vmem:[%s927_s1 + $0x10c] ss:$16 sps:$4 sm:$0xff]   ;;  %v670_v35 = vld [vmem:[%s927_s1 + $0x100] ss:$16 sps:$4 sm:$0xff]   ;;  %v671_v36 = vld [vmem:[%s927_s1 + $0x108] ss:$16 sps:$4 sm:$0xff]  }
   0xd   :  { %v672_v37 = vld [vmem:[%s927_s1 + $0x124] ss:$16 sps:$4 sm:$0xff]   ;;  %v674_v38 = vld [vmem:[%s927_s1 + $0x12c] ss:$16 sps:$4 sm:$0xff]   ;;  %v676_v41 = vld [vmem:[%s927_s1 + $0x120] ss:$16 sps:$4 sm:$0xff]  }
   0xe   :  { %v20_v39 = vld [vmem:[%s928_s0] sm:$0xff]  ;;  %v677_v42 = vld [vmem:[%s927_s1 + $0x128] ss:$16 sps:$4 sm:$0xff]   ;;  %v680_v44 = vld [vmem:[%s927_s1 + $0x14c] ss:$16 sps:$4 sm:$0xff]  }
   0xf   :  { %381 = vmatpush1.bf16.msra.mxu0 %v640_v15  ;;  %422 = vmatpush1.bf16.msra.mxu1 %v641_v16  ;;  %v75_v40 = vld [vmem:[%s929_s2] sm:$0xff]  ;;  %v543_v45 = vcombine.high %v20_v39, %v20_v39  ;;  %v683_v47 = vld [vmem:[%s927_s1 + $0x148] ss:$16 sps:$4 sm:$0xff]   ;;  %v686_v49 = vld [vmem:[%s927_s1 + $0x16c] ss:$16 sps:$4 sm:$0xff]   ;;  %v542_v0 = vcombine.low %v20_v39, %v20_v39 }
  0x10   :  { %382 = vmatprep.subr.bf16.mxu0 %v642_v17  ;;  %423 = vmatprep.subr.bf16.mxu1 %v644_v18  ;;  %v678_v43 = vld [vmem:[%s927_s1 + $0x144] ss:$16 sps:$4 sm:$0xff]   ;;  %v682_v46 = vld [vmem:[%s927_s1 + $0x140] ss:$16 sps:$4 sm:$0xff]   ;;  %v689_v51 = vld [vmem:[%s927_s1 + $0x168] ss:$16 sps:$4 sm:$0xff]  }
  0x11   :  { %78 = vperm.xlu0 %617, %v75_v40   ;;  %601 = vmatprep.mubr.msk.bf16.mxu0 %vm357_vm0, %v543_v45  ;;  %v684_v48 = vld [vmem:[%s927_s1 + $0x164] ss:$16 sps:$4 sm:$0xff]   ;;  %v688_v50 = vld [vmem:[%s927_s1 + $0x160] ss:$16 sps:$4 sm:$0xff]   ;;  %v692_v53 = vld [vmem:[%s927_s1 + $0x18c] ss:$16 sps:$4 sm:$0xff]  }
  0x12   :  { %603 = vmatprep.mubr.msk.bf16.mxu1 %vm357_vm0, %v543_v45  ;;  %v690_v52 = vld [vmem:[%s927_s1 + $0x184] ss:$16 sps:$4 sm:$0xff]   ;;  %v74_v55 = vld [vmem:[%s927_s1 + $0x1a8] sm:$0xff]  ;;  %v694_v56 = vld [vmem:[%s927_s1 + $0x180] ss:$16 sps:$4 sm:$0xff]  }
  0x13   :  { %383 = vmatpush1.bf16.msra.mxu0 %v646_v19  ;;  %424 = vmatpush1.bf16.msra.mxu1 %v647_v20  ;;  %v73_v54 = vld [vmem:[%s927_s1 + $0x1a0] sm:$0xff]  ;;  %v695_v57 = vld [vmem:[%s927_s1 + $0x188] ss:$16 sps:$4 sm:$0xff]   ;;  %v599_v59 = vcombine.high %v74_v55, %v74_v55  ;;  %v598_v61 = vcombine.low %v74_v55, %v74_v55 }
  0x14   :  { %384 = vmatprep.subr.bf16.mxu0 %v648_v21  ;;  %425 = vmatprep.subr.bf16.mxu1 %v650_v22  ;;  %v597_v58 = vcombine.high %v73_v54, %v73_v54  ;;  %v596_v60 = vcombine.low %v73_v54, %v73_v54 }
  0x15   :  { %v369_v63 = vsel %vm361_vm1, %v598_v61, 0 }
  0x16   :  { %v363_v62 = vsel %vm361_vm1, %v596_v60, 0 }
  0x17   :  { %385 = vmatpush1.bf16.msra.mxu0 %v652_v23  ;;  %426 = vmatpush1.bf16.msra.mxu1 %v653_v24  ;;  %v506_v23 = vld [vmem:[%s930_s3] sm:$0xff] }
  0x18   :  { %386 = vmatprep.subr.bf16.mxu0 %v654_v25  ;;  %427 = vmatprep.subr.bf16.mxu1 %v656_v26  ;;  %v507_v26 = vld [vmem:[%s930_s3 + $0x8] sm:$0xff] }
  0x1b   :  { %387 = vmatpush1.bf16.msra.mxu0 %v658_v27  ;;  %428 = vmatpush1.bf16.msra.mxu1 %v659_v28 }
  0x1c   :  { %388 = vmatprep.subr.bf16.mxu0 %v660_v29  ;;  %429 = vmatprep.subr.bf16.mxu1 %v662_v30 }
  0x1f   :  { %389 = vmatpush1.bf16.msra.mxu0 %v664_v31  ;;  %430 = vmatpush1.bf16.msra.mxu1 %v665_v32  ;;  %v508_v31 = vunpack.c.l.bf16 %v506_v23 }
  0x20   :  { %390 = vmatprep.subr.bf16.mxu0 %v666_v33  ;;  %431 = vmatprep.subr.bf16.mxu1 %v668_v34  ;;  %v510_v34 = vunpack.c.l.bf16 %v507_v26 }
  0x23   :  { %391 = vmatpush1.bf16.msra.mxu0 %v670_v35  ;;  %432 = vmatpush1.bf16.msra.mxu1 %v671_v36 }
  0x24   :  { %392 = vmatprep.subr.bf16.mxu0 %v672_v37  ;;  %433 = vmatprep.subr.bf16.mxu1 %v674_v38  ;;  %v509_v38 = vunpack.c.h.bf16 %v506_v23 }
  0x27   :  { %393 = vmatpush1.bf16.msra.mxu0 %v676_v41  ;;  %434 = vmatpush1.bf16.msra.mxu1 %v677_v42 }
  0x28   :  { %394 = vmatprep.subr.bf16.mxu0 %v678_v43  ;;  %435 = vmatprep.subr.bf16.mxu1 %v680_v44  ;;  %v511_v44 = vunpack.c.h.bf16 %v507_v26 }
  0x2b   :  { %395 = vmatpush1.bf16.msra.mxu0 %v682_v46  ;;  %436 = vmatpush1.bf16.msra.mxu1 %v683_v47 }
  0x2c   :  { %396 = vmatprep.subr.bf16.mxu0 %v684_v48  ;;  %437 = vmatprep.subr.bf16.mxu1 %v686_v49 }
  0x2f   :  { %397 = vmatpush1.bf16.msra.mxu0 %v688_v50  ;;  %438 = vmatpush1.bf16.msra.mxu1 %v689_v51 }
  0x30   :  { %398 = vmatprep.subr.bf16.mxu0 %v690_v52  ;;  %439 = vmatprep.subr.bf16.mxu1 %v692_v53 }
  0x33   :  { %399 = vmatpush1.bf16.msra.mxu0 %v694_v56  ;;  %440 = vmatpush1.bf16.msra.mxu1 %v695_v57 }
  0x34   :  { %600 = vmatprep.subr.msk.bf16.mxu0 %vm361_vm1, %v597_v58  ;;  %602 = vmatprep.subr.msk.bf16.mxu1 %vm361_vm1, %v599_v59 }
  0x37   :  { %401 = vmatpush1.bf16.msra.mxu0 %v363_v62  ;;  %442 = vmatpush1.bf16.msra.mxu1 %v369_v63 }
  0x3a   :  { %407 = vmatmul.mubr.bf16.vlgmr.msra.gmra.mrb[0].mxu0 %v542_v0  ;;  %448 = vmatmul.mubr.bf16.vlgmr.msra.gmra.mrb[0].mxu1 %v542_v0 }
  0x90   :  { %v79_v1 = vpop.permute.xlu0 %78 }
 0x10d   :  { %v408_v2 = vpop.f32.mrb[0].mxu0  ;;  %v449_v3 = vpop.f32.mrb[0].mxu1 }
 0x10e   :  { %v409_v4 = vadd.f32 %v408_v2, %v79_v1  ;;  %v450_v5 = vadd.f32 %v449_v3, %v79_v1  ;;  %v410_v6 = vpop.f32.mrb[1].mxu0  ;;  %v451_v7 = vpop.f32.mrb[1].mxu1 }
 0x10f   :  { %v411_v8 = vadd.f32 %v410_v6, %v79_v1  ;;  %v452_v9 = vadd.f32 %v451_v7, %v79_v1  ;;  %v412_v10 = vpop.f32.mrb[2].mxu0  ;;  %v453_v11 = vpop.f32.mrb[2].mxu1 }
 0x110   :  { %v460_v12 = vmin.f32 %v409_v4, 0.0  ;;  %v462_v13 = vmin.f32 %v450_v5, 0.0  ;;  %v413_v14 = vpop.f32.mrb[3].mxu0  ;;  %v454_v15 = vpop.f32.mrb[3].mxu1  ;;  %vm456_vm2 = vcmp.gt.f32.partialorder %v409_v4, 0.0  ;;  %vm458_vm3 = vcmp.gt.f32.partialorder %v450_v5, 0.0 }
 0x111   :  { %v461_v16 = vmin.f32 %v411_v8, 0.0  ;;  %v463_v17 = vmin.f32 %v452_v9, 0.0  ;;  %vm457_vm4 = vcmp.gt.f32.partialorder %v411_v8, 0.0  ;;  %vm459_vm5 = vcmp.gt.f32.partialorder %v452_v9, 0.0 }
 0x112   :  { %v464_v18 = vmul.f32 1.442695, %v460_v12  ;;  %v468_v19 = vmul.f32 1.442695, %v462_v13 }
 0x113   :  { %v466_v20 = vmul.f32 1.442695, %v461_v16  ;;  %v470_v21 = vmul.f32 1.442695, %v463_v17 }
 0x114   :  { %702 = vpow2.f32 %v464_v18 }
 0x115   :  { %704 = vpow2.f32 %v468_v19 }
 0x116   :  { %706 = vpow2.f32 %v466_v20 }
 0x117   :  { %708 = vpow2.f32 %v470_v21 }
 0x11e   :  { %v703_v22 = vpop.eup %702 }
 0x11f   :  { %v705_v24 = vpop.eup %704  ;;  %v604_v25 = vadd.f32 -1.0, %v703_v22 }
 0x120   :  { %v707_v27 = vpop.eup %706  ;;  %v606_v28 = vadd.f32 -1.0, %v705_v24 }
 0x121   :  { %v709_v29 = vpop.eup %708  ;;  %v476_v30 = vmul.f32 1.6732632, %v604_v25  ;;  %v605_v32 = vadd.f32 -1.0, %v707_v27 }
 0x122   :  { %v478_v33 = vmul.f32 1.6732632, %v606_v28  ;;  %v607_v35 = vadd.f32 -1.0, %v709_v29 }
 0x123   :  { %v480_v36 = vsel %vm456_vm2, %v409_v4, %v476_v30  ;;  %v477_v37 = vmul.f32 1.6732632, %v605_v32 }
 0x124   :  { %v484_v39 = vmul.f32 1.050701, %v480_v36  ;;  %v482_v40 = vsel %vm458_vm3, %v450_v5, %v478_v33  ;;  %v479_v41 = vmul.f32 1.6732632, %v607_v35 }
 0x125   :  { %v486_v42 = vmul.f32 1.050701, %v482_v40  ;;  %v481_v43 = vsel %vm457_vm4, %v411_v8, %v477_v37 }
 0x126   :  { %v512_v45 = vadd.f32 %v508_v31, %v484_v39  ;;  %v485_v46 = vmul.f32 1.050701, %v481_v43  ;;  %v483_v47 = vsel %vm459_vm5, %v452_v9, %v479_v41 }
 0x127   :  { %v514_v48 = vadd.f32 %v510_v34, %v486_v42  ;;  %v487_v49 = vmul.f32 1.050701, %v483_v47 }
 0x128   :  { %v612_v50 = vpack.c.bf16 %v485_v46, %v484_v39  ;;  %v513_v51 = vadd.f32 %v509_v38, %v485_v46 }
 0x129   :  { %v613_v52 = vpack.c.bf16 %v487_v49, %v486_v42  ;;  %v515_v53 = vadd.f32 %v511_v44, %v487_v49 }
 0x12a   :  { %504 = vst [vmem:[%s931_s4] sm:$0xff] %v612_v50  ;;  %v614_v54 = vpack.c.bf16 %v513_v51, %v512_v45 }
 0x12b   :  { %505 = vst [vmem:[%s931_s4 + $0x8] sm:$0xff] %v613_v52  ;;  %v615_v55 = vpack.c.bf16 %v515_v53, %v514_v48 }
 0x12c   :  { %532 = vst [vmem:[%s932_s5] sm:$0xff] %v614_v54 }
 0x12d   :  { %533 = vst [vmem:[%s932_s5 + $0x8] sm:$0xff] %v615_v55 }

// kernel: resnet_regression_forward.24
= control target key start
LH: loop header
LB: loop body
LE: loop exit
PB: predicated region body
PF: predicated region fallthrough
CT: control target
= control target key end

     0   :  { %v236_v0 = vmov 0   ;;  %vm136_vm0 = vcmask 719872   ;;  %vm140_vm1 = vcmask 1043456   ;;  %s308_s1 = inlined_call_operand.vmem [shape: bf16[216,128], index: 1, kind: input, shape index: {}]   ;;  %s309_s0 = inlined_call_operand.vmem [shape: bf16[8,216], index: 0, kind: input, shape index: {}]   ;;  %s310_s2 = inlined_call_operand.vmem [shape: f32[8,1], index: 2, kind: input, shape index: {}]   ;;  %s311_s3 = inlined_call_operand.vmem [shape: bf16[8,128], index: 3, kind: output, shape index: {}]  }
   0x1   :  { %144 = vmatprep.subr.bf16.mxu0 %v236_v0  ;;  %v218_v1 = vld [vmem:[%s308_s1] sm:$0xff]   ;;  %217 = vset.pattern.permute.xlu0 %v236_v0  ;;  %v219_v2 = vld [vmem:[%s308_s1 + $0x8] sm:$0xff]   ;;  %v220_v3 = vld [vmem:[%s308_s1 + $0x10] sm:$0xff]  }
   0x2   :  { %145 = vmatpush1.bf16.msra.mxu0 %v218_v1  ;;  %v221_v4 = vld [vmem:[%s308_s1 + $0x18] sm:$0xff]   ;;  %v15_v5 = vld [vmem:[%s309_s0] sm:$0xff]  ;;  %v223_v9 = vld [vmem:[%s308_s1 + $0x28] sm:$0xff]  }
   0x3   :  { %146 = vmatprep.subr.bf16.mxu0 %v236_v0  ;;  %v222_v6 = vld [vmem:[%s308_s1 + $0x20] sm:$0xff]   ;;  %v199_v7 = vcombine.high %v15_v5, %v15_v5  ;;  %v224_v10 = vld [vmem:[%s308_s1 + $0x30] sm:$0xff]   ;;  %v225_v11 = vld [vmem:[%s308_s1 + $0x38] sm:$0xff]   ;;  %v198_v19 = vcombine.low %v15_v5, %v15_v5 }
   0x4   :  { %v43_v8 = vld [vmem:[%s310_s2] sm:$0xff]  ;;  %v227_v13 = vld [vmem:[%s308_s1 + $0x48] sm:$0xff]   ;;  %v228_v14 = vld [vmem:[%s308_s1 + $0x50] sm:$0xff]  }
   0x5   :  { %46 = vperm.xlu0 %217, %v43_v8   ;;  %214 = vmatprep.mubr.msk.bf16.mxu0 %vm136_vm0, %v199_v7  ;;  %v226_v12 = vld [vmem:[%s308_s1 + $0x40] sm:$0xff]   ;;  %v229_v15 = vld [vmem:[%s308_s1 + $0x58] sm:$0xff]   ;;  %v231_v17 = vld [vmem:[%s308_s1 + $0x68] ss:$0 sps:$4 sm:$0xff]  }
   0x6   :  { %147 = vmatpush1.bf16.msra.mxu0 %v219_v2  ;;  %v230_v16 = vld [vmem:[%s308_s1 + $0x60] sm:$0xff]   ;;  %v142_v18 = vsel %vm140_vm1, %v231_v17, 0 }
   0x7   :  { %148 = vmatprep.subr.bf16.mxu0 %v236_v0 }
   0xa   :  { %149 = vmatpush1.bf16.msra.mxu0 %v220_v3 }
   0xb   :  { %150 = vmatprep.subr.bf16.mxu0 %v236_v0 }
   0xe   :  { %151 = vmatpush1.bf16.msra.mxu0 %v221_v4 }
   0xf   :  { %152 = vmatprep.subr.bf16.mxu0 %v236_v0 }
  0x12   :  { %153 = vmatpush1.bf16.msra.mxu0 %v222_v6 }
  0x13   :  { %154 = vmatprep.subr.bf16.mxu0 %v236_v0 }
  0x16   :  { %155 = vmatpush1.bf16.msra.mxu0 %v223_v9 }
  0x17   :  { %156 = vmatprep.subr.bf16.mxu0 %v236_v0 }
  0x1a   :  { %157 = vmatpush1.bf16.msra.mxu0 %v224_v10 }
  0x1b   :  { %158 = vmatprep.subr.bf16.mxu0 %v236_v0 }
  0x1e   :  { %159 = vmatpush1.bf16.msra.mxu0 %v225_v11 }
  0x1f   :  { %160 = vmatprep.subr.bf16.mxu0 %v236_v0 }
  0x22   :  { %161 = vmatpush1.bf16.msra.mxu0 %v226_v12 }
  0x23   :  { %162 = vmatprep.subr.bf16.mxu0 %v236_v0 }
  0x26   :  { %163 = vmatpush1.bf16.msra.mxu0 %v227_v13 }
  0x27   :  { %164 = vmatprep.subr.bf16.mxu0 %v236_v0 }
  0x2a   :  { %165 = vmatpush1.bf16.msra.mxu0 %v228_v14 }
  0x2b   :  { %166 = vmatprep.subr.bf16.mxu0 %v236_v0 }
  0x2e   :  { %167 = vmatpush1.bf16.msra.mxu0 %v229_v15 }
  0x2f   :  { %168 = vmatprep.subr.bf16.mxu0 %v236_v0 }
  0x32   :  { %169 = vmatpush1.bf16.msra.mxu0 %v230_v16 }
  0x33   :  { %170 = vmatprep.subr.bf16.mxu0 %v236_v0 }
  0x36   :  { %171 = vmatpush1.bf16.msra.mxu0 %v142_v18 }
  0x39   :  { %177 = vmatmul.mubr.bf16.vlgmr.msra.gmra.mrb[0].mxu0 %v198_v19 }
  0x84   :  { %v47_v20 = vpop.permute.xlu0 %46 }
 0x10c   :  { %v178_v21 = vpop.f32.mrb[0].mxu0 }
 0x10d   :  { %v179_v22 = vadd.f32 %v178_v21, %v47_v20  ;;  %v180_v23 = vpop.f32.mrb[1].mxu0 }
 0x10e   :  { %v181_v24 = vpop.f32.mrb[2].mxu0 }
 0x10f   :  { %v185_v25 = vmin.f32 %v179_v22, 0.0  ;;  %v182_v26 = vpop.f32.mrb[3].mxu0  ;;  %vm184_vm2 = vcmp.gt.f32.partialorder %v179_v22, 0.0 }
 0x111   :  { %v186_v27 = vmul.f32 1.442695, %v185_v25 }
 0x113   :  { %234 = vpow2.f32 %v186_v27 }
 0x11d   :  { %v235_v28 = vpop.eup %234 }
 0x11e   :  { %v215_v29 = vadd.f32 -1.0, %v235_v28 }
 0x120   :  { %v189_v30 = vmul.f32 1.6732632, %v215_v29 }
 0x122   :  { %v190_v31 = vsel %vm184_vm2, %v179_v22, %v189_v30 }
 0x123   :  { %v191_v32 = vmul.f32 1.050701, %v190_v31 }
 0x125   :  { %v192_v33 = vpack.c.bf16 %v191_v32, %v191_v32 }
 0x127   :  { %193 = vst [vmem:[%s311_s3] sm:$0xf] %v192_v33 }

// kernel: resnet_regression_forward.26
= control target key start
LH: loop header
LB: loop body
LE: loop exit
PB: predicated region body
PF: predicated region fallthrough
CT: control target
= control target key end

     0   :  { %v250_v0 = vmov 0   ;;  %vm141_vm0 = vcmask 719872   ;;  %vm145_vm1 = vcmask 1043456   ;;  %s338_s1 = inlined_call_operand.vmem [shape: bf16[216,128], index: 1, kind: input, shape index: {}]   ;;  %s339_s0 = inlined_call_operand.vmem [shape: bf16[8,216], index: 0, kind: input, shape index: {}]   ;;  %s340_s2 = inlined_call_operand.vmem [shape: f32[8,1], index: 2, kind: input, shape index: {}]   ;;  %s341_s3 = inlined_call_operand.vmem [shape: bf16[8,128], index: 3, kind: input, shape index: {}]   ;;  %s342_s4 = inlined_call_operand.vmem [shape: bf16[8,128], index: 4, kind: output, shape index: {0}]   ;;  %s343_s5 = inlined_call_operand.vmem [shape: bf16[8,128], index: 5, kind: output, shape index: {1}]  }
   0x1   :  { %149 = vmatprep.subr.bf16.mxu0 %v250_v0  ;;  %v232_v1 = vld [vmem:[%s338_s1] sm:$0xff]   ;;  %231 = vset.pattern.permute.xlu0 %v250_v0  ;;  %v233_v2 = vld [vmem:[%s338_s1 + $0x8] sm:$0xff]   ;;  %v234_v3 = vld [vmem:[%s338_s1 + $0x10] sm:$0xff]  }
   0x2   :  { %150 = vmatpush1.bf16.msra.mxu0 %v232_v1  ;;  %v235_v4 = vld [vmem:[%s338_s1 + $0x18] sm:$0xff]   ;;  %v20_v5 = vld [vmem:[%s339_s0] sm:$0xff]  ;;  %v237_v9 = vld [vmem:[%s338_s1 + $0x28] sm:$0xff]  }
   0x3   :  { %151 = vmatprep.subr.bf16.mxu0 %v250_v0  ;;  %v236_v6 = vld [vmem:[%s338_s1 + $0x20] sm:$0xff]   ;;  %v213_v7 = vcombine.high %v20_v5, %v20_v5  ;;  %v238_v10 = vld [vmem:[%s338_s1 + $0x30] sm:$0xff]   ;;  %v239_v11 = vld [vmem:[%s338_s1 + $0x38] sm:$0xff]   ;;  %v212_v19 = vcombine.low %v20_v5, %v20_v5 }
   0x4   :  { %v48_v8 = vld [vmem:[%s340_s2] sm:$0xff]  ;;  %v241_v13 = vld [vmem:[%s338_s1 + $0x48] sm:$0xff]   ;;  %v242_v14 = vld [vmem:[%s338_s1 + $0x50] sm:$0xff]  }
   0x5   :  { %51 = vperm.xlu0 %231, %v48_v8   ;;  %228 = vmatprep.mubr.msk.bf16.mxu0 %vm141_vm0, %v213_v7  ;;  %v240_v12 = vld [vmem:[%s338_s1 + $0x40] sm:$0xff]   ;;  %v243_v15 = vld [vmem:[%s338_s1 + $0x58] sm:$0xff]   ;;  %v245_v17 = vld [vmem:[%s338_s1 + $0x68] ss:$0 sps:$4 sm:$0xff]  }
   0x6   :  { %152 = vmatpush1.bf16.msra.mxu0 %v233_v2  ;;  %v244_v16 = vld [vmem:[%s338_s1 + $0x60] sm:$0xff]   ;;  %v147_v18 = vsel %vm145_vm1, %v245_v17, 0 }
   0x7   :  { %153 = vmatprep.subr.bf16.mxu0 %v250_v0  ;;  %v199_v30 = vld [vmem:[%s341_s3] sm:$0xf] }
   0x8   :  { %v200_v32 = vunpack.c.l.bf16 %v199_v30 }
   0xa   :  { %154 = vmatpush1.bf16.msra.mxu0 %v234_v3 }
   0xb   :  { %155 = vmatprep.subr.bf16.mxu0 %v250_v0 }
   0xe   :  { %156 = vmatpush1.bf16.msra.mxu0 %v235_v4 }
   0xf   :  { %157 = vmatprep.subr.bf16.mxu0 %v250_v0 }
  0x12   :  { %158 = vmatpush1.bf16.msra.mxu0 %v236_v6 }
  0x13   :  { %159 = vmatprep.subr.bf16.mxu0 %v250_v0 }
  0x16   :  { %160 = vmatpush1.bf16.msra.mxu0 %v237_v9 }
  0x17   :  { %161 = vmatprep.subr.bf16.mxu0 %v250_v0 }
  0x1a   :  { %162 = vmatpush1.bf16.msra.mxu0 %v238_v10 }
  0x1b   :  { %163 = vmatprep.subr.bf16.mxu0 %v250_v0 }
  0x1e   :  { %164 = vmatpush1.bf16.msra.mxu0 %v239_v11 }
  0x1f   :  { %165 = vmatprep.subr.bf16.mxu0 %v250_v0 }
  0x22   :  { %166 = vmatpush1.bf16.msra.mxu0 %v240_v12 }
  0x23   :  { %167 = vmatprep.subr.bf16.mxu0 %v250_v0 }
  0x26   :  { %168 = vmatpush1.bf16.msra.mxu0 %v241_v13 }
  0x27   :  { %169 = vmatprep.subr.bf16.mxu0 %v250_v0 }
  0x2a   :  { %170 = vmatpush1.bf16.msra.mxu0 %v242_v14 }
  0x2b   :  { %171 = vmatprep.subr.bf16.mxu0 %v250_v0 }
  0x2e   :  { %172 = vmatpush1.bf16.msra.mxu0 %v243_v15 }
  0x2f   :  { %173 = vmatprep.subr.bf16.mxu0 %v250_v0 }
  0x32   :  { %174 = vmatpush1.bf16.msra.mxu0 %v244_v16 }
  0x33   :  { %175 = vmatprep.subr.bf16.mxu0 %v250_v0 }
  0x36   :  { %176 = vmatpush1.bf16.msra.mxu0 %v147_v18 }
  0x39   :  { %182 = vmatmul.mubr.bf16.vlgmr.msra.gmra.mrb[0].mxu0 %v212_v19 }
  0x84   :  { %v52_v20 = vpop.permute.xlu0 %51 }
 0x10c   :  { %v183_v21 = vpop.f32.mrb[0].mxu0 }
 0x10d   :  { %v184_v22 = vadd.f32 %v183_v21, %v52_v20  ;;  %v185_v23 = vpop.f32.mrb[1].mxu0 }
 0x10e   :  { %v186_v24 = vpop.f32.mrb[2].mxu0 }
 0x10f   :  { %v190_v25 = vmin.f32 %v184_v22, 0.0  ;;  %v187_v26 = vpop.f32.mrb[3].mxu0  ;;  %vm189_vm2 = vcmp.gt.f32.partialorder %v184_v22, 0.0 }
 0x111   :  { %v191_v27 = vmul.f32 1.442695, %v190_v25 }
 0x113   :  { %248 = vpow2.f32 %v191_v27 }
 0x11d   :  { %v249_v28 = vpop.eup %248 }
 0x11e   :  { %v229_v29 = vadd.f32 -1.0, %v249_v28 }
 0x120   :  { %v194_v31 = vmul.f32 1.6732632, %v229_v29 }
 0x122   :  { %v195_v33 = vsel %vm189_vm2, %v184_v22, %v194_v31 }
 0x123   :  { %v196_v34 = vmul.f32 1.050701, %v195_v33 }
 0x125   :  { %v197_v35 = vpack.c.bf16 %v196_v34, %v196_v34  ;;  %v201_v36 = vadd.f32 %v200_v32, %v196_v34 }
 0x127   :  { %198 = vst [vmem:[%s342_s4] sm:$0xf] %v197_v35  ;;  %v202_v37 = vpack.c.bf16 %v201_v36, %v201_v36 }
 0x129   :  { %203 = vst [vmem:[%s343_s5] sm:$0xf] %v202_v37 }

// kernel: resnet_regression_forward.30
= control target key start
LH: loop header
LB: loop body
LE: loop exit
PB: predicated region body
PF: predicated region fallthrough
CT: control target
= control target key end

     0   :  { %v276_v0 = vmov 0   ;;  %vm146_vm0 = vcmask 719872   ;;  %vm150_vm1 = vcmask 1043456   ;;  %s354_s1 = inlined_call_operand.vmem [shape: bf16[216,128], index: 1, kind: input, shape index: {}]   ;;  %s355_s0 = inlined_call_operand.vmem [shape: bf16[16,216], index: 0, kind: input, shape index: {}]   ;;  %s356_s2 = inlined_call_operand.vmem [shape: f32[16,1], index: 2, kind: input, shape index: {}]   ;;  %s357_s3 = inlined_call_operand.vmem [shape: bf16[16,128], index: 3, kind: output, shape index: {}]  }
   0x1   :  { %154 = vmatprep.subr.bf16.mxu0 %v276_v0  ;;  %v255_v1 = vld [vmem:[%s354_s1] sm:$0xff]   ;;  %254 = vset.pattern.permute.xlu0 %v276_v0  ;;  %v256_v2 = vld [vmem:[%s354_s1 + $0x8] sm:$0xff]   ;;  %v257_v3 = vld [vmem:[%s354_s1 + $0x10] sm:$0xff]  }
   0x2   :  { %155 = vmatpush1.bf16.msra.mxu0 %v255_v1  ;;  %v258_v4 = vld [vmem:[%s354_s1 + $0x18] sm:$0xff]   ;;  %v259_v5 = vld [vmem:[%s354_s1 + $0x20] sm:$0xff]   ;;  %v45_v8 = vld [vmem:[%s356_s2 + $0x8] sm:$0xff] }
   0x3   :  { %156 = vmatprep.subr.bf16.mxu0 %v276_v0  ;;  %v271_v6 = vld [vmem:[%s355_s0 + $0x4] ss:$8 sps:$4 sm:$0xff]   ;;  %v261_v10 = vld [vmem:[%s354_s1 + $0x30] sm:$0xff]   ;;  %v262_v11 = vld [vmem:[%s354_s1 + $0x38] sm:$0xff]  }
   0x4   :  { %v44_v7 = vld [vmem:[%s356_s2] sm:$0xff]  ;;  %241 = vmatprep.mubr.msk.bf16.mxu0 %vm146_vm0, %v271_v6  ;;  %v260_v9 = vld [vmem:[%s354_s1 + $0x28] sm:$0xff]   ;;  %v265_v14 = vld [vmem:[%s354_s1 + $0x50] sm:$0xff]  }
   0x5   :  { %48 = vperm.xlu0 %254, %v44_v7   ;;  %v263_v12 = vld [vmem:[%s354_s1 + $0x40] sm:$0xff]   ;;  %v264_v13 = vld [vmem:[%s354_s1 + $0x48] sm:$0xff]   ;;  %v266_v15 = vld [vmem:[%s354_s1 + $0x58] sm:$0xff]  }
   0x6   :  { %157 = vmatpush1.bf16.msra.mxu0 %v256_v2  ;;  %v267_v16 = vld [vmem:[%s354_s1 + $0x60] sm:$0xff]   ;;  %v268_v17 = vld [vmem:[%s354_s1 + $0x68] ss:$0 sps:$4 sm:$0xff]  }
   0x7   :  { %158 = vmatprep.subr.bf16.mxu0 %v276_v0  ;;  %v152_v18 = vsel %vm150_vm1, %v268_v17, 0  ;;  %v269_v19 = vld [vmem:[%s355_s0] ss:$8 sps:$4 sm:$0xff]  }
   0x9   :  { %53 = vperm.xlu0 %254, %v45_v8  }
   0xa   :  { %159 = vmatpush1.bf16.msra.mxu0 %v257_v3 }
   0xb   :  { %160 = vmatprep.subr.bf16.mxu0 %v276_v0 }
   0xe   :  { %161 = vmatpush1.bf16.msra.mxu0 %v258_v4 }
   0xf   :  { %162 = vmatprep.subr.bf16.mxu0 %v276_v0 }
  0x12   :  { %163 = vmatpush1.bf16.msra.mxu0 %v259_v5 }
  0x13   :  { %164 = vmatprep.subr.bf16.mxu0 %v276_v0 }
  0x16   :  { %165 = vmatpush1.bf16.msra.mxu0 %v260_v9 }
  0x17   :  { %166 = vmatprep.subr.bf16.mxu0 %v276_v0 }
  0x1a   :  { %167 = vmatpush1.bf16.msra.mxu0 %v261_v10 }
  0x1b   :  { %168 = vmatprep.subr.bf16.mxu0 %v276_v0 }
  0x1e   :  { %169 = vmatpush1.bf16.msra.mxu0 %v262_v11 }
  0x1f   :  { %170 = vmatprep.subr.bf16.mxu0 %v276_v0 }
  0x22   :  { %171 = vmatpush1.bf16.msra.mxu0 %v263_v12 }
  0x23   :  { %172 = vmatprep.subr.bf16.mxu0 %v276_v0 }
  0x26   :  { %173 = vmatpush1.bf16.msra.mxu0 %v264_v13 }
  0x27   :  { %174 = vmatprep.subr.bf16.mxu0 %v276_v0 }
  0x2a   :  { %175 = vmatpush1.bf16.msra.mxu0 %v265_v14 }
  0x2b   :  { %176 = vmatprep.subr.bf16.mxu0 %v276_v0 }
  0x2e   :  { %177 = vmatpush1.bf16.msra.mxu0 %v266_v15 }
  0x2f   :  { %178 = vmatprep.subr.bf16.mxu0 %v276_v0 }
  0x32   :  { %179 = vmatpush1.bf16.msra.mxu0 %v267_v16 }
  0x33   :  { %180 = vmatprep.subr.bf16.mxu0 %v276_v0 }
  0x36   :  { %181 = vmatpush1.bf16.msra.mxu0 %v152_v18 }
  0x39   :  { %187 = vmatmul.mubr.bf16.vlgmr.msra.gmra.mrb[0].mxu0 %v269_v19 }
  0x84   :  { %v49_v20 = vpop.permute.xlu0 %48 }
  0x88   :  { %v54_v24 = vpop.permute.xlu0 %53 }
 0x10c   :  { %v188_v21 = vpop.f32.mrb[0].mxu0 }
 0x10d   :  { %v189_v22 = vadd.f32 %v188_v21, %v49_v20  ;;  %v190_v23 = vpop.f32.mrb[1].mxu0 }
 0x10e   :  { %v191_v25 = vpop.f32.mrb[2].mxu0 }
 0x10f   :  { %v197_v26 = vmin.f32 %v189_v22, 0.0  ;;  %v192_v27 = vadd.f32 %v191_v25, %v54_v24  ;;  %v193_v28 = vpop.f32.mrb[3].mxu0  ;;  %vm195_vm2 = vcmp.gt.f32.partialorder %v189_v22, 0.0 }
 0x111   :  { %v199_v29 = vmul.f32 1.442695, %v197_v26  ;;  %v198_v30 = vmin.f32 %v192_v27, 0.0  ;;  %vm196_vm3 = vcmp.gt.f32.partialorder %v192_v27, 0.0 }
 0x113   :  { %272 = vpow2.f32 %v199_v29  ;;  %v201_v31 = vmul.f32 1.442695, %v198_v30 }
 0x115   :  { %274 = vpow2.f32 %v201_v31 }
 0x11d   :  { %v273_v32 = vpop.eup %272 }
 0x11e   :  { %v242_v33 = vadd.f32 -1.0, %v273_v32 }
 0x11f   :  { %v275_v34 = vpop.eup %274 }
 0x120   :  { %v205_v35 = vmul.f32 1.6732632, %v242_v33  ;;  %v243_v36 = vadd.f32 -1.0, %v275_v34 }
 0x122   :  { %v207_v37 = vsel %vm195_vm2, %v189_v22, %v205_v35  ;;  %v206_v38 = vmul.f32 1.6732632, %v243_v36 }
 0x123   :  { %v209_v40 = vmul.f32 1.050701, %v207_v37 }
 0x124   :  { %v208_v39 = vsel %vm196_vm3, %v192_v27, %v206_v38 }
 0x125   :  { %v210_v41 = vmul.f32 1.050701, %v208_v39 }
 0x127   :  { %v251_v42 = vpack.c.bf16 %v210_v41, %v209_v40 }
 0x129   :  { %252 = vst [vmem:[%s357_s3] sm:$0xff] %v251_v42  }

// kernel: resnet_regression_forward.31
= control target key start
LH: loop header
LB: loop body
LE: loop exit
PB: predicated region body
PF: predicated region fallthrough
CT: control target
= control target key end

     0   :  { %v486_v0 = vmov 0   ;;  %vm266_vm0 = vcmask 392192   ;;  %s621_s1 = inlined_call_operand.vmem [shape: bf16[432,128], index: 1, kind: input, shape index: {}]   ;;  %s622_s0 = inlined_call_operand.vmem [shape: bf16[16,432], index: 0, kind: input, shape index: {}]   ;;  %s623_s2 = inlined_call_operand.vmem [shape: f32[16,1], index: 2, kind: input, shape index: {}]   ;;  %s624_s3 = inlined_call_operand.vmem [shape: bf16[16,128], index: 3, kind: output, shape index: {}]  }
   0x1   :  { %311 = vmatprep.subr.bf16.mxu1 %v486_v0  ;;  %v449_v1 = vld [vmem:[%s621_s1 + $0x80] sm:$0xff]   ;;  %448 = vset.pattern.permute.xlu0 %v486_v0  ;;  %v452_v4 = vld [vmem:[%s621_s1 + $0x88] sm:$0xff]   ;;  %v455_v7 = vld [vmem:[%s621_s1 + $0x90] sm:$0xff]  }
   0x2   :  { %v450_v2 = vld [vmem:[%s621_s1 + $0x40] sm:$0xff]   ;;  %312 = vmatpush1.bf16.msra.mxu1 %v449_v1  ;;  %v453_v5 = vld [vmem:[%s621_s1 + $0x48] sm:$0xff]   ;;  %v456_v8 = vld [vmem:[%s621_s1 + $0x50] sm:$0xff]  }
   0x3   :  { %v451_v3 = vld [vmem:[%s621_s1] sm:$0xff]   ;;  %425 = vmatprep.subr.bf16.mxu0 %v450_v2  ;;  %313 = vmatprep.subr.bf16.mxu1 %v486_v0  ;;  %v454_v6 = vld [vmem:[%s621_s1 + $0x8] sm:$0xff]   ;;  %v457_v9 = vld [vmem:[%s621_s1 + $0x10] sm:$0xff]  }
   0x4   :  { %426 = vmatpush3.bf16.msra.mxu0 %v451_v3  ;;  %v458_v10 = vld [vmem:[%s621_s1 + $0x98] sm:$0xff]   ;;  %v462_v13 = vld [vmem:[%s621_s1 + $0x60] sm:$0xff]   ;;  %v465_v16 = vld [vmem:[%s621_s1 + $0x68] sm:$0xff]  }
   0x5   :  { %427 = vmatprep.subr.bf16.mxu0 %v453_v5  ;;  %v459_v11 = vld [vmem:[%s621_s1 + $0x58] sm:$0xff]   ;;  %v461_v14 = vld [vmem:[%s621_s1 + $0xa0] sm:$0xff]   ;;  %v464_v17 = vld [vmem:[%s621_s1 + $0xa8] sm:$0xff]  }
   0x6   :  { %314 = vmatpush1.bf16.msra.mxu1 %v452_v4  ;;  %v460_v12 = vld [vmem:[%s621_s1 + $0x18] sm:$0xff]   ;;  %v463_v15 = vld [vmem:[%s621_s1 + $0x20] sm:$0xff]   ;;  %v466_v18 = vld [vmem:[%s621_s1 + $0x28] sm:$0xff]  }
   0x7   :  { %315 = vmatprep.subr.bf16.mxu1 %v486_v0  ;;  %v468_v19 = vld [vmem:[%s621_s1 + $0x70] sm:$0xff]   ;;  %v470_v22 = vld [vmem:[%s621_s1 + $0xb8] sm:$0xff]   ;;  %v73_v27 = vld [vmem:[%s623_s2] sm:$0xff] }
   0x8   :  { %428 = vmatpush3.bf16.msra.mxu0 %v454_v6  ;;  %v467_v20 = vld [vmem:[%s621_s1 + $0xb0] sm:$0xff]   ;;  %v471_v23 = vld [vmem:[%s621_s1 + $0x78] sm:$0xff]   ;;  %v473_v28 = vld [vmem:[%s621_s1 + $0xc0] sm:$0xff]   ;;  %77 = vperm.xlu0 %448, %v73_v27  }
   0x9   :  { %429 = vmatprep.subr.bf16.mxu0 %v456_v8  ;;  %v469_v21 = vld [vmem:[%s621_s1 + $0x30] sm:$0xff]   ;;  %v472_v25 = vld [vmem:[%s621_s1 + $0x38] sm:$0xff]   ;;  %v74_v30 = vld [vmem:[%s623_s2 + $0x8] sm:$0xff] }
   0xa   :  { %316 = vmatpush1.bf16.msra.mxu1 %v455_v7  ;;  %v476_v24 = vld [vmem:[%s622_s0 + $0x4] ss:$16 sps:$4 sm:$0xff]   ;;  %v481_v26 = vld [vmem:[%s622_s0 + $0xc] ss:$16 sps:$4 sm:$0xff]   ;;  %v474_v29 = vld [vmem:[%s622_s0] ss:$16 sps:$4 sm:$0xff]  }
   0xb   :  { %317 = vmatprep.subr.bf16.mxu1 %v486_v0  ;;  %302 = vmatprep.mubr.bf16.mxu0 %v476_v24  ;;  %v477_v31 = vld [vmem:[%s621_s1 + $0xc8] sm:$0xff]   ;;  %v478_v32 = vld [vmem:[%s621_s1 + $0xd0] sm:$0xff]  }
   0xc   :  { %430 = vmatpush3.bf16.msra.mxu0 %v457_v9  ;;  %413 = vmatprep.mubr.msk.bf16.mxu1 %vm266_vm0, %v481_v26  ;;  %v479_v33 = vld [vmem:[%s622_s0 + $0x8] ss:$16 sps:$4 sm:$0xff]  }
   0xd   :  { %431 = vmatprep.subr.bf16.mxu0 %v459_v11  ;;  %82 = vperm.xlu0 %448, %v74_v30  }
   0xe   :  { %318 = vmatpush1.bf16.msra.mxu1 %v458_v10 }
   0xf   :  { %319 = vmatprep.subr.bf16.mxu1 %v486_v0 }
  0x10   :  { %432 = vmatpush3.bf16.msra.mxu0 %v460_v12 }
  0x11   :  { %433 = vmatprep.subr.bf16.mxu0 %v462_v13 }
  0x12   :  { %320 = vmatpush1.bf16.msra.mxu1 %v461_v14 }
  0x13   :  { %321 = vmatprep.subr.bf16.mxu1 %v486_v0 }
  0x14   :  { %434 = vmatpush3.bf16.msra.mxu0 %v463_v15 }
  0x15   :  { %435 = vmatprep.subr.bf16.mxu0 %v465_v16 }
  0x16   :  { %322 = vmatpush1.bf16.msra.mxu1 %v464_v17 }
  0x17   :  { %323 = vmatprep.subr.bf16.mxu1 %v486_v0 }
  0x18   :  { %436 = vmatpush3.bf16.msra.mxu0 %v466_v18 }
  0x19   :  { %437 = vmatprep.subr.bf16.mxu0 %v468_v19 }
  0x1a   :  { %324 = vmatpush1.bf16.msra.mxu1 %v467_v20 }
  0x1b   :  { %325 = vmatprep.subr.bf16.mxu1 %v486_v0 }
  0x1c   :  { %438 = vmatpush3.bf16.msra.mxu0 %v469_v21 }
  0x1d   :  { %439 = vmatprep.subr.bf16.mxu0 %v471_v23 }
  0x1e   :  { %326 = vmatpush1.bf16.msra.mxu1 %v470_v22 }
  0x1f   :  { %327 = vmatprep.subr.bf16.mxu1 %v486_v0 }
  0x20   :  { %440 = vmatpush3.bf16.msra.mxu0 %v472_v25 }
  0x22   :  { %328 = vmatpush1.bf16.msra.mxu1 %v473_v28 }
  0x23   :  { %303 = vmatmul.mubr.bf16.vlgmr.msra.gmra.mrb[0].mxu0 %v474_v29  ;;  %329 = vmatprep.subr.bf16.mxu1 %v486_v0 }
  0x26   :  { %330 = vmatpush1.bf16.msra.mxu1 %v477_v31 }
  0x27   :  { %331 = vmatprep.subr.bf16.mxu1 %v486_v0 }
  0x2a   :  { %332 = vmatpush1.bf16.msra.mxu1 %v478_v32 }
  0x2d   :  { %344 = vmatmul.mubr.bf16.vlgmr.msra.gmra.mrb[0].mxu1 %v479_v33 }
  0x87   :  { %v78_v36 = vpop.permute.xlu0 %77 }
  0x8c   :  { %v83_v41 = vpop.permute.xlu0 %82 }
  0xf6   :  { %v441_v34 = vpop.f32.mrb[0].mxu0 }
  0xf7   :  { %v442_v35 = vpop.f32.mrb[1].mxu0 }
  0xf8   :  { %v443_v37 = vadd.f32 %v442_v35, %v441_v34  ;;  %v444_v38 = vpop.f32.mrb[2].mxu0 }
  0xf9   :  { %v445_v39 = vpop.f32.mrb[3].mxu0 }
  0xfa   :  { %v446_v40 = vadd.f32 %v445_v39, %v444_v38  ;;  %v305_v42 = vadd.f32 %v443_v37, %v78_v36 }
  0xfc   :  { %v308_v44 = vadd.f32 %v446_v40, %v83_v41 }
 0x100   :  { %v345_v43 = vpop.f32.mrb[0].mxu1 }
 0x101   :  { %v346_v45 = vadd.f32 %v345_v43, %v305_v42  ;;  %v347_v46 = vpop.f32.mrb[1].mxu1 }
 0x102   :  { %v348_v47 = vpop.f32.mrb[2].mxu1 }
 0x103   :  { %v354_v48 = vmin.f32 %v346_v45, 0.0  ;;  %v349_v49 = vadd.f32 %v348_v47, %v308_v44  ;;  %v350_v50 = vpop.f32.mrb[3].mxu1  ;;  %vm352_vm1 = vcmp.gt.f32.partialorder %v346_v45, 0.0 }
 0x105   :  { %v356_v51 = vmul.f32 1.442695, %v354_v48  ;;  %v355_v52 = vmin.f32 %v349_v49, 0.0  ;;  %vm353_vm2 = vcmp.gt.f32.partialorder %v349_v49, 0.0 }
 0x107   :  { %482 = vpow2.f32 %v356_v51  ;;  %v358_v53 = vmul.f32 1.442695, %v355_v52 }
 0x109   :  { %484 = vpow2.f32 %v358_v53 }
 0x111   :  { %v483_v54 = vpop.eup %482 }
 0x112   :  { %v414_v55 = vadd.f32 -1.0, %v483_v54 }
 0x113   :  { %v485_v56 = vpop.eup %484 }
 0x114   :  { %v362_v57 = vmul.f32 1.6732632, %v414_v55  ;;  %v415_v58 = vadd.f32 -1.0, %v485_v56 }
 0x116   :  { %v364_v59 = vsel %vm352_vm1, %v346_v45, %v362_v57  ;;  %v363_v60 = vmul.f32 1.6732632, %v415_v58 }
 0x117   :  { %v366_v62 = vmul.f32 1.050701, %v364_v59 }
 0x118   :  { %v365_v61 = vsel %vm353_vm2, %v349_v49, %v363_v60 }
 0x119   :  { %v367_v63 = vmul.f32 1.050701, %v365_v61 }
 0x11b   :  { %v423_v0 = vpack.c.bf16 %v367_v63, %v366_v62 }
 0x11d   :  { %424 = vst [vmem:[%s624_s3] sm:$0xff] %v423_v0  }

// kernel: resnet_regression_forward.33
= control target key start
LH: loop header
LB: loop body
LE: loop exit
PB: predicated region body
PF: predicated region fallthrough
CT: control target
= control target key end

     0   :  { %v520_v1 = vmov 0   ;;  %s676_s1 = inlined_call_operand.vmem [shape: bf16[128,128], index: 1, kind: input, shape index: {}]   ;;  %s677_s0 = inlined_call_operand.vmem [shape: bf16[64,128], index: 0, kind: input, shape index: {}]   ;;  %s678_s2 = inlined_call_operand.vmem [shape: f32[64,1], index: 2, kind: input, shape index: {}]   ;;  %s679_s3 = inlined_call_operand.vmem [shape: bf16[64,128], index: 3, kind: input, shape index: {}]   ;;  %s680_s4 = inlined_call_operand.vmem [shape: bf16[64,128], index: 4, kind: output, shape index: {}]  }
   0x1   :  { %v492_v0 = vld [vmem:[%s676_s1] sm:$0xff]   ;;  %491 = vset.pattern.permute.xlu1 %v520_v1  ;;  %490 = vset.pattern.permute.xlu0 %v520_v1  ;;  %v493_v2 = vld [vmem:[%s676_s1 + $0x8] sm:$0xff]   ;;  %v494_v3 = vld [vmem:[%s676_s1 + $0x10] sm:$0xff]  }
   0x2   :  { %449 = vmatprep.subr.bf16.mxu0 %v492_v0  ;;  %473 = vmatprep.subr.bf16.mxu1 %v492_v0  ;;  %v495_v4 = vld [vmem:[%s676_s1 + $0x18] sm:$0xff]   ;;  %v500_v5 = vld [vmem:[%s677_s0] sm:$0xff]   ;;  %v501_v6 = vld [vmem:[%s677_s0 + $0x10] sm:$0xff]  }
   0x3   :  { %450 = vmatpush3.bf16.msra.mxu0 %v492_v0  ;;  %481 = vmatpush3.bf16.msra.mxu1 %v492_v0  ;;  %v496_v7 = vld [vmem:[%s676_s1 + $0x20] sm:$0xff]   ;;  %v44_v8 = vld [vmem:[%s678_s2 + $0x10] sm:$0xff]  ;;  %v45_v10 = vld [vmem:[%s678_s2 + $0x18] sm:$0xff] }
   0x4   :  { %451 = vmatprep.subr.bf16.mxu0 %v493_v2  ;;  %474 = vmatprep.subr.bf16.mxu1 %v493_v2  ;;  %v42_v9 = vld [vmem:[%s678_s2] sm:$0xff]  ;;  %v43_v11 = vld [vmem:[%s678_s2 + $0x8] sm:$0xff]  ;;  %v498_v15 = vld [vmem:[%s676_s1 + $0x30] sm:$0xff]  }
   0x5   :  { %465 = vmatprep.mubr.bf16.mxu0 %v500_v5  ;;  %469 = vmatprep.mubr.bf16.mxu1 %v501_v6  ;;  %v497_v12 = vld [vmem:[%s676_s1 + $0x28] sm:$0xff]   ;;  %v46_v14 = vld [vmem:[%s678_s2 + $0x20] sm:$0xff]  ;;  %v49_v16 = vld [vmem:[%s678_s2 + $0x38] sm:$0xff] }
   0x6   :  { %62 = vperm.xlu1 %491, %v44_v8   ;;  %52 = vperm.xlu0 %490, %v42_v9   ;;  %v47_v13 = vld [vmem:[%s678_s2 + $0x28] sm:$0xff]  ;;  %v48_v17 = vld [vmem:[%s678_s2 + $0x30] sm:$0xff]  ;;  %v499_v18 = vld [vmem:[%s676_s1 + $0x38] sm:$0xff]  }
   0x7   :  { %452 = vmatpush3.bf16.msra.mxu0 %v493_v2  ;;  %482 = vmatpush3.bf16.msra.mxu1 %v493_v2  ;;  %v502_v19 = vld [vmem:[%s677_s0 + $0x8] sm:$0xff]   ;;  %v503_v20 = vld [vmem:[%s677_s0 + $0x18] sm:$0xff]   ;;  %v639_v63 = vld [vmem:[%s679_s3] sm:$0xff]  }
   0x8   :  { %453 = vmatprep.subr.bf16.mxu0 %v494_v3  ;;  %475 = vmatprep.subr.bf16.mxu1 %v494_v3  ;;  %v431_v61 = vld [vmem:[%s679_s3 + $0x8] sm:$0xff]   ;;  %v433_v62 = vld [vmem:[%s679_s3 + $0x18] sm:$0xff]  }
   0x9   :  { %v409_v6 = vunpack.c.l.bf16 %v433_v62  ;;  %v402_v8 = vunpack.c.h.bf16 %v431_v61 }
   0xa   :  { %67 = vperm.xlu1 %491, %v45_v10   ;;  %57 = vperm.xlu0 %490, %v43_v11  }
   0xb   :  { %454 = vmatpush3.bf16.msra.mxu0 %v494_v3  ;;  %483 = vmatpush3.bf16.msra.mxu1 %v494_v3  ;;  %v401_v3 = vunpack.c.l.bf16 %v431_v61 }
   0xc   :  { %455 = vmatprep.subr.bf16.mxu0 %v495_v4  ;;  %476 = vmatprep.subr.bf16.mxu1 %v495_v4 }
   0xe   :  { %77 = vperm.xlu1 %491, %v47_v13   ;;  %72 = vperm.xlu0 %490, %v46_v14   ;;  %v398_v13 = vunpack.c.h.bf16 %v639_v63 }
   0xf   :  { %456 = vmatpush3.bf16.msra.mxu0 %v495_v4  ;;  %484 = vmatpush3.bf16.msra.mxu1 %v495_v4 }
  0x10   :  { %457 = vmatprep.subr.bf16.mxu0 %v496_v7  ;;  %477 = vmatprep.subr.bf16.mxu1 %v496_v7 }
  0x12   :  { %87 = vperm.xlu1 %491, %v49_v16   ;;  %82 = vperm.xlu0 %490, %v48_v17  }
  0x13   :  { %458 = vmatpush3.bf16.msra.mxu0 %v496_v7  ;;  %485 = vmatpush3.bf16.msra.mxu1 %v496_v7  ;;  %v397_v7 = vunpack.c.l.bf16 %v639_v63 }
  0x14   :  { %459 = vmatprep.subr.bf16.mxu0 %v497_v12  ;;  %478 = vmatprep.subr.bf16.mxu1 %v497_v12 }
  0x17   :  { %460 = vmatpush3.bf16.msra.mxu0 %v497_v12  ;;  %486 = vmatpush3.bf16.msra.mxu1 %v497_v12  ;;  %v410_v12 = vunpack.c.h.bf16 %v433_v62 }
  0x18   :  { %461 = vmatprep.subr.bf16.mxu0 %v498_v15  ;;  %479 = vmatprep.subr.bf16.mxu1 %v498_v15 }
  0x1b   :  { %462 = vmatpush3.bf16.msra.mxu0 %v498_v15  ;;  %487 = vmatpush3.bf16.msra.mxu1 %v498_v15 }
  0x1c   :  { %463 = vmatprep.subr.bf16.mxu0 %v499_v18  ;;  %480 = vmatprep.subr.bf16.mxu1 %v499_v18 }
  0x1f   :  { %464 = vmatpush3.bf16.msra.mxu0 %v499_v18  ;;  %488 = vmatpush3.bf16.msra.mxu1 %v499_v18 }
  0x22   :  { %466 = vmatmul.mubr.bf16.vlgmr.msra.gmra.mrb[0].mxu0 %v502_v19  ;;  %470 = vmatmul.mubr.bf16.vlgmr.msra.gmra.mrb[0].mxu1 %v503_v20 }
  0x85   :  { %v53_v21 = vpop.permute.xlu0 %52  ;;  %v63_v22 = vpop.permute.xlu1 %62 }
  0x89   :  { %v58_v23 = vpop.permute.xlu0 %57  ;;  %v68_v24 = vpop.permute.xlu1 %67 }
  0x8d   :  { %v73_v25 = vpop.permute.xlu0 %72  ;;  %v78_v26 = vpop.permute.xlu1 %77 }
  0x91   :  { %v83_v27 = vpop.permute.xlu0 %82  ;;  %v88_v42 = vpop.permute.xlu1 %87 }
  0xf5   :  { %v467_v28 = vpop.f32.mrb[0].mxu0  ;;  %v471_v29 = vpop.f32.mrb[0].mxu1 }
  0xf6   :  { %v606_v30 = vadd.f32 %v467_v28, %v63_v22  ;;  %v608_v31 = vadd.f32 %v471_v29, %v83_v27  ;;  %v196_v32 = vpop.f32.mrb[1].mxu0  ;;  %v212_v33 = vpop.f32.mrb[1].mxu1  ;;  %v432_v27 = vld [vmem:[%s679_s3 + $0x10] sm:$0xff]  }
  0xf7   :  { %v610_v34 = vadd.f32 %v196_v32, %v53_v21  ;;  %v612_v35 = vadd.f32 %v212_v33, %v73_v25  ;;  %v468_v36 = vpop.f32.mrb[2].mxu0  ;;  %v472_v37 = vpop.f32.mrb[2].mxu1 }
  0xf8   :  { %v237_v38 = vmin.f32 %v606_v30, 0.0  ;;  %v241_v39 = vmin.f32 %v608_v31, 0.0  ;;  %v199_v40 = vpop.f32.mrb[3].mxu0  ;;  %v215_v41 = vpop.f32.mrb[3].mxu1  ;;  %v618_v47 = vadd.f32 %v468_v36, %v68_v24  ;;  %v620_v48 = vadd.f32 %v472_v37, %v88_v42 }
  0xf9   :  { %v235_v43 = vmin.f32 %v610_v34, 0.0  ;;  %v239_v44 = vmin.f32 %v612_v35, 0.0  ;;  %v622_v51 = vadd.f32 %v199_v40, %v58_v23  ;;  %v624_v52 = vadd.f32 %v215_v41, %v78_v26 }
  0xfa   :  { %v247_v45 = vmul.f32 1.442695, %v237_v38  ;;  %v255_v46 = vmul.f32 1.442695, %v241_v39  ;;  %v238_v53 = vmin.f32 %v618_v47, 0.0  ;;  %v242_v54 = vmin.f32 %v620_v48, 0.0 }
  0xfb   :  { %v243_v49 = vmul.f32 1.442695, %v235_v43  ;;  %v251_v50 = vmul.f32 1.442695, %v239_v44  ;;  %v236_v55 = vmin.f32 %v622_v51, 0.0  ;;  %v240_v57 = vmin.f32 %v624_v52, 0.0 }
  0xfc   :  { %504 = vpow2.f32 %v247_v45  ;;  %v249_v56 = vmul.f32 1.442695, %v238_v53  ;;  %v257_v58 = vmul.f32 1.442695, %v242_v54  ;;  %vm229_vm0 = vcmp.gt.f32.partialorder %v606_v30, 0.0 }
  0xfd   :  { %506 = vpow2.f32 %v255_v46  ;;  %v245_v59 = vmul.f32 1.442695, %v236_v55  ;;  %v253_v60 = vmul.f32 1.442695, %v240_v57  ;;  %vm233_vm1 = vcmp.gt.f32.partialorder %v608_v31, 0.0 }
  0xfe   :  { %508 = vpow2.f32 %v243_v49  ;;  %vm227_vm2 = vcmp.gt.f32.partialorder %v610_v34, 0.0  ;;  %vm231_vm3 = vcmp.gt.f32.partialorder %v612_v35, 0.0  ;;  %vm230_vm4 = vcmp.gt.f32.partialorder %v618_v47, 0.0 }
  0xff   :  { %510 = vpow2.f32 %v251_v50  ;;  %vm234_vm5 = vcmp.gt.f32.partialorder %v620_v48, 0.0  ;;  %vm228_vm6 = vcmp.gt.f32.partialorder %v622_v51, 0.0  ;;  %v405_v41 = vunpack.c.l.bf16 %v432_v27 }
 0x100   :  { %512 = vpow2.f32 %v249_v56  ;;  %v406_v44 = vunpack.c.h.bf16 %v432_v27  ;;  %vm232_vm7 = vcmp.gt.f32.partialorder %v624_v52, 0.0 }
 0x101   :  { %514 = vpow2.f32 %v257_v58 }
 0x102   :  { %516 = vpow2.f32 %v245_v59 }
 0x103   :  { %518 = vpow2.f32 %v253_v60 }
 0x106   :  { %v505_v0 = vpop.eup %504 }
 0x107   :  { %v507_v1 = vpop.eup %506  ;;  %v373_v2 = vadd.f32 -1.0, %v505_v0 }
 0x108   :  { %v509_v4 = vpop.eup %508  ;;  %v377_v5 = vadd.f32 -1.0, %v507_v1 }
 0x109   :  { %v511_v9 = vpop.eup %510  ;;  %v269_v10 = vmul.f32 1.6732632, %v373_v2  ;;  %v371_v11 = vadd.f32 -1.0, %v509_v4 }
 0x10a   :  { %v513_v14 = vpop.eup %512  ;;  %v273_v15 = vmul.f32 1.6732632, %v377_v5  ;;  %v375_v16 = vadd.f32 -1.0, %v511_v9 }
 0x10b   :  { %v515_v17 = vpop.eup %514  ;;  %v277_v18 = vsel %vm229_vm0, %v606_v30, %v269_v10  ;;  %v267_v19 = vmul.f32 1.6732632, %v371_v11  ;;  %v374_v20 = vadd.f32 -1.0, %v513_v14 }
 0x10c   :  { %v517_v21 = vpop.eup %516  ;;  %v281_v22 = vsel %vm233_vm1, %v608_v31, %v273_v15  ;;  %v271_v23 = vmul.f32 1.6732632, %v375_v16  ;;  %v378_v24 = vadd.f32 -1.0, %v515_v17  ;;  %v285_v30 = vmul.f32 1.050701, %v277_v18 }
 0x10d   :  { %v519_v25 = vpop.eup %518  ;;  %v275_v26 = vsel %vm227_vm2, %v610_v34, %v267_v19  ;;  %v270_v28 = vmul.f32 1.6732632, %v374_v20  ;;  %v372_v29 = vadd.f32 -1.0, %v517_v21  ;;  %v289_v31 = vmul.f32 1.050701, %v281_v22 }
 0x10e   :  { %v274_v32 = vmul.f32 1.6732632, %v378_v24  ;;  %v283_v33 = vmul.f32 1.050701, %v275_v26  ;;  %v279_v34 = vsel %vm231_vm3, %v612_v35, %v271_v23  ;;  %v376_v40 = vadd.f32 -1.0, %v519_v25 }
 0x10f   :  { %v278_v36 = vsel %vm230_vm4, %v618_v47, %v270_v28  ;;  %v268_v37 = vmul.f32 1.6732632, %v372_v29  ;;  %v309_v45 = vadd.f32 %v401_v3, %v285_v30  ;;  %v313_v53 = vadd.f32 %v409_v6, %v289_v31 }
 0x110   :  { %v286_v38 = vmul.f32 1.050701, %v278_v36  ;;  %v282_v39 = vsel %vm234_vm5, %v620_v48, %v274_v32  ;;  %v272_v50 = vmul.f32 1.6732632, %v376_v40  ;;  %v287_v47 = vmul.f32 1.050701, %v279_v34 }
 0x111   :  { %v290_v42 = vmul.f32 1.050701, %v282_v39  ;;  %v276_v43 = vsel %vm228_vm6, %v622_v51, %v268_v37  ;;  %v307_v55 = vadd.f32 %v397_v7, %v283_v33 }
 0x112   :  { %v310_v46 = vadd.f32 %v402_v8, %v286_v38  ;;  %v284_v49 = vmul.f32 1.050701, %v276_v43  ;;  %v280_v48 = vsel %vm232_vm7, %v624_v52, %v272_v50  ;;  %v311_v59 = vadd.f32 %v405_v41, %v287_v47 }
 0x113   :  { %v314_v54 = vadd.f32 %v410_v12, %v290_v42  ;;  %v288_v58 = vmul.f32 1.050701, %v280_v48 }
 0x114   :  { %v419_v35 = vpack.c.bf16 %v310_v46, %v309_v45  ;;  %v308_v56 = vadd.f32 %v398_v13, %v284_v49 }
 0x115   :  { %v429_v57 = vpack.c.bf16 %v314_v54, %v313_v53  ;;  %v312_v60 = vadd.f32 %v406_v44, %v288_v58 }
 0x116   :  { %434 = vst [vmem:[%s680_s4 + $0x8] sm:$0xff] %v419_v35   ;;  %v414_v51 = vpack.c.bf16 %v308_v56, %v307_v55 }
 0x117   :  { %436 = vst [vmem:[%s680_s4 + $0x18] sm:$0xff] %v429_v57   ;;  %v424_v61 = vpack.c.bf16 %v312_v60, %v311_v59 }
 0x118   :  { %415 = vst [vmem:[%s680_s4] sm:$0xff] %v414_v51  }
 0x119   :  { %435 = vst [vmem:[%s680_s4 + $0x10] sm:$0xff] %v424_v61  }

// kernel: resnet_regression_forward.34
= control target key start
LH: loop header
LB: loop body
LE: loop exit
PB: predicated region body
PF: predicated region fallthrough
CT: control target
= control target key end

     0   :  { %v473_v1 = vmov 0   ;;  %vm126_vm0 = vcmask 523264   ;;  %s621_s1 = inlined_call_operand.vmem [shape: bf16[64,128], index: 1, kind: input, shape index: {}]   ;;  %s622_s0 = inlined_call_operand.vmem [shape: bf16[64,64], index: 0, kind: input, shape index: {}]   ;;  %s623_s2 = inlined_call_operand.vmem [shape: f32[64,1], index: 2, kind: input, shape index: {}]   ;;  %s624_s3 = inlined_call_operand.vmem [shape: bf16[64,128], index: 3, kind: input, shape index: {}]   ;;  %s625_s4 = inlined_call_operand.vmem [shape: bf16[64,128], index: 4, kind: output, shape index: {}]  }
   0x1   :  { %v449_v0 = vld [vmem:[%s621_s1] sm:$0xff]   ;;  %448 = vset.pattern.permute.xlu1 %v473_v1  ;;  %447 = vset.pattern.permute.xlu0 %v473_v1  ;;  %v450_v2 = vld [vmem:[%s621_s1 + $0x8] sm:$0xff]   ;;  %v451_v3 = vld [vmem:[%s621_s1 + $0x10] sm:$0xff]  }
   0x2   :  { %422 = vmatprep.subr.bf16.mxu0 %v449_v0  ;;  %438 = vmatprep.subr.bf16.mxu1 %v449_v0  ;;  %v453_v4 = vld [vmem:[%s622_s0] sm:$0xff]   ;;  %v454_v5 = vld [vmem:[%s622_s0 + $0x10] sm:$0xff]   ;;  %v452_v6 = vld [vmem:[%s621_s1 + $0x18] sm:$0xff]  }
   0x3   :  { %423 = vmatpush3.bf16.msra.mxu0 %v449_v0  ;;  %442 = vmatpush3.bf16.msra.mxu1 %v449_v0  ;;  %v36_v7 = vld [vmem:[%s623_s2 + $0x10] sm:$0xff]  ;;  %v34_v8 = vld [vmem:[%s623_s2] sm:$0xff]  ;;  %v37_v9 = vld [vmem:[%s623_s2 + $0x18] sm:$0xff] }
   0x4   :  { %424 = vmatprep.subr.bf16.mxu0 %v450_v2  ;;  %439 = vmatprep.subr.bf16.mxu1 %v450_v2  ;;  %v35_v10 = vld [vmem:[%s623_s2 + $0x8] sm:$0xff]  ;;  %v456_v12 = vld [vmem:[%s622_s0 + $0x18] sm:$0xff]   ;;  %v38_v14 = vld [vmem:[%s623_s2 + $0x20] sm:$0xff] }
   0x5   :  { %430 = vmatprep.mubr.msk.bf16.mxu0 %vm126_vm0, %v453_v4  ;;  %434 = vmatprep.mubr.msk.bf16.mxu1 %vm126_vm0, %v454_v5  ;;  %v455_v11 = vld [vmem:[%s622_s0 + $0x8] sm:$0xff]   ;;  %v41_v15 = vld [vmem:[%s623_s2 + $0x38] sm:$0xff]  ;;  %v40_v16 = vld [vmem:[%s623_s2 + $0x30] sm:$0xff] }
   0x6   :  { %54 = vperm.xlu1 %448, %v36_v7   ;;  %44 = vperm.xlu0 %447, %v34_v8   ;;  %v39_v13 = vld [vmem:[%s623_s2 + $0x28] sm:$0xff]  ;;  %v410_v58 = vld [vmem:[%s624_s3 + $0x18] sm:$0xff]   ;;  %v584_v59 = vld [vmem:[%s624_s3] sm:$0xff]  }
   0x7   :  { %425 = vmatpush3.bf16.msra.mxu0 %v450_v2  ;;  %443 = vmatpush3.bf16.msra.mxu1 %v450_v2  ;;  %v408_v57 = vld [vmem:[%s624_s3 + $0x8] sm:$0xff]   ;;  %v386_v2 = vunpack.c.l.bf16 %v410_v58  ;;  %v387_v8 = vunpack.c.h.bf16 %v410_v58 }
   0x8   :  { %426 = vmatprep.subr.bf16.mxu0 %v451_v3  ;;  %440 = vmatprep.subr.bf16.mxu1 %v451_v3  ;;  %v378_v63 = vunpack.c.l.bf16 %v408_v57  ;;  %v379_v4 = vunpack.c.h.bf16 %v408_v57 }
   0xa   :  { %59 = vperm.xlu1 %448, %v37_v9   ;;  %49 = vperm.xlu0 %447, %v35_v10   ;;  %v375_v9 = vunpack.c.h.bf16 %v584_v59 }
   0xb   :  { %427 = vmatpush3.bf16.msra.mxu0 %v451_v3  ;;  %444 = vmatpush3.bf16.msra.mxu1 %v451_v3  ;;  %v374_v3 = vunpack.c.l.bf16 %v584_v59 }
   0xc   :  { %428 = vmatprep.subr.bf16.mxu0 %v452_v6  ;;  %441 = vmatprep.subr.bf16.mxu1 %v452_v6 }
   0xe   :  { %69 = vperm.xlu1 %448, %v39_v13   ;;  %64 = vperm.xlu0 %447, %v38_v14  }
   0xf   :  { %429 = vmatpush3.bf16.msra.mxu0 %v452_v6  ;;  %445 = vmatpush3.bf16.msra.mxu1 %v452_v6 }
  0x12   :  { %431 = vmatmul.mubr.msk.bf16.vlgmr.msra.gmra.mrb[0].mxu0 %vm126_vm0, %v455_v11  ;;  %435 = vmatmul.mubr.msk.bf16.vlgmr.msra.gmra.mrb[0].mxu1 %vm126_vm0, %v456_v12 }
  0x13   :  { %79 = vperm.xlu1 %448, %v41_v15   ;;  %74 = vperm.xlu0 %447, %v40_v16  }
  0x85   :  { %v45_v17 = vpop.permute.xlu0 %44  ;;  %v55_v18 = vpop.permute.xlu1 %54 }
  0x89   :  { %v50_v19 = vpop.permute.xlu0 %49  ;;  %v60_v20 = vpop.permute.xlu1 %59 }
  0x8d   :  { %v65_v21 = vpop.permute.xlu0 %64  ;;  %v70_v22 = vpop.permute.xlu1 %69 }
  0x92   :  { %v75_v23 = vpop.permute.xlu0 %74  ;;  %v80_v38 = vpop.permute.xlu1 %79 }
  0xe5   :  { %v432_v24 = vpop.f32.mrb[0].mxu0  ;;  %v436_v25 = vpop.f32.mrb[0].mxu1 }
  0xe6   :  { %v551_v26 = vadd.f32 %v432_v24, %v55_v18  ;;  %v553_v27 = vadd.f32 %v436_v25, %v75_v23  ;;  %v173_v28 = vpop.f32.mrb[1].mxu0  ;;  %v189_v29 = vpop.f32.mrb[1].mxu1  ;;  %v409_v23 = vld [vmem:[%s624_s3 + $0x10] sm:$0xff]  }
  0xe7   :  { %v555_v30 = vadd.f32 %v173_v28, %v45_v17  ;;  %v557_v31 = vadd.f32 %v189_v29, %v65_v21  ;;  %v433_v32 = vpop.f32.mrb[2].mxu0  ;;  %v437_v33 = vpop.f32.mrb[2].mxu1 }
  0xe8   :  { %v214_v34 = vmin.f32 %v551_v26, 0.0  ;;  %v218_v35 = vmin.f32 %v553_v27, 0.0  ;;  %v176_v36 = vpop.f32.mrb[3].mxu0  ;;  %v192_v37 = vpop.f32.mrb[3].mxu1  ;;  %v563_v43 = vadd.f32 %v433_v32, %v60_v20  ;;  %v565_v44 = vadd.f32 %v437_v33, %v80_v38 }
  0xe9   :  { %v212_v39 = vmin.f32 %v555_v30, 0.0  ;;  %v216_v40 = vmin.f32 %v557_v31, 0.0  ;;  %v567_v47 = vadd.f32 %v176_v36, %v50_v19  ;;  %v569_v48 = vadd.f32 %v192_v37, %v70_v22 }
  0xea   :  { %v224_v41 = vmul.f32 1.442695, %v214_v34  ;;  %v232_v42 = vmul.f32 1.442695, %v218_v35  ;;  %v215_v49 = vmin.f32 %v563_v43, 0.0  ;;  %v219_v50 = vmin.f32 %v565_v44, 0.0 }
  0xeb   :  { %v220_v45 = vmul.f32 1.442695, %v212_v39  ;;  %v228_v46 = vmul.f32 1.442695, %v216_v40  ;;  %v213_v51 = vmin.f32 %v567_v47, 0.0  ;;  %v217_v53 = vmin.f32 %v569_v48, 0.0 }
  0xec   :  { %457 = vpow2.f32 %v224_v41  ;;  %v226_v52 = vmul.f32 1.442695, %v215_v49  ;;  %v234_v54 = vmul.f32 1.442695, %v219_v50  ;;  %vm206_vm1 = vcmp.gt.f32.partialorder %v551_v26, 0.0 }
  0xed   :  { %459 = vpow2.f32 %v232_v42  ;;  %v222_v55 = vmul.f32 1.442695, %v213_v51  ;;  %v230_v56 = vmul.f32 1.442695, %v217_v53  ;;  %vm210_vm2 = vcmp.gt.f32.partialorder %v553_v27, 0.0 }
  0xee   :  { %461 = vpow2.f32 %v220_v45  ;;  %vm204_vm3 = vcmp.gt.f32.partialorder %v555_v30, 0.0  ;;  %vm208_vm4 = vcmp.gt.f32.partialorder %v557_v31, 0.0  ;;  %vm207_vm5 = vcmp.gt.f32.partialorder %v563_v43, 0.0 }
  0xef   :  { %463 = vpow2.f32 %v228_v46  ;;  %vm211_vm6 = vcmp.gt.f32.partialorder %v565_v44, 0.0  ;;  %vm205_vm7 = vcmp.gt.f32.partialorder %v567_v47, 0.0  ;;  %v382_v37 = vunpack.c.l.bf16 %v409_v23 }
  0xf0   :  { %465 = vpow2.f32 %v226_v52  ;;  %v383_v40 = vunpack.c.h.bf16 %v409_v23  ;;  %vm209_vm8 = vcmp.gt.f32.partialorder %v569_v48, 0.0 }
  0xf1   :  { %467 = vpow2.f32 %v234_v54 }
  0xf2   :  { %469 = vpow2.f32 %v222_v55 }
  0xf3   :  { %471 = vpow2.f32 %v230_v56 }
  0xf6   :  { %v458_v60 = vpop.eup %457 }
  0xf7   :  { %v460_v61 = vpop.eup %459  ;;  %v350_v62 = vadd.f32 -1.0, %v458_v60 }
  0xf8   :  { %v462_v0 = vpop.eup %461  ;;  %v354_v1 = vadd.f32 -1.0, %v460_v61 }
  0xf9   :  { %v464_v5 = vpop.eup %463  ;;  %v246_v6 = vmul.f32 1.6732632, %v350_v62  ;;  %v348_v7 = vadd.f32 -1.0, %v462_v0 }
  0xfa   :  { %v466_v10 = vpop.eup %465  ;;  %v250_v11 = vmul.f32 1.6732632, %v354_v1  ;;  %v352_v12 = vadd.f32 -1.0, %v464_v5 }
  0xfb   :  { %v468_v13 = vpop.eup %467  ;;  %v254_v14 = vsel %vm206_vm1, %v551_v26, %v246_v6  ;;  %v244_v15 = vmul.f32 1.6732632, %v348_v7  ;;  %v351_v16 = vadd.f32 -1.0, %v466_v10 }
  0xfc   :  { %v470_v17 = vpop.eup %469  ;;  %v258_v18 = vsel %vm210_vm2, %v553_v27, %v250_v11  ;;  %v248_v19 = vmul.f32 1.6732632, %v352_v12  ;;  %v355_v20 = vadd.f32 -1.0, %v468_v13  ;;  %v262_v26 = vmul.f32 1.050701, %v254_v14 }
  0xfd   :  { %v472_v21 = vpop.eup %471  ;;  %v252_v22 = vsel %vm204_vm3, %v555_v30, %v244_v15  ;;  %v247_v24 = vmul.f32 1.6732632, %v351_v16  ;;  %v349_v25 = vadd.f32 -1.0, %v470_v17  ;;  %v266_v27 = vmul.f32 1.050701, %v258_v18 }
  0xfe   :  { %v251_v28 = vmul.f32 1.6732632, %v355_v20  ;;  %v260_v29 = vmul.f32 1.050701, %v252_v22  ;;  %v256_v30 = vsel %vm208_vm4, %v557_v31, %v248_v19  ;;  %v353_v36 = vadd.f32 -1.0, %v472_v21 }
  0xff   :  { %v255_v32 = vsel %vm207_vm5, %v563_v43, %v247_v24  ;;  %v245_v33 = vmul.f32 1.6732632, %v349_v25  ;;  %v286_v41 = vadd.f32 %v378_v63, %v262_v26  ;;  %v290_v49 = vadd.f32 %v386_v2, %v266_v27 }
 0x100   :  { %v263_v34 = vmul.f32 1.050701, %v255_v32  ;;  %v259_v35 = vsel %vm211_vm6, %v565_v44, %v251_v28  ;;  %v249_v46 = vmul.f32 1.6732632, %v353_v36  ;;  %v264_v43 = vmul.f32 1.050701, %v256_v30 }
 0x101   :  { %v267_v38 = vmul.f32 1.050701, %v259_v35  ;;  %v253_v39 = vsel %vm205_vm7, %v567_v47, %v245_v33  ;;  %v284_v51 = vadd.f32 %v374_v3, %v260_v29 }
 0x102   :  { %v287_v42 = vadd.f32 %v379_v4, %v263_v34  ;;  %v261_v45 = vmul.f32 1.050701, %v253_v39  ;;  %v257_v44 = vsel %vm209_vm8, %v569_v48, %v249_v46  ;;  %v288_v55 = vadd.f32 %v382_v37, %v264_v43 }
 0x103   :  { %v291_v50 = vadd.f32 %v387_v8, %v267_v38  ;;  %v265_v54 = vmul.f32 1.050701, %v257_v44 }
 0x104   :  { %v396_v31 = vpack.c.bf16 %v287_v42, %v286_v41  ;;  %v285_v52 = vadd.f32 %v375_v9, %v261_v45 }
 0x105   :  { %v406_v53 = vpack.c.bf16 %v291_v50, %v290_v49  ;;  %v289_v56 = vadd.f32 %v383_v40, %v265_v54 }
 0x106   :  { %411 = vst [vmem:[%s625_s4 + $0x8] sm:$0xff] %v396_v31   ;;  %v391_v47 = vpack.c.bf16 %v285_v52, %v284_v51 }
 0x107   :  { %413 = vst [vmem:[%s625_s4 + $0x18] sm:$0xff] %v406_v53   ;;  %v401_v57 = vpack.c.bf16 %v289_v56, %v288_v55 }
 0x108   :  { %392 = vst [vmem:[%s625_s4] sm:$0xff] %v391_v47  }
 0x109   :  { %412 = vst [vmem:[%s625_s4 + $0x10] sm:$0xff] %v401_v57  }

// kernel: resnet_regression_forward.36
= control target key start
LH: loop header
LB: loop body
LE: loop exit
PB: predicated region body
PF: predicated region fallthrough
CT: control target
= control target key end

     0   :  { %v608_v1 = vmov 0   ;;  %vm152_vm0 = vcmask 523264   ;;  %s904_s1 = inlined_call_operand.vmem [shape: bf16[64,512], index: 1, kind: input, shape index: {}]   ;;  %s905_s0 = inlined_call_operand.vmem [shape: bf16[32,64], index: 0, kind: input, shape index: {}]   ;;  %s906_s2 = inlined_call_operand.vmem [shape: f32[32,1], index: 2, kind: input, shape index: {}]   ;;  %s907_s3 = inlined_call_operand.vmem [shape: bf16[32,512], index: 3, kind: input, shape index: {}]   ;;  %s908_s4 = inlined_call_operand.vmem [shape: bf16[32,512], index: 4, kind: output, shape index: {}]  }
   0x1   :  { %v550_v0 = vld [vmem:[%s904_s1 + $0x4] ss:$16 sps:$4 sm:$0xff]   ;;  %191 = vmatprep.mubr.bf16.mxu0 %v608_v1  ;;  %244 = vmatprep.mubr.bf16.mxu1 %v608_v1  ;;  %v552_v2 = vld [vmem:[%s904_s1 + $0xc] ss:$16 sps:$4 sm:$0xff]   ;;  %v554_v3 = vld [vmem:[%s904_s1] ss:$16 sps:$4 sm:$0xff]  }
   0x2   :  { %548 = vset.pattern.permute.xlu0 %v608_v1  ;;  %549 = vset.pattern.permute.xlu1 %v608_v1  ;;  %v555_v4 = vld [vmem:[%s904_s1 + $0x8] ss:$16 sps:$4 sm:$0xff]   ;;  %v556_v5 = vld [vmem:[%s904_s1 + $0x24] ss:$16 sps:$4 sm:$0xff]   ;;  %v558_v6 = vld [vmem:[%s904_s1 + $0x2c] ss:$16 sps:$4 sm:$0xff]  }
   0x3   :  { %159 = vmatprep.subr.bf16.mxu0 %v550_v0  ;;  %212 = vmatprep.subr.bf16.mxu1 %v552_v2  ;;  %v560_v7 = vld [vmem:[%s904_s1 + $0x20] ss:$16 sps:$4 sm:$0xff]   ;;  %v561_v8 = vld [vmem:[%s904_s1 + $0x28] ss:$16 sps:$4 sm:$0xff]   ;;  %v562_v9 = vld [vmem:[%s904_s1 + $0x44] ss:$16 sps:$4 sm:$0xff]  }
   0x4   :  { %160 = vmatpush1.bf16.msra.mxu0 %v554_v3  ;;  %213 = vmatpush1.bf16.msra.mxu1 %v555_v4  ;;  %v564_v10 = vld [vmem:[%s904_s1 + $0x4c] ss:$16 sps:$4 sm:$0xff]   ;;  %v566_v11 = vld [vmem:[%s904_s1 + $0x40] ss:$16 sps:$4 sm:$0xff]   ;;  %v567_v12 = vld [vmem:[%s904_s1 + $0x48] ss:$16 sps:$4 sm:$0xff]  }
   0x5   :  { %161 = vmatprep.subr.bf16.mxu0 %v556_v5  ;;  %214 = vmatprep.subr.bf16.mxu1 %v558_v6  ;;  %v568_v13 = vld [vmem:[%s904_s1 + $0x64] ss:$16 sps:$4 sm:$0xff]   ;;  %v570_v14 = vld [vmem:[%s904_s1 + $0x6c] ss:$16 sps:$4 sm:$0xff]   ;;  %v572_v15 = vld [vmem:[%s904_s1 + $0x60] ss:$16 sps:$4 sm:$0xff]  }
   0x6   :  { %v573_v16 = vld [vmem:[%s904_s1 + $0x68] ss:$16 sps:$4 sm:$0xff]   ;;  %v38_v17 = vld [vmem:[%s906_s2] sm:$0xff]  ;;  %v40_v18 = vld [vmem:[%s906_s2 + $0x10] sm:$0xff] }
   0x7   :  { %44 = vperm.xlu0 %548, %v38_v17   ;;  %54 = vperm.xlu1 %549, %v40_v18   ;;  %v574_v19 = vld [vmem:[%s905_s0] sm:$0xff]   ;;  %v39_v20 = vld [vmem:[%s906_s2 + $0x8] sm:$0xff]  ;;  %v41_v21 = vld [vmem:[%s906_s2 + $0x18] sm:$0xff] }
   0x8   :  { %162 = vmatpush1.bf16.msra.mxu0 %v560_v7  ;;  %215 = vmatpush1.bf16.msra.mxu1 %v561_v8  ;;  %v575_v22 = vld [vmem:[%s905_s0 + $0x8] sm:$0xff]   ;;  %v703_v24 = vld [vmem:[%s907_s3] sm:$0xff]  ;;  %v717_v33 = vld [vmem:[%s907_s3 + $0x10] sm:$0xff] }
   0x9   :  { %163 = vmatprep.subr.bf16.mxu0 %v562_v9  ;;  %216 = vmatprep.subr.bf16.mxu1 %v564_v10  ;;  %v708_v28 = vld [vmem:[%s907_s3 + $0x8] sm:$0xff]  ;;  %v401_v34 = vunpack.c.l.bf16 %v703_v24  ;;  %v402_v42 = vunpack.c.h.bf16 %v703_v24  ;;  %v405_v48 = vunpack.c.l.bf16 %v717_v33  ;;  %v735_v49 = vld [vmem:[%s907_s3 + $0x18] sm:$0xff]  ;;  %v748_v58 = vld [vmem:[%s907_s3 + $0x20] sm:$0xff]  ;;  %v406_v62 = vunpack.c.h.bf16 %v717_v33 }
   0xa   :  { %v403_v41 = vunpack.c.l.bf16 %v708_v28  ;;  %v404_v47 = vunpack.c.h.bf16 %v708_v28  ;;  %v407_v60 = vunpack.c.l.bf16 %v735_v49  ;;  %v409_v6 = vunpack.c.l.bf16 %v748_v58  ;;  %v761_v7 = vld [vmem:[%s907_s3 + $0x28] sm:$0xff] }
   0xb   :  { %49 = vperm.xlu0 %548, %v39_v20   ;;  %59 = vperm.xlu1 %549, %v41_v21   ;;  %v411_v21 = vunpack.c.l.bf16 %v761_v7 }
   0xc   :  { %164 = vmatpush1.bf16.msra.mxu0 %v566_v11  ;;  %217 = vmatpush1.bf16.msra.mxu1 %v567_v12 }
   0xd   :  { %165 = vmatprep.subr.bf16.mxu0 %v568_v13  ;;  %218 = vmatprep.subr.bf16.mxu1 %v570_v14 }
  0x10   :  { %166 = vmatpush1.bf16.msra.mxu0 %v572_v15  ;;  %219 = vmatpush1.bf16.msra.mxu1 %v573_v16 }
  0x13   :  { %511 = vmatmul.mubr.msk.bf16.vlgmr.msra.gmra.mrb[0].mxu0 %vm152_vm0, %v574_v19  ;;  %513 = vmatmul.mubr.msk.bf16.vlgmr.msra.gmra.mrb[0].mxu1 %vm152_vm0, %v574_v19 }
  0x14   :  { %201 = vmatprep.mubr.bf16.mxu0 %v608_v1  ;;  %254 = vmatprep.mubr.bf16.mxu1 %v608_v1  ;;  %v408_v1 = vunpack.c.h.bf16 %v735_v49 }
  0x1b   :  { %512 = vmatmul.mubr.msk.bf16.gmra.mrb[4].mxu0 %vm152_vm0, %v575_v22  ;;  %514 = vmatmul.mubr.msk.bf16.gmra.mrb[4].mxu1 %vm152_vm0, %v575_v22 }
  0x86   :  { %v45_v23 = vpop.permute.xlu0 %44  ;;  %v55_v61 = vpop.permute.xlu1 %54 }
  0x8a   :  { %v50_v25 = vpop.permute.xlu0 %49 }
  0xe6   :  { %v193_v26 = vpop.f32.mrb[0].mxu0  ;;  %v246_v27 = vpop.f32.mrb[0].mxu1 }
  0xe7   :  { %v710_v29 = vadd.f32 %v193_v26, %v45_v23  ;;  %v712_v30 = vadd.f32 %v246_v27, %v45_v23  ;;  %v195_v31 = vpop.f32.mrb[1].mxu0  ;;  %v248_v32 = vpop.f32.mrb[1].mxu1  ;;  %v412_v26 = vunpack.c.h.bf16 %v761_v7 }
  0xe8   :  { %v720_v35 = vadd.f32 %v195_v31, %v45_v23  ;;  %v722_v36 = vadd.f32 %v248_v32, %v45_v23  ;;  %v197_v37 = vpop.f32.mrb[2].mxu0  ;;  %v250_v38 = vpop.f32.mrb[2].mxu1 }
  0xe9   :  { %v281_v39 = vmin.f32 %v710_v29, 0.0  ;;  %v283_v40 = vmin.f32 %v712_v30, 0.0  ;;  %v199_v43 = vpop.f32.mrb[3].mxu0  ;;  %v252_v44 = vpop.f32.mrb[3].mxu1  ;;  %v737_v52 = vadd.f32 %v197_v37, %v50_v25  ;;  %v739_v53 = vadd.f32 %v250_v38, %v50_v25 }
  0xea   :  { %v282_v45 = vmin.f32 %v720_v35, 0.0  ;;  %v284_v46 = vmin.f32 %v722_v36, 0.0  ;;  %v741_v56 = vadd.f32 %v199_v43, %v50_v25  ;;  %v743_v57 = vadd.f32 %v252_v44, %v50_v25  ;;  %v779_v27 = vpop.permute.xlu1 %59 }
  0xeb   :  { %v297_v50 = vmul.f32 1.442695, %v281_v39  ;;  %v301_v51 = vmul.f32 1.442695, %v283_v40  ;;  %v285_v59 = vmin.f32 %v737_v52, 0.0  ;;  %v287_v63 = vmin.f32 %v739_v53, 0.0 }
  0xec   :  { %v299_v54 = vmul.f32 1.442695, %v282_v45  ;;  %v303_v55 = vmul.f32 1.442695, %v284_v46  ;;  %v286_v0 = vmin.f32 %v741_v56, 0.0  ;;  %v288_v5 = vmin.f32 %v743_v57, 0.0 }
  0xed   :  { %576 = vpow2.f32 %v297_v50  ;;  %v305_v4 = vmul.f32 1.442695, %v285_v59  ;;  %v309_v10 = vmul.f32 1.442695, %v287_v63  ;;  %v410_v25 = vunpack.c.h.bf16 %v748_v58 }
  0xee   :  { %578 = vpow2.f32 %v301_v51  ;;  %v203_v2 = vpop.f32.mrb[4].mxu0  ;;  %v256_v3 = vpop.f32.mrb[4].mxu1  ;;  %v307_v11 = vmul.f32 1.442695, %v286_v0  ;;  %v311_v15 = vmul.f32 1.442695, %v288_v5 }
  0xef   :  { %580 = vpow2.f32 %v299_v54  ;;  %v205_v8 = vpop.f32.mrb[5].mxu0  ;;  %v258_v9 = vpop.f32.mrb[5].mxu1  ;;  %v763_v12 = vadd.f32 %v203_v2, %v55_v61  ;;  %v765_v16 = vadd.f32 %v256_v3, %v55_v61  ;;  %vm265_vm1 = vcmp.gt.f32.partialorder %v710_v29, 0.0 }
  0xf0   :  { %582 = vpow2.f32 %v303_v55  ;;  %v207_v13 = vpop.f32.mrb[6].mxu0  ;;  %v260_v14 = vpop.f32.mrb[6].mxu1  ;;  %v767_v17 = vadd.f32 %v205_v8, %v55_v61  ;;  %v773_v22 = vadd.f32 %v258_v9, %v55_v61  ;;  %vm267_vm2 = vcmp.gt.f32.partialorder %v712_v30, 0.0 }
  0xf1   :  { %584 = vpow2.f32 %v305_v4  ;;  %v209_v18 = vpop.f32.mrb[7].mxu0  ;;  %v769_v19 = vpop.f32.mrb[7].mxu1  ;;  %v289_v20 = vmin.f32 %v763_v12, 0.0  ;;  %v291_v23 = vmin.f32 %v765_v16, 0.0  ;;  %v784_v39 = vadd.f32 %v207_v13, %v779_v27 }
  0xf2   :  { %586 = vpow2.f32 %v309_v10  ;;  %v290_v32 = vmin.f32 %v767_v17, 0.0  ;;  %v292_v38 = vmin.f32 %v773_v22, 0.0  ;;  %v787_v40 = vadd.f32 %v260_v14, %v779_v27 }
  0xf3   :  { %588 = vpow2.f32 %v307_v11  ;;  %v313_v31 = vmul.f32 1.442695, %v289_v20  ;;  %v317_v37 = vmul.f32 1.442695, %v291_v23  ;;  %vm266_vm3 = vcmp.gt.f32.partialorder %v720_v35, 0.0 }
  0xf4   :  { %590 = vpow2.f32 %v311_v15  ;;  %v315_v43 = vmul.f32 1.442695, %v290_v32  ;;  %v319_v45 = vmul.f32 1.442695, %v292_v38  ;;  %v293_v46 = vmin.f32 %v784_v39, 0.0 }
  0xf5   :  { %592 = vpow2.f32 %v313_v31  ;;  %v793_v50 = vadd.f32 %v209_v18, %v779_v27  ;;  %vm268_vm4 = vcmp.gt.f32.partialorder %v722_v36, 0.0  ;;  %v295_v55 = vmin.f32 %v787_v40, 0.0 }
  0xf6   :  { %594 = vpow2.f32 %v317_v37  ;;  %vm269_vm5 = vcmp.gt.f32.partialorder %v737_v52, 0.0  ;;  %v321_v63 = vmul.f32 1.442695, %v293_v46  ;;  %vm271_vm6 = vcmp.gt.f32.partialorder %v739_v53, 0.0 }
  0xf7   :  { %v577_v44 = vpop.eup %576  ;;  %596 = vpow2.f32 %v315_v43  ;;  %vm270_vm7 = vcmp.gt.f32.partialorder %v741_v56, 0.0  ;;  %v325_v9 = vmul.f32 1.442695, %v295_v55  ;;  %v294_v10 = vmin.f32 %v793_v50, 0.0 }
  0xf8   :  { %v579_v51 = vpop.eup %578  ;;  %v515_v54 = vadd.f32 -1.0, %v577_v44  ;;  %598 = vpow2.f32 %v319_v45  ;;  %vm272_vm8 = vcmp.gt.f32.partialorder %v743_v57, 0.0  ;;  %vm273_vm9 = vcmp.gt.f32.partialorder %v763_v12, 0.0 }
  0xf9   :  { %v581_v59 = vpop.eup %580  ;;  %v517_v61 = vadd.f32 -1.0, %v579_v51  ;;  %600 = vpow2.f32 %v321_v63  ;;  %vm275_vm10 = vcmp.gt.f32.partialorder %v765_v16, 0.0  ;;  %vm274_vm11 = vcmp.gt.f32.partialorder %v767_v17, 0.0 }
  0xfa   :  { %v583_v0 = vpop.eup %582  ;;  %v345_v2 = vmul.f32 1.6732632, %v515_v54  ;;  %v516_v3 = vadd.f32 -1.0, %v581_v59  ;;  %602 = vpow2.f32 %v325_v9  ;;  %vm276_vm12 = vcmp.gt.f32.partialorder %v773_v22, 0.0 }
  0xfb   :  { %v585_v4 = vpop.eup %584  ;;  %v347_v5 = vmul.f32 1.6732632, %v517_v61  ;;  %v518_v8 = vadd.f32 -1.0, %v583_v0  ;;  %vm277_vm13 = vcmp.gt.f32.partialorder %v784_v39, 0.0  ;;  %vm279_vm14 = vcmp.gt.f32.partialorder %v787_v40, 0.0 }
  0xfc   :  { %v587_v11 = vpop.eup %586  ;;  %v361_v13 = vsel %vm265_vm1, %v710_v29, %v345_v2  ;;  %v346_v14 = vmul.f32 1.6732632, %v516_v3  ;;  %v519_v15 = vadd.f32 -1.0, %v585_v4  ;;  %vm278_vm15 = vcmp.gt.f32.partialorder %v793_v50, 0.0 }
  0xfd   :  { %v589_v18 = vpop.eup %588  ;;  %v377_v20 = vmul.f32 1.050701, %v361_v13  ;;  %v363_v23 = vsel %vm267_vm2, %v712_v30, %v347_v5  ;;  %v348_v31 = vmul.f32 1.6732632, %v518_v8  ;;  %v521_v32 = vadd.f32 -1.0, %v587_v11 }
  0xfe   :  { %v591_v37 = vpop.eup %590  ;;  %v379_v38 = vmul.f32 1.050701, %v363_v23  ;;  %v362_v29 = vsel %vm266_vm3, %v720_v35, %v346_v14  ;;  %v349_v43 = vmul.f32 1.6732632, %v519_v15  ;;  %v520_v44 = vadd.f32 -1.0, %v589_v18 }
  0xff   :  { %v417_v45 = vadd.f32 %v401_v34, %v377_v20  ;;  %v378_v46 = vmul.f32 1.050701, %v362_v29  ;;  %v364_v30 = vsel %vm268_vm4, %v722_v36, %v348_v31  ;;  %v351_v51 = vmul.f32 1.6732632, %v521_v32  ;;  %v593_v54 = vpop.eup %592 }
 0x100   :  { %v419_v55 = vadd.f32 %v403_v41, %v379_v38  ;;  %v380_v59 = vmul.f32 1.050701, %v364_v30  ;;  %v365_v35 = vsel %vm269_vm5, %v737_v52, %v349_v43  ;;  %v350_v61 = vmul.f32 1.6732632, %v520_v44  ;;  %v595_v34 = vpop.eup %594 }
 0x101   :  { %v418_v63 = vadd.f32 %v402_v42, %v378_v46  ;;  %v381_v36 = vmul.f32 1.050701, %v365_v35  ;;  %v367_v0 = vsel %vm271_vm6, %v739_v53, %v351_v51  ;;  %v522_v2 = vadd.f32 -1.0, %v591_v37  ;;  %v597_v3 = vpop.eup %596 }
 0x102   :  { %v420_v41 = vadd.f32 %v404_v47, %v380_v59  ;;  %v383_v4 = vmul.f32 1.050701, %v367_v0  ;;  %v366_v52 = vsel %vm270_vm7, %v741_v56, %v350_v61  ;;  %v523_v5 = vadd.f32 -1.0, %v593_v54  ;;  %v599_v8 = vpop.eup %598 }
 0x103   :  { %v539_v11 = vpack.c.bf16 %v418_v63, %v417_v45  ;;  %v421_v24 = vadd.f32 %v405_v48, %v381_v36  ;;  %v382_v42 = vmul.f32 1.050701, %v366_v52  ;;  %v352_v13 = vmul.f32 1.6732632, %v522_v2  ;;  %v601_v48 = vpop.eup %600 }
 0x104   :  { %v540_v14 = vpack.c.bf16 %v420_v41, %v419_v55  ;;  %v353_v53 = vmul.f32 1.6732632, %v523_v5  ;;  %v525_v15 = vadd.f32 -1.0, %v595_v34  ;;  %v524_v56 = vadd.f32 -1.0, %v597_v3  ;;  %v400_v34 = vld [vmem:[%s907_s3 + $0x38] sm:$0xff] }
 0x105   :  { %481 = vst [vmem:[%s908_s4] sm:$0xff] %v539_v11  ;;  %v422_v28 = vadd.f32 %v406_v62, %v382_v42  ;;  %v368_v47 = vsel %vm272_vm8, %v743_v57, %v352_v13  ;;  %v526_v18 = vadd.f32 -1.0, %v599_v8  ;;  %v423_v9 = vadd.f32 %v407_v60, %v383_v4 }
 0x106   :  { %482 = vst [vmem:[%s908_s4 + $0x8] sm:$0xff] %v540_v14  ;;  %v384_v20 = vmul.f32 1.050701, %v368_v47  ;;  %v369_v33 = vsel %vm273_vm9, %v763_v12, %v353_v53  ;;  %v355_v62 = vmul.f32 1.6732632, %v525_v15  ;;  %v263_v60 = vadd.f32 %v769_v19, %v779_v27 }
 0x107   :  { %v541_v23 = vpack.c.bf16 %v422_v28, %v421_v24  ;;  %v385_v31 = vmul.f32 1.050701, %v369_v33  ;;  %v354_v32 = vmul.f32 1.6732632, %v524_v56  ;;  %v356_v57 = vmul.f32 1.6732632, %v526_v18 }
 0x108   :  { %v424_v37 = vadd.f32 %v408_v1, %v384_v20  ;;  %v371_v38 = vsel %vm275_vm10, %v765_v16, %v355_v62  ;;  %v323_v27 = vmul.f32 1.442695, %v294_v10  ;;  %v296_v45 = vmin.f32 %v263_v60, 0.0  ;;  %v399_v10 = vld [vmem:[%s907_s3 + $0x30] sm:$0xff] }
 0x109   :  { %483 = vst [vmem:[%s908_s4 + $0x10] sm:$0xff] %v541_v23  ;;  %v387_v12 = vmul.f32 1.050701, %v371_v38  ;;  %v370_v29 = vsel %vm274_vm11, %v767_v17, %v354_v32  ;;  %v372_v49 = vsel %vm276_vm12, %v773_v22, %v356_v57  ;;  %v425_v16 = vadd.f32 %v409_v6, %v385_v31  ;;  %v603_v6 = vpop.eup %602 }
 0x10a   :  { %v542_v1 = vpack.c.bf16 %v424_v37, %v423_v9  ;;  %v386_v43 = vmul.f32 1.050701, %v370_v29  ;;  %v388_v44 = vmul.f32 1.050701, %v372_v49  ;;  %604 = vpow2.f32 %v323_v27 }
 0x10b   :  { %v427_v19 = vadd.f32 %v411_v21, %v387_v12  ;;  %v527_v51 = vadd.f32 -1.0, %v601_v48  ;;  %v327_v21 = vmul.f32 1.442695, %v296_v45  ;;  %v529_v58 = vadd.f32 -1.0, %v603_v6 }
 0x10c   :  { %484 = vst [vmem:[%s908_s4 + $0x18] sm:$0xff] %v542_v1  ;;  %v426_v17 = vadd.f32 %v410_v25, %v386_v43  ;;  %v428_v22 = vadd.f32 %v412_v26, %v388_v44  ;;  %v413_v35 = vunpack.c.l.bf16 %v399_v10  ;;  %v415_v3 = vunpack.c.l.bf16 %v400_v34 }
 0x10d   :  { %606 = vpow2.f32 %v327_v21  ;;  %v357_v25 = vmul.f32 1.6732632, %v527_v51  ;;  %v359_v7 = vmul.f32 1.6732632, %v529_v58  ;;  %vm280_vm0 = vcmp.gt.f32.partialorder %v263_v60, 0.0 }
 0x10e   :  { %v543_v46 = vpack.c.bf16 %v426_v17, %v425_v16  ;;  %v544_v30 = vpack.c.bf16 %v428_v22, %v427_v19  ;;  %v416_v8 = vunpack.c.h.bf16 %v400_v34 }
 0x10f   :  { %v373_v26 = vsel %vm277_vm13, %v784_v39, %v357_v25  ;;  %v375_v61 = vsel %vm279_vm14, %v787_v40, %v359_v7  ;;  %v414_v39 = vunpack.c.h.bf16 %v399_v10 }
 0x110   :  { %485 = vst [vmem:[%s908_s4 + $0x20] sm:$0xff] %v543_v46  ;;  %486 = vst [vmem:[%s908_s4 + $0x28] sm:$0xff] %v544_v30  ;;  %v389_v59 = vmul.f32 1.050701, %v373_v26  ;;  %v391_v2 = vmul.f32 1.050701, %v375_v61 }
 0x112   :  { %v429_v4 = vadd.f32 %v413_v35, %v389_v59  ;;  %v431_v24 = vadd.f32 %v415_v3, %v391_v2 }
 0x114   :  { %v605_v54 = vpop.eup %604 }
 0x115   :  { %v528_v55 = vadd.f32 -1.0, %v605_v54 }
 0x117   :  { %v607_v63 = vpop.eup %606  ;;  %v358_v36 = vmul.f32 1.6732632, %v528_v55 }
 0x118   :  { %v530_v0 = vadd.f32 -1.0, %v607_v63 }
 0x119   :  { %v374_v41 = vsel %vm278_vm15, %v793_v50, %v358_v36 }
 0x11a   :  { %v390_v52 = vmul.f32 1.050701, %v374_v41  ;;  %v360_v5 = vmul.f32 1.6732632, %v530_v0 }
 0x11c   :  { %v430_v40 = vadd.f32 %v414_v39, %v390_v52  ;;  %v376_v11 = vsel %vm280_vm0, %v263_v60, %v360_v5 }
 0x11d   :  { %v392_v42 = vmul.f32 1.050701, %v376_v11 }
 0x11e   :  { %v545_v13 = vpack.c.bf16 %v430_v40, %v429_v4 }
 0x11f   :  { %v432_v14 = vadd.f32 %v416_v8, %v392_v42 }
 0x120   :  { %487 = vst [vmem:[%s908_s4 + $0x30] sm:$0xff] %v545_v13 }
 0x121   :  { %v546_v53 = vpack.c.bf16 %v432_v14, %v431_v24 }
 0x123   :  { %488 = vst [vmem:[%s908_s4 + $0x38] sm:$0xff] %v546_v53 }

// kernel: resnet_regression_forward.37
= control target key start
LH: loop header
LB: loop body
LE: loop exit
PB: predicated region body
PF: predicated region fallthrough
CT: control target
= control target key end

     0   :  { %s990_s12 = smov 0   ;;  %s992_s13 = smov 0   ;;  %s1195_s0 = inlined_call_operand.vmem [shape: bf16[8,32], index: 0, kind: input, shape index: {}]   ;;  %s1196_s1 = inlined_call_operand.vmem [shape: bf16[32,4096], index: 1, kind: input, shape index: {}]   ;;  %s1197_s2 = inlined_call_operand.vmem [shape: f32[8,1], index: 2, kind: input, shape index: {}]   ;;  %s1198_s3 = inlined_call_operand.vmem [shape: f32[8,4096], index: 3, kind: output, shape index: {}]  }
   0x1   :  { %s994_s14 = smov 0  }
   0x2 LB: > { %s865_s15 = sadd.s32 4294967295, %s967_s14   ;;  %s1007_s16 = sadd.s32 1, %s967_s14   ;;  %s967_s14 = sphi %s994_s14, %s1201_s14   ;;  %s963_s13 = sphi %s992_s13, %s1200_s13   ;;  %s959_s12 = sphi %s990_s12, %s1199_s12  }
   0x3   : > { %s38_s17 = ssub.s32 %s967_s14, %s1007_s16  ;;  %s41_s18 = sadd.s32 1, %s963_s13 }
   0x4   : > { %p39_p0 = scmp.eq.s32.totalorder %s38_s17, 0  ;;  %p48_p1 = scmp.ne.s32.totalorder %s963_s13, %s959_s12 }
   0x5   : > { %p49_p2 = scmp.eq.s32.totalorder %s967_s14, 0  ;;  %p868_p4 = scmp.ge.s32.totalorder %s967_s14, 2 }
   0x6   : > { %s1016_s19 = scalar_select %p39_p0, %s963_s13, %s41_s18  }
   0x7   : > { %p50_p3 = por %p49_p2, %p48_p1  ;;  %127 = sbr.rel (%p868_p4) target bundleno = 34 (0x22), region = 24 }
   0xe   : > { %130 = sbr.rel (!%p50_p3) target bundleno = 34 (0x22), region = 28  ;;  %s132_s20 = sand.u32 (%p50_p3), 1, %s963_s13  }
   0xf   : > { %s918_s21 = sshll.u32 (%p50_p3), %s967_s14, 6  ;;  %s869_s22 = sshll.u32 (%p50_p3), %s132_s20, 8 }
  0x10   : > { %s1024_s25 = scalar_lea.vmem (%p50_p3), %s1196_s1, %s918_s21  ;;  %s1029_s26 = scalar_lea.vmem (%p50_p3), [#allocation2], %s869_s22 }
  0x11   : > { %v150_v0 = vld [vmem:[%s1024_s25] sm:$0xff] (%p50_p3)  ;;  %v152_v1 = vld [vmem:[%s1024_s25 + $0x8] sm:$0xff] (%p50_p3)  ;;  %v154_v2 = vld [vmem:[%s1024_s25 + $0x10] sm:$0xff] (%p50_p3) }
  0x12   : > { %151 = vst [vmem:[%s1029_s26] sm:$0xff] (%p50_p3), %v150_v0  ;;  %153 = vst [vmem:[%s1029_s26 + $0x8] sm:$0xff] (%p50_p3), %v152_v1  ;;  %v156_v3 = vld [vmem:[%s1024_s25 + $0x18] sm:$0xff] (%p50_p3)  ;;  %v158_v4 = vld [vmem:[%s1024_s25 + $0x20] sm:$0xff] (%p50_p3) }
  0x13   : > { %155 = vst [vmem:[%s1029_s26 + $0x10] sm:$0xff] (%p50_p3), %v154_v2  ;;  %v160_v5 = vld [vmem:[%s1024_s25 + $0x28] sm:$0xff] (%p50_p3)  ;;  %157 = vst [vmem:[%s1029_s26 + $0x18] sm:$0xff] (%p50_p3), %v156_v3  ;;  %v162_v6 = vld [vmem:[%s1024_s25 + $0x30] sm:$0xff] (%p50_p3) }
  0x14   : > { %159 = vst [vmem:[%s1029_s26 + $0x20] sm:$0xff] (%p50_p3), %v158_v4  ;;  %161 = vst [vmem:[%s1029_s26 + $0x28] sm:$0xff] (%p50_p3), %v160_v5  ;;  %v164_v7 = vld [vmem:[%s1024_s25 + $0x38] sm:$0xff] (%p50_p3)  ;;  %v166_v8 = vld [vmem:[%s1024_s25 + $0x80] sm:$0xff] (%p50_p3) }
  0x15   : > { %163 = vst [vmem:[%s1029_s26 + $0x30] sm:$0xff] %v162_v6  ;;  %165 = vst [vmem:[%s1029_s26 + $0x38] sm:$0xff] %v164_v7  ;;  %v168_v9 = vld [vmem:[%s1024_s25 + $0x88] sm:$0xff]  ;;  %v170_v10 = vld [vmem:[%s1024_s25 + $0x90] sm:$0xff] }
  0x16   : > { %167 = vst [vmem:[%s1029_s26 + $0x40] sm:$0xff] %v166_v8  ;;  %v172_v11 = vld [vmem:[%s1024_s25 + $0x98] sm:$0xff]  ;;  %169 = vst [vmem:[%s1029_s26 + $0x48] sm:$0xff] %v168_v9  ;;  %v174_v12 = vld [vmem:[%s1024_s25 + $0xa0] sm:$0xff] }
  0x17   : > { %171 = vst [vmem:[%s1029_s26 + $0x50] sm:$0xff] %v170_v10  ;;  %173 = vst [vmem:[%s1029_s26 + $0x58] sm:$0xff] %v172_v11  ;;  %v176_v13 = vld [vmem:[%s1024_s25 + $0xa8] sm:$0xff]  ;;  %v178_v14 = vld [vmem:[%s1024_s25 + $0xb0] sm:$0xff] }
  0x18   : > { %175 = vst [vmem:[%s1029_s26 + $0x60] sm:$0xff] %v174_v12  ;;  %177 = vst [vmem:[%s1029_s26 + $0x68] sm:$0xff] %v176_v13  ;;  %v180_v15 = vld [vmem:[%s1024_s25 + $0xb8] sm:$0xff]  ;;  %v182_v16 = vld [vmem:[%s1024_s25 + $0x100] sm:$0xff] }
  0x19   : > { %179 = vst [vmem:[%s1029_s26 + $0x70] sm:$0xff] %v178_v14  ;;  %v184_v17 = vld [vmem:[%s1024_s25 + $0x108] sm:$0xff]  ;;  %181 = vst [vmem:[%s1029_s26 + $0x78] sm:$0xff] %v180_v15  ;;  %v186_v18 = vld [vmem:[%s1024_s25 + $0x110] sm:$0xff] }
  0x1a   : > { %183 = vst [vmem:[%s1029_s26 + $0x80] sm:$0xff] %v182_v16  ;;  %185 = vst [vmem:[%s1029_s26 + $0x88] sm:$0xff] %v184_v17  ;;  %v188_v19 = vld [vmem:[%s1024_s25 + $0x118] sm:$0xff]  ;;  %v190_v20 = vld [vmem:[%s1024_s25 + $0x120] sm:$0xff] }
  0x1b   : > { %187 = vst [vmem:[%s1029_s26 + $0x90] sm:$0xff] %v186_v18  ;;  %189 = vst [vmem:[%s1029_s26 + $0x98] sm:$0xff] %v188_v19  ;;  %v192_v21 = vld [vmem:[%s1024_s25 + $0x128] sm:$0xff]  ;;  %v194_v22 = vld [vmem:[%s1024_s25 + $0x130] sm:$0xff] }
  0x1c   : > { %191 = vst [vmem:[%s1029_s26 + $0xa0] sm:$0xff] %v190_v20  ;;  %v196_v23 = vld [vmem:[%s1024_s25 + $0x138] sm:$0xff]  ;;  %193 = vst [vmem:[%s1029_s26 + $0xa8] sm:$0xff] %v192_v21  ;;  %v198_v24 = vld [vmem:[%s1024_s25 + $0x180] sm:$0xff] }
  0x1d   : > { %195 = vst [vmem:[%s1029_s26 + $0xb0] sm:$0xff] %v194_v22  ;;  %197 = vst [vmem:[%s1029_s26 + $0xb8] sm:$0xff] %v196_v23  ;;  %v200_v25 = vld [vmem:[%s1024_s25 + $0x188] sm:$0xff]  ;;  %v202_v26 = vld [vmem:[%s1024_s25 + $0x190] sm:$0xff] }
  0x1e   : > { %199 = vst [vmem:[%s1029_s26 + $0xc0] sm:$0xff] %v198_v24  ;;  %201 = vst [vmem:[%s1029_s26 + $0xc8] sm:$0xff] %v200_v25  ;;  %v204_v27 = vld [vmem:[%s1024_s25 + $0x198] sm:$0xff]  ;;  %v206_v28 = vld [vmem:[%s1024_s25 + $0x1a0] sm:$0xff] }
  0x1f   : > { %203 = vst [vmem:[%s1029_s26 + $0xd0] sm:$0xff] %v202_v26  ;;  %v208_v29 = vld [vmem:[%s1024_s25 + $0x1a8] sm:$0xff]  ;;  %205 = vst [vmem:[%s1029_s26 + $0xd8] sm:$0xff] %v204_v27  ;;  %v210_v30 = vld [vmem:[%s1024_s25 + $0x1b0] sm:$0xff] }
  0x20   : > { %207 = vst [vmem:[%s1029_s26 + $0xe0] sm:$0xff] %v206_v28  ;;  %209 = vst [vmem:[%s1029_s26 + $0xe8] sm:$0xff] %v208_v29  ;;  %v212_v31 = vld [vmem:[%s1024_s25 + $0x1b8] sm:$0xff] }
  0x21   : > { %211 = vst [vmem:[%s1029_s26 + $0xf0] sm:$0xff] %v210_v30  ;;  %213 = vst [vmem:[%s1029_s26 + $0xf8] sm:$0xff] %v212_v31 }
  0x22 PF: > { %p872_p5 = scmp.ge.s32.totalorder %s967_s14, 1  ;;  %p218_p6 = scmp.lt.s32.totalorder %s967_s14, 3 }
  0x24   : > { %p219_p7 = pnand %p872_p5, %p218_p6 }
  0x25   : > { %s225_s27 = sand.u32 (!%p219_p7), 1, %s959_s12   ;;  %v289_v32 = vld [vmem:[%s1197_s2] sm:$0xff] (!%p219_p7)  ;;  %v969_v33 = vmov (!%p219_p7), 0   ;;  %vm455_vm0 = vcmask (!%p219_p7), 261120   ;;  %s874_s7 = sshll.u32 (!%p219_p7), %s865_s15, 4 }
  0x26   : > { %222 = sbr.rel (%p219_p7) target bundleno = 292 (0x124), region = 51  ;;  %s873_s30 = sshll.u32 (!%p219_p7), %s225_s27, 8  ;;  %491 = vmatprep.mubr.bf16.mxu0 (!%p219_p7), %v969_v33  ;;  %532 = vmatprep.mubr.bf16.mxu1 (!%p219_p7), %v969_v33  ;;  %v1122_v60 = vld [vmem:[%s1195_s0] sm:$0xf] (!%p219_p7) }
  0x27   : > { %944 = vset.pattern.permute.xlu0 (!%p219_p7), %v969_v33  ;;  %s1101_s4 = scalar_lea.vmem (!%p219_p7), [#allocation2], %s873_s30  ;;  %p250_p8 = scmp.lt.s32.totalorder (!%p219_p7), %s874_s7, 31 }
  0x28   : > { %v257_v34 = vld [vmem:[%s1101_s4] sm:$0xff] (!%p219_p7)  ;;  %v258_v36 = vld [vmem:[%s1101_s4 + $0x8] sm:$0xff] (!%p219_p7)  ;;  %292 = vperm.xlu0 (!%p219_p7), %944, %v289_v32   ;;  %v259_v47 = vld [vmem:[%s1101_s4 + $0x10] sm:$0xff] (!%p219_p7) }
  0x29   : > { %v265_v35 = vld [vmem:[%s1101_s4 + $0x40] sm:$0xff] (!%p219_p7)  ;;  %v266_v38 = vld [vmem:[%s1101_s4 + $0x48] sm:$0xff] (!%p219_p7)  ;;  %v267_v49 = vld [vmem:[%s1101_s4 + $0x50] sm:$0xff] (!%p219_p7) }
  0x2a   : > { %v877_v37 = vcombine.high (!%p219_p7), %v257_v34, %v265_v35  ;;  %v876_v39 = vcombine.low (!%p219_p7), %v257_v34, %v265_v35  ;;  %v273_v40 = vld [vmem:[%s1101_s4 + $0x80] sm:$0xff] (!%p219_p7)  ;;  %v879_v42 = vcombine.high (!%p219_p7), %v258_v36, %v266_v38  ;;  %v878_v43 = vcombine.low (!%p219_p7), %v258_v36, %v266_v38  ;;  %v274_v45 = vld [vmem:[%s1101_s4 + $0x88] sm:$0xff] (!%p219_p7)  ;;  %v260_v50 = vld [vmem:[%s1101_s4 + $0x18] sm:$0xff] (!%p219_p7) }
  0x2b   : > { %v281_v41 = vld [vmem:[%s1101_s4 + $0xc0] sm:$0xff] (!%p219_p7)  ;;  %v282_v46 = vld [vmem:[%s1101_s4 + $0xc8] sm:$0xff] (!%p219_p7)  ;;  %v268_v51 = vld [vmem:[%s1101_s4 + $0x58] sm:$0xff] (!%p219_p7)  ;;  %v881_v54 = vcombine.high (!%p219_p7), %v259_v47, %v267_v49  ;;  %v880_v61 = vcombine.low (!%p219_p7), %v259_v47, %v267_v49 }
  0x2c   : > { %v893_v44 = vcombine.high (!%p219_p7), %v273_v40, %v281_v41  ;;  %459 = vmatprep.subr.bf16.mxu0 (!%p219_p7), %v877_v37  ;;  %v895_v48 = vcombine.high (!%p219_p7), %v274_v45, %v282_v46  ;;  %500 = vmatprep.subr.bf16.mxu1 (!%p219_p7), %v879_v42  ;;  %v892_v52 = vcombine.low (!%p219_p7), %v273_v40, %v281_v41  ;;  %v275_v56 = vld [vmem:[%s1101_s4 + $0x90] sm:$0xff] (!%p219_p7)  ;;  %v276_v58 = vld [vmem:[%s1101_s4 + $0x98] sm:$0xff] (!%p219_p7)  ;;  %v261_v1 = vld [vmem:[%s1101_s4 + $0x20] sm:$0xff] (!%p219_p7) }
  0x2d   : > { %460 = vmatpush1.bf16.msra.mxu0 %v876_v39  ;;  %501 = vmatpush1.bf16.msra.mxu1 %v878_v43  ;;  %v894_v53 = vcombine.low %v274_v45, %v282_v46  ;;  %v883_v55 = vcombine.high %v260_v50, %v268_v51  ;;  %v283_v57 = vld [vmem:[%s1101_s4 + $0xd0] sm:$0xff]  ;;  %v284_v59 = vld [vmem:[%s1101_s4 + $0xd8] sm:$0xff]  ;;  %v882_v62 = vcombine.low %v260_v50, %v268_v51  ;;  %v269_v2 = vld [vmem:[%s1101_s4 + $0x60] sm:$0xff]  ;;  %s1203_s7 = smov (!%p250_p8, %s874_s7), 31 }
  0x2e   : > { %461 = vmatprep.subr.bf16.mxu0 %v893_v44  ;;  %502 = vmatprep.subr.bf16.mxu1 %v895_v48  ;;  %v897_v63 = vcombine.high %v275_v56, %v283_v57  ;;  %v899_v0 = vcombine.high %v276_v58, %v284_v59  ;;  %v262_v3 = vld [vmem:[%s1101_s4 + $0x28] sm:$0xff]  ;;  %v896_v5 = vcombine.low %v275_v56, %v283_v57  ;;  %v277_v9 = vld [vmem:[%s1101_s4 + $0xa0] sm:$0xff]  ;;  %v263_v17 = vld [vmem:[%s1101_s4 + $0x30] sm:$0xff]  ;;  %s875_s8 = sshll.u32 %s1203_s7, 3 }
  0x2f   : > { %v270_v4 = vld [vmem:[%s1101_s4 + $0x68] sm:$0xff]  ;;  %v898_v6 = vcombine.low %v276_v58, %v284_v59  ;;  %v885_v7 = vcombine.high %v261_v1, %v269_v2  ;;  %v285_v10 = vld [vmem:[%s1101_s4 + $0xe0] sm:$0xff]  ;;  %v884_v13 = vcombine.low %v261_v1, %v269_v2  ;;  %v271_v18 = vld [vmem:[%s1101_s4 + $0x70] sm:$0xff]  ;;  %s1167_s11 = scalar_lea.vmem %s1198_s3, %s875_s8 }
  0x30   : > { %v887_v8 = vcombine.high %v262_v3, %v270_v4  ;;  %v278_v11 = vld [vmem:[%s1101_s4 + $0xa8] sm:$0xff]  ;;  %v886_v14 = vcombine.low %v262_v3, %v270_v4  ;;  %v901_v15 = vcombine.high %v277_v9, %v285_v10  ;;  %v264_v19 = vld [vmem:[%s1101_s4 + $0x38] sm:$0xff]  ;;  %v900_v21 = vcombine.low %v277_v9, %v285_v10  ;;  %v279_v25 = vld [vmem:[%s1101_s4 + $0xb0] sm:$0xff] }
  0x31   : > { %462 = vmatpush1.bf16.msra.mxu0 %v892_v52  ;;  %503 = vmatpush1.bf16.msra.mxu1 %v894_v53  ;;  %v286_v12 = vld [vmem:[%s1101_s4 + $0xe8] sm:$0xff]  ;;  %v272_v20 = vld [vmem:[%s1101_s4 + $0x78] sm:$0xff]  ;;  %v889_v23 = vcombine.high %v263_v17, %v271_v18  ;;  %v287_v26 = vld [vmem:[%s1101_s4 + $0xf0] sm:$0xff]  ;;  %v888_v29 = vcombine.low %v263_v17, %v271_v18 }
  0x32   : > { %541 = vmatprep.subr.bf16.mxu0 %v881_v54  ;;  %582 = vmatprep.subr.bf16.mxu1 %v883_v55  ;;  %v903_v16 = vcombine.high %v278_v11, %v286_v12  ;;  %v902_v22 = vcombine.low %v278_v11, %v286_v12  ;;  %v891_v24 = vcombine.high %v264_v19, %v272_v20  ;;  %v280_v27 = vld [vmem:[%s1101_s4 + $0xb8] sm:$0xff] }
  0x33   : > { %v288_v28 = vld [vmem:[%s1101_s4 + $0xf8] sm:$0xff]  ;;  %v890_v30 = vcombine.low %v264_v19, %v272_v20  ;;  %v905_v31 = vcombine.high %v279_v25, %v287_v26  ;;  %v904_v34 = vcombine.low %v279_v25, %v287_v26 }
  0x34   : > { %908 = vmatmul.mubr.msk.bf16.vlgmr.msra.gmra.mrb[0].mxu0 %vm455_vm0, %v1122_v60  ;;  %909 = vmatmul.mubr.msk.bf16.vlgmr.msra.gmra.mrb[0].mxu1 %vm455_vm0, %v1122_v60  ;;  %v907_v32 = vcombine.high %v280_v27, %v288_v28  ;;  %v906_v35 = vcombine.low %v280_v27, %v288_v28 }
  0x35   : > { %542 = vmatpush1.bf16.msra.mxu0 %v880_v61  ;;  %583 = vmatpush1.bf16.msra.mxu1 %v882_v62 }
  0x36   : > { %543 = vmatprep.subr.bf16.mxu0 %v897_v63  ;;  %584 = vmatprep.subr.bf16.mxu1 %v899_v0 }
  0x37   : > { %573 = vmatprep.mubr.bf16.mxu0 %v969_v33  ;;  %614 = vmatprep.mubr.bf16.mxu1 %v969_v33 }
  0x39   : > { %544 = vmatpush1.bf16.msra.mxu0 %v896_v5  ;;  %585 = vmatpush1.bf16.msra.mxu1 %v898_v6 }
  0x3a   : > { %623 = vmatprep.subr.bf16.mxu0 %v885_v7  ;;  %664 = vmatprep.subr.bf16.mxu1 %v887_v8 }
  0x3c   : > { %910 = vmatmul.mubr.msk.bf16.vlgmr.msra.gmra.mrb[4].mxu0 %vm455_vm0, %v1122_v60  ;;  %911 = vmatmul.mubr.msk.bf16.vlgmr.msra.gmra.mrb[4].mxu1 %vm455_vm0, %v1122_v60 }
  0x3d   : > { %624 = vmatpush1.bf16.msra.mxu0 %v884_v13  ;;  %665 = vmatpush1.bf16.msra.mxu1 %v886_v14 }
  0x3e   : > { %625 = vmatprep.subr.bf16.mxu0 %v901_v15  ;;  %666 = vmatprep.subr.bf16.mxu1 %v903_v16 }
  0x3f   : > { %655 = vmatprep.mubr.bf16.mxu0 %v969_v33  ;;  %696 = vmatprep.mubr.bf16.mxu1 %v969_v33 }
  0x41   : > { %626 = vmatpush1.bf16.msra.mxu0 %v900_v21  ;;  %667 = vmatpush1.bf16.msra.mxu1 %v902_v22 }
  0x42   : > { %705 = vmatprep.subr.bf16.mxu0 %v889_v23  ;;  %746 = vmatprep.subr.bf16.mxu1 %v891_v24 }
  0x44   : > { %912 = vmatmul.mubr.msk.bf16.vlgmr.msra.gmra.mrb[8].mxu0 %vm455_vm0, %v1122_v60  ;;  %913 = vmatmul.mubr.msk.bf16.vlgmr.msra.gmra.mrb[8].mxu1 %vm455_vm0, %v1122_v60 }
  0x45   : > { %706 = vmatpush1.bf16.msra.mxu0 %v888_v29  ;;  %747 = vmatpush1.bf16.msra.mxu1 %v890_v30 }
  0x46   : > { %707 = vmatprep.subr.bf16.mxu0 %v905_v31  ;;  %748 = vmatprep.subr.bf16.mxu1 %v907_v32 }
  0x47   : > { %737 = vmatprep.mubr.bf16.mxu0 %v969_v33  ;;  %778 = vmatprep.mubr.bf16.mxu1 %v969_v33 }
  0x49   : > { %708 = vmatpush1.bf16.msra.mxu0 %v904_v34  ;;  %749 = vmatpush1.bf16.msra.mxu1 %v906_v35 }
  0x4c   : > { %914 = vmatmul.mubr.msk.bf16.vlgmr.msra.gmra.mrb[12].mxu0 %vm455_vm0, %v1122_v60  ;;  %915 = vmatmul.mubr.msk.bf16.vlgmr.msra.gmra.mrb[12].mxu1 %vm455_vm0, %v1122_v60 }
  0xa7   : > { %v293_v36 = vpop.permute.xlu0 %292 }
 0x107   : > { %v493_v37 = vpop.f32.mrb[0].mxu0  ;;  %v534_v33 = vpop.f32.mrb[0].mxu1 }
 0x108   : > { %v494_v38 = vadd.f32 %v493_v37, %v293_v36  ;;  %v495_v39 = vpop.f32.mrb[1].mxu0  ;;  %v535_v40 = vadd.f32 %v534_v33, %v293_v36  ;;  %v536_v42 = vpop.f32.mrb[1].mxu1 }
 0x109   : > { %v496_v41 = vadd.f32 %v495_v39, %v293_v36  ;;  %v497_v43 = vpop.f32.mrb[2].mxu0  ;;  %v537_v44 = vadd.f32 %v536_v42, %v293_v36  ;;  %v538_v45 = vpop.f32.mrb[2].mxu1 }
 0x10a   : > { %787 = vst [vmem:[%s1167_s11] sm:$0xff] %v494_v38  ;;  %v498_v46 = vpop.f32.mrb[3].mxu0  ;;  %789 = vst [vmem:[%s1167_s11 + $0x10] sm:$0xff] %v535_v40  ;;  %v539_v47 = vpop.f32.mrb[3].mxu1 }
 0x10b   : > { %788 = vst [vmem:[%s1167_s11 + $0x8] sm:$0xff] %v496_v41  ;;  %790 = vst [vmem:[%s1167_s11 + $0x18] sm:$0xff] %v537_v44 }
 0x10f   : > { %v575_v48 = vpop.f32.mrb[4].mxu0  ;;  %v616_v50 = vpop.f32.mrb[4].mxu1 }
 0x110   : > { %v576_v49 = vadd.f32 %v575_v48, %v293_v36  ;;  %v577_v51 = vpop.f32.mrb[5].mxu0  ;;  %v617_v52 = vadd.f32 %v616_v50, %v293_v36  ;;  %v618_v54 = vpop.f32.mrb[5].mxu1 }
 0x111   : > { %v578_v53 = vadd.f32 %v577_v51, %v293_v36  ;;  %v579_v55 = vpop.f32.mrb[6].mxu0  ;;  %v619_v56 = vadd.f32 %v618_v54, %v293_v36  ;;  %v620_v57 = vpop.f32.mrb[6].mxu1 }
 0x112   : > { %791 = vst [vmem:[%s1167_s11 + $0x20] sm:$0xff] %v576_v49  ;;  %v580_v58 = vpop.f32.mrb[7].mxu0  ;;  %793 = vst [vmem:[%s1167_s11 + $0x30] sm:$0xff] %v617_v52  ;;  %v621_v59 = vpop.f32.mrb[7].mxu1 }
 0x113   : > { %792 = vst [vmem:[%s1167_s11 + $0x28] sm:$0xff] %v578_v53  ;;  %794 = vst [vmem:[%s1167_s11 + $0x38] sm:$0xff] %v619_v56 }
 0x117   : > { %v657_v60 = vpop.f32.mrb[8].mxu0  ;;  %v698_v62 = vpop.f32.mrb[8].mxu1 }
 0x118   : > { %v658_v61 = vadd.f32 %v657_v60, %v293_v36  ;;  %v659_v63 = vpop.f32.mrb[9].mxu0  ;;  %v699_v0 = vadd.f32 %v698_v62, %v293_v36  ;;  %v700_v2 = vpop.f32.mrb[9].mxu1 }
 0x119   : > { %v660_v1 = vadd.f32 %v659_v63, %v293_v36  ;;  %v661_v3 = vpop.f32.mrb[10].mxu0  ;;  %v701_v4 = vadd.f32 %v700_v2, %v293_v36  ;;  %v702_v5 = vpop.f32.mrb[10].mxu1 }
 0x11a   : > { %795 = vst [vmem:[%s1167_s11 + $0x40] sm:$0xff] %v658_v61  ;;  %v662_v6 = vpop.f32.mrb[11].mxu0  ;;  %797 = vst [vmem:[%s1167_s11 + $0x50] sm:$0xff] %v699_v0  ;;  %v703_v7 = vpop.f32.mrb[11].mxu1 }
 0x11b   : > { %796 = vst [vmem:[%s1167_s11 + $0x48] sm:$0xff] %v660_v1  ;;  %798 = vst [vmem:[%s1167_s11 + $0x58] sm:$0xff] %v701_v4 }
 0x11f   : > { %v739_v8 = vpop.f32.mrb[12].mxu0  ;;  %v780_v10 = vpop.f32.mrb[12].mxu1 }
 0x120   : > { %v740_v9 = vadd.f32 %v739_v8, %v293_v36  ;;  %v741_v11 = vpop.f32.mrb[13].mxu0  ;;  %v781_v12 = vadd.f32 %v780_v10, %v293_v36  ;;  %v782_v14 = vpop.f32.mrb[13].mxu1 }
 0x121   : > { %v742_v13 = vadd.f32 %v741_v11, %v293_v36  ;;  %v743_v15 = vpop.f32.mrb[14].mxu0  ;;  %v783_v16 = vadd.f32 %v782_v14, %v293_v36  ;;  %v784_v17 = vpop.f32.mrb[14].mxu1 }
 0x122   : > { %799 = vst [vmem:[%s1167_s11 + $0x60] sm:$0xff] %v740_v9  ;;  %v744_v18 = vpop.f32.mrb[15].mxu0  ;;  %801 = vst [vmem:[%s1167_s11 + $0x70] sm:$0xff] %v781_v12  ;;  %v785_v19 = vpop.f32.mrb[15].mxu1 }
 0x123   : > { %800 = vst [vmem:[%s1167_s11 + $0x68] sm:$0xff] %v742_v13  ;;  %802 = vst [vmem:[%s1167_s11 + $0x78] sm:$0xff] %v783_v16 }
 0x124 PF: > { %p10_p9 = scmp.ge.s32.totalorder %s1007_s16, 4   ;;  %s1199_s12 = smov %s963_s13 }
 0x125   : > { %s1200_s13 = smov %s1016_s19  ;;  %s1201_s14 = smov %s1007_s16 }
 0x126   :  { %12 = sbr.rel (!%p10_p9) target bundleno = 2 (0x2), region = 90 }

</bundles_post_ra>
